<compile_context>
chip_gen: v5e
topology: v5e:2x2
jax: 0.10.0
libtpu: 0.0.40
codegen_flags: <defaults>
</compile_context>

<pallas_src>
import functools

import jax
import jax.numpy as jnp
from jax.experimental import pallas as pl
from jax.experimental.pallas import tpu as pltpu


def _pick_tile_pixels(HW, N, Cin, Cout, out_bytes=2, budget_bytes=4 << 20):
    """Largest pixel tile TP dividing HW with TP % 128 == 0 (or TP == HW)
    whose per-step pipelined blocks (output + im2col + input) fit the budget.
    Prefers tilings with at least two total grid steps (v7x has 2 cores)."""
    def legal(tp):
        return HW % tp == 0 and (tp % 128 == 0 or tp == HW)

    def nbytes(tp):
        return tp * (5 * Cout * out_bytes + 3 * 9 * Cin * 2 + Cin * 2)

    cands = [tp for tp in range(HW, 0, -1) if legal(tp)]
    pref = [tp for tp in cands if N * (HW // tp) >= 2] or cands
    fitting = [tp for tp in pref if nbytes(tp) <= budget_bytes]
    return fitting[0] if fitting else pref[-1]


def _make_aspp_kernel(Cin, Cout, K9, TP, out_dtype):
    def kernel(x_ref, im_ref, w0_ref, wd_ref, bias_ref, o_ref):
        # x_ref   : (1, Cin, TP)        bf16   flattened NCHW input tile
        # im_ref  : (1, 3, 9*Cin, TP)   bf16   host-built im2col (one per rate)
        # w0_ref  : (Cout, Cin)         bf16   BN-scale-folded 1x1 weights
        # wd_ref  : (3, Cout, 9*Cin)    bf16   BN-scale-folded 3x3 weights
        # bias_ref: (1, 5*Cout, 1)      f32    folded BN bias (+ branch 4)
        # o_ref   : (1, 5*Cout, TP)     bf16   channel-major output tile

        def store(branch, acc):
            c0 = branch * Cout
            o_ref[0, c0:c0 + Cout, :] = jnp.maximum(
                acc + bias_ref[0, c0:c0 + Cout, :], 0.0).astype(out_dtype)

        # ---- branch 0: 1x1 conv ---------------------------------------------
        store(0, jnp.dot(w0_ref[...], x_ref[0],
                         preferred_element_type=jnp.float32))

        # ---- branches 1..3: dilated 3x3 conv == one K=9*Cin matmul each -----
        for b in range(3):
            store(b + 1, jnp.dot(wd_ref[b], im_ref[0, b],
                                 preferred_element_type=jnp.float32))

        # ---- branch 4: pool + 1x1 conv folded into the bias on the host -----
        # bilinear upsample (align_corners=True) of a 1x1 map == broadcast.
        b4 = jnp.maximum(bias_ref[0, 4 * Cout:5 * Cout, :],
                         0.0).astype(out_dtype)                 # (Cout, 1)
        o_ref[0, 4 * Cout:5 * Cout, :] = jnp.broadcast_to(b4, (Cout, TP))

    return kernel


def aspp_forward(x_nchw, params, rates, out_dtype=jnp.bfloat16):
    """Pallas implementation of _ASPP.forward (inference). NCHW in, NCHW out."""
    N, Cin, H, W = x_nchw.shape
    Cout = params["w0"].shape[0]
    rates = tuple(int(r) for r in rates)
    rmax = max(rates)
    HW = H * W
    K9 = 9 * Cin
    eps = 1e-5

    # ---- fold BatchNorm (inference): scale into weights, bias kept ----------
    scales, biases = [], []
    for b in range(5):
        s = params[f"bn{b}_gamma"] * jax.lax.rsqrt(params[f"bn{b}_var"] + eps)
        scales.append(s)
        biases.append(params[f"bn{b}_beta"] - params[f"bn{b}_mean"] * s)

    w0 = (params["w0"][:, :, 0, 0] * scales[0][:, None]).astype(jnp.bfloat16)
    # 3x3 weights -> (Cout, ky, kx, Cin) -> (Cout, 9*Cin): tap-major, ch-minor,
    # matching the host im2col ordering below.
    wd = jnp.stack([
        (jnp.transpose(params[f"w{b}"], (0, 2, 3, 1)).reshape(Cout, K9)
         * scales[b][:, None]).astype(jnp.bfloat16) for b in (1, 2, 3)])

    # ---- branch 4 folded into the bias (per-image constant), all in f32 -----
    pooled = jnp.mean(x_nchw.astype(jnp.float32), axis=(2, 3))      # (N, Cin)
    w4 = params["w4"][:, :, 0, 0] * scales[4][:, None]              # (Cout,Cin)
    bias4 = pooled @ w4.T + biases[4][None, :]                      # (N, Cout)
    bias = jnp.concatenate(
        [jnp.broadcast_to(jnp.concatenate(biases[:4])[None, :], (N, 4 * Cout)),
         bias4], axis=1).astype(jnp.float32)[..., None]             # (N,5C,1)

    # ---- bf16 activations, channel-major, flattened spatial -----------------
    xb = x_nchw.astype(jnp.bfloat16)
    x_flat = xb.reshape(N, Cin, HW)

    # host-side im2col for the dilated branches: (N, 3, 9*Cin, H*W)
    xp = jnp.pad(xb, ((0, 0), (0, 0), (rmax, rmax), (rmax, rmax)))

    def cols(r):
        taps = [xp[:, :, rmax + dy:rmax + dy + H, rmax + dx:rmax + dx + W]
                for dy in (-r, 0, r) for dx in (-r, 0, r)]
        return jnp.concatenate(taps, axis=1).reshape(N, K9, HW)

    im2col = jnp.stack([cols(r) for r in rates], axis=1)

    TP = _pick_tile_pixels(HW, N, Cin, Cout,
                           out_bytes=jnp.dtype(out_dtype).itemsize)
    kernel = _make_aspp_kernel(Cin, Cout, K9, TP, out_dtype)

    out_flat = pl.pallas_call(
        kernel,
        out_shape=jax.ShapeDtypeStruct((N, 5 * Cout, HW), out_dtype),
        grid_spec=pltpu.PrefetchScalarGridSpec(
            num_scalar_prefetch=0,
            grid=(N, HW // TP),
            in_specs=[
                pl.BlockSpec((1, Cin, TP), lambda n, t: (n, 0, t)),
                pl.BlockSpec((1, 3, K9, TP), lambda n, t: (n, 0, 0, t)),
                pl.BlockSpec((Cout, Cin), lambda n, t: (0, 0)),
                pl.BlockSpec((3, Cout, K9), lambda n, t: (0, 0, 0)),
                pl.BlockSpec((1, 5 * Cout, 1), lambda n, t: (n, 0, 0)),
            ],
            out_specs=pl.BlockSpec((1, 5 * Cout, TP), lambda n, t: (n, 0, t)),
        ),
        compiler_params=pltpu.CompilerParams(
            dimension_semantics=("parallel", "parallel"),
            vmem_limit_bytes=64 * 1024 * 1024),
    )(x_flat, im2col, w0, wd, bias)

    # contiguous reshape only -- no transpose pass.
    return out_flat.reshape(N, 5 * Cout, H, W)


# ----------------------------- reference (plain JAX, NCHW) -------------------
def aspp_reference(x, params, rates):
    eps = 1e-5

    def bn_relu(y, b):
        s = params[f"bn{b}_gamma"] / jnp.sqrt(params[f"bn{b}_var"] + eps)
        o = params[f"bn{b}_beta"] - params[f"bn{b}_mean"] * s
        return jnp.maximum(y * s[None, :, None, None] + o[None, :, None, None],
                           0.0)

    conv = functools.partial(
        jax.lax.conv_general_dilated,
        window_strides=(1, 1),
        dimension_numbers=("NCHW", "OIHW", "NCHW"),
        precision=jax.lax.Precision.HIGHEST)

    feats = [bn_relu(conv(x, params["w0"], padding=[(0, 0), (0, 0)]), 0)]
    for b, r in enumerate(rates, start=1):
        y = conv(x, params[f"w{b}"], padding=[(r, r), (r, r)],
                 rhs_dilation=(r, r))
        feats.append(bn_relu(y, b))
    pooled = jnp.mean(x, axis=(2, 3), keepdims=True)
    y4 = bn_relu(conv(pooled, params["w4"], padding=[(0, 0), (0, 0)]), 4)
    feats.append(
        jnp.broadcast_to(y4, (x.shape[0], y4.shape[1], x.shape[2],
                              x.shape[3])))
    return jnp.concatenate(feats, axis=1)


# ----------------------------- deterministic init ----------------------------
def init_params(key, in_channels, out_channels=512):
    params = {}
    keys = iter(jax.random.split(key, 32))

    def conv_w(k, shape):
        fan_in = shape[1] * shape[2] * shape[3]
        return (jax.random.normal(k, shape, jnp.float32) *
                (2.0 / fan_in) ** 0.5)

    params["w0"] = conv_w(next(keys), (out_channels, in_channels, 1, 1))
    params["w1"] = conv_w(next(keys), (out_channels, in_channels, 3, 3))
    params["w2"] = conv_w(next(keys), (out_channels, in_channels, 3, 3))
    params["w3"] = conv_w(next(keys), (out_channels, in_channels, 3, 3))
    params["w4"] = conv_w(next(keys), (out_channels, in_channels, 1, 1))
    for b in range(5):
        params[f"bn{b}_gamma"] = 0.5 + jax.random.uniform(
            next(keys), (out_channels,), jnp.float32)
        params[f"bn{b}_beta"] = 0.1 * jax.random.normal(
            next(keys), (out_channels,), jnp.float32)
        params[f"bn{b}_mean"] = 0.1 * jax.random.normal(
            next(keys), (out_channels,), jnp.float32)
        params[f"bn{b}_var"] = 0.5 + jax.random.uniform(
            next(keys), (out_channels,), jnp.float32)
    return params


if __name__ == "__main__":
    key = jax.random.PRNGKey(0)
    kx, kp = jax.random.split(key)

    N, Cin, H, W = 2, 16, 16, 16          # small synthetic input (NCHW)
    OUT_CHANNELS = 512                    # fixed inside _ASPP.__init__
    rates = (2, 4, 6)                     # atrous_rates

    x = jax.random.normal(kx, (N, Cin, H, W), jnp.float32)
    params = init_params(kp, Cin, OUT_CHANNELS)

    out = aspp_forward(x, params, rates)
    out = jax.block_until_ready(out)

    assert out.shape == (N, 5 * OUT_CHANNELS, H, W), out.shape

    ref = aspp_reference(x, params, rates)
    out_f32 = out.astype(jnp.float32)
    max_err = float(jnp.max(jnp.abs(out_f32 - ref)))
    ref_scale = float(jnp.max(jnp.abs(ref)))
    # bf16 operands + bf16 output vs a pure-f32 reference: expected error is a
    # small multiple of the bf16 ulp at the output magnitude; real bugs
    # (tap-offset / bias-fold mistakes) show up as O(1) discrepancies.
    assert max_err < 2e-2 * ref_scale + 5e-2, (max_err, ref_scale)

    print("KERNEL_OK")
</pallas_src>

<mosaic_0001>
module attributes {stable_mosaic.version = 11 : i64} {
  func.func @kernel(%arg0: i32, %arg1: i32, %arg2: memref<1x16x256xbf16, #tpu.memory_space<vmem>>, %arg3: memref<1x3x144x256xbf16, #tpu.memory_space<vmem>>, %arg4: memref<512x16xbf16, #tpu.memory_space<vmem>>, %arg5: memref<3x512x144xbf16, #tpu.memory_space<vmem>>, %arg6: memref<1x2560x1xf32, #tpu.memory_space<vmem>>, %arg7: memref<1x2560x256xbf16, #tpu.memory_space<vmem>>) attributes {dimension_semantics = [#tpu.dimension_semantics<parallel>, #tpu.dimension_semantics<parallel>], iteration_bounds = array<i64: 2, 1>, scalar_prefetch = 0 : i64, scratch_operands = 0 : i64, tpu.core_type = #tpu.core_type<tc>, window_params = [{transform_indices = @transform_0, window_bounds = array<i64: 1, 16, 256>}, {transform_indices = @transform_1, window_bounds = array<i64: 1, 3, 144, 256>}, {pipeline_mode = #tpu.pipeline_mode<synchronous>, transform_indices = @transform_2, window_bounds = array<i64: 512, 16>}, {pipeline_mode = #tpu.pipeline_mode<synchronous>, transform_indices = @transform_3, window_bounds = array<i64: 3, 512, 144>}, {transform_indices = @transform_4, window_bounds = array<i64: 1, 2560, 1>}, {transform_indices = @transform_5, window_bounds = array<i64: 1, 2560, 256>}]} {
    %c0 = arith.constant 0 : index
    %c0_0 = arith.constant 0 : index
    %0 = vector.load %arg4[%c0, %c0_0] : memref<512x16xbf16, #tpu.memory_space<vmem>>, vector<512x16xbf16>
    %c0_1 = arith.constant 0 : index
    %c0_2 = arith.constant 0 : index
    %c0_3 = arith.constant 0 : index
    %1 = vector.load %arg2[%c0_1, %c0_2, %c0_3] : memref<1x16x256xbf16, #tpu.memory_space<vmem>>, vector<1x16x256xbf16>
    %2 = vector.shape_cast %1 : vector<1x16x256xbf16> to vector<16x256xbf16>
    %cst = arith.constant dense<0.000000e+00> : vector<512x256xf32>
    %3 = tpu.matmul %0, %2, %cst {dimension_numbers = #tpu.dot_dimension_numbers<[1], [0], [0], [1], [0, 0, 1, 1], [], []>} : vector<512x16xbf16>, vector<16x256xbf16>, vector<512x256xf32> -> vector<512x256xf32>
    %c0_4 = arith.constant 0 : index
    %c0_5 = arith.constant 0 : index
    %c0_6 = arith.constant 0 : index
    %4 = vector.load %arg6[%c0_4, %c0_5, %c0_6] : memref<1x2560x1xf32, #tpu.memory_space<vmem>>, vector<1x512x1xf32>
    %5 = vector.shape_cast %4 : vector<1x512x1xf32> to vector<512x1xf32>
    %6 = vector.broadcast %5 : vector<512x1xf32> to vector<512x256xf32>
    %7 = arith.addf %3, %6 : vector<512x256xf32>
    %cst_7 = arith.constant 0.000000e+00 : f32
    %8 = vector.broadcast %cst_7 : f32 to vector<512x256xf32>
    %9 = arith.maximumf %7, %8 : vector<512x256xf32>
    %10 = arith.truncf %9 : vector<512x256xf32> to vector<512x256xbf16>
    %c0_8 = arith.constant 0 : index
    %c0_9 = arith.constant 0 : index
    %c0_10 = arith.constant 0 : index
    %11 = vector.load %arg7[%c0_8, %c0_9, %c0_10] : memref<1x2560x256xbf16, #tpu.memory_space<vmem>>, vector<1x512x256xbf16>
    %12 = vector.shape_cast %11 : vector<1x512x256xbf16> to vector<512x256xbf16>
    %13 = vector.shape_cast %10 : vector<512x256xbf16> to vector<1x512x256xbf16>
    tpu.vector_store %arg7[%c0_8, %c0_9, %c0_10], %13 {strides = array<i32>} : memref<1x2560x256xbf16, #tpu.memory_space<vmem>>, vector<1x512x256xbf16>,
    %c0_11 = arith.constant 0 : index
    %c0_12 = arith.constant 0 : index
    %c0_13 = arith.constant 0 : index
    %14 = vector.load %arg5[%c0_11, %c0_12, %c0_13] : memref<3x512x144xbf16, #tpu.memory_space<vmem>>, vector<1x512x144xbf16>
    %15 = vector.shape_cast %14 : vector<1x512x144xbf16> to vector<512x144xbf16>
    %c0_14 = arith.constant 0 : index
    %c0_15 = arith.constant 0 : index
    %c0_16 = arith.constant 0 : index
    %c0_17 = arith.constant 0 : index
    %16 = vector.load %arg3[%c0_14, %c0_15, %c0_16, %c0_17] : memref<1x3x144x256xbf16, #tpu.memory_space<vmem>>, vector<1x1x144x256xbf16>
    %17 = vector.shape_cast %16 : vector<1x1x144x256xbf16> to vector<144x256xbf16>
    %cst_18 = arith.constant dense<0.000000e+00> : vector<512x256xf32>
    %18 = tpu.matmul %15, %17, %cst_18 {dimension_numbers = #tpu.dot_dimension_numbers<[1], [0], [0], [1], [0, 0, 1, 1], [], []>} : vector<512x144xbf16>, vector<144x256xbf16>, vector<512x256xf32> -> vector<512x256xf32>
    %c0_19 = arith.constant 0 : index
    %c512 = arith.constant 512 : index
    %c0_20 = arith.constant 0 : index
    %19 = vector.load %arg6[%c0_19, %c512, %c0_20] : memref<1x2560x1xf32, #tpu.memory_space<vmem>>, vector<1x512x1xf32>
    %20 = vector.shape_cast %19 : vector<1x512x1xf32> to vector<512x1xf32>
    %21 = vector.broadcast %20 : vector<512x1xf32> to vector<512x256xf32>
    %22 = arith.addf %18, %21 : vector<512x256xf32>
    %cst_21 = arith.constant 0.000000e+00 : f32
    %23 = vector.broadcast %cst_21 : f32 to vector<512x256xf32>
    %24 = arith.maximumf %22, %23 : vector<512x256xf32>
    %25 = arith.truncf %24 : vector<512x256xf32> to vector<512x256xbf16>
    %c0_22 = arith.constant 0 : index
    %c512_23 = arith.constant 512 : index
    %c0_24 = arith.constant 0 : index
    %26 = vector.load %arg7[%c0_22, %c512_23, %c0_24] : memref<1x2560x256xbf16, #tpu.memory_space<vmem>>, vector<1x512x256xbf16>
    %27 = vector.shape_cast %26 : vector<1x512x256xbf16> to vector<512x256xbf16>
    %28 = vector.shape_cast %25 : vector<512x256xbf16> to vector<1x512x256xbf16>
    tpu.vector_store %arg7[%c0_22, %c512_23, %c0_24], %28 {strides = array<i32>} : memref<1x2560x256xbf16, #tpu.memory_space<vmem>>, vector<1x512x256xbf16>,
    %c1 = arith.constant 1 : index
    %c0_25 = arith.constant 0 : index
    %c0_26 = arith.constant 0 : index
    %29 = vector.load %arg5[%c1, %c0_25, %c0_26] : memref<3x512x144xbf16, #tpu.memory_space<vmem>>, vector<1x512x144xbf16>
    %30 = vector.shape_cast %29 : vector<1x512x144xbf16> to vector<512x144xbf16>
    %c0_27 = arith.constant 0 : index
    %c1_28 = arith.constant 1 : index
    %c0_29 = arith.constant 0 : index
    %c0_30 = arith.constant 0 : index
    %31 = vector.load %arg3[%c0_27, %c1_28, %c0_29, %c0_30] : memref<1x3x144x256xbf16, #tpu.memory_space<vmem>>, vector<1x1x144x256xbf16>
    %32 = vector.shape_cast %31 : vector<1x1x144x256xbf16> to vector<144x256xbf16>
    %cst_31 = arith.constant dense<0.000000e+00> : vector<512x256xf32>
    %33 = tpu.matmul %30, %32, %cst_31 {dimension_numbers = #tpu.dot_dimension_numbers<[1], [0], [0], [1], [0, 0, 1, 1], [], []>} : vector<512x144xbf16>, vector<144x256xbf16>, vector<512x256xf32> -> vector<512x256xf32>
    %c0_32 = arith.constant 0 : index
    %c1024 = arith.constant 1024 : index
    %c0_33 = arith.constant 0 : index
    %34 = vector.load %arg6[%c0_32, %c1024, %c0_33] : memref<1x2560x1xf32, #tpu.memory_space<vmem>>, vector<1x512x1xf32>
    %35 = vector.shape_cast %34 : vector<1x512x1xf32> to vector<512x1xf32>
    %36 = vector.broadcast %35 : vector<512x1xf32> to vector<512x256xf32>
    %37 = arith.addf %33, %36 : vector<512x256xf32>
    %cst_34 = arith.constant 0.000000e+00 : f32
    %38 = vector.broadcast %cst_34 : f32 to vector<512x256xf32>
    %39 = arith.maximumf %37, %38 : vector<512x256xf32>
    %40 = arith.truncf %39 : vector<512x256xf32> to vector<512x256xbf16>
    %c0_35 = arith.constant 0 : index
    %c1024_36 = arith.constant 1024 : index
    %c0_37 = arith.constant 0 : index
    %41 = vector.load %arg7[%c0_35, %c1024_36, %c0_37] : memref<1x2560x256xbf16, #tpu.memory_space<vmem>>, vector<1x512x256xbf16>
    %42 = vector.shape_cast %41 : vector<1x512x256xbf16> to vector<512x256xbf16>
    %43 = vector.shape_cast %40 : vector<512x256xbf16> to vector<1x512x256xbf16>
    tpu.vector_store %arg7[%c0_35, %c1024_36, %c0_37], %43 {strides = array<i32>} : memref<1x2560x256xbf16, #tpu.memory_space<vmem>>, vector<1x512x256xbf16>,
    %c2 = arith.constant 2 : index
    %c0_38 = arith.constant 0 : index
    %c0_39 = arith.constant 0 : index
    %44 = vector.load %arg5[%c2, %c0_38, %c0_39] : memref<3x512x144xbf16, #tpu.memory_space<vmem>>, vector<1x512x144xbf16>
    %45 = vector.shape_cast %44 : vector<1x512x144xbf16> to vector<512x144xbf16>
    %c0_40 = arith.constant 0 : index
    %c2_41 = arith.constant 2 : index
    %c0_42 = arith.constant 0 : index
    %c0_43 = arith.constant 0 : index
    %46 = vector.load %arg3[%c0_40, %c2_41, %c0_42, %c0_43] : memref<1x3x144x256xbf16, #tpu.memory_space<vmem>>, vector<1x1x144x256xbf16>
    %47 = vector.shape_cast %46 : vector<1x1x144x256xbf16> to vector<144x256xbf16>
    %cst_44 = arith.constant dense<0.000000e+00> : vector<512x256xf32>
    %48 = tpu.matmul %45, %47, %cst_44 {dimension_numbers = #tpu.dot_dimension_numbers<[1], [0], [0], [1], [0, 0, 1, 1], [], []>} : vector<512x144xbf16>, vector<144x256xbf16>, vector<512x256xf32> -> vector<512x256xf32>
    %c0_45 = arith.constant 0 : index
    %c1536 = arith.constant 1536 : index
    %c0_46 = arith.constant 0 : index
    %49 = vector.load %arg6[%c0_45, %c1536, %c0_46] : memref<1x2560x1xf32, #tpu.memory_space<vmem>>, vector<1x512x1xf32>
    %50 = vector.shape_cast %49 : vector<1x512x1xf32> to vector<512x1xf32>
    %51 = vector.broadcast %50 : vector<512x1xf32> to vector<512x256xf32>
    %52 = arith.addf %48, %51 : vector<512x256xf32>
    %cst_47 = arith.constant 0.000000e+00 : f32
    %53 = vector.broadcast %cst_47 : f32 to vector<512x256xf32>
    %54 = arith.maximumf %52, %53 : vector<512x256xf32>
    %55 = arith.truncf %54 : vector<512x256xf32> to vector<512x256xbf16>
    %c0_48 = arith.constant 0 : index
    %c1536_49 = arith.constant 1536 : index
    %c0_50 = arith.constant 0 : index
    %56 = vector.load %arg7[%c0_48, %c1536_49, %c0_50] : memref<1x2560x256xbf16, #tpu.memory_space<vmem>>, vector<1x512x256xbf16>
    %57 = vector.shape_cast %56 : vector<1x512x256xbf16> to vector<512x256xbf16>
    %58 = vector.shape_cast %55 : vector<512x256xbf16> to vector<1x512x256xbf16>
    tpu.vector_store %arg7[%c0_48, %c1536_49, %c0_50], %58 {strides = array<i32>} : memref<1x2560x256xbf16, #tpu.memory_space<vmem>>, vector<1x512x256xbf16>,
    %c0_51 = arith.constant 0 : index
    %c2048 = arith.constant 2048 : index
    %c0_52 = arith.constant 0 : index
    %59 = vector.load %arg6[%c0_51, %c2048, %c0_52] : memref<1x2560x1xf32, #tpu.memory_space<vmem>>, vector<1x512x1xf32>
    %60 = vector.shape_cast %59 : vector<1x512x1xf32> to vector<512x1xf32>
    %cst_53 = arith.constant 0.000000e+00 : f32
    %61 = vector.broadcast %cst_53 : f32 to vector<512x1xf32>
    %62 = arith.maximumf %60, %61 : vector<512x1xf32>
    %63 = arith.truncf %62 : vector<512x1xf32> to vector<512x1xbf16>
    %64 = vector.shape_cast %63 : vector<512x1xbf16> to vector<512x1xbf16>
    %65 = vector.broadcast %64 : vector<512x1xbf16> to vector<512x256xbf16>
    %c0_54 = arith.constant 0 : index
    %c2048_55 = arith.constant 2048 : index
    %c0_56 = arith.constant 0 : index
    %66 = vector.load %arg7[%c0_54, %c2048_55, %c0_56] : memref<1x2560x256xbf16, #tpu.memory_space<vmem>>, vector<1x512x256xbf16>
    %67 = vector.shape_cast %66 : vector<1x512x256xbf16> to vector<512x256xbf16>
    %68 = vector.shape_cast %65 : vector<512x256xbf16> to vector<1x512x256xbf16>
    tpu.vector_store %arg7[%c0_54, %c2048_55, %c0_56], %68 {strides = array<i32>} : memref<1x2560x256xbf16, #tpu.memory_space<vmem>>, vector<1x512x256xbf16>,
    return
  }
  func.func @transform_0(%arg0: i32, %arg1: i32) -> (i32, i32, i32) {
    %c0_i32 = arith.constant 0 : i32
    %c0_i32_0 = arith.constant 0 : i32
    return %arg0, %c0_i32, %arg1 : i32, i32, i32
  }
  func.func @transform_1(%arg0: i32, %arg1: i32) -> (i32, i32, i32, i32) {
    %c0_i32 = arith.constant 0 : i32
    %c0_i32_0 = arith.constant 0 : i32
    %c0_i32_1 = arith.constant 0 : i32
    return %arg0, %c0_i32, %c0_i32_0, %arg1 : i32, i32, i32, i32
  }
  func.func @transform_2(%arg0: i32, %arg1: i32) -> (i32, i32) {
    %c0_i32 = arith.constant 0 : i32
    %c0_i32_0 = arith.constant 0 : i32
    %c0_i32_1 = arith.constant 0 : i32
    return %c0_i32, %c0_i32_0 : i32, i32
  }
  func.func @transform_3(%arg0: i32, %arg1: i32) -> (i32, i32, i32) {
    %c0_i32 = arith.constant 0 : i32
    %c0_i32_0 = arith.constant 0 : i32
    %c0_i32_1 = arith.constant 0 : i32
    %c0_i32_2 = arith.constant 0 : i32
    return %c0_i32, %c0_i32_0, %c0_i32_1 : i32, i32, i32
  }
  func.func @transform_4(%arg0: i32, %arg1: i32) -> (i32, i32, i32) {
    %c0_i32 = arith.constant 0 : i32
    %c0_i32_0 = arith.constant 0 : i32
    %c0_i32_1 = arith.constant 0 : i32
    return %arg0, %c0_i32, %c0_i32_0 : i32, i32, i32
  }
  func.func @transform_5(%arg0: i32, %arg1: i32) -> (i32, i32, i32) {
    %c0_i32 = arith.constant 0 : i32
    %c0_i32_0 = arith.constant 0 : i32
    return %arg0, %c0_i32, %arg1 : i32, i32, i32
  }
}

</mosaic_0001>

<bundles_post_ra>
// kernel: tpu_custom_call.1
= control target key start
LH: loop header
LB: loop body
LE: loop exit
PB: predicated region body
PF: predicated region fallthrough
CT: control target
= control target key end

     0   :  { %10 = vsyncpa [#allocation3], 0  ;;  %s13574_s0 = inlined_call_operand.vmem [shape: bf16[2,16,256], index: 0, kind: input, shape index: {}]   ;;  %s13575_s1 = inlined_call_operand.vmem [shape: bf16[2,3,144,256], index: 1, kind: input, shape index: {}]   ;;  %s13576_s2 = inlined_call_operand.vmem [shape: bf16[512,16], index: 2, kind: input, shape index: {}]   ;;  %s13577_s3 = inlined_call_operand.vmem [shape: bf16[3,512,144], index: 3, kind: input, shape index: {}]   ;;  %s13578_s4 = inlined_call_operand.vmem [shape: f32[2,2560,1], index: 4, kind: input, shape index: {}]   ;;  %s13579_s5 = inlined_call_operand.hbm [shape: bf16[2,2560,256], index: 5, kind: output, shape index: {}]  }
   0x1   :  { %12 = vsyncpa [#allocation3 + $0x1], 0  ;;  %s10216_s18 = smov 0   ;;  %s10218_s19 = smov 0  }
   0x2   :  { %s10220_s20 = smov 0   ;;  %s10222_s21 = smov 0  }
   0x3   :  { %s10224_s22 = smov 0   ;;  %s10226_s23 = smov 0  }
   0x4 LB: > { %s8201_s24 = sadd.s32 4294967295, %s10180_s23   ;;  %s8202_s25 = sadd.s32 4294967294, %s10180_s23   ;;  %s10180_s23 = sphi %s10226_s23, %s18_s23   ;;  %s10176_s22 = sphi %s10224_s22, %s13862_s22   ;;  %s10172_s21 = sphi %s10222_s21, %s13861_s21   ;;  %s10168_s20 = sphi %s10220_s20, %s13860_s20   ;;  %s10164_s19 = sphi %s10218_s19, %s13859_s19   ;;  %s10160_s18 = sphi %s10216_s18, %s13858_s18  }
   0x5   : > { %s30_s26 = sadd.s32 1, %s10176_s22  ;;  %s163_s27 = sadd.s32 1, %s10168_s20 }
   0x6   : > { %p32_p0 = scmp.ge.s32.totalorder %s30_s26, 2  ;;  %p173_p1 = scmp.ne.s32.totalorder %s10168_s20, %s10164_s19 }
   0x7   : > { %p174_p2 = scmp.eq.s32.totalorder %s8201_s24, 1  ;;  %p179_p3 = scmp.ne.s32.totalorder %s10164_s19, %s10160_s18 }
   0x8   : > { %s13864_s26 = smov (%p32_p0, %s30_s26), 0  ;;  %p180_p5 = scmp.eq.s32.totalorder %s8202_s25, 1 }
   0x9   : > { %p10256_p4 = por %p174_p2, %p173_p1  ;;  %s158_s29 = ssub.s32 %s10176_s22, %s13864_s26 }
   0xa   : > { %p8205_p6 = scmp.ge.s32.totalorder %s10180_s23, 1  ;;  %p161_p7 = scmp.eq.s32.totalorder %s158_s29, 0 }
   0xb   : > { %p10263_p8 = por %p180_p5, %p179_p3  ;;  %p238_p9 = scmp.lt.s32.totalorder %s10180_s23, 3 }
   0xc   : > { %s10269_s6 = scalar_select %p161_p7, %s10168_s20, %s163_s27  }
   0xd   : > { %p239_p10 = pnand %p8205_p6, %p238_p9 }
   0xf   : > { %242 = sbr.rel (%p239_p10) target bundleno = 1961 (0x7a9), region = 40 }
  0x14   : > { %p285_p11 = scmp.lt.s32.totalorder %s10172_s21, 1  ;;  %v10182_v0 = vmov 0   ;;  %v9754_v4 = vld [vmem:[%s13576_s2] sm:$0xff]  ;;  %vm931_vm0 = vcmask 130048   ;;  %v9755_v36 = vld [vmem:[%s13576_s2 + $0x8] sm:$0xff]  ;;  %v9756_v44 = vld [vmem:[%s13576_s2 + $0x10] sm:$0xff] }
  0x15   : > { %10101 = vset.pattern.permute.xlu2 %v10182_v0  ;;  %10100 = vset.pattern.permute.xlu1 %v10182_v0  ;;  %v9770_v13 = vld [vmem:[%s13576_s2 + $0x80] sm:$0xff]  ;;  %v9771_v37 = vld [vmem:[%s13576_s2 + $0x88] sm:$0xff]  ;;  %v9772_v45 = vld [vmem:[%s13576_s2 + $0x90] sm:$0xff]  ;;  %s281_s11 = sand.u32 1, %s10164_s19  }
  0x16   : > { %10099 = vset.pattern.permute.xlu0 %v10182_v0  ;;  %s286_s7 = scalar_select %p285_p11, %s10172_s21, 1  ;;  %v9757_v58 = vld [vmem:[%s13576_s2 + $0x18] sm:$0xff] }
  0x17   : > { %v9773_v59 = vld [vmem:[%s13576_s2 + $0x98] sm:$0xff]  ;;  %s10036_s17 = smul.u32 2560, %s281_s11  ;;  %s8075_s14 = scalar_lea.sflag [#allocation3], %s281_s11 }
  0x18   : > { %s10038_s8 = smul.u32 2560, %s286_s7  ;;  %s9753_s9 = sshll.u32 %s286_s7, 4 }
  0x19   : > { %s292_s12 = scalar_lea.vmem %s13574_s0, %s9753_s9  ;;  %s10037_s13 = smul.u32 432, %s286_s7 }
  0x1a   : > { %s10279_s16 = scalar_lea.vmem %s13578_s4, %s10038_s8  ;;  %v8340_v1 = vld [vmem:[%s292_s12] sm:$0xf]  ;;  %v9787_v2 = vld [vmem:[%s292_s12 + $0x4] sm:$0xf0]  ;;  %v9786_v3 = vld [vmem:[%s292_s12 + $0x4] sm:$0xf] }
  0x1b   : > { %v381_v5 = vld [vmem:[%s10279_s16 + $0x20] sm:$0xff]  ;;  %v379_v6 = vld [vmem:[%s10279_s16 + $0x10] sm:$0xff]  ;;  %v8341_v8 = vor.u32 %v9787_v2, %v8340_v1  ;;  %s10290_s29 = scalar_lea.vmem %s13575_s1, %s10037_s13  ;;  %v8342_v9 = vld [vmem:[%s292_s12 + $0x8] sm:$0xf0]  ;;  %s10477_s24 = scalar_lea.vmem [#allocation2], %s10036_s17 }
  0x1c   : > { %v377_v7 = vld [vmem:[%s10279_s16] sm:$0xff]  ;;  %463 = vperm.xlu2 %10101, %v381_v5   ;;  %453 = vperm.xlu1 %10100, %v379_v6   ;;  %v9869_v11 = vld [vmem:[%s10290_s29 + $0x84] sm:$0xf0]  ;;  %v8345_v12 = vor.u32 %v9786_v3, %v8342_v9  ;;  %v8724_v15 = vld [vmem:[%s10290_s29 + $0x70] sm:$0xf]  ;;  %s10039_s8 = smul.u32 2560, %s10172_s21 }
  0x1d   : > { %v8732_v10 = vld [vmem:[%s10290_s29 + $0x80] sm:$0xf]  ;;  %443 = vperm.xlu0 %10099, %v377_v7   ;;  %1035 = vmatpush.bf16.msra.mxu0 %v8341_v8  ;;  %v9867_v16 = vld [vmem:[%s10290_s29 + $0x74] sm:$0xf0]  ;;  %v9866_v18 = vld [vmem:[%s10290_s29 + $0x74] sm:$0xf] }
  0x1e   : > { %v8733_v14 = vor.u32 %v9869_v11, %v8732_v10  ;;  %10034 = vmatpush.bf16.msra.mxu3 %v8341_v8  ;;  %v8725_v17 = vor.u32 %v9867_v16, %v8724_v15  ;;  %1204 = vmatpush.bf16.msra.mxu1 %v8345_v12  ;;  %v8726_v19 = vld [vmem:[%s10290_s29 + $0x78] sm:$0xf0]  ;;  %v9868_v20 = vld [vmem:[%s10290_s29 + $0x84] sm:$0xf]  ;;  %v8734_v21 = vld [vmem:[%s10290_s29 + $0x88] sm:$0xf0]  ;;  %s8088_s12 = scalar_lea.hbm %s13579_s5, %s10039_s8 }
  0x1f   : > { %10035 = vmatpush.bf16.msra.mxu2 %v8345_v12  ;;  %v8729_v22 = vor.u32 %v9866_v18, %v8726_v19  ;;  %v8737_v23 = vor.u32 %v9868_v20, %v8734_v21  ;;  %v382_v24 = vld [vmem:[%s10279_s16 + $0x28] sm:$0xff]  ;;  %v380_v25 = vld [vmem:[%s10279_s16 + $0x18] sm:$0xff]  ;;  %v8716_v27 = vld [vmem:[%s10290_s29 + $0x60] sm:$0xf]  ;;  %s8089_s21 = sshll.u32 %s10477_s24, 4  ;;  %s8091_s13 = sshll.u32 %s8088_s12, 4  ;;  %s8090_s21 = int_to_ptr.vmem [resolvable:$true] %s8089_s21  ;;  %s8092_s13 = int_to_ptr.hbm [resolvable:$true] %s8091_s13 }
  0x20   : > { %8346 = vmatmul.msk.bf16.vlgmr.msra.gmra.mxu0 %vm931_vm0, %v9754_v4  ;;  %v378_v26 = vld [vmem:[%s10279_s16 + $0x8] sm:$0xff]  ;;  %v9864_v30 = vld [vmem:[%s10290_s29 + $0x64] sm:$0xf]  ;;  %v384_v34 = vld [vmem:[%s10279_s16 + $0x38] sm:$0xff]  ;;  %s10116_s15 = sshra.s32 %s8092_s13, 4  ;;  %s10122_s7 = scalar_lea.hbm %s13579_s5, 5120  ;;  %s10117_s15 = int_to_ptr.hbm [resolvable:$true] %s10116_s15 }
  0x21   : > { %8362 = vmatmul.msk.bf16.vlgmr.msra.gmra.mxu3 %vm931_vm0, %v9770_v13  ;;  %8378 = vmatmul.msk.bf16.vlgmr.msra.gmra.mxu1 %vm931_vm0, %v9754_v4  ;;  %v9865_v28 = vld [vmem:[%s10290_s29 + $0x64] sm:$0xf0]  ;;  %v8718_v31 = vld [vmem:[%s10290_s29 + $0x68] sm:$0xf0]  ;;  %v385_v33 = vld [vmem:[%s10279_s16 + $0x40] sm:$0xff]  ;;  %s10118_s17 = scalar_lea.hbm %s10117_s15, 2560  ;;  %p10123_p1 = scmp.lt.s32.totalorder %s10117_s15, %s13579_s5 }
  0x22   : > { %2738 = vmatpush.bf16.msrb.mxu3 %v8733_v14  ;;  %8394 = vmatmul.msk.bf16.vlgmr.msra.gmra.mxu2 %vm931_vm0, %v9770_v13  ;;  %v8717_v29 = vor.u32 %v9865_v28, %v8716_v27  ;;  %v8721_v32 = vor.u32 %v9864_v30, %v8718_v31  ;;  %v383_v35 = vld [vmem:[%s10279_s16 + $0x30] sm:$0xff]  ;;  %v388_v38 = vld [vmem:[%s10279_s16 + $0x58] sm:$0xff]  ;;  %v386_v40 = vld [vmem:[%s10279_s16 + $0x48] sm:$0xff]  ;;  %p10119_p12 = scmp.ne.s32.totalorder %s10117_s15, %s10118_s17  ;;  %p10124_p2 = scmp.lt.s32.totalorder %s10122_s7, %s10118_s17 }
  0x23   : > { %2562 = vmatpush.bf16.msrb.mxu2 %v8725_v17  ;;  %2900 = vmatpush.bf16.msrb.mxu0 %v8729_v22  ;;  %v387_v39 = vld [vmem:[%s10279_s16 + $0x50] sm:$0xff]  ;;  %v390_v42 = vld [vmem:[%s10279_s16 + $0x68] sm:$0xff]  ;;  %v389_v43 = vld [vmem:[%s10279_s16 + $0x60] sm:$0xff] }
  0x24   : > { %3076 = vmatpush.bf16.msrb.mxu1 %v8737_v23  ;;  %468 = vperm.xlu2 %10101, %v382_v24   ;;  %v391_v41 = vld [vmem:[%s10279_s16 + $0x70] sm:$0xff]  ;;  %v394_v46 = vld [vmem:[%s10279_s16 + $0x88] sm:$0xff]  ;;  %v393_v47 = vld [vmem:[%s10279_s16 + $0x80] sm:$0xff]  ;;  %p10120_p13 = pnand %p10119_p12, %p10256_p4  ;;  %p10125_p3 = por %p10124_p2, %p10123_p1 }
  0x25   : > { %458 = vperm.xlu1 %10100, %v380_v25   ;;  %448 = vperm.xlu0 %10099, %v378_v26   ;;  %v392_v48 = vld [vmem:[%s10279_s16 + $0x78] sm:$0xff]  ;;  %v8708_v49 = vld [vmem:[%s10290_s29 + $0x50] sm:$0xf]  ;;  %v9862_v52 = vld [vmem:[%s10290_s29 + $0x54] sm:$0xf] }
  0x26   : > { %v9863_v50 = vld [vmem:[%s10290_s29 + $0x54] sm:$0xf0]  ;;  %v8710_v53 = vld [vmem:[%s10290_s29 + $0x58] sm:$0xf0]  ;;  %v397_v55 = vld [vmem:[%s10279_s16 + $0xa0] sm:$0xff]  ;;  %p10121_p0 = pneg %p10120_p13 }
  0x27   : > { %2563 = vmatpush.bf16.msrb.mxu2 %v8717_v29  ;;  %2901 = vmatpush.bf16.msrb.mxu0 %v8721_v32  ;;  %v8709_v51 = vor.u32 %v9863_v50, %v8708_v49  ;;  %v8713_v54 = vor.u32 %v9862_v52, %v8710_v53  ;;  %v396_v56 = vld [vmem:[%s10279_s16 + $0x98] sm:$0xff]  ;;  %v395_v57 = vld [vmem:[%s10279_s16 + $0x90] sm:$0xff]  ;;  %v398_v62 = vld [vmem:[%s10279_s16 + $0xa8] sm:$0xff] }
  0x28   : > { %v400_v60 = vld [vmem:[%s10279_s16 + $0xb8] sm:$0xff]  ;;  %v399_v61 = vld [vmem:[%s10279_s16 + $0xb0] sm:$0xff]  ;;  %v402_v0 = vld [vmem:[%s10279_s16 + $0xc8] sm:$0xff]  ;;  %p10126_p5 = pnand %p10125_p3, %p10121_p0 }
  0x29   : > { %v403_v63 = vld [vmem:[%s10279_s16 + $0xd0] sm:$0xff]  ;;  %v401_v1 = vld [vmem:[%s10279_s16 + $0xc0] sm:$0xff]  ;;  %v406_v4 = vld [vmem:[%s10279_s16 + $0xe8] sm:$0xff] }
  0x2a   : > { %v9758_v2 = vld [vmem:[%s13576_s2 + $0x20] sm:$0xff]  ;;  %v404_v6 = vld [vmem:[%s10279_s16 + $0xd8] sm:$0xff]  ;;  %v9861_v8 = vld [vmem:[%s10290_s29 + $0x44] sm:$0xf0] }
  0x2b   : > { %2564 = vmatpush.bf16.msrb.mxu2 %v8709_v51  ;;  %2902 = vmatpush.bf16.msrb.mxu0 %v8713_v54  ;;  %v9774_v3 = vld [vmem:[%s13576_s2 + $0xa0] sm:$0xff]  ;;  %v8702_v11 = vld [vmem:[%s10290_s29 + $0x48] sm:$0xf0]  ;;  %v408_v14 = vld [vmem:[%s10279_s16 + $0xf8] sm:$0xff] }
  0x2c   : > { %483 = vperm.xlu2 %10101, %v385_v33   ;;  %v405_v5 = vld [vmem:[%s10279_s16 + $0xe0] sm:$0xff]  ;;  %v407_v15 = vld [vmem:[%s10279_s16 + $0xf0] sm:$0xff]  ;;  %v9759_v16 = vld [vmem:[%s13576_s2 + $0x28] sm:$0xff] }
  0x2d   : > { %478 = vperm.xlu1 %10100, %v384_v34   ;;  %473 = vperm.xlu0 %10099, %v383_v35   ;;  %v8700_v7 = vld [vmem:[%s10290_s29 + $0x40] sm:$0xf]  ;;  %v9860_v10 = vld [vmem:[%s10290_s29 + $0x44] sm:$0xf]  ;;  %v9775_v17 = vld [vmem:[%s13576_s2 + $0xa8] sm:$0xff] }
  0x2e   : > { %v8701_v9 = vor.u32 %v9861_v8, %v8700_v7  ;;  %v8705_v12 = vor.u32 %v9860_v10, %v8702_v11  ;;  %v409_v13 = vld [vmem:[%s10279_s16 + $0x100] sm:$0xff]  ;;  %v412_v18 = vld [vmem:[%s10279_s16 + $0x118] sm:$0xff]  ;;  %v411_v19 = vld [vmem:[%s10279_s16 + $0x110] sm:$0xff] }
  0x2f   : > { %v410_v20 = vld [vmem:[%s10279_s16 + $0x108] sm:$0xff]  ;;  %v415_v22 = vld [vmem:[%s10279_s16 + $0x130] sm:$0xff]  ;;  %v413_v24 = vld [vmem:[%s10279_s16 + $0x120] sm:$0xff] }
  0x30   : > { %8347 = vmatmul.msk.bf16.gmra.mxu0 %vm931_vm0, %v9755_v36  ;;  %2565 = vmatpush.bf16.msrb.mxu2 %v8701_v9  ;;  %v414_v23 = vld [vmem:[%s10279_s16 + $0x128] sm:$0xff]  ;;  %v9760_v25 = vld [vmem:[%s13576_s2 + $0x30] sm:$0xff]  ;;  %v417_v28 = vld [vmem:[%s10279_s16 + $0x140] sm:$0xff] }
  0x31   : > { %8363 = vmatmul.msk.bf16.gmra.mxu3 %vm931_vm0, %v9771_v37  ;;  %8379 = vmatmul.msk.bf16.gmra.mxu1 %vm931_vm0, %v9755_v36  ;;  %v9776_v26 = vld [vmem:[%s13576_s2 + $0xb0] sm:$0xff]  ;;  %v418_v29 = vld [vmem:[%s10279_s16 + $0x148] sm:$0xff]  ;;  %v416_v30 = vld [vmem:[%s10279_s16 + $0x138] sm:$0xff] }
  0x32   : > { %8395 = vmatmul.msk.bf16.gmra.mxu2 %vm931_vm0, %v9771_v37  ;;  %2903 = vmatpush.bf16.msrb.mxu0 %v8705_v12  ;;  %v8692_v32 = vld [vmem:[%s10290_s29 + $0x30] sm:$0xf]  ;;  %v9859_v33 = vld [vmem:[%s10290_s29 + $0x34] sm:$0xf0]  ;;  %v421_v37 = vld [vmem:[%s10279_s16 + $0x160] sm:$0xff] }
  0x33   : > { %v8693_v34 = vor.u32 %v9859_v33, %v8692_v32  ;;  %v420_v35 = vld [vmem:[%s10279_s16 + $0x158] sm:$0xff]  ;;  %v419_v36 = vld [vmem:[%s10279_s16 + $0x150] sm:$0xff]  ;;  %v425_v51 = vld [vmem:[%s10279_s16 + $0x180] sm:$0xff] }
  0x34   : > { %498 = vperm.xlu2 %10101, %v388_v38   ;;  %v9761_v38 = vld [vmem:[%s13576_s2 + $0x38] sm:$0xff]  ;;  %v426_v52 = vld [vmem:[%s10279_s16 + $0x188] sm:$0xff]  ;;  %v9762_v53 = vld [vmem:[%s13576_s2 + $0x40] sm:$0xff] }
  0x35   : > { %493 = vperm.xlu1 %10100, %v387_v39   ;;  %488 = vperm.xlu0 %10099, %v386_v40   ;;  %v9777_v39 = vld [vmem:[%s13576_s2 + $0xb8] sm:$0xff]  ;;  %v8684_v8 = vld [vmem:[%s10290_s29 + $0x20] sm:$0xf]  ;;  %v9857_v9 = vld [vmem:[%s10290_s29 + $0x24] sm:$0xf0] }
  0x36   : > { %2566 = vmatpush.bf16.msrb.mxu2 %v8693_v34  ;;  %v8685_v12 = vor.u32 %v9857_v9, %v8684_v8 }
  0x3a   : > { %2567 = vmatpush.bf16.msrb.mxu2 %v8685_v12 }
  0x3c   : > { %513 = vperm.xlu2 %10101, %v391_v41  }
  0x3d   : > { %508 = vperm.xlu1 %10100, %v390_v42   ;;  %503 = vperm.xlu0 %10099, %v389_v43   ;;  %v9858_v42 = vld [vmem:[%s10290_s29 + $0x34] sm:$0xf]  ;;  %v8694_v43 = vld [vmem:[%s10290_s29 + $0x38] sm:$0xf0] }
  0x40   : > { %8348 = vmatmul.msk.bf16.gmra.mxu0 %vm931_vm0, %v9756_v44 }
  0x41   : > { %8364 = vmatmul.msk.bf16.gmra.mxu3 %vm931_vm0, %v9772_v45  ;;  %8380 = vmatmul.msk.bf16.gmra.mxu1 %vm931_vm0, %v9756_v44 }
  0x42   : > { %8396 = vmatmul.msk.bf16.gmra.mxu2 %vm931_vm0, %v9772_v45  ;;  %v8697_v45 = vor.u32 %v9858_v42, %v8694_v43 }
  0x44   : > { %528 = vperm.xlu2 %10101, %v394_v46   ;;  %v423_v46 = vld [vmem:[%s10279_s16 + $0x170] sm:$0xff]  ;;  %2904 = vmatpush.bf16.msrb.mxu0 %v8697_v45 }
  0x45   : > { %523 = vperm.xlu1 %10100, %v393_v47   ;;  %518 = vperm.xlu0 %10099, %v392_v48   ;;  %v422_v47 = vld [vmem:[%s10279_s16 + $0x168] sm:$0xff] }
  0x4c   : > { %543 = vperm.xlu2 %10101, %v397_v55   ;;  %v9778_v55 = vld [vmem:[%s13576_s2 + $0xc0] sm:$0xff] }
  0x4d   : > { %538 = vperm.xlu1 %10100, %v396_v56   ;;  %533 = vperm.xlu0 %10099, %v395_v57  }
  0x50   : > { %8349 = vmatmul.msk.bf16.gmra.mxu0 %vm931_vm0, %v9757_v58 }
  0x51   : > { %8365 = vmatmul.msk.bf16.gmra.mxu3 %vm931_vm0, %v9773_v59  ;;  %8381 = vmatmul.msk.bf16.gmra.mxu1 %vm931_vm0, %v9757_v58 }
  0x52   : > { %8397 = vmatmul.msk.bf16.gmra.mxu2 %vm931_vm0, %v9773_v59 }
  0x54   : > { %558 = vperm.xlu2 %10101, %v400_v60  }
  0x55   : > { %553 = vperm.xlu1 %10100, %v399_v61   ;;  %548 = vperm.xlu0 %10099, %v398_v62  }
  0x5c   : > { %573 = vperm.xlu2 %10101, %v403_v63  }
  0x5d   : > { %568 = vperm.xlu1 %10100, %v402_v0   ;;  %563 = vperm.xlu0 %10099, %v401_v1   ;;  %v424_v0 = vld [vmem:[%s10279_s16 + $0x178] sm:$0xff] }
  0x60   : > { %8350 = vmatmul.msk.bf16.gmra.mxu0 %vm931_vm0, %v9758_v2 }
  0x61   : > { %8366 = vmatmul.msk.bf16.gmra.mxu3 %vm931_vm0, %v9774_v3  ;;  %8382 = vmatmul.msk.bf16.gmra.mxu1 %vm931_vm0, %v9758_v2 }
  0x62   : > { %8398 = vmatmul.msk.bf16.gmra.mxu2 %vm931_vm0, %v9774_v3 }
  0x64   : > { %588 = vperm.xlu2 %10101, %v406_v4  }
  0x65   : > { %583 = vperm.xlu1 %10100, %v405_v5   ;;  %578 = vperm.xlu0 %10099, %v404_v6  }
  0x6c   : > { %603 = vperm.xlu2 %10101, %v409_v13  }
  0x6d   : > { %598 = vperm.xlu1 %10100, %v408_v14   ;;  %593 = vperm.xlu0 %10099, %v407_v15  }
  0x70   : > { %8351 = vmatmul.msk.bf16.gmra.mxu0 %vm931_vm0, %v9759_v16 }
  0x71   : > { %8367 = vmatmul.msk.bf16.gmra.mxu3 %vm931_vm0, %v9775_v17  ;;  %8383 = vmatmul.msk.bf16.gmra.mxu1 %vm931_vm0, %v9759_v16  ;;  %v428_v16 = vld [vmem:[%s10279_s16 + $0x198] sm:$0xff] }
  0x72   : > { %8399 = vmatmul.msk.bf16.gmra.mxu2 %vm931_vm0, %v9775_v17 }
  0x74   : > { %618 = vperm.xlu2 %10101, %v412_v18  }
  0x75   : > { %613 = vperm.xlu1 %10100, %v411_v19   ;;  %608 = vperm.xlu0 %10099, %v410_v20   ;;  %v9763_v19 = vld [vmem:[%s13576_s2 + $0x48] sm:$0xff] }
  0x76   : > { %v10402_v21 = vpop.permute.xlu2 %463 }
  0x7c   : > { %633 = vperm.xlu2 %10101, %v415_v22  }
  0x7d   : > { %628 = vperm.xlu1 %10100, %v414_v23   ;;  %623 = vperm.xlu0 %10099, %v413_v24   ;;  %v9779_v23 = vld [vmem:[%s13576_s2 + $0xc8] sm:$0xff] }
  0x7e   : > { %v10413_v27 = vpop.permute.xlu2 %468 }
  0x80   : > { %8352 = vmatmul.msk.bf16.gmra.mxu0 %vm931_vm0, %v9760_v25 }
  0x81   : > { %8368 = vmatmul.msk.bf16.gmra.mxu3 %vm931_vm0, %v9776_v26  ;;  %8384 = vmatmul.msk.bf16.gmra.mxu1 %vm931_vm0, %v9760_v25 }
  0x82   : > { %8400 = vmatmul.msk.bf16.gmra.mxu2 %vm931_vm0, %v9776_v26 }
  0x84   : > { %648 = vperm.xlu2 %10101, %v418_v29   ;;  %v8686_v29 = vld [vmem:[%s10290_s29 + $0x28] sm:$0xf0] }
  0x85   : > { %643 = vperm.xlu1 %10100, %v417_v28   ;;  %638 = vperm.xlu0 %10099, %v416_v30   ;;  %v9856_v28 = vld [vmem:[%s10290_s29 + $0x24] sm:$0xf] }
  0x86   : > { %v10422_v31 = vpop.permute.xlu2 %483  ;;  %v8689_v33 = vor.u32 %v9856_v28, %v8686_v29 }
  0x88   : > { %2905 = vmatpush.bf16.msrb.mxu0 %v8689_v33 }
  0x8c   : > { %663 = vperm.xlu2 %10101, %v421_v37   ;;  %v429_v37 = vld [vmem:[%s10279_s16 + $0x1a0] sm:$0xff] }
  0x8d   : > { %658 = vperm.xlu1 %10100, %v420_v35   ;;  %653 = vperm.xlu0 %10099, %v419_v36  }
  0x8e   : > { %v10435_v40 = vpop.permute.xlu2 %498  ;;  %v10437_v41 = vpop.permute.xlu1 %453 }
  0x8f   : > { %v444_v44 = vpop.permute.xlu0 %443 }
  0x90   : > { %8353 = vmatmul.msk.bf16.gmra.mxu0 %vm931_vm0, %v9761_v38 }
  0x91   : > { %8369 = vmatmul.msk.bf16.gmra.mxu3 %vm931_vm0, %v9777_v39  ;;  %8385 = vmatmul.msk.bf16.gmra.mxu1 %vm931_vm0, %v9761_v38 }
  0x92   : > { %8401 = vmatmul.msk.bf16.gmra.mxu2 %vm931_vm0, %v9777_v39 }
  0x94   : > { %678 = vperm.xlu2 %10101, %v424_v0  }
  0x95   : > { %673 = vperm.xlu1 %10100, %v423_v46   ;;  %668 = vperm.xlu0 %10099, %v422_v47  }
  0x96   : > { %v10447_v48 = vpop.permute.xlu2 %513 }
  0x97   : > { %v10449_v49 = vpop.permute.xlu1 %458  ;;  %v449_v50 = vpop.permute.xlu0 %448 }
  0x9d   : > { %688 = vperm.xlu1 %10100, %v426_v52   ;;  %v1037_v54 = vpop.f32.mrf.mxu0  ;;  %683 = vperm.xlu0 %10099, %v425_v51  }
  0x9e   : > { %v1038_v56 = vadd.f32 %v1037_v54, %v444_v44  ;;  %v10460_v57 = vpop.permute.xlu2 %528  ;;  %v1206_v59 = vpop.f32.mrf.mxu1 }
  0x9f   : > { %v10462_v58 = vpop.permute.xlu1 %478  ;;  %v10466_v60 = vpop.permute.xlu0 %473  ;;  %v1207_v62 = vadd.f32 %v1206_v59, %v444_v44 }
  0xa0   : > { %v1366_v61 = vmax.f32 %v1038_v56, 0.0  ;;  %8354 = vmatmul.msk.bf16.gmra.mxu0 %vm931_vm0, %v9762_v53  ;;  %v9764_v56 = vld [vmem:[%s13576_s2 + $0x50] sm:$0xff] }
  0xa1   : > { %8370 = vmatmul.msk.bf16.gmra.mxu3 %vm931_vm0, %v9778_v55  ;;  %v1367_v63 = vmax.f32 %v1207_v62, 0.0  ;;  %8386 = vmatmul.msk.bf16.gmra.mxu1 %vm931_vm0, %v9762_v53  ;;  %v427_v53 = vld [vmem:[%s10279_s16 + $0x190] sm:$0xff] }
  0xa2   : > { %8402 = vmatmul.msk.bf16.gmra.mxu2 %vm931_vm0, %v9778_v55  ;;  %693 = vperm.xlu2 %10101, %v427_v53   ;;  %v9780_v62 = vld [vmem:[%s13576_s2 + $0xd0] sm:$0xff] }
  0xa3   : > { %v1494_v1 = vpack.c.bf16 %v1367_v63, %v1366_v61 }
  0xa4   : > { %v10473_v2 = vpop.f32.mrf.mxu3 }
  0xa5   : > { %v10475_v3 = vpop.f32.mrf.mxu2  ;;  %v1039_v4 = vpop.f32.mrf.mxu0  ;;  %1558 = vst [vmem:[%s10477_s24] sm:$0xff] %v1494_v1  ;;  %698 = vperm.xlu0 %10099, %v428_v16   ;;  %703 = vperm.xlu1 %10100, %v429_v37  }
  0xa6   : > { %v1040_v5 = vadd.f32 %v1039_v4, %v449_v50  ;;  %v10480_v6 = vpop.permute.xlu2 %543  ;;  %v1208_v10 = vpop.f32.mrf.mxu1 }
  0xa7   : > { %v10482_v7 = vpop.permute.xlu1 %493  ;;  %v10486_v11 = vpop.permute.xlu0 %488  ;;  %v1209_v14 = vadd.f32 %v1208_v10, %v449_v50  ;;  %v431_v10 = vld [vmem:[%s10279_s16 + $0x1b0] sm:$0xff] }
  0xa8   : > { %v1368_v13 = vmax.f32 %v1040_v5, 0.0 }
  0xa9   : > { %v1369_v15 = vmax.f32 %v1209_v14, 0.0 }
  0xab   : > { %v1495_v17 = vpack.c.bf16 %v1369_v15, %v1368_v13 }
  0xac   : > { %v10489_v18 = vpop.f32.mrf.mxu3 }
  0xad   : > { %v10494_v20 = vpop.f32.mrf.mxu2  ;;  %v1042_v22 = vpop.f32.mrf.mxu0  ;;  %1559 = vst [vmem:[%s10477_s24 + $0x8] sm:$0xff] %v1495_v17  ;;  %713 = vperm.xlu0 %10099, %v431_v10  }
  0xae   : > { %v1043_v24 = vadd.f32 %v1042_v22, %v10437_v41  ;;  %v10501_v25 = vpop.permute.xlu2 %558  ;;  %v1211_v30 = vpop.f32.mrf.mxu1  ;;  %v9855_v22 = vld [vmem:[%s10290_s29 + $0x14] sm:$0xf0] }
  0xaf   : > { %v10503_v26 = vpop.permute.xlu1 %508  ;;  %v10507_v32 = vpop.permute.xlu0 %503  ;;  %v1212_v35 = vadd.f32 %v1211_v30, %v10437_v41 }
  0xb0   : > { %v1370_v34 = vmax.f32 %v1043_v24, 0.0  ;;  %8355 = vmatmul.msk.bf16.gmra.mxu0 %vm931_vm0, %v9763_v19 }
  0xb1   : > { %8371 = vmatmul.msk.bf16.gmra.mxu3 %vm931_vm0, %v9779_v23  ;;  %v1371_v36 = vmax.f32 %v1212_v35, 0.0  ;;  %8387 = vmatmul.msk.bf16.gmra.mxu1 %vm931_vm0, %v9763_v19  ;;  %v8676_v19 = vld [vmem:[%s10290_s29 + $0x10] sm:$0xf] }
  0xb2   : > { %8403 = vmatmul.msk.bf16.gmra.mxu2 %vm931_vm0, %v9779_v23  ;;  %v8677_v30 = vor.u32 %v9855_v22, %v8676_v19 }
  0xb3   : > { %v1496_v38 = vpack.c.bf16 %v1371_v36, %v1370_v34 }
  0xb4   : > { %v10515_v39 = vpop.f32.mrf.mxu3  ;;  %2568 = vmatpush.bf16.msrb.mxu2 %v8677_v30 }
  0xb5   : > { %v10517_v42 = vpop.f32.mrf.mxu2  ;;  %v1044_v43 = vpop.f32.mrf.mxu0  ;;  %1560 = vst [vmem:[%s10477_s24 + $0x10] sm:$0xff] %v1496_v38  ;;  %v432_v38 = vld [vmem:[%s10279_s16 + $0x1b8] sm:$0xff] }
  0xb6   : > { %v1045_v41 = vadd.f32 %v1044_v43, %v10449_v49  ;;  %v10521_v44 = vpop.permute.xlu2 %573  ;;  %v1213_v46 = vpop.f32.mrf.mxu1  ;;  %718 = vperm.xlu1 %10100, %v432_v38  }
  0xb7   : > { %v10523_v45 = vpop.permute.xlu1 %523  ;;  %v10525_v47 = vpop.permute.xlu0 %518  ;;  %v1214_v51 = vadd.f32 %v1213_v46, %v10449_v49 }
  0xb8   : > { %v1372_v50 = vmax.f32 %v1045_v41, 0.0 }
  0xb9   : > { %v1373_v52 = vmax.f32 %v1214_v51, 0.0 }
  0xbb   : > { %v1497_v54 = vpack.c.bf16 %v1373_v52, %v1372_v50  ;;  %v9781_v50 = vld [vmem:[%s13576_s2 + $0xd8] sm:$0xff] }
  0xbc   : > { %v1124_v55 = vpop.f32.mrf.mxu3 }
  0xbd   : > { %v1293_v59 = vpop.f32.mrf.mxu2  ;;  %v1047_v61 = vpop.f32.mrf.mxu0  ;;  %1561 = vst [vmem:[%s10477_s24 + $0x18] sm:$0xff] %v1497_v54 }
  0xbe   : > { %v1048_v63 = vadd.f32 %v1047_v61, %v10402_v21  ;;  %v10537_v49 = vpop.permute.xlu2 %588  ;;  %v1216_v1 = vpop.f32.mrf.mxu1 }
  0xbf   : > { %v10539_v0 = vpop.permute.xlu1 %538  ;;  %v10541_v4 = vpop.permute.xlu0 %533  ;;  %v1217_v8 = vadd.f32 %v1216_v1, %v10402_v21  ;;  %v8678_v1 = vld [vmem:[%s10290_s29 + $0x18] sm:$0xf0] }
  0xc0   : > { %v1374_v5 = vmax.f32 %v1048_v63, 0.0  ;;  %8356 = vmatmul.msk.bf16.gmra.mxu0 %vm931_vm0, %v9764_v56  ;;  %v9854_v63 = vld [vmem:[%s10290_s29 + $0x14] sm:$0xf] }
  0xc1   : > { %8372 = vmatmul.msk.bf16.gmra.mxu3 %vm931_vm0, %v9780_v62  ;;  %v1375_v9 = vmax.f32 %v1217_v8, 0.0  ;;  %8388 = vmatmul.msk.bf16.gmra.mxu1 %vm931_vm0, %v9764_v56 }
  0xc2   : > { %8404 = vmatmul.msk.bf16.gmra.mxu2 %vm931_vm0, %v9780_v62 }
  0xc3   : > { %v1498_v12 = vpack.c.bf16 %v1375_v9, %v1374_v5  ;;  %v8681_v9 = vor.u32 %v9854_v63, %v8678_v1 }
  0xc4   : > { %v10549_v13 = vpop.f32.mrf.mxu3 }
  0xc5   : > { %v10551_v14 = vpop.f32.mrf.mxu2  ;;  %v1049_v15 = vpop.f32.mrf.mxu0  ;;  %1562 = vst [vmem:[%s10477_s24 + $0x20] sm:$0xff] %v1498_v12  ;;  %2906 = vmatpush.bf16.msrb.mxu0 %v8681_v9 }
  0xc6   : > { %v1050_v21 = vadd.f32 %v1049_v15, %v10413_v27  ;;  %v604_v16 = vpop.permute.xlu2 %603  ;;  %v1218_v23 = vpop.f32.mrf.mxu1 }
  0xc7   : > { %v10555_v17 = vpop.permute.xlu1 %553  ;;  %v1118_v24 = vadd.f32 %v10473_v2, %v604_v16  ;;  %v1287_v28 = vadd.f32 %v10475_v3, %v604_v16  ;;  %v10561_v29 = vpop.permute.xlu0 %548  ;;  %v1219_v34 = vadd.f32 %v1218_v23, %v10413_v27  ;;  %v9765_v3 = vld [vmem:[%s13576_s2 + $0x58] sm:$0xff] }
  0xc8   : > { %v1376_v33 = vmax.f32 %v1050_v21, 0.0 }
  0xc9   : > { %v1430_v35 = vmax.f32 %v1118_v24, 0.0  ;;  %v1431_v36 = vmax.f32 %v1287_v28, 0.0  ;;  %v1377_v37 = vmax.f32 %v1219_v34, 0.0 }
  0xcb   : > { %v1526_v43 = vpack.c.bf16 %v1431_v36, %v1430_v35  ;;  %v1499_v41 = vpack.c.bf16 %v1377_v37, %v1376_v33 }
  0xcc   : > { %v10565_v2 = vpop.f32.mrf.mxu3 }
  0xcd   : > { %1590 = vst [vmem:[%s10477_s24 + $0x100] sm:$0xff] %v1526_v43  ;;  %v10571_v46 = vpop.f32.mrf.mxu2  ;;  %v1052_v27 = vpop.f32.mrf.mxu0 }
  0xce   : > { %1563 = vst [vmem:[%s10477_s24 + $0x28] sm:$0xff] %v1499_v41  ;;  %v1053_v51 = vadd.f32 %v1052_v27, %v10466_v60  ;;  %v619_v52 = vpop.permute.xlu2 %618  ;;  %v1221_v54 = vpop.f32.mrf.mxu1  ;;  %v434_v41 = vld [vmem:[%s10279_s16 + $0x1c8] sm:$0xff] }
  0xcf   : > { %v10578_v53 = vpop.permute.xlu1 %568  ;;  %v1125_v56 = vadd.f32 %v1124_v55, %v619_v52  ;;  %v1294_v61 = vadd.f32 %v1293_v59, %v619_v52  ;;  %v10580_v62 = vpop.permute.xlu0 %563  ;;  %v1222_v8 = vadd.f32 %v1221_v54, %v10466_v60  ;;  %v430_v55 = vld [vmem:[%s10279_s16 + $0x1a8] sm:$0xff]  ;;  %728 = vperm.xlu0 %10099, %v434_v41  }
  0xd0   : > { %v1378_v5 = vmax.f32 %v1053_v51, 0.0  ;;  %8357 = vmatmul.msk.bf16.gmra.mxu0 %vm931_vm0, %v9765_v3  ;;  %708 = vperm.xlu2 %10101, %v430_v55   ;;  %v9766_v51 = vld [vmem:[%s13576_s2 + $0x60] sm:$0xff] }
  0xd1   : > { %v1436_v10 = vmax.f32 %v1125_v56, 0.0  ;;  %v1437_v12 = vmax.f32 %v1294_v61, 0.0  ;;  %8373 = vmatmul.msk.bf16.gmra.mxu3 %vm931_vm0, %v9781_v50  ;;  %v1379_v15 = vmax.f32 %v1222_v8, 0.0  ;;  %8389 = vmatmul.msk.bf16.gmra.mxu1 %vm931_vm0, %v9765_v3 }
  0xd2   : > { %8405 = vmatmul.msk.bf16.gmra.mxu2 %vm931_vm0, %v9781_v50 }
  0xd3   : > { %v1529_v59 = vpack.c.bf16 %v1437_v12, %v1436_v10  ;;  %v1500_v21 = vpack.c.bf16 %v1379_v15, %v1378_v5  ;;  %v435_v10 = vld [vmem:[%s10279_s16 + $0x1d0] sm:$0xff] }
  0xd4   : > { %v1132_v16 = vpop.f32.mrf.mxu3  ;;  %733 = vperm.xlu1 %10100, %v435_v10  }
  0xd5   : > { %1593 = vst [vmem:[%s10477_s24 + $0x118] sm:$0xff] %v1529_v59  ;;  %v1301_v60 = vpop.f32.mrf.mxu2  ;;  %v1054_v19 = vpop.f32.mrf.mxu0 }
  0xd6   : > { %1564 = vst [vmem:[%s10477_s24 + $0x30] sm:$0xff] %v1500_v21  ;;  %v1055_v22 = vadd.f32 %v1054_v19, %v10462_v58  ;;  %v634_v23 = vpop.permute.xlu2 %633  ;;  %v1223_v28 = vpop.f32.mrf.mxu1 }
  0xd7   : > { %v10593_v24 = vpop.permute.xlu1 %583  ;;  %v1133_v30 = vadd.f32 %v1132_v16, %v634_v23  ;;  %v1302_v33 = vadd.f32 %v1301_v60, %v634_v23  ;;  %v10595_v34 = vpop.permute.xlu0 %578  ;;  %v1224_v36 = vadd.f32 %v1223_v28, %v10462_v58  ;;  %v9782_v58 = vld [vmem:[%s13576_s2 + $0xe0] sm:$0xff]  ;;  %v9853_v28 = vld [vmem:[%s10290_s29 + $0x4] sm:$0xf0] }
  0xd8   : > { %v1380_v35 = vmax.f32 %v1055_v22, 0.0  ;;  %v8668_v23 = vld [vmem:[%s10290_s29] sm:$0xf] }
  0xd9   : > { %v1442_v37 = vmax.f32 %v1133_v30, 0.0  ;;  %v1443_v38 = vmax.f32 %v1302_v33, 0.0  ;;  %v1381_v43 = vmax.f32 %v1224_v36, 0.0 }
  0xdb   : > { %v1532_v3 = vpack.c.bf16 %v1443_v38, %v1442_v37  ;;  %v1501_v27 = vpack.c.bf16 %v1381_v43, %v1380_v35  ;;  %v8669_v43 = vor.u32 %v9853_v28, %v8668_v23 }
  0xdc   : > { %v10599_v50 = vpop.f32.mrf.mxu3 }
  0xdd   : > { %1596 = vst [vmem:[%s10477_s24 + $0x130] sm:$0xff] %v1532_v3  ;;  %v10605_v52 = vpop.f32.mrf.mxu2  ;;  %v1057_v54 = vpop.f32.mrf.mxu0  ;;  %2569 = vmatpush.bf16.msrb.mxu2 %v8669_v43 }
  0xde   : > { %1565 = vst [vmem:[%s10477_s24 + $0x38] sm:$0xff] %v1501_v27  ;;  %v1058_v56 = vadd.f32 %v1057_v54, %v10422_v31  ;;  %v1226_v63 = vpop.f32.mrf.mxu1  ;;  %v649_v27 = vpop.permute.xlu2 %648 }
  0xdf   : > { %v10612_v61 = vpop.permute.xlu1 %598  ;;  %v10614_v1 = vpop.permute.xlu0 %593  ;;  %v1227_v8 = vadd.f32 %v1226_v63, %v10422_v31 }
  0xe0   : > { %v1382_v5 = vmax.f32 %v1058_v56, 0.0  ;;  %8358 = vmatmul.msk.bf16.gmra.mxu0 %vm931_vm0, %v9766_v51 }
  0xe1   : > { %8374 = vmatmul.msk.bf16.gmra.mxu3 %vm931_vm0, %v9782_v58  ;;  %v1383_v9 = vmax.f32 %v1227_v8, 0.0  ;;  %8390 = vmatmul.msk.bf16.gmra.mxu1 %vm931_vm0, %v9766_v51 }
  0xe2   : > { %8406 = vmatmul.msk.bf16.gmra.mxu2 %vm931_vm0, %v9782_v58 }
  0xe3   : > { %v1502_v12 = vpack.c.bf16 %v1383_v9, %v1382_v5  ;;  %v9783_v5 = vld [vmem:[%s13576_s2 + $0xe8] sm:$0xff] }
  0xe4   : > { %v10622_v15 = vpop.f32.mrf.mxu3 }
  0xe5   : > { %v10624_v55 = vpop.f32.mrf.mxu2  ;;  %v1059_v59 = vpop.f32.mrf.mxu0  ;;  %1566 = vst [vmem:[%s10477_s24 + $0x40] sm:$0xff] %v1502_v12  ;;  %v9852_v12 = vld [vmem:[%s10290_s29 + $0x4] sm:$0xf] }
  0xe6   : > { %v1060_v31 = vadd.f32 %v1059_v59, %v10486_v11  ;;  %v1228_v16 = vpop.f32.mrf.mxu1  ;;  %v8670_v59 = vld [vmem:[%s10290_s29 + $0x8] sm:$0xf0] }
  0xe7   : > { %v614_v21 = vpop.permute.xlu1 %613  ;;  %v609_v22 = vpop.permute.xlu0 %608  ;;  %v1229_v33 = vadd.f32 %v1228_v16, %v10486_v11 }
  0xe8   : > { %v1123_v60 = vadd.f32 %v10515_v39, %v614_v21  ;;  %v1292_v19 = vadd.f32 %v10517_v42, %v614_v21  ;;  %v1384_v30 = vmax.f32 %v1060_v31, 0.0  ;;  %v1120_v35 = vadd.f32 %v10489_v18, %v609_v22  ;;  %v433_v42 = vld [vmem:[%s10279_s16 + $0x1c0] sm:$0xff] }
  0xe9   : > { %v1289_v36 = vadd.f32 %v10494_v20, %v609_v22  ;;  %v1385_v41 = vmax.f32 %v1229_v33, 0.0  ;;  %723 = vperm.xlu2 %10101, %v433_v42   ;;  %v9767_v20 = vld [vmem:[%s13576_s2 + $0x68] sm:$0xff]  ;;  %v8673_v22 = vor.u32 %v9852_v12, %v8670_v59 }
  0xea   : > { %v1434_v37 = vmax.f32 %v1123_v60, 0.0  ;;  %v1435_v38 = vmax.f32 %v1292_v19, 0.0  ;;  %v1432_v3 = vmax.f32 %v1120_v35, 0.0 }
  0xeb   : > { %v1433_v39 = vmax.f32 %v1289_v36, 0.0  ;;  %v1503_v11 = vpack.c.bf16 %v1385_v41, %v1384_v30  ;;  %2907 = vmatpush.bf16.msrb.mxu0 %v8673_v22 }
  0xec   : > { %v1528_v51 = vpack.c.bf16 %v1435_v38, %v1434_v37  ;;  %v1139_v54 = vpop.f32.mrf.mxu3 }
  0xed   : > { %v1527_v18 = vpack.c.bf16 %v1433_v39, %v1432_v3  ;;  %v1140_v58 = vadd.f32 %v1139_v54, %v649_v27  ;;  %v1308_v56 = vpop.f32.mrf.mxu2  ;;  %v1062_v63 = vpop.f32.mrf.mxu0  ;;  %1567 = vst [vmem:[%s10477_s24 + $0x48] sm:$0xff] %v1503_v11 }
  0xee   : > { %1592 = vst [vmem:[%s10477_s24 + $0x110] sm:$0xff] %v1528_v51  ;;  %v1309_v8 = vadd.f32 %v1308_v56, %v649_v27  ;;  %v1063_v9 = vadd.f32 %v1062_v63, %v10482_v7  ;;  %v1231_v21 = vpop.f32.mrf.mxu1 }
  0xef   : > { %v629_v10 = vpop.permute.xlu1 %628  ;;  %1591 = vst [vmem:[%s10477_s24 + $0x108] sm:$0xff] %v1527_v18  ;;  %v1448_v31 = vmax.f32 %v1140_v58, 0.0  ;;  %v624_v19 = vpop.permute.xlu0 %623  ;;  %v1232_v30 = vadd.f32 %v1231_v21, %v10482_v7  ;;  %v437_v7 = vld [vmem:[%s10279_s16 + $0x1e0] sm:$0xff] }
  0xf0   : > { %v1130_v16 = vadd.f32 %v10565_v2, %v629_v10  ;;  %v1299_v60 = vadd.f32 %v10571_v46, %v629_v10  ;;  %v1449_v23 = vmax.f32 %v1309_v8, 0.0  ;;  %v1386_v28 = vmax.f32 %v1063_v9, 0.0  ;;  %8359 = vmatmul.msk.bf16.gmra.mxu0 %vm931_vm0, %v9767_v20  ;;  %743 = vperm.xlu0 %10099, %v437_v7  }
  0xf1   : > { %v1128_v33 = vadd.f32 %v10549_v13, %v624_v19  ;;  %v1297_v37 = vadd.f32 %v10551_v14, %v624_v19  ;;  %8375 = vmatmul.msk.bf16.gmra.mxu3 %vm931_vm0, %v9783_v5  ;;  %v1387_v46 = vmax.f32 %v1232_v30, 0.0  ;;  %8391 = vmatmul.msk.bf16.gmra.mxu1 %vm931_vm0, %v9767_v20 }
  0xf2   : > { %v1440_v35 = vmax.f32 %v1130_v16, 0.0  ;;  %v1441_v36 = vmax.f32 %v1299_v60, 0.0  ;;  %v1535_v2 = vpack.c.bf16 %v1449_v23, %v1448_v31  ;;  %8407 = vmatmul.msk.bf16.gmra.mxu2 %vm931_vm0, %v9783_v5  ;;  %v438_v31 = vld [vmem:[%s10279_s16 + $0x1e8] sm:$0xff]  ;;  %v9784_v60 = vld [vmem:[%s13576_s2 + $0xf0] sm:$0xff] }
  0xf3   : > { %v1438_v38 = vmax.f32 %v1128_v33, 0.0  ;;  %v1439_v43 = vmax.f32 %v1297_v37, 0.0  ;;  %v1504_v41 = vpack.c.bf16 %v1387_v46, %v1386_v28  ;;  %748 = vperm.xlu1 %10100, %v438_v31  }
  0xf4   : > { %v1531_v13 = vpack.c.bf16 %v1441_v36, %v1440_v35  ;;  %1599 = vst [vmem:[%s10477_s24 + $0x148] sm:$0xff] %v1535_v2  ;;  %v1142_v3 = vpop.f32.mrf.mxu3 }
  0xf5   : > { %v1530_v14 = vpack.c.bf16 %v1439_v43, %v1438_v38  ;;  %v1311_v39 = vpop.f32.mrf.mxu2  ;;  %v1064_v27 = vpop.f32.mrf.mxu0  ;;  %1568 = vst [vmem:[%s10477_s24 + $0x50] sm:$0xff] %v1504_v41  ;;  %v436_v41 = vld [vmem:[%s10279_s16 + $0x1d8] sm:$0xff] }
  0xf6   : > { %1595 = vst [vmem:[%s10477_s24 + $0x128] sm:$0xff] %v1531_v13  ;;  %v1065_v42 = vadd.f32 %v1064_v27, %v10435_v40  ;;  %v1233_v11 = vpop.f32.mrf.mxu1  ;;  %738 = vperm.xlu2 %10101, %v436_v41  }
  0xf7   : > { %v644_v51 = vpop.permute.xlu1 %643  ;;  %1594 = vst [vmem:[%s10477_s24 + $0x120] sm:$0xff] %v1530_v14  ;;  %v639_v20 = vpop.permute.xlu0 %638  ;;  %v1234_v56 = vadd.f32 %v1233_v11, %v10435_v40  ;;  %v9768_v40 = vld [vmem:[%s13576_s2 + $0x70] sm:$0xff] }
  0xf8   : > { %v1138_v18 = vadd.f32 %v10622_v15, %v644_v51  ;;  %v1307_v54 = vadd.f32 %v10624_v55, %v644_v51  ;;  %v1388_v58 = vmax.f32 %v1065_v42, 0.0  ;;  %v1135_v63 = vadd.f32 %v10599_v50, %v639_v20 }
  0xf9   : > { %v1304_v5 = vadd.f32 %v10605_v52, %v639_v20  ;;  %v1389_v10 = vmax.f32 %v1234_v56, 0.0  ;;  %v9198_v20 = vld [vmem:[%s10290_s29 + $0x100] sm:$0xf] }
  0xfa   : > { %v1446_v8 = vmax.f32 %v1138_v18, 0.0  ;;  %v1447_v9 = vmax.f32 %v1307_v54, 0.0  ;;  %v1444_v12 = vmax.f32 %v1135_v63, 0.0 }
  0xfb   : > { %v1445_v59 = vmax.f32 %v1304_v5, 0.0  ;;  %v1505_v55 = vpack.c.bf16 %v1389_v10, %v1388_v58  ;;  %v9949_v58 = vld [vmem:[%s10290_s29 + $0x104] sm:$0xf0] }
  0xfc   : > { %v1534_v15 = vpack.c.bf16 %v1447_v9, %v1446_v8  ;;  %v1144_v16 = vpop.f32.mrf.mxu3  ;;  %v9199_v5 = vor.u32 %v9949_v58, %v9198_v20  ;;  %v9206_v8 = vld [vmem:[%s10290_s29 + $0x110] sm:$0xf]  ;;  %v9951_v9 = vld [vmem:[%s10290_s29 + $0x114] sm:$0xf0] }
  0xfd   : > { %v1533_v21 = vpack.c.bf16 %v1445_v59, %v1444_v12  ;;  %v1313_v50 = vpop.f32.mrf.mxu2  ;;  %v1067_v52 = vpop.f32.mrf.mxu0  ;;  %1569 = vst [vmem:[%s10477_s24 + $0x58] sm:$0xff] %v1505_v55  ;;  %v9207_v31 = vor.u32 %v9951_v9, %v9206_v8  ;;  %v9789_v8 = vld [vmem:[%s13577_s3 + $0x4] sm:$0xf0] }
  0xfe   : > { %1598 = vst [vmem:[%s10477_s24 + $0x140] sm:$0xff] %v1534_v15  ;;  %v1068_v19 = vadd.f32 %v1067_v52, %v10507_v32  ;;  %v1236_v23 = vpop.f32.mrf.mxu1  ;;  %4436 = vmatpush.bf16.msra.mxu3 %v9199_v5  ;;  %v8412_v5 = vld [vmem:[%s13577_s3] sm:$0xf] }
  0xff   : > { %v659_v22 = vpop.permute.xlu1 %658  ;;  %1597 = vst [vmem:[%s10477_s24 + $0x138] sm:$0xff] %v1533_v21  ;;  %v654_v33 = vpop.permute.xlu0 %653  ;;  %v1237_v36 = vadd.f32 %v1236_v23, %v10507_v32  ;;  %4612 = vmatpush.bf16.msra.mxu2 %v9207_v31  ;;  %v439_v31 = vld [vmem:[%s10279_s16 + $0x1f0] sm:$0xff] }
 0x100   : > { %v1145_v28 = vadd.f32 %v1144_v16, %v659_v22  ;;  %v1314_v30 = vadd.f32 %v1313_v50, %v659_v22  ;;  %v1390_v35 = vmax.f32 %v1068_v19, 0.0  ;;  %v1143_v37 = vadd.f32 %v1142_v3, %v654_v33  ;;  %8360 = vmatmul.msk.bf16.gmra.mxu0 %vm931_vm0, %v9768_v40  ;;  %v664_v32 = vpop.permute.xlu2 %663  ;;  %v440_v16 = vld [vmem:[%s10279_s16 + $0x1f8] sm:$0xff]  ;;  %753 = vperm.xlu2 %10101, %v439_v31  }
 0x101   : > { %v1312_v2 = vadd.f32 %v1311_v39, %v654_v33  ;;  %8376 = vmatmul.msk.bf16.gmra.mxu3 %vm931_vm0, %v9784_v60  ;;  %v1391_v7 = vmax.f32 %v1237_v36, 0.0  ;;  %8392 = vmatmul.msk.bf16.gmra.mxu1 %vm931_vm0, %v9768_v40  ;;  %v9785_v22 = vld [vmem:[%s13576_s2 + $0xf8] sm:$0xff]  ;;  %v9200_v33 = vld [vmem:[%s10290_s29 + $0x108] sm:$0xf0] }
 0x102   : > { %v1452_v46 = vmax.f32 %v1145_v28, 0.0  ;;  %v1453_v38 = vmax.f32 %v1314_v30, 0.0  ;;  %v1450_v13 = vmax.f32 %v1143_v37, 0.0  ;;  %8408 = vmatmul.msk.bf16.gmra.mxu2 %vm931_vm0, %v9784_v60  ;;  %758 = vperm.xlu0 %10099, %v440_v16   ;;  %v9948_v30 = vld [vmem:[%s10290_s29 + $0x104] sm:$0xf] }
 0x103   : > { %v1451_v43 = vmax.f32 %v1312_v2, 0.0  ;;  %v1506_v14 = vpack.c.bf16 %v1391_v7, %v1390_v35  ;;  %v9203_v37 = vor.u32 %v9948_v30, %v9200_v33  ;;  %v9950_v2 = vld [vmem:[%s10290_s29 + $0x114] sm:$0xf]  ;;  %v1707_v33 = vld [vmem:[%s10279_s16 + $0x218] sm:$0xff] }
 0x104   : > { %v1537_v3 = vpack.c.bf16 %v1453_v38, %v1452_v46  ;;  %v1147_v27 = vpop.f32.mrf.mxu3  ;;  %v9208_v46 = vld [vmem:[%s10290_s29 + $0x118] sm:$0xf0] }
 0x105   : > { %v1536_v39 = vpack.c.bf16 %v1451_v43, %v1450_v13  ;;  %v1148_v42 = vadd.f32 %v1147_v27, %v664_v32  ;;  %v1316_v51 = vpop.f32.mrf.mxu2  ;;  %v1069_v11 = vpop.f32.mrf.mxu0  ;;  %1570 = vst [vmem:[%s10477_s24 + $0x60] sm:$0xff] %v1506_v14  ;;  %v9211_v43 = vor.u32 %v9950_v2, %v9208_v46  ;;  %4774 = vmatpush.bf16.msra.mxu0 %v9203_v37  ;;  %v1704_v14 = vld [vmem:[%s10279_s16 + $0x200] sm:$0xff] }
 0x106   : > { %1601 = vst [vmem:[%s10477_s24 + $0x158] sm:$0xff] %v1537_v3  ;;  %v1317_v18 = vadd.f32 %v1316_v51, %v664_v32  ;;  %v1070_v54 = vadd.f32 %v1069_v11, %v10503_v26  ;;  %v1238_v63 = vpop.f32.mrf.mxu1  ;;  %1770 = vperm.xlu1 %10100, %v1704_v14  }
 0x107   : > { %1600 = vst [vmem:[%s10477_s24 + $0x150] sm:$0xff] %v1536_v39  ;;  %v1454_v56 = vmax.f32 %v1148_v42, 0.0  ;;  %v1239_v59 = vadd.f32 %v1238_v63, %v10503_v26  ;;  %v669_v21 = vpop.permute.xlu0 %668  ;;  %v9769_v26 = vld [vmem:[%s13576_s2 + $0x78] sm:$0xff]  ;;  %v674_v3 = vpop.permute.xlu1 %673  ;;  %4950 = vmatpush.bf16.msra.mxu1 %v9211_v43 }
 0x108   : > { %v1455_v10 = vmax.f32 %v1317_v18, 0.0  ;;  %v1392_v12 = vmax.f32 %v1070_v54, 0.0 }
 0x109   : > { %v1393_v55 = vmax.f32 %v1239_v59, 0.0  ;;  %v9788_v59 = vld [vmem:[%s13577_s3 + $0x4] sm:$0xf] }
 0x10a   : > { %v1538_v15 = vpack.c.bf16 %v1455_v10, %v1454_v56 }
 0x10b   : > { %v1507_v40 = vpack.c.bf16 %v1393_v55, %v1392_v12  ;;  %v679_v12 = vpop.permute.xlu2 %678 }
 0x10c   : > { %1602 = vst [vmem:[%s10477_s24 + $0x160] sm:$0xff] %v1538_v15  ;;  %v1149_v50 = vpop.f32.mrf.mxu3 }
 0x10d   : > { %v1150_v52 = vadd.f32 %v1149_v50, %v669_v21  ;;  %v1318_v60 = vpop.f32.mrf.mxu2  ;;  %v1072_v19 = vpop.f32.mrf.mxu0  ;;  %1571 = vst [vmem:[%s10477_s24 + $0x68] sm:$0xff] %v1507_v40 }
 0x10e   : > { %v1319_v23 = vadd.f32 %v1318_v60, %v669_v21  ;;  %v1073_v28 = vadd.f32 %v1072_v19, %v10447_v48  ;;  %v1241_v36 = vpop.f32.mrf.mxu1  ;;  %v8413_v21 = vor.u32 %v9789_v8, %v8412_v5  ;;  %1785 = vperm.xlu1 %10100, %v1707_v33   ;;  %v1705_v8 = vld [vmem:[%s10279_s16 + $0x208] sm:$0xff] }
 0x10f   : > { %v1456_v35 = vmax.f32 %v1150_v52, 0.0  ;;  %v1242_v13 = vadd.f32 %v1241_v36, %v10447_v48  ;;  %v684_v2 = vpop.permute.xlu0 %683  ;;  %1775 = vperm.xlu2 %10101, %v1705_v8   ;;  %v1719_v8 = vld [vmem:[%s10279_s16 + $0x278] sm:$0xff] }
 0x110   : > { %v1457_v38 = vmax.f32 %v1319_v23, 0.0  ;;  %v1394_v7 = vmax.f32 %v1073_v28, 0.0  ;;  %8361 = vmatmul.msk.bf16.gmra.mxu0 %vm931_vm0, %v9769_v26 }
 0x111   : > { %8377 = vmatmul.msk.bf16.gmra.mxu3 %vm931_vm0, %v9785_v22  ;;  %v1395_v41 = vmax.f32 %v1242_v13, 0.0  ;;  %8393 = vmatmul.msk.bf16.gmra.mxu1 %vm931_vm0, %v9769_v26 }
 0x112   : > { %v1539_v32 = vpack.c.bf16 %v1457_v38, %v1456_v35  ;;  %8409 = vmatmul.msk.bf16.gmra.mxu2 %vm931_vm0, %v9785_v22  ;;  %v1706_v35 = vld [vmem:[%s10279_s16 + $0x210] sm:$0xff] }
 0x113   : > { %v1508_v39 = vpack.c.bf16 %v1395_v41, %v1394_v7  ;;  %1780 = vperm.xlu0 %10099, %v1706_v35  }
 0x114   : > { %1603 = vst [vmem:[%s10477_s24 + $0x168] sm:$0xff] %v1539_v32  ;;  %v1152_v48 = vpop.f32.mrf.mxu3 }
 0x115   : > { %v1153_v27 = vadd.f32 %v1152_v48, %v674_v3  ;;  %v1321_v42 = vpop.f32.mrf.mxu2  ;;  %v1074_v51 = vpop.f32.mrf.mxu0  ;;  %1572 = vst [vmem:[%s10477_s24 + $0x70] sm:$0xff] %v1508_v39 }
 0x116   : > { %v1322_v11 = vadd.f32 %v1321_v42, %v674_v3  ;;  %v1075_v18 = vadd.f32 %v1074_v51, %v10525_v47  ;;  %v1243_v20 = vpop.f32.mrf.mxu1  ;;  %v1709_v42 = vld [vmem:[%s10279_s16 + $0x228] sm:$0xff]  ;;  %v8420_v51 = vld [vmem:[%s13577_s3 + $0x10] sm:$0xf] }
 0x117   : > { %v1458_v54 = vmax.f32 %v1153_v27, 0.0  ;;  %v1244_v63 = vadd.f32 %v1243_v20, %v10525_v47  ;;  %v8414_v47 = vld [vmem:[%s13577_s3 + $0x8] sm:$0xf0]  ;;  %v1710_v27 = vld [vmem:[%s10279_s16 + $0x230] sm:$0xff]  ;;  %v689_v20 = vpop.permute.xlu1 %688 }
 0x118   : > { %v1459_v58 = vmax.f32 %v1322_v11, 0.0  ;;  %v1396_v56 = vmax.f32 %v1075_v18, 0.0  ;;  %v8417_v26 = vor.u32 %v9788_v59, %v8414_v47  ;;  %v9791_v11 = vld [vmem:[%s13577_s3 + $0x14] sm:$0xf0]  ;;  %1800 = vperm.xlu1 %10100, %v1710_v27  }
 0x119   : > { %v1397_v10 = vmax.f32 %v1244_v63, 0.0  ;;  %v8421_v5 = vor.u32 %v9791_v11, %v8420_v51 }
 0x11a   : > { %v1540_v9 = vpack.c.bf16 %v1459_v58, %v1458_v54  ;;  %v8422_v58 = vld [vmem:[%s13577_s3 + $0x18] sm:$0xf0] }
 0x11b   : > { %v1509_v15 = vpack.c.bf16 %v1397_v10, %v1396_v56  ;;  %1795 = vperm.xlu0 %10099, %v1709_v42  }
 0x11c   : > { %1604 = vst [vmem:[%s10477_s24 + $0x170] sm:$0xff] %v1540_v9  ;;  %v1154_v55 = vpop.f32.mrf.mxu3 }
 0x11d   : > { %v1155_v16 = vadd.f32 %v1154_v55, %v679_v12  ;;  %v1323_v40 = vpop.f32.mrf.mxu2  ;;  %v1077_v50 = vpop.f32.mrf.mxu0  ;;  %1573 = vst [vmem:[%s10477_s24 + $0x78] sm:$0xff] %v1509_v15 }
 0x11e   : > { %v1324_v52 = vadd.f32 %v1323_v40, %v679_v12  ;;  %v1078_v60 = vadd.f32 %v1077_v50, %v10523_v45  ;;  %v1246_v22 = vpop.f32.mrf.mxu1  ;;  %v1713_v50 = vld [vmem:[%s10279_s16 + $0x248] sm:$0xff] }
 0x11f   : > { %v1460_v19 = vmax.f32 %v1155_v16, 0.0  ;;  %v1247_v30 = vadd.f32 %v1246_v22, %v10523_v45 }
 0x120   : > { %v1461_v23 = vmax.f32 %v1324_v52, 0.0  ;;  %v1398_v28 = vmax.f32 %v1078_v60, 0.0  ;;  %2908 = vmatmul.bf16.vlgmr.msrb.gmra.mxu0 %v8413_v21  ;;  %1815 = vperm.xlu1 %10100, %v1713_v50   ;;  %v9947_v50 = vld [vmem:[%s10290_s29 + $0xf4] sm:$0xf0] }
 0x121   : > { %8738 = vmatmul.msk.bf16.vlgmr.msrb.gmra.mxu3 %vm931_vm0, %v8417_v26  ;;  %v1399_v37 = vmax.f32 %v1247_v30, 0.0  ;;  %8770 = vmatmul.msk.bf16.vlgmr.msrb.gmra.mxu1 %vm931_vm0, %v8417_v26  ;;  %v1712_v26 = vld [vmem:[%s10279_s16 + $0x240] sm:$0xff] }
 0x122   : > { %v1541_v36 = vpack.c.bf16 %v1461_v23, %v1460_v19  ;;  %2570 = vmatmul.bf16.vlgmr.msrb.gmra.mxu2 %v8413_v21  ;;  %v694_v19 = vpop.permute.xlu2 %693 }
 0x123   : > { %v1510_v46 = vpack.c.bf16 %v1399_v37, %v1398_v28  ;;  %1810 = vperm.xlu0 %10099, %v1712_v26  }
 0x124   : > { %1605 = vst [vmem:[%s10477_s24 + $0x178] sm:$0xff] %v1541_v36  ;;  %v1157_v38 = vpop.f32.mrf.mxu3 }
 0x125   : > { %v1158_v45 = vadd.f32 %v1157_v38, %v684_v2  ;;  %v1326_v7 = vpop.f32.mrf.mxu2  ;;  %v1079_v13 = vpop.f32.mrf.mxu0  ;;  %1574 = vst [vmem:[%s10477_s24 + $0x80] sm:$0xff] %v1510_v46 }
 0x126   : > { %v1327_v43 = vadd.f32 %v1326_v7, %v684_v2  ;;  %v1080_v32 = vadd.f32 %v1079_v13, %v10460_v57  ;;  %v1248_v3 = vpop.f32.mrf.mxu1  ;;  %v1715_v7 = vld [vmem:[%s10279_s16 + $0x258] sm:$0xff]  ;;  %v8428_v13 = vld [vmem:[%s13577_s3 + $0x20] sm:$0xf] }
 0x127   : > { %v1462_v41 = vmax.f32 %v1158_v45, 0.0  ;;  %v1249_v48 = vadd.f32 %v1248_v3, %v10460_v57  ;;  %v9790_v57 = vld [vmem:[%s13577_s3 + $0x14] sm:$0xf]  ;;  %v1716_v45 = vld [vmem:[%s10279_s16 + $0x260] sm:$0xff]  ;;  %v699_v3 = vpop.permute.xlu0 %698 }
 0x128   : > { %v1463_v14 = vmax.f32 %v1327_v43, 0.0  ;;  %v1400_v39 = vmax.f32 %v1080_v32, 0.0  ;;  %v8425_v59 = vor.u32 %v9790_v57, %v8422_v58  ;;  %v9793_v43 = vld [vmem:[%s13577_s3 + $0x24] sm:$0xf0]  ;;  %1830 = vperm.xlu1 %10100, %v1716_v45  }
 0x129   : > { %v1401_v54 = vmax.f32 %v1249_v48, 0.0  ;;  %v8429_v27 = vor.u32 %v9793_v43, %v8428_v13 }
 0x12a   : > { %v1542_v18 = vpack.c.bf16 %v1463_v14, %v1462_v41  ;;  %v9792_v14 = vld [vmem:[%s13577_s3 + $0x24] sm:$0xf] }
 0x12b   : > { %v1511_v56 = vpack.c.bf16 %v1401_v54, %v1400_v39  ;;  %1825 = vperm.xlu0 %10099, %v1715_v7  }
 0x12c   : > { %1606 = vst [vmem:[%s10477_s24 + $0x180] sm:$0xff] %v1542_v18  ;;  %v1159_v63 = vpop.f32.mrf.mxu3 }
 0x12d   : > { %v1160_v9 = vadd.f32 %v1159_v63, %v689_v20  ;;  %v1328_v10 = vpop.f32.mrf.mxu2  ;;  %v1082_v12 = vpop.f32.mrf.mxu0  ;;  %1575 = vst [vmem:[%s10477_s24 + $0x88] sm:$0xff] %v1511_v56 }
 0x12e   : > { %v1329_v47 = vadd.f32 %v1328_v10, %v689_v20  ;;  %v1083_v31 = vadd.f32 %v1082_v12, %v10541_v4  ;;  %v1251_v55 = vpop.f32.mrf.mxu1 }
 0x12f   : > { %v1464_v15 = vmax.f32 %v1160_v9, 0.0  ;;  %v1252_v40 = vadd.f32 %v1251_v55, %v10541_v4  ;;  %v1718_v9 = vld [vmem:[%s10279_s16 + $0x270] sm:$0xff] }
 0x130   : > { %v1465_v21 = vmax.f32 %v1329_v47, 0.0  ;;  %v1402_v16 = vmax.f32 %v1083_v31, 0.0  ;;  %2913 = vmatmul.bf16.gmra.mxu0 %v8421_v5  ;;  %1845 = vperm.xlu1 %10100, %v1719_v8  }
 0x131   : > { %8739 = vmatmul.msk.bf16.gmra.mxu3 %vm931_vm0, %v8425_v59  ;;  %v1403_v60 = vmax.f32 %v1252_v40, 0.0  ;;  %8771 = vmatmul.msk.bf16.gmra.mxu1 %vm931_vm0, %v8425_v59  ;;  %v704_v59 = vpop.permute.xlu1 %703  ;;  %v9190_v40 = vld [vmem:[%s10290_s29 + $0xf0] sm:$0xf] }
 0x132   : > { %v1543_v52 = vpack.c.bf16 %v1465_v21, %v1464_v15  ;;  %2575 = vmatmul.bf16.gmra.mxu2 %v8421_v5 }
 0x133   : > { %v1512_v22 = vpack.c.bf16 %v1403_v60, %v1402_v16  ;;  %1840 = vperm.xlu0 %10099, %v1718_v9   ;;  %v9191_v60 = vor.u32 %v9947_v50, %v9190_v40  ;;  %v8444_v40 = vld [vmem:[%s13577_s3 + $0x40] sm:$0xf]  ;;  %v9797_v50 = vld [vmem:[%s13577_s3 + $0x44] sm:$0xf0] }
 0x134   : > { %1607 = vst [vmem:[%s10477_s24 + $0x188] sm:$0xff] %v1543_v52  ;;  %v1162_v23 = vpop.f32.mrf.mxu3 }
 0x135   : > { %v1163_v4 = vadd.f32 %v1162_v23, %v694_v19  ;;  %v1331_v28 = vpop.f32.mrf.mxu2  ;;  %v1084_v30 = vpop.f32.mrf.mxu0  ;;  %1576 = vst [vmem:[%s10477_s24 + $0x90] sm:$0xff] %v1512_v22  ;;  %4437 = vmatpush.bf16.msra.mxu3 %v9191_v60 }
 0x136   : > { %v1332_v33 = vadd.f32 %v1331_v28, %v694_v19  ;;  %v1085_v35 = vadd.f32 %v1084_v30, %v10539_v0  ;;  %v1253_v37 = vpop.f32.mrf.mxu1  ;;  %v1722_v28 = vld [vmem:[%s10279_s16 + $0x290] sm:$0xff]  ;;  %v1721_v30 = vld [vmem:[%s10279_s16 + $0x288] sm:$0xff] }
 0x137   : > { %v1466_v36 = vmax.f32 %v1163_v4, 0.0  ;;  %v1254_v38 = vadd.f32 %v1253_v37, %v10539_v0  ;;  %v8430_v0 = vld [vmem:[%s13577_s3 + $0x28] sm:$0xf0]  ;;  %v1708_v4 = vld [vmem:[%s10279_s16 + $0x220] sm:$0xff] }
 0x138   : > { %v1467_v2 = vmax.f32 %v1332_v33, 0.0  ;;  %v1404_v46 = vmax.f32 %v1085_v35, 0.0  ;;  %v8433_v18 = vor.u32 %v9792_v14, %v8430_v0  ;;  %v8436_v33 = vld [vmem:[%s13577_s3 + $0x30] sm:$0xf]  ;;  %v9795_v35 = vld [vmem:[%s13577_s3 + $0x34] sm:$0xf0]  ;;  %1790 = vperm.xlu2 %10101, %v1708_v4   ;;  %1860 = vperm.xlu1 %10100, %v1722_v28   ;;  %v8445_v28 = vor.u32 %v9797_v50, %v8444_v40 }
 0x139   : > { %v1405_v41 = vmax.f32 %v1254_v38, 0.0  ;;  %v8437_v7 = vor.u32 %v9795_v35, %v8436_v33  ;;  %v9946_v0 = vld [vmem:[%s10290_s29 + $0xf4] sm:$0xf] }
 0x13a   : > { %v1544_v32 = vpack.c.bf16 %v1467_v2, %v1466_v36  ;;  %v709_v2 = vpop.permute.xlu2 %708 }
 0x13b   : > { %v1513_v39 = vpack.c.bf16 %v1405_v41, %v1404_v46  ;;  %v8438_v46 = vld [vmem:[%s13577_s3 + $0x38] sm:$0xf0]  ;;  %1855 = vperm.xlu0 %10099, %v1721_v30  }
 0x13c   : > { %1608 = vst [vmem:[%s10477_s24 + $0x190] sm:$0xff] %v1544_v32  ;;  %v1164_v48 = vpop.f32.mrf.mxu3 }
 0x13d   : > { %v1165_v42 = vadd.f32 %v1164_v48, %v699_v3  ;;  %v1333_v51 = vpop.f32.mrf.mxu2  ;;  %v1087_v11 = vpop.f32.mrf.mxu0  ;;  %1577 = vst [vmem:[%s10477_s24 + $0x98] sm:$0xff] %v1513_v39  ;;  %v9192_v39 = vld [vmem:[%s10290_s29 + $0xf8] sm:$0xf0] }
 0x13e   : > { %v1334_v54 = vadd.f32 %v1333_v51, %v699_v3  ;;  %v1088_v20 = vadd.f32 %v1087_v11, %v10480_v6  ;;  %v1256_v58 = vpop.f32.mrf.mxu1 }
 0x13f   : > { %v1468_v57 = vmax.f32 %v1165_v42, 0.0  ;;  %v1257_v5 = vadd.f32 %v1256_v58, %v10480_v6  ;;  %v9195_v42 = vor.u32 %v9946_v0, %v9192_v39 }
 0x140   : > { %v1469_v56 = vmax.f32 %v1334_v54, 0.0  ;;  %v1406_v63 = vmax.f32 %v1088_v20, 0.0  ;;  %2918 = vmatmul.bf16.gmra.mxu0 %v8429_v27  ;;  %v1711_v54 = vld [vmem:[%s10279_s16 + $0x238] sm:$0xff]  ;;  %v1725_v20 = vld [vmem:[%s10279_s16 + $0x2a8] sm:$0xff] }
 0x141   : > { %8740 = vmatmul.msk.bf16.gmra.mxu3 %vm931_vm0, %v8433_v18  ;;  %v1407_v12 = vmax.f32 %v1257_v5, 0.0  ;;  %8772 = vmatmul.msk.bf16.gmra.mxu1 %vm931_vm0, %v8433_v18 }
 0x142   : > { %v1545_v10 = vpack.c.bf16 %v1469_v56, %v1468_v57  ;;  %2580 = vmatmul.bf16.gmra.mxu2 %v8429_v27  ;;  %4775 = vmatpush.bf16.msra.mxu0 %v9195_v42  ;;  %v1724_v57 = vld [vmem:[%s10279_s16 + $0x2a0] sm:$0xff] }
 0x143   : > { %v1514_v47 = vpack.c.bf16 %v1407_v12, %v1406_v63  ;;  %v714_v63 = vpop.permute.xlu0 %713  ;;  %1805 = vperm.xlu2 %10101, %v1711_v54   ;;  %1875 = vperm.xlu1 %10100, %v1725_v20  }
 0x144   : > { %1609 = vst [vmem:[%s10477_s24 + $0x198] sm:$0xff] %v1545_v10  ;;  %v1167_v6 = vpop.f32.mrf.mxu3  ;;  %1870 = vperm.xlu0 %10099, %v1724_v57  }
 0x145   : > { %v1168_v31 = vadd.f32 %v1167_v6, %v704_v59  ;;  %v1336_v15 = vpop.f32.mrf.mxu2  ;;  %v1089_v55 = vpop.f32.mrf.mxu0  ;;  %1578 = vst [vmem:[%s10477_s24 + $0xa0] sm:$0xff] %v1514_v47 }
 0x146   : > { %v1337_v21 = vadd.f32 %v1336_v15, %v704_v59  ;;  %v1090_v16 = vadd.f32 %v1089_v55, %v10561_v29  ;;  %v1258_v52 = vpop.f32.mrf.mxu1 }
 0x147   : > { %v1470_v26 = vmax.f32 %v1168_v31, 0.0  ;;  %v1259_v23 = vadd.f32 %v1258_v52, %v10561_v29  ;;  %v9794_v29 = vld [vmem:[%s13577_s3 + $0x34] sm:$0xf] }
 0x148   : > { %v1471_v19 = vmax.f32 %v1337_v21, 0.0  ;;  %v1408_v22 = vmax.f32 %v1090_v16, 0.0  ;;  %v8441_v41 = vor.u32 %v9794_v29, %v8438_v46  ;;  %v1714_v21 = vld [vmem:[%s10279_s16 + $0x250] sm:$0xff]  ;;  %v1728_v16 = vld [vmem:[%s10279_s16 + $0x2c0] sm:$0xff] }
 0x149   : > { %v1409_v37 = vmax.f32 %v1259_v23, 0.0 }
 0x14a   : > { %v1546_v36 = vpack.c.bf16 %v1471_v19, %v1470_v26  ;;  %v1727_v26 = vld [vmem:[%s10279_s16 + $0x2b8] sm:$0xff]  ;;  %v719_v19 = vpop.permute.xlu1 %718 }
 0x14b   : > { %v1515_v38 = vpack.c.bf16 %v1409_v37, %v1408_v22  ;;  %v9796_v22 = vld [vmem:[%s13577_s3 + $0x44] sm:$0xf]  ;;  %1820 = vperm.xlu2 %10101, %v1714_v21   ;;  %1890 = vperm.xlu1 %10100, %v1728_v16  }
 0x14c   : > { %1610 = vst [vmem:[%s10477_s24 + $0x1a0] sm:$0xff] %v1546_v36  ;;  %v1169_v45 = vpop.f32.mrf.mxu3  ;;  %1885 = vperm.xlu0 %10099, %v1727_v26  }
 0x14d   : > { %v1170_v13 = vadd.f32 %v1169_v45, %v709_v2  ;;  %v1338_v43 = vpop.f32.mrf.mxu2  ;;  %v1092_v32 = vpop.f32.mrf.mxu0  ;;  %1579 = vst [vmem:[%s10477_s24 + $0xa8] sm:$0xff] %v1515_v38 }
 0x14e   : > { %v1339_v3 = vadd.f32 %v1338_v43, %v709_v2  ;;  %v1093_v14 = vadd.f32 %v1092_v32, %v10555_v17  ;;  %v1261_v27 = vpop.f32.mrf.mxu1  ;;  %v1731_v43 = vld [vmem:[%s10279_s16 + $0x2d8] sm:$0xff]  ;;  %v1730_v32 = vld [vmem:[%s10279_s16 + $0x2d0] sm:$0xff] }
 0x14f   : > { %v1472_v48 = vmax.f32 %v1170_v13, 0.0  ;;  %v1262_v18 = vadd.f32 %v1261_v27, %v10555_v17  ;;  %v1717_v13 = vld [vmem:[%s10279_s16 + $0x268] sm:$0xff] }
 0x150   : > { %v1473_v51 = vmax.f32 %v1339_v3, 0.0  ;;  %v1410_v11 = vmax.f32 %v1093_v14, 0.0  ;;  %2923 = vmatmul.bf16.gmra.mxu0 %v8437_v7  ;;  %v724_v14 = vpop.permute.xlu2 %723 }
 0x151   : > { %8741 = vmatmul.msk.bf16.gmra.mxu3 %vm931_vm0, %v8441_v41  ;;  %v1411_v56 = vmax.f32 %v1262_v18, 0.0  ;;  %8773 = vmatmul.msk.bf16.gmra.mxu1 %vm931_vm0, %v8441_v41 }
 0x152   : > { %v1547_v58 = vpack.c.bf16 %v1473_v51, %v1472_v48  ;;  %2585 = vmatmul.bf16.gmra.mxu2 %v8437_v7 }
 0x153   : > { %v1516_v17 = vpack.c.bf16 %v1411_v56, %v1410_v11  ;;  %1835 = vperm.xlu2 %10101, %v1717_v13   ;;  %1905 = vperm.xlu1 %10100, %v1731_v43   ;;  %v1734_v56 = vld [vmem:[%s10279_s16 + $0x2f0] sm:$0xff] }
 0x154   : > { %1611 = vst [vmem:[%s10477_s24 + $0x1a8] sm:$0xff] %v1547_v58  ;;  %v1172_v5 = vpop.f32.mrf.mxu3  ;;  %1900 = vperm.xlu0 %10099, %v1730_v32   ;;  %v1720_v58 = vld [vmem:[%s10279_s16 + $0x280] sm:$0xff]  ;;  %v1726_v43 = vld [vmem:[%s10279_s16 + $0x2b0] sm:$0xff] }
 0x155   : > { %v1173_v8 = vadd.f32 %v1172_v5, %v714_v63  ;;  %v1341_v9 = vpop.f32.mrf.mxu2  ;;  %v1094_v10 = vpop.f32.mrf.mxu0  ;;  %1580 = vst [vmem:[%s10477_s24 + $0xb0] sm:$0xff] %v1516_v17  ;;  %v9799_v17 = vld [vmem:[%s13577_s3 + $0x54] sm:$0xf0]  ;;  %v1733_v5 = vld [vmem:[%s10279_s16 + $0x2e8] sm:$0xff]  ;;  %v1740_v32 = vld [vmem:[%s10279_s16 + $0x320] sm:$0xff] }
 0x156   : > { %v1342_v12 = vadd.f32 %v1341_v9, %v714_v63  ;;  %v1095_v59 = vadd.f32 %v1094_v10, %v10501_v25  ;;  %v1263_v6 = vpop.f32.mrf.mxu1  ;;  %v8452_v63 = vld [vmem:[%s13577_s3 + $0x50] sm:$0xf]  ;;  %v729_v10 = vpop.permute.xlu0 %728 }
 0x157   : > { %v1474_v47 = vmax.f32 %v1173_v8, 0.0  ;;  %v1264_v55 = vadd.f32 %v1263_v6, %v10501_v25  ;;  %v8446_v25 = vld [vmem:[%s13577_s3 + $0x48] sm:$0xf0]  ;;  %v8453_v6 = vor.u32 %v9799_v17, %v8452_v63 }
 0x158   : > { %v1475_v31 = vmax.f32 %v1342_v12, 0.0  ;;  %v1412_v15 = vmax.f32 %v1095_v59, 0.0  ;;  %v8449_v36 = vor.u32 %v9796_v22, %v8446_v25  ;;  %v9798_v12 = vld [vmem:[%s13577_s3 + $0x54] sm:$0xf]  ;;  %v1723_v22 = vld [vmem:[%s10279_s16 + $0x298] sm:$0xff]  ;;  %v1737_v25 = vld [vmem:[%s10279_s16 + $0x308] sm:$0xff] }
 0x159   : > { %v1413_v60 = vmax.f32 %v1264_v55, 0.0 }
 0x15a   : > { %v1548_v52 = vpack.c.bf16 %v1475_v31, %v1474_v47 }
 0x15b   : > { %v1517_v23 = vpack.c.bf16 %v1413_v60, %v1412_v15  ;;  %1850 = vperm.xlu2 %10101, %v1720_v58   ;;  %1920 = vperm.xlu1 %10100, %v1734_v56  }
 0x15c   : > { %1612 = vst [vmem:[%s10477_s24 + $0x1b0] sm:$0xff] %v1548_v52  ;;  %v1174_v4 = vpop.f32.mrf.mxu3  ;;  %1915 = vperm.xlu0 %10099, %v1733_v5  }
 0x15d   : > { %v1175_v30 = vadd.f32 %v1174_v4, %v719_v19  ;;  %v1343_v33 = vpop.f32.mrf.mxu2  ;;  %v1097_v35 = vpop.f32.mrf.mxu0  ;;  %1581 = vst [vmem:[%s10477_s24 + $0xb8] sm:$0xff] %v1517_v23  ;;  %v1736_v23 = vld [vmem:[%s10279_s16 + $0x300] sm:$0xff] }
 0x15e   : > { %v1344_v37 = vadd.f32 %v1343_v33, %v719_v19  ;;  %v1098_v2 = vadd.f32 %v1097_v35, %v10580_v62  ;;  %v1266_v46 = vpop.f32.mrf.mxu1 }
 0x15f   : > { %v1476_v29 = vmax.f32 %v1175_v30, 0.0  ;;  %v1267_v7 = vadd.f32 %v1266_v46, %v10580_v62  ;;  %v734_v30 = vpop.permute.xlu1 %733 }
 0x160   : > { %v1477_v38 = vmax.f32 %v1344_v37, 0.0  ;;  %v1414_v45 = vmax.f32 %v1098_v2, 0.0  ;;  %2928 = vmatmul.bf16.gmra.mxu0 %v8445_v28 }
 0x161   : > { %8742 = vmatmul.msk.bf16.gmra.mxu3 %vm931_vm0, %v8449_v36  ;;  %v1415_v3 = vmax.f32 %v1267_v7, 0.0  ;;  %8774 = vmatmul.msk.bf16.gmra.mxu1 %vm931_vm0, %v8449_v36 }
 0x162   : > { %v1549_v41 = vpack.c.bf16 %v1477_v38, %v1476_v29  ;;  %2590 = vmatmul.bf16.gmra.mxu2 %v8445_v28 }
 0x163   : > { %v1518_v0 = vpack.c.bf16 %v1415_v3, %v1414_v45  ;;  %1865 = vperm.xlu2 %10101, %v1723_v22   ;;  %1935 = vperm.xlu1 %10100, %v1737_v25   ;;  %v9801_v3 = vld [vmem:[%s13577_s3 + $0x64] sm:$0xf0] }
 0x164   : > { %1613 = vst [vmem:[%s10477_s24 + $0x1b8] sm:$0xff] %v1549_v41  ;;  %v1177_v62 = vpop.f32.mrf.mxu3  ;;  %1930 = vperm.xlu0 %10099, %v1736_v23   ;;  %v8460_v41 = vld [vmem:[%s13577_s3 + $0x60] sm:$0xf] }
 0x165   : > { %v1178_v39 = vadd.f32 %v1177_v62, %v724_v14  ;;  %v1346_v48 = vpop.f32.mrf.mxu2  ;;  %v1099_v27 = vpop.f32.mrf.mxu0  ;;  %1582 = vst [vmem:[%s10477_s24 + $0xc0] sm:$0xff] %v1518_v0 }
 0x166   : > { %v1347_v42 = vadd.f32 %v1346_v48, %v724_v14  ;;  %v1100_v51 = vadd.f32 %v1099_v27, %v10578_v53  ;;  %v1268_v18 = vpop.f32.mrf.mxu1  ;;  %v1739_v14 = vld [vmem:[%s10279_s16 + $0x318] sm:$0xff]  ;;  %v9800_v48 = vld [vmem:[%s13577_s3 + $0x64] sm:$0xf] }
 0x167   : > { %v1478_v11 = vmax.f32 %v1178_v39, 0.0  ;;  %v1269_v57 = vadd.f32 %v1268_v18, %v10578_v53  ;;  %v8454_v53 = vld [vmem:[%s13577_s3 + $0x58] sm:$0xf0]  ;;  %v739_v39 = vpop.permute.xlu2 %738 }
 0x168   : > { %v1479_v54 = vmax.f32 %v1347_v42, 0.0  ;;  %v1416_v20 = vmax.f32 %v1100_v51, 0.0  ;;  %v8457_v21 = vor.u32 %v9798_v12, %v8454_v53  ;;  %v8461_v51 = vor.u32 %v9801_v3, %v8460_v41  ;;  %v1742_v12 = vld [vmem:[%s10279_s16 + $0x330] sm:$0xff] }
 0x169   : > { %v1417_v9 = vmax.f32 %v1269_v57, 0.0 }
 0x16a   : > { %v1550_v8 = vpack.c.bf16 %v1479_v54, %v1478_v11 }
 0x16b   : > { %v1519_v59 = vpack.c.bf16 %v1417_v9, %v1416_v20  ;;  %1880 = vperm.xlu2 %10101, %v1726_v43   ;;  %1950 = vperm.xlu1 %10100, %v1740_v32   ;;  %v1729_v9 = vld [vmem:[%s10279_s16 + $0x2c8] sm:$0xff] }
 0x16c   : > { %1614 = vst [vmem:[%s10477_s24 + $0x1c0] sm:$0xff] %v1550_v8  ;;  %v1179_v47 = vpop.f32.mrf.mxu3  ;;  %1945 = vperm.xlu0 %10099, %v1739_v14   ;;  %v9944_v14 = vld [vmem:[%s10290_s29 + $0xe4] sm:$0xf] }
 0x16d   : > { %v1180_v31 = vadd.f32 %v1179_v47, %v729_v10  ;;  %v1348_v15 = vpop.f32.mrf.mxu2  ;;  %v1102_v55 = vpop.f32.mrf.mxu0  ;;  %1583 = vst [vmem:[%s10477_s24 + $0xc8] sm:$0xff] %v1519_v59 }
 0x16e   : > { %v1349_v16 = vadd.f32 %v1348_v15, %v729_v10  ;;  %v1103_v40 = vadd.f32 %v1102_v55, %v10521_v44  ;;  %v1271_v26 = vpop.f32.mrf.mxu1  ;;  %v1743_v10 = vld [vmem:[%s10279_s16 + $0x338] sm:$0xff]  ;;  %v744_v47 = vpop.permute.xlu0 %743  ;;  %v9182_v15 = vld [vmem:[%s10290_s29 + $0xe0] sm:$0xf]  ;;  %v9945_v55 = vld [vmem:[%s10290_s29 + $0xe4] sm:$0xf0] }
 0x16f   : > { %v1480_v50 = vmax.f32 %v1180_v31, 0.0  ;;  %v1272_v19 = vadd.f32 %v1271_v26, %v10521_v44 }
 0x170   : > { %v1481_v52 = vmax.f32 %v1349_v16, 0.0  ;;  %v1418_v60 = vmax.f32 %v1103_v40, 0.0  ;;  %2933 = vmatmul.bf16.gmra.mxu0 %v8453_v6 }
 0x171   : > { %8743 = vmatmul.msk.bf16.gmra.mxu3 %vm931_vm0, %v8457_v21  ;;  %v1419_v28 = vmax.f32 %v1272_v19, 0.0  ;;  %8775 = vmatmul.msk.bf16.gmra.mxu1 %vm931_vm0, %v8457_v21 }
 0x172   : > { %v1551_v4 = vpack.c.bf16 %v1481_v52, %v1480_v50  ;;  %2595 = vmatmul.bf16.gmra.mxu2 %v8453_v6  ;;  %v749_v6 = vpop.permute.xlu1 %748  ;;  %v9183_v50 = vor.u32 %v9945_v55, %v9182_v15  ;;  %v8476_v15 = vld [vmem:[%s13577_s3 + $0x80] sm:$0xf]  ;;  %v9805_v55 = vld [vmem:[%s13577_s3 + $0x84] sm:$0xf0] }
 0x173   : > { %v1520_v33 = vpack.c.bf16 %v1419_v28, %v1418_v60  ;;  %1895 = vperm.xlu2 %10101, %v1729_v9   ;;  %1965 = vperm.xlu1 %10100, %v1743_v10   ;;  %v1746_v28 = vld [vmem:[%s10279_s16 + $0x350] sm:$0xff] }
 0x174   : > { %1615 = vst [vmem:[%s10477_s24 + $0x1c8] sm:$0xff] %v1551_v4  ;;  %v1182_v44 = vpop.f32.mrf.mxu3  ;;  %1960 = vperm.xlu0 %10099, %v1742_v12   ;;  %4438 = vmatpush.bf16.msra.mxu3 %v9183_v50  ;;  %v1732_v4 = vld [vmem:[%s10279_s16 + $0x2e0] sm:$0xff] }
 0x175   : > { %v1183_v35 = vadd.f32 %v1182_v44, %v734_v30  ;;  %v1351_v36 = vpop.f32.mrf.mxu2  ;;  %v1104_v37 = vpop.f32.mrf.mxu0  ;;  %1584 = vst [vmem:[%s10477_s24 + $0xd0] sm:$0xff] %v1520_v33  ;;  %v9803_v33 = vld [vmem:[%s13577_s3 + $0x74] sm:$0xf0]  ;;  %v1745_v44 = vld [vmem:[%s10279_s16 + $0x348] sm:$0xff]  ;;  %v9804_v50 = vld [vmem:[%s13577_s3 + $0x84] sm:$0xf] }
 0x176   : > { %v1352_v2 = vadd.f32 %v1351_v36, %v734_v30  ;;  %v1105_v29 = vadd.f32 %v1104_v37, %v10595_v34  ;;  %v1273_v38 = vpop.f32.mrf.mxu1  ;;  %v8468_v30 = vld [vmem:[%s13577_s3 + $0x70] sm:$0xf]  ;;  %v9802_v37 = vld [vmem:[%s13577_s3 + $0x74] sm:$0xf]  ;;  %v759_v3 = vpop.permute.xlu0 %758 }
 0x177   : > { %v1482_v46 = vmax.f32 %v1183_v35, 0.0  ;;  %v1274_v13 = vadd.f32 %v1273_v38, %v10595_v34  ;;  %v8462_v34 = vld [vmem:[%s13577_s3 + $0x68] sm:$0xf0]  ;;  %v8469_v38 = vor.u32 %v9803_v33, %v8468_v30 }
 0x178   : > { %v1483_v45 = vmax.f32 %v1352_v2, 0.0  ;;  %v1420_v7 = vmax.f32 %v1105_v29, 0.0  ;;  %v8465_v20 = vor.u32 %v9800_v48, %v8462_v34 }
 0x179   : > { %v1421_v62 = vmax.f32 %v1274_v13, 0.0 }
 0x17a   : > { %v1552_v0 = vpack.c.bf16 %v1483_v45, %v1482_v46  ;;  %v10929_v2 = vpop.permute.xlu1 %1770 }
 0x17b   : > { %v1521_v27 = vpack.c.bf16 %v1421_v62, %v1420_v7  ;;  %1910 = vperm.xlu2 %10101, %v1732_v4   ;;  %1980 = vperm.xlu1 %10100, %v1746_v28  }
 0x17c   : > { %1616 = vst [vmem:[%s10477_s24 + $0x1d0] sm:$0xff] %v1552_v0  ;;  %v1184_v42 = vpop.f32.mrf.mxu3  ;;  %1975 = vperm.xlu0 %10099, %v1745_v44   ;;  %v9184_v0 = vld [vmem:[%s10290_s29 + $0xe8] sm:$0xf0] }
 0x17d   : > { %v1185_v11 = vadd.f32 %v1184_v42, %v739_v39  ;;  %v1353_v18 = vpop.f32.mrf.mxu2  ;;  %v1107_v54 = vpop.f32.mrf.mxu0  ;;  %1585 = vst [vmem:[%s10477_s24 + $0xd8] sm:$0xff] %v1521_v27  ;;  %v9187_v48 = vor.u32 %v9944_v14, %v9184_v0 }
 0x17e   : > { %v1354_v57 = vadd.f32 %v1353_v18, %v739_v39  ;;  %v1108_v58 = vadd.f32 %v1107_v54, %v10593_v24  ;;  %v1276_v63 = vpop.f32.mrf.mxu1  ;;  %v1748_v18 = vld [vmem:[%s10279_s16 + $0x360] sm:$0xff] }
 0x17f   : > { %v1484_v56 = vmax.f32 %v1185_v11, 0.0  ;;  %v1277_v8 = vadd.f32 %v1276_v63, %v10593_v24  ;;  %v1749_v11 = vld [vmem:[%s10279_s16 + $0x368] sm:$0xff]  ;;  %4776 = vmatpush.bf16.msra.mxu0 %v9187_v48  ;;  %v1744_v48 = vld [vmem:[%s10279_s16 + $0x340] sm:$0xff] }
 0x180   : > { %v1485_v17 = vmax.f32 %v1354_v57, 0.0  ;;  %v1422_v5 = vmax.f32 %v1108_v58, 0.0  ;;  %2938 = vmatmul.bf16.gmra.mxu0 %v8461_v51  ;;  %v754_v57 = vpop.permute.xlu2 %753 }
 0x181   : > { %8744 = vmatmul.msk.bf16.gmra.mxu3 %vm931_vm0, %v8465_v20  ;;  %v1423_v59 = vmax.f32 %v1277_v8, 0.0  ;;  %8776 = vmatmul.msk.bf16.gmra.mxu1 %vm931_vm0, %v8465_v20 }
 0x182   : > { %v1553_v53 = vpack.c.bf16 %v1485_v17, %v1484_v56  ;;  %2600 = vmatmul.bf16.gmra.mxu2 %v8461_v51  ;;  %v1735_v51 = vld [vmem:[%s10279_s16 + $0x2f8] sm:$0xff]  ;;  %v10942_v58 = vpop.permute.xlu1 %1785 }
 0x183   : > { %v1522_v24 = vpack.c.bf16 %v1423_v59, %v1422_v5  ;;  %1925 = vperm.xlu2 %10101, %v1735_v51   ;;  %1995 = vperm.xlu1 %10100, %v1749_v11   ;;  %v1757_v51 = vld [vmem:[%s10279_s16 + $0x3a8] sm:$0xff] }
 0x184   : > { %1617 = vst [vmem:[%s10477_s24 + $0x1d8] sm:$0xff] %v1553_v53  ;;  %v1187_v31 = vpop.f32.mrf.mxu3  ;;  %1990 = vperm.xlu0 %10099, %v1748_v18  }
 0x185   : > { %v1188_v21 = vadd.f32 %v1187_v31, %v744_v47  ;;  %v1356_v16 = vpop.f32.mrf.mxu2  ;;  %v1109_v40 = vpop.f32.mrf.mxu0  ;;  %1586 = vst [vmem:[%s10477_s24 + $0xe0] sm:$0xff] %v1522_v24  ;;  %v1738_v24 = vld [vmem:[%s10279_s16 + $0x310] sm:$0xff]  ;;  %v1752_v31 = vld [vmem:[%s10279_s16 + $0x380] sm:$0xff] }
 0x186   : > { %v1357_v26 = vadd.f32 %v1356_v16, %v744_v47  ;;  %v1110_v52 = vadd.f32 %v1109_v40, %v10537_v49  ;;  %v1278_v19 = vpop.f32.mrf.mxu1  ;;  %v10947_v10 = vpop.permute.xlu0 %1780 }
 0x187   : > { %v1486_v60 = vmax.f32 %v1188_v21, 0.0  ;;  %v1279_v23 = vadd.f32 %v1278_v19, %v10537_v49  ;;  %v8470_v49 = vld [vmem:[%s13577_s3 + $0x78] sm:$0xf0]  ;;  %v8477_v19 = vor.u32 %v9805_v55, %v8476_v15  ;;  %v1760_v15 = vld [vmem:[%s10279_s16 + $0x3c0] sm:$0xff] }
 0x188   : > { %v1487_v22 = vmax.f32 %v1357_v26, 0.0  ;;  %v1424_v25 = vmax.f32 %v1110_v52, 0.0  ;;  %v8473_v43 = vor.u32 %v9802_v37, %v8470_v49  ;;  %v1751_v21 = vld [vmem:[%s10279_s16 + $0x378] sm:$0xff]  ;;  %v1741_v49 = vld [vmem:[%s10279_s16 + $0x328] sm:$0xff] }
 0x189   : > { %v1425_v36 = vmax.f32 %v1279_v23, 0.0 }
 0x18a   : > { %v1554_v35 = vpack.c.bf16 %v1487_v22, %v1486_v60  ;;  %v10965_v26 = vpop.permute.xlu1 %1800  ;;  %v1776_v22 = vpop.permute.xlu2 %1775 }
 0x18b   : > { %v1523_v29 = vpack.c.bf16 %v1425_v36, %v1424_v25  ;;  %1940 = vperm.xlu2 %10101, %v1738_v24   ;;  %2010 = vperm.xlu1 %10100, %v1752_v31   ;;  %v1747_v24 = vld [vmem:[%s10279_s16 + $0x358] sm:$0xff]  ;;  %v1761_v31 = vld [vmem:[%s10279_s16 + $0x3c8] sm:$0xff] }
 0x18c   : > { %1618 = vst [vmem:[%s10477_s24 + $0x1e0] sm:$0xff] %v1554_v35  ;;  %v1189_v46 = vpop.f32.mrf.mxu3  ;;  %2005 = vperm.xlu0 %10099, %v1751_v21  }
 0x18d   : > { %v1190_v45 = vadd.f32 %v1189_v46, %v749_v6  ;;  %v1358_v7 = vpop.f32.mrf.mxu2  ;;  %v1112_v13 = vpop.f32.mrf.mxu0  ;;  %1587 = vst [vmem:[%s10477_s24 + $0xe8] sm:$0xff] %v1523_v29  ;;  %v1755_v29 = vld [vmem:[%s10279_s16 + $0x398] sm:$0xff]  ;;  %v1754_v46 = vld [vmem:[%s10279_s16 + $0x390] sm:$0xff] }
 0x18e   : > { %v1359_v32 = vadd.f32 %v1358_v7, %v749_v6  ;;  %v1113_v41 = vadd.f32 %v1112_v13, %v10614_v1  ;;  %v1281_v39 = vpop.f32.mrf.mxu1  ;;  %v10969_v33 = vpop.permute.xlu0 %1795 }
 0x18f   : > { %v1488_v62 = vmax.f32 %v1190_v45, 0.0  ;;  %v1282_v42 = vadd.f32 %v1281_v39, %v10614_v1 }
 0x190   : > { %v1489_v34 = vmax.f32 %v1359_v32, 0.0  ;;  %v1426_v27 = vmax.f32 %v1113_v41, 0.0  ;;  %2943 = vmatmul.bf16.gmra.mxu0 %v8469_v38 }
 0x191   : > { %8745 = vmatmul.msk.bf16.gmra.mxu3 %vm931_vm0, %v8473_v43  ;;  %v1427_v20 = vmax.f32 %v1282_v42, 0.0  ;;  %8777 = vmatmul.msk.bf16.gmra.mxu1 %vm931_vm0, %v8473_v43  ;;  %v9807_v42 = vld [vmem:[%s13577_s3 + $0x94] sm:$0xf0] }
 0x192   : > { %v1555_v54 = vpack.c.bf16 %v1489_v34, %v1488_v62  ;;  %2605 = vmatmul.bf16.gmra.mxu2 %v8469_v38  ;;  %v10977_v45 = vpop.permute.xlu1 %1815  ;;  %v10980_v43 = vpop.permute.xlu2 %1790  ;;  %v1758_v34 = vld [vmem:[%s10279_s16 + $0x3b0] sm:$0xff] }
 0x193   : > { %v1524_v1 = vpack.c.bf16 %v1427_v20, %v1426_v27  ;;  %1955 = vperm.xlu2 %10101, %v1741_v49   ;;  %2025 = vperm.xlu1 %10100, %v1755_v29   ;;  %v8484_v27 = vld [vmem:[%s13577_s3 + $0x90] sm:$0xf]  ;;  %v9808_v29 = vld [vmem:[%s13577_s3 + $0xa4] sm:$0xf] }
 0x194   : > { %1619 = vst [vmem:[%s10477_s24 + $0x1e8] sm:$0xff] %v1555_v54  ;;  %v1192_v56 = vpop.f32.mrf.mxu3  ;;  %2020 = vperm.xlu0 %10099, %v1754_v46   ;;  %v8486_v54 = vld [vmem:[%s13577_s3 + $0x98] sm:$0xf0]  ;;  %v8494_v46 = vld [vmem:[%s13577_s3 + $0xa8] sm:$0xf0] }
 0x195   : > { %v1193_v63 = vadd.f32 %v1192_v56, %v754_v57  ;;  %v1361_v17 = vpop.f32.mrf.mxu2  ;;  %v1114_v5 = vpop.f32.mrf.mxu0  ;;  %1588 = vst [vmem:[%s10477_s24 + $0xf0] sm:$0xff] %v1524_v1  ;;  %v8485_v56 = vor.u32 %v9807_v42, %v8484_v27 }
 0x196   : > { %v1362_v8 = vadd.f32 %v1361_v17, %v754_v57  ;;  %v1115_v9 = vadd.f32 %v1114_v5, %v10612_v61  ;;  %v1283_v53 = vpop.f32.mrf.mxu1  ;;  %v10983_v14 = vpop.permute.xlu0 %1810 }
 0x197   : > { %v1490_v12 = vmax.f32 %v1193_v63, 0.0  ;;  %v1284_v6 = vadd.f32 %v1283_v53, %v10612_v61  ;;  %v8478_v61 = vld [vmem:[%s13577_s3 + $0x88] sm:$0xf0] }
 0x198   : > { %v1491_v59 = vmax.f32 %v1362_v8, 0.0  ;;  %v1428_v47 = vmax.f32 %v1115_v9, 0.0  ;;  %v8481_v28 = vor.u32 %v9804_v50, %v8478_v61 }
 0x199   : > { %v1429_v40 = vmax.f32 %v1284_v6, 0.0 }
 0x19a   : > { %v1556_v16 = vpack.c.bf16 %v1491_v59, %v1490_v12  ;;  %v11000_v20 = vpop.permute.xlu1 %1830 }
 0x19b   : > { %v1525_v52 = vpack.c.bf16 %v1429_v40, %v1428_v47  ;;  %1970 = vperm.xlu2 %10101, %v1744_v48   ;;  %2040 = vperm.xlu1 %10100, %v1758_v34  }
 0x19c   : > { %1620 = vst [vmem:[%s10477_s24 + $0x1f0] sm:$0xff] %v1556_v16  ;;  %v1194_v60 = vpop.f32.mrf.mxu3  ;;  %2035 = vperm.xlu0 %10099, %v1757_v51  }
 0x19d   : > { %v1195_v25 = vadd.f32 %v1194_v60, %v759_v3  ;;  %v1363_v23 = vpop.f32.mrf.mxu2  ;;  %v2909_v4 = vpop.f32.mrf.mxu0  ;;  %1589 = vst [vmem:[%s10477_s24 + $0xf8] sm:$0xff] %v1525_v52 }
 0x19e   : > { %v1364_v30 = vadd.f32 %v1363_v23, %v759_v3  ;;  %v3078_v35 = vpop.f32.mrf.mxu1  ;;  %v2910_v37 = vadd.f32 %v2909_v4, %v10929_v2  ;;  %v11003_v12 = vpop.permute.xlu2 %1805 }
 0x19f   : > { %v1492_v44 = vmax.f32 %v1195_v25, 0.0  ;;  %v11005_v53 = vpop.permute.xlu0 %1825 }
 0x1a0   : > { %v1493_v36 = vmax.f32 %v1364_v30, 0.0  ;;  %2948 = vmatmul.bf16.gmra.mxu0 %v8477_v19  ;;  %v3079_v13 = vadd.f32 %v3078_v35, %v2910_v37  ;;  %v1750_v30 = vld [vmem:[%s10279_s16 + $0x370] sm:$0xff]  ;;  %v8492_v35 = vld [vmem:[%s13577_s3 + $0xa0] sm:$0xf]  ;;  %v1763_v37 = vld [vmem:[%s10279_s16 + $0x3d8] sm:$0xff] }
 0x1a1   : > { %8746 = vmatmul.msk.bf16.gmra.mxu3 %vm931_vm0, %v8481_v28  ;;  %8778 = vmatmul.msk.bf16.gmra.mxu1 %vm931_vm0, %v8481_v28 }
 0x1a2   : > { %v1557_v38 = vpack.c.bf16 %v1493_v36, %v1492_v44  ;;  %2610 = vmatmul.bf16.gmra.mxu2 %v8477_v19  ;;  %v3239_v39 = vmax.f32 %v3079_v13, 0.0  ;;  %v11013_v16 = vpop.permute.xlu1 %1845  ;;  %v1764_v44 = vld [vmem:[%s10279_s16 + $0x3e0] sm:$0xff]  ;;  %v9809_v36 = vld [vmem:[%s13577_s3 + $0xa4] sm:$0xf0] }
 0x1a3   : > { %1985 = vperm.xlu2 %10101, %v1747_v24   ;;  %2055 = vperm.xlu1 %10100, %v1761_v31   ;;  %v8493_v13 = vor.u32 %v9809_v36, %v8492_v35 }
 0x1a4   : > { %1621 = vst [vmem:[%s10477_s24 + $0x1f8] sm:$0xff] %v1557_v38  ;;  %v2740_v7 = vpop.f32.mrf.mxu3  ;;  %2050 = vperm.xlu0 %10099, %v1760_v15  }
 0x1a5   : > { %v2571_v32 = vpop.f32.mrf.mxu2  ;;  %v2911_v41 = vpop.f32.mrf.mxu0 }
 0x1a6   : > { %v2572_v3 = vadd.f32 %v2571_v32, %v10929_v2  ;;  %v3080_v0 = vpop.f32.mrf.mxu1  ;;  %v2912_v18 = vadd.f32 %v2911_v41, %v1776_v22  ;;  %v9806_v2 = vld [vmem:[%s13577_s3 + $0x94] sm:$0xf] }
 0x1a7   : > { %v8489_v5 = vor.u32 %v9806_v2, %v8486_v54  ;;  %v11019_v25 = vpop.permute.xlu0 %1840  ;;  %v1766_v2 = vld [vmem:[%s10279_s16 + $0x3f0] sm:$0xff] }
 0x1a8   : > { %v2741_v62 = vadd.f32 %v2740_v7, %v2572_v3  ;;  %v3081_v8 = vadd.f32 %v3080_v0, %v2912_v18  ;;  %v8497_v0 = vor.u32 %v9808_v29, %v8494_v46  ;;  %v1767_v18 = vld [vmem:[%s10279_s16 + $0x3f8] sm:$0xff] }
 0x1a9   : > { %v9176_v29 = vld [vmem:[%s10290_s29 + $0xd8] sm:$0xf0] }
 0x1aa   : > { %v3238_v11 = vmax.f32 %v2741_v62, 0.0  ;;  %v3241_v55 = vmax.f32 %v3081_v8, 0.0  ;;  %v11037_v32 = vpop.permute.xlu1 %1860  ;;  %v9174_v8 = vld [vmem:[%s10290_s29 + $0xd0] sm:$0xf] }
 0x1ab   : > { %2000 = vperm.xlu2 %10101, %v1750_v30   ;;  %2070 = vperm.xlu1 %10100, %v1764_v44  }
 0x1ac   : > { %v3366_v57 = vpack.c.bf16 %v3239_v39, %v3238_v11  ;;  %v2742_v1 = vpop.f32.mrf.mxu3  ;;  %2065 = vperm.xlu0 %10099, %v1763_v37   ;;  %v1753_v11 = vld [vmem:[%s10279_s16 + $0x388] sm:$0xff] }
 0x1ad   : > { %v2573_v63 = vpop.f32.mrf.mxu2  ;;  %v2914_v17 = vpop.f32.mrf.mxu0 }
 0x1ae   : > { %3430 = vst [vmem:[%s10477_s24 + $0x200] sm:$0xff] %v3366_v57  ;;  %v2574_v9 = vadd.f32 %v2573_v63, %v1776_v22  ;;  %v3083_v59 = vpop.f32.mrf.mxu1  ;;  %v2915_v6 = vadd.f32 %v2914_v17, %v10947_v10  ;;  %v11017_v22 = vpop.permute.xlu2 %1820 }
 0x1af   : > { %v11043_v34 = vpop.permute.xlu0 %1855 }
 0x1b0   : > { %v2743_v47 = vadd.f32 %v2742_v1, %v2574_v9  ;;  %2953 = vmatmul.bf16.gmra.mxu0 %v8485_v56  ;;  %v3084_v61 = vadd.f32 %v3083_v59, %v2915_v6  ;;  %v9943_v9 = vld [vmem:[%s10290_s29 + $0xd4] sm:$0xf0] }
 0x1b1   : > { %8747 = vmatmul.msk.bf16.gmra.mxu3 %vm931_vm0, %v8489_v5  ;;  %8779 = vmatmul.msk.bf16.gmra.mxu1 %vm931_vm0, %v8489_v5  ;;  %v9175_v24 = vor.u32 %v9943_v9, %v9174_v8  ;;  %v1762_v8 = vld [vmem:[%s10279_s16 + $0x3d0] sm:$0xff]  ;;  %v3586_v9 = vld [vmem:[%s10279_s16 + $0x440] sm:$0xff] }
 0x1b2   : > { %v3240_v21 = vmax.f32 %v2743_v47, 0.0  ;;  %2615 = vmatmul.bf16.gmra.mxu2 %v8485_v56  ;;  %v3243_v28 = vmax.f32 %v3084_v61, 0.0  ;;  %v3579_v61 = vld [vmem:[%s10279_s16 + $0x408] sm:$0xff] }
 0x1b3   : > { %2015 = vperm.xlu2 %10101, %v1753_v11   ;;  %2085 = vperm.xlu1 %10100, %v1767_v18  }
 0x1b4   : > { %v3367_v40 = vpack.c.bf16 %v3241_v55, %v3240_v21  ;;  %v2745_v50 = vpop.f32.mrf.mxu3  ;;  %2080 = vperm.xlu0 %10099, %v1766_v2   ;;  %v1756_v21 = vld [vmem:[%s10279_s16 + $0x3a0] sm:$0xff]  ;;  %4439 = vmatpush.bf16.msra.mxu3 %v9175_v24  ;;  %v3585_v24 = vld [vmem:[%s10279_s16 + $0x438] sm:$0xff] }
 0x1b5   : > { %v2576_v52 = vpop.f32.mrf.mxu2  ;;  %v2916_v60 = vpop.f32.mrf.mxu0 }
 0x1b6   : > { %3431 = vst [vmem:[%s10477_s24 + $0x208] sm:$0xff] %v3367_v40  ;;  %v2577_v19 = vadd.f32 %v2576_v52, %v10947_v10  ;;  %v3085_v23 = vpop.f32.mrf.mxu1  ;;  %v2917_v49 = vadd.f32 %v2916_v60, %v10942_v58  ;;  %v11041_v48 = vpop.permute.xlu2 %1835  ;;  %v3580_v40 = vld [vmem:[%s10279_s16 + $0x410] sm:$0xff] }
 0x1b7   : > { %v11057_v47 = vpop.permute.xlu1 %1875  ;;  %v11059_v31 = vpop.permute.xlu0 %1870 }
 0x1b8   : > { %v2746_v4 = vadd.f32 %v2745_v50, %v2577_v19  ;;  %v3086_v62 = vadd.f32 %v3085_v23, %v2917_v49  ;;  %v8500_v50 = vld [vmem:[%s13577_s3 + $0xb0] sm:$0xf]  ;;  %v9810_v19 = vld [vmem:[%s13577_s3 + $0xb4] sm:$0xf]  ;;  %v8502_v23 = vld [vmem:[%s13577_s3 + $0xb8] sm:$0xf0] }
 0x1b9   : > { %v8505_v36 = vor.u32 %v9810_v19, %v8502_v23  ;;  %v9942_v49 = vld [vmem:[%s10290_s29 + $0xd4] sm:$0xf] }
 0x1ba   : > { %v3242_v10 = vmax.f32 %v2746_v4, 0.0  ;;  %v3245_v54 = vmax.f32 %v3086_v62, 0.0  ;;  %v1759_v62 = vld [vmem:[%s10279_s16 + $0x3b8] sm:$0xff] }
 0x1bb   : > { %2030 = vperm.xlu2 %10101, %v1756_v21   ;;  %3654 = vperm.xlu1 %10100, %v3580_v40   ;;  %v9812_v21 = vld [vmem:[%s13577_s3 + $0xc4] sm:$0xf]  ;;  %v8510_v40 = vld [vmem:[%s13577_s3 + $0xc8] sm:$0xf0] }
 0x1bc   : > { %v3368_v38 = vpack.c.bf16 %v3243_v28, %v3242_v10  ;;  %v2747_v7 = vpop.f32.mrf.mxu3  ;;  %3649 = vperm.xlu0 %10099, %v3579_v61   ;;  %v8513_v19 = vor.u32 %v9812_v21, %v8510_v40 }
 0x1bd   : > { %v2578_v41 = vpop.f32.mrf.mxu2  ;;  %v2919_v3 = vpop.f32.mrf.mxu0 }
 0x1be   : > { %3432 = vst [vmem:[%s10477_s24 + $0x210] sm:$0xff] %v3368_v38  ;;  %v2579_v39 = vadd.f32 %v2578_v41, %v10942_v58  ;;  %v3088_v27 = vpop.f32.mrf.mxu1  ;;  %v2920_v51 = vadd.f32 %v2919_v3, %v10980_v43  ;;  %v11055_v59 = vpop.permute.xlu2 %1850 }
 0x1bf   : > { %v11083_v38 = vpop.permute.xlu1 %1890  ;;  %v11085_v41 = vpop.permute.xlu0 %1885 }
 0x1c0   : > { %v2748_v42 = vadd.f32 %v2747_v7, %v2579_v39  ;;  %2958 = vmatmul.bf16.gmra.mxu0 %v8493_v13  ;;  %v3089_v56 = vadd.f32 %v3088_v27, %v2920_v51  ;;  %v3583_v39 = vld [vmem:[%s10279_s16 + $0x428] sm:$0xff] }
 0x1c1   : > { %8748 = vmatmul.msk.bf16.gmra.mxu3 %vm931_vm0, %v8497_v0  ;;  %8780 = vmatmul.msk.bf16.gmra.mxu1 %vm931_vm0, %v8497_v0 }
 0x1c2   : > { %v3244_v57 = vmax.f32 %v2748_v42, 0.0  ;;  %2620 = vmatmul.bf16.gmra.mxu2 %v8493_v13  ;;  %v3247_v55 = vmax.f32 %v3089_v56, 0.0  ;;  %v9179_v13 = vor.u32 %v9942_v49, %v9176_v29  ;;  %v3589_v49 = vld [vmem:[%s10279_s16 + $0x458] sm:$0xff]  ;;  %v3588_v29 = vld [vmem:[%s10279_s16 + $0x450] sm:$0xff] }
 0x1c3   : > { %2045 = vperm.xlu2 %10101, %v1759_v62   ;;  %3669 = vperm.xlu1 %10100, %v3583_v39  }
 0x1c4   : > { %v3369_v58 = vpack.c.bf16 %v3245_v54, %v3244_v57  ;;  %v2750_v1 = vpop.f32.mrf.mxu3  ;;  %4777 = vmatpush.bf16.msra.mxu0 %v9179_v13 }
 0x1c5   : > { %v2581_v63 = vpop.f32.mrf.mxu2  ;;  %v2921_v17 = vpop.f32.mrf.mxu0 }
 0x1c6   : > { %3433 = vst [vmem:[%s10477_s24 + $0x218] sm:$0xff] %v3369_v58  ;;  %v2582_v5 = vadd.f32 %v2581_v63, %v10980_v43  ;;  %v3090_v6 = vpop.f32.mrf.mxu1  ;;  %v9811_v43 = vld [vmem:[%s13577_s3 + $0xb4] sm:$0xf0]  ;;  %v2922_v60 = vadd.f32 %v2921_v17, %v10969_v33  ;;  %v11081_v46 = vpop.permute.xlu2 %1865 }
 0x1c7   : > { %v8501_v30 = vor.u32 %v9811_v43, %v8500_v50  ;;  %v11099_v63 = vpop.permute.xlu0 %1900 }
 0x1c8   : > { %v2751_v15 = vadd.f32 %v2750_v1, %v2582_v5  ;;  %v3091_v37 = vadd.f32 %v3090_v6, %v2922_v60  ;;  %v11097_v1 = vpop.permute.xlu1 %1905  ;;  %v8508_v6 = vld [vmem:[%s13577_s3 + $0xc0] sm:$0xf] }
 0x1ca   : > { %v3246_v52 = vmax.f32 %v2751_v15, 0.0  ;;  %v3249_v27 = vmax.f32 %v3091_v37, 0.0 }
 0x1cb   : > { %2060 = vperm.xlu2 %10101, %v1762_v8   ;;  %3684 = vperm.xlu1 %10100, %v3586_v9   ;;  %v9814_v9 = vld [vmem:[%s13577_s3 + $0xd4] sm:$0xf] }
 0x1cc   : > { %v3370_v4 = vpack.c.bf16 %v3247_v55, %v3246_v52  ;;  %v2752_v28 = vpop.f32.mrf.mxu3 }
 0x1cd   : > { %v2583_v44 = vpop.f32.mrf.mxu2  ;;  %v2924_v35 = vpop.f32.mrf.mxu0 }
 0x1ce   : > { %3434 = vst [vmem:[%s10477_s24 + $0x220] sm:$0xff] %v3370_v4  ;;  %v2584_v10 = vadd.f32 %v2583_v44, %v10969_v33  ;;  %v3093_v7 = vpop.f32.mrf.mxu1  ;;  %v2925_v0 = vadd.f32 %v2924_v35, %v10965_v26  ;;  %v3582_v33 = vld [vmem:[%s10279_s16 + $0x420] sm:$0xff]  ;;  %v11095_v58 = vpop.permute.xlu2 %1880 }
 0x1cf   : > { %3664 = vperm.xlu0 %10099, %v3582_v33   ;;  %v11123_v35 = vpop.permute.xlu0 %1915 }
 0x1d0   : > { %v2753_v3 = vadd.f32 %v2752_v28, %v2584_v10  ;;  %2963 = vmatmul.bf16.gmra.mxu0 %v8501_v30  ;;  %v3094_v11 = vadd.f32 %v3093_v7, %v2925_v0  ;;  %v1765_v10 = vld [vmem:[%s10279_s16 + $0x3e8] sm:$0xff] }
 0x1d1   : > { %8749 = vmatmul.msk.bf16.gmra.mxu3 %vm931_vm0, %v8505_v36  ;;  %8781 = vmatmul.msk.bf16.gmra.mxu1 %vm931_vm0, %v8505_v36 }
 0x1d2   : > { %v3248_v42 = vmax.f32 %v2753_v3, 0.0  ;;  %2625 = vmatmul.bf16.gmra.mxu2 %v8501_v30  ;;  %v3251_v17 = vmax.f32 %v3094_v11, 0.0  ;;  %v11121_v30 = vpop.permute.xlu1 %1920 }
 0x1d3   : > { %2075 = vperm.xlu2 %10101, %v1765_v10   ;;  %3699 = vperm.xlu1 %10100, %v3589_v49  }
 0x1d4   : > { %v3371_v51 = vpack.c.bf16 %v3249_v27, %v3248_v42  ;;  %v2755_v18 = vpop.f32.mrf.mxu3 }
 0x1d5   : > { %v2586_v2 = vpop.f32.mrf.mxu2  ;;  %v2926_v54 = vpop.f32.mrf.mxu0 }
 0x1d6   : > { %3435 = vst [vmem:[%s10477_s24 + $0x228] sm:$0xff] %v3371_v51  ;;  %v2587_v57 = vadd.f32 %v2586_v2, %v10965_v26  ;;  %v3095_v56 = vpop.f32.mrf.mxu1  ;;  %v9813_v26 = vld [vmem:[%s13577_s3 + $0xc4] sm:$0xf0]  ;;  %v2927_v55 = vadd.f32 %v2926_v54, %v11003_v12  ;;  %v11119_v28 = vpop.permute.xlu2 %1895  ;;  %v3578_v54 = vld [vmem:[%s10279_s16 + $0x400] sm:$0xff] }
 0x1d7   : > { %v8509_v61 = vor.u32 %v9813_v26, %v8508_v6  ;;  %3679 = vperm.xlu0 %10099, %v3585_v24   ;;  %v11137_v11 = vpop.permute.xlu0 %1930  ;;  %v8518_v6 = vld [vmem:[%s13577_s3 + $0xd8] sm:$0xf0] }
 0x1d8   : > { %v2756_v5 = vadd.f32 %v2755_v18, %v2587_v57  ;;  %v3096_v23 = vadd.f32 %v3095_v56, %v2927_v55  ;;  %v3592_v57 = vld [vmem:[%s10279_s16 + $0x470] sm:$0xff]  ;;  %v8521_v40 = vor.u32 %v9814_v9, %v8518_v6 }
 0x1d9   : > { %v8516_v56 = vld [vmem:[%s13577_s3 + $0xd0] sm:$0xf] }
 0x1da   : > { %v3250_v15 = vmax.f32 %v2756_v5, 0.0  ;;  %v3253_v7 = vmax.f32 %v3096_v23, 0.0  ;;  %v11135_v42 = vpop.permute.xlu1 %1935 }
 0x1db   : > { %3644 = vperm.xlu2 %10101, %v3578_v54   ;;  %3714 = vperm.xlu1 %10100, %v3592_v57   ;;  %v3598_v54 = vld [vmem:[%s10279_s16 + $0x4a0] sm:$0xff] }
 0x1dc   : > { %v3372_v50 = vpack.c.bf16 %v3251_v17, %v3250_v15  ;;  %v2757_v43 = vpop.f32.mrf.mxu3  ;;  %v3591_v17 = vld [vmem:[%s10279_s16 + $0x468] sm:$0xff]  ;;  %v8524_v57 = vld [vmem:[%s13577_s3 + $0xe0] sm:$0xf] }
 0x1dd   : > { %v2588_v52 = vpop.f32.mrf.mxu2  ;;  %v2929_v60 = vpop.f32.mrf.mxu0 }
 0x1de   : > { %3436 = vst [vmem:[%s10477_s24 + $0x230] sm:$0xff] %v3372_v50  ;;  %v2589_v4 = vadd.f32 %v2588_v52, %v11003_v12  ;;  %v3098_v44 = vpop.f32.mrf.mxu1  ;;  %v2930_v37 = vadd.f32 %v2929_v60, %v10983_v14  ;;  %v11133_v27 = vpop.permute.xlu2 %1910 }
 0x1df   : > { %3694 = vperm.xlu0 %10099, %v3588_v29  }
 0x1e0   : > { %v2758_v36 = vadd.f32 %v2757_v43, %v2589_v4  ;;  %2968 = vmatmul.bf16.gmra.mxu0 %v8509_v61  ;;  %v3099_v3 = vadd.f32 %v3098_v44, %v2930_v37  ;;  %v3581_v44 = vld [vmem:[%s10279_s16 + $0x418] sm:$0xff]  ;;  %v3594_v37 = vld [vmem:[%s10279_s16 + $0x480] sm:$0xff] }
 0x1e1   : > { %8750 = vmatmul.msk.bf16.gmra.mxu3 %vm931_vm0, %v8513_v19  ;;  %8782 = vmatmul.msk.bf16.gmra.mxu1 %vm931_vm0, %v8513_v19  ;;  %v11161_v19 = vpop.permute.xlu0 %1945 }
 0x1e2   : > { %v3252_v13 = vmax.f32 %v2758_v36, 0.0  ;;  %2630 = vmatmul.bf16.gmra.mxu2 %v8509_v61  ;;  %v3255_v18 = vmax.f32 %v3099_v3, 0.0  ;;  %v11159_v52 = vpop.permute.xlu1 %1950  ;;  %v3595_v36 = vld [vmem:[%s10279_s16 + $0x488] sm:$0xff] }
 0x1e3   : > { %3659 = vperm.xlu2 %10101, %v3581_v44   ;;  %3729 = vperm.xlu1 %10100, %v3595_v36   ;;  %v3587_v36 = vld [vmem:[%s10279_s16 + $0x448] sm:$0xff] }
 0x1e4   : > { %v3373_v12 = vpack.c.bf16 %v3253_v7, %v3252_v13  ;;  %v2760_v0 = vpop.f32.mrf.mxu3 }
 0x1e5   : > { %v2591_v62 = vpop.f32.mrf.mxu2  ;;  %v2931_v39 = vpop.f32.mrf.mxu0 }
 0x1e6   : > { %3437 = vst [vmem:[%s10477_s24 + $0x238] sm:$0xff] %v3373_v12  ;;  %v2592_v33 = vadd.f32 %v2591_v62, %v10983_v14  ;;  %v3100_v51 = vpop.f32.mrf.mxu1  ;;  %v9815_v14 = vld [vmem:[%s13577_s3 + $0xd4] sm:$0xf0]  ;;  %v2932_v8 = vadd.f32 %v2931_v39, %v10977_v45  ;;  %v11157_v61 = vpop.permute.xlu2 %1925 }
 0x1e7   : > { %v8517_v15 = vor.u32 %v9815_v14, %v8516_v56  ;;  %3709 = vperm.xlu0 %10099, %v3591_v17   ;;  %v3597_v56 = vld [vmem:[%s10279_s16 + $0x498] sm:$0xff] }
 0x1e8   : > { %v2761_v2 = vadd.f32 %v2760_v0, %v2592_v33  ;;  %v3101_v50 = vadd.f32 %v3100_v51, %v2932_v8  ;;  %v8526_v8 = vld [vmem:[%s13577_s3 + $0xe8] sm:$0xf0] }
 0x1e9   : > { %v11175_v33 = vpop.permute.xlu0 %1960 }
 0x1ea   : > { %v3254_v5 = vmax.f32 %v2761_v2, 0.0  ;;  %v3257_v10 = vmax.f32 %v3101_v50, 0.0  ;;  %v11173_v62 = vpop.permute.xlu1 %1965  ;;  %v3584_v2 = vld [vmem:[%s10279_s16 + $0x430] sm:$0xff] }
 0x1eb   : > { %3674 = vperm.xlu2 %10101, %v3584_v2   ;;  %3744 = vperm.xlu1 %10100, %v3598_v54  }
 0x1ec   : > { %v3374_v26 = vpack.c.bf16 %v3255_v18, %v3254_v5  ;;  %v2762_v24 = vpop.f32.mrf.mxu3  ;;  %v9816_v5 = vld [vmem:[%s13577_s3 + $0xe4] sm:$0xf] }
 0x1ed   : > { %v2593_v55 = vpop.f32.mrf.mxu2  ;;  %v2934_v21 = vpop.f32.mrf.mxu0 }
 0x1ee   : > { %3438 = vst [vmem:[%s10477_s24 + $0x240] sm:$0xff] %v3374_v26  ;;  %v2594_v43 = vadd.f32 %v2593_v55, %v10977_v45  ;;  %v3103_v60 = vpop.f32.mrf.mxu1  ;;  %v2935_v4 = vadd.f32 %v2934_v21, %v11017_v22  ;;  %v11171_v0 = vpop.permute.xlu2 %1940  ;;  %v8529_v55 = vor.u32 %v9816_v5, %v8526_v8  ;;  %v3604_v5 = vld [vmem:[%s10279_s16 + $0x4d0] sm:$0xff] }
 0x1ef   : > { %3724 = vperm.xlu0 %10099, %v3594_v37   ;;  %v3601_v37 = vld [vmem:[%s10279_s16 + $0x4b8] sm:$0xff]  ;;  %v8532_v8 = vld [vmem:[%s13577_s3 + $0xf0] sm:$0xf] }
 0x1f0   : > { %v2763_v23 = vadd.f32 %v2762_v24, %v2594_v43  ;;  %2973 = vmatmul.bf16.gmra.mxu0 %v8517_v15  ;;  %v3104_v29 = vadd.f32 %v3103_v60, %v2935_v4 }
 0x1f1   : > { %8751 = vmatmul.msk.bf16.gmra.mxu3 %vm931_vm0, %v8521_v40  ;;  %8783 = vmatmul.msk.bf16.gmra.mxu1 %vm931_vm0, %v8521_v40 }
 0x1f2   : > { %v3256_v49 = vmax.f32 %v2763_v23, 0.0  ;;  %2635 = vmatmul.bf16.gmra.mxu2 %v8517_v15  ;;  %v3259_v51 = vmax.f32 %v3104_v29, 0.0  ;;  %v11197_v43 = vpop.permute.xlu1 %1980  ;;  %v11199_v23 = vpop.permute.xlu0 %1975 }
 0x1f3   : > { %3689 = vperm.xlu2 %10101, %v3587_v36   ;;  %3759 = vperm.xlu1 %10100, %v3601_v37  }
 0x1f4   : > { %v3375_v45 = vpack.c.bf16 %v3257_v10, %v3256_v49  ;;  %v2765_v7 = vpop.f32.mrf.mxu3  ;;  %v3600_v10 = vld [vmem:[%s10279_s16 + $0x4b0] sm:$0xff] }
 0x1f5   : > { %v2596_v13 = vpop.f32.mrf.mxu2  ;;  %v2936_v12 = vpop.f32.mrf.mxu0 }
 0x1f6   : > { %3439 = vst [vmem:[%s10477_s24 + $0x248] sm:$0xff] %v3375_v45  ;;  %v2597_v3 = vadd.f32 %v2596_v13, %v11017_v22  ;;  %v3105_v39 = vpop.f32.mrf.mxu1  ;;  %v9817_v22 = vld [vmem:[%s13577_s3 + $0xe4] sm:$0xf0]  ;;  %v2937_v17 = vadd.f32 %v2936_v12, %v11005_v53  ;;  %v11195_v50 = vpop.permute.xlu2 %1955 }
 0x1f7   : > { %v8525_v26 = vor.u32 %v9817_v22, %v8524_v57  ;;  %3739 = vperm.xlu0 %10099, %v3597_v56  }
 0x1f8   : > { %v2766_v18 = vadd.f32 %v2765_v7, %v2597_v3  ;;  %v3106_v21 = vadd.f32 %v3105_v39, %v2937_v17  ;;  %v9166_v39 = vld [vmem:[%s10290_s29 + $0xc0] sm:$0xf] }
 0x1f9   : > { %v3590_v17 = vld [vmem:[%s10279_s16 + $0x460] sm:$0xff] }
 0x1fa   : > { %v3258_v14 = vmax.f32 %v2766_v18, 0.0  ;;  %v11213_v2 = vpop.permute.xlu1 %1995  ;;  %v11215_v22 = vpop.permute.xlu0 %1990 }
 0x1fb   : > { %3704 = vperm.xlu2 %10101, %v3590_v17   ;;  %3774 = vperm.xlu1 %10100, %v3604_v5  }
 0x1fc   : > { %v3376_v9 = vpack.c.bf16 %v3259_v51, %v3258_v14  ;;  %v2767_v6 = vpop.f32.mrf.mxu3  ;;  %v9941_v51 = vld [vmem:[%s10290_s29 + $0xc4] sm:$0xf0] }
 0x1fd   : > { %v2598_v24 = vpop.f32.mrf.mxu2  ;;  %v2939_v15 = vpop.f32.mrf.mxu0  ;;  %v9167_v57 = vor.u32 %v9941_v51, %v9166_v39  ;;  %v3593_v39 = vld [vmem:[%s10279_s16 + $0x478] sm:$0xff]  ;;  %v3607_v51 = vld [vmem:[%s10279_s16 + $0x4e8] sm:$0xff] }
 0x1fe   : > { %3440 = vst [vmem:[%s10477_s24 + $0x250] sm:$0xff] %v3376_v9  ;;  %v2599_v40 = vadd.f32 %v2598_v24, %v11005_v53  ;;  %v3108_v60 = vpop.f32.mrf.mxu1  ;;  %v2940_v44 = vadd.f32 %v2939_v15, %v11000_v20  ;;  %v3261_v53 = vmax.f32 %v3106_v21, 0.0  ;;  %v11211_v18 = vpop.permute.xlu2 %1970  ;;  %v3603_v9 = vld [vmem:[%s10279_s16 + $0x4c8] sm:$0xff]  ;;  %v9818_v24 = vld [vmem:[%s13577_s3 + $0xf4] sm:$0xf] }
 0x1ff   : > { %3754 = vperm.xlu0 %10099, %v3600_v10   ;;  %4440 = vmatpush.bf16.msra.mxu3 %v9167_v57  ;;  %v8534_v15 = vld [vmem:[%s13577_s3 + $0xf8] sm:$0xf0]  ;;  %v9940_v10 = vld [vmem:[%s10290_s29 + $0xc4] sm:$0xf] }
 0x200   : > { %v2768_v4 = vadd.f32 %v2767_v6, %v2599_v40  ;;  %2978 = vmatmul.bf16.gmra.mxu0 %v8525_v26  ;;  %v3109_v29 = vadd.f32 %v3108_v60, %v2940_v44  ;;  %v8537_v44 = vor.u32 %v9818_v24, %v8534_v15 }
 0x201   : > { %8752 = vmatmul.msk.bf16.gmra.mxu3 %vm931_vm0, %v8529_v55  ;;  %8784 = vmatmul.msk.bf16.gmra.mxu1 %vm931_vm0, %v8529_v55 }
 0x202   : > { %v3260_v49 = vmax.f32 %v2768_v4, 0.0  ;;  %2640 = vmatmul.bf16.gmra.mxu2 %v8525_v26  ;;  %v3263_v56 = vmax.f32 %v3109_v29, 0.0 }
 0x203   : > { %3719 = vperm.xlu2 %10101, %v3593_v39   ;;  %3789 = vperm.xlu1 %10100, %v3607_v51  }
 0x204   : > { %v3377_v45 = vpack.c.bf16 %v3261_v53, %v3260_v49  ;;  %v2770_v7 = vpop.f32.mrf.mxu3  ;;  %v9168_v53 = vld [vmem:[%s10290_s29 + $0xc8] sm:$0xf0] }
 0x205   : > { %v2601_v13 = vpop.f32.mrf.mxu2  ;;  %v2941_v12 = vpop.f32.mrf.mxu0 }
 0x206   : > { %3441 = vst [vmem:[%s10477_s24 + $0x258] sm:$0xff] %v3377_v45  ;;  %v2602_v3 = vadd.f32 %v2601_v13, %v11000_v20  ;;  %v3110_v54 = vpop.f32.mrf.mxu1  ;;  %v9819_v20 = vld [vmem:[%s13577_s3 + $0xf4] sm:$0xf0]  ;;  %v2942_v26 = vadd.f32 %v2941_v12, %v11041_v48  ;;  %v11237_v49 = vpop.permute.xlu2 %1985 }
 0x207   : > { %v8533_v40 = vor.u32 %v9819_v20, %v8532_v8  ;;  %3769 = vperm.xlu0 %10099, %v3603_v9   ;;  %v11239_v45 = vpop.permute.xlu1 %2010  ;;  %v11241_v13 = vpop.permute.xlu0 %2005 }
 0x208   : > { %v2771_v14 = vadd.f32 %v2770_v7, %v2602_v3  ;;  %v3111_v36 = vadd.f32 %v3110_v54, %v2942_v26  ;;  %v9171_v7 = vor.u32 %v9940_v10, %v9168_v53  ;;  %v8542_v10 = vld [vmem:[%s13577_s3 + $0x108] sm:$0xf0] }
 0x20a   : > { %v3262_v6 = vmax.f32 %v2771_v14, 0.0  ;;  %4778 = vmatpush.bf16.msra.mxu0 %v9171_v7  ;;  %v3265_v54 = vmax.f32 %v3111_v36, 0.0 }
 0x20c   : > { %v3378_v55 = vpack.c.bf16 %v3263_v56, %v3262_v6  ;;  %v2772_v21 = vpop.f32.mrf.mxu3 }
 0x20d   : > { %v2603_v60 = vpop.f32.mrf.mxu2  ;;  %v2944_v4 = vpop.f32.mrf.mxu0 }
 0x20e   : > { %3442 = vst [vmem:[%s10477_s24 + $0x260] sm:$0xff] %v3378_v55  ;;  %v2604_v37 = vadd.f32 %v2603_v60, %v11041_v48  ;;  %v3113_v29 = vpop.f32.mrf.mxu1  ;;  %v2945_v3 = vadd.f32 %v2944_v4, %v11019_v25  ;;  %v3606_v48 = vld [vmem:[%s10279_s16 + $0x4e0] sm:$0xff]  ;;  %v11251_v9 = vpop.permute.xlu2 %2000  ;;  %v3609_v4 = vld [vmem:[%s10279_s16 + $0x4f8] sm:$0xff] }
 0x20f   : > { %3784 = vperm.xlu0 %10099, %v3606_v48   ;;  %v11253_v6 = vpop.permute.xlu1 %2025  ;;  %v11255_v24 = vpop.permute.xlu0 %2020  ;;  %v8540_v60 = vld [vmem:[%s13577_s3 + $0x100] sm:$0xf] }
 0x210   : > { %v2773_v12 = vadd.f32 %v2772_v21, %v2604_v37  ;;  %2983 = vmatmul.bf16.gmra.mxu0 %v8533_v40  ;;  %v3114_v14 = vadd.f32 %v3113_v29, %v2945_v3  ;;  %v3596_v21 = vld [vmem:[%s10279_s16 + $0x490] sm:$0xff]  ;;  %v9820_v37 = vld [vmem:[%s13577_s3 + $0x104] sm:$0xf] }
 0x211   : > { %8753 = vmatmul.msk.bf16.gmra.mxu3 %vm931_vm0, %v8537_v44  ;;  %8785 = vmatmul.msk.bf16.gmra.mxu1 %vm931_vm0, %v8537_v44  ;;  %v8545_v39 = vor.u32 %v9820_v37, %v8542_v10 }
 0x212   : > { %v3264_v57 = vmax.f32 %v2773_v12, 0.0  ;;  %2645 = vmatmul.bf16.gmra.mxu2 %v8533_v40  ;;  %v3267_v15 = vmax.f32 %v3114_v14, 0.0  ;;  %v3610_v40 = vld [vmem:[%s10279_s16 + $0x500] sm:$0xff]  ;;  %3734 = vperm.xlu2 %10101, %v3596_v21  }
 0x213   : > { %3804 = vperm.xlu1 %10100, %v3610_v40  }
 0x214   : > { %v3379_v56 = vpack.c.bf16 %v3265_v54, %v3264_v57  ;;  %v2775_v17 = vpop.f32.mrf.mxu3 }
 0x215   : > { %v2606_v5 = vpop.f32.mrf.mxu2  ;;  %v2946_v8 = vpop.f32.mrf.mxu0 }
 0x216   : > { %3443 = vst [vmem:[%s10477_s24 + $0x268] sm:$0xff] %v3379_v56  ;;  %v2607_v20 = vadd.f32 %v2606_v5, %v11019_v25  ;;  %v3115_v26 = vpop.f32.mrf.mxu1  ;;  %v9821_v25 = vld [vmem:[%s13577_s3 + $0x104] sm:$0xf0]  ;;  %v2947_v36 = vadd.f32 %v2946_v8, %v11013_v16  ;;  %v11275_v54 = vpop.permute.xlu2 %2015 }
 0x217   : > { %v8541_v7 = vor.u32 %v9821_v25, %v8540_v60  ;;  %3799 = vperm.xlu0 %10099, %v3609_v4   ;;  %v11277_v57 = vpop.permute.xlu1 %2040  ;;  %v11279_v14 = vpop.permute.xlu0 %2035  ;;  %v3599_v8 = vld [vmem:[%s10279_s16 + $0x4a8] sm:$0xff] }
 0x218   : > { %v2776_v55 = vadd.f32 %v2775_v17, %v2607_v20  ;;  %v3116_v51 = vadd.f32 %v3115_v26, %v2947_v36  ;;  %v3613_v20 = vld [vmem:[%s10279_s16 + $0x518] sm:$0xff] }
 0x21a   : > { %v3266_v44 = vmax.f32 %v2776_v55, 0.0  ;;  %v3269_v26 = vmax.f32 %v3116_v51, 0.0  ;;  %3749 = vperm.xlu2 %10101, %v3599_v8  }
 0x21b   : > { %3819 = vperm.xlu1 %10100, %v3613_v20  }
 0x21c   : > { %v3380_v53 = vpack.c.bf16 %v3267_v15, %v3266_v44  ;;  %v2777_v29 = vpop.f32.mrf.mxu3  ;;  %v3612_v15 = vld [vmem:[%s10279_s16 + $0x510] sm:$0xff] }
 0x21d   : > { %v2608_v12 = vpop.f32.mrf.mxu2  ;;  %v2949_v3 = vpop.f32.mrf.mxu0 }
 0x21e   : > { %3444 = vst [vmem:[%s10477_s24 + $0x270] sm:$0xff] %v3380_v53  ;;  %v2609_v48 = vadd.f32 %v2608_v12, %v11013_v16  ;;  %v3118_v56 = vpop.f32.mrf.mxu1  ;;  %v2950_v5 = vadd.f32 %v2949_v3, %v11055_v59  ;;  %v11289_v44 = vpop.permute.xlu2 %2030  ;;  %v3616_v12 = vld [vmem:[%s10279_s16 + $0x530] sm:$0xff] }
 0x21f   : > { %3814 = vperm.xlu0 %10099, %v3612_v15   ;;  %v11291_v36 = vpop.permute.xlu1 %2055  ;;  %v11293_v10 = vpop.permute.xlu0 %2050  ;;  %v8548_v3 = vld [vmem:[%s13577_s3 + $0x110] sm:$0xf] }
 0x220   : > { %v2778_v17 = vadd.f32 %v2777_v29, %v2609_v48  ;;  %2988 = vmatmul.bf16.gmra.mxu0 %v8541_v7  ;;  %v3119_v21 = vadd.f32 %v3118_v56, %v2950_v5  ;;  %v9822_v56 = vld [vmem:[%s13577_s3 + $0x114] sm:$0xf] }
 0x221   : > { %8754 = vmatmul.msk.bf16.gmra.mxu3 %vm931_vm0, %v8545_v39  ;;  %8786 = vmatmul.msk.bf16.gmra.mxu1 %vm931_vm0, %v8545_v39  ;;  %v3615_v39 = vld [vmem:[%s10279_s16 + $0x528] sm:$0xff] }
 0x222   : > { %v3268_v55 = vmax.f32 %v2778_v17, 0.0  ;;  %2650 = vmatmul.bf16.gmra.mxu2 %v8541_v7  ;;  %v3271_v53 = vmax.f32 %v3119_v21, 0.0  ;;  %v3602_v7 = vld [vmem:[%s10279_s16 + $0x4c0] sm:$0xff]  ;;  %v8550_v17 = vld [vmem:[%s13577_s3 + $0x118] sm:$0xf0] }
 0x223   : > { %3764 = vperm.xlu2 %10101, %v3602_v7   ;;  %3834 = vperm.xlu1 %10100, %v3616_v12   ;;  %v3605_v7 = vld [vmem:[%s10279_s16 + $0x4d8] sm:$0xff]  ;;  %v3619_v12 = vld [vmem:[%s10279_s16 + $0x548] sm:$0xff] }
 0x224   : > { %v3381_v16 = vpack.c.bf16 %v3269_v26, %v3268_v55  ;;  %v2780_v40 = vpop.f32.mrf.mxu3  ;;  %v8553_v55 = vor.u32 %v9822_v56, %v8550_v17 }
 0x225   : > { %v2611_v60 = vpop.f32.mrf.mxu2  ;;  %v2951_v25 = vpop.f32.mrf.mxu0 }
 0x226   : > { %3445 = vst [vmem:[%s10477_s24 + $0x278] sm:$0xff] %v3381_v16  ;;  %v2612_v4 = vadd.f32 %v2611_v60, %v11055_v59  ;;  %v3120_v37 = vpop.f32.mrf.mxu1  ;;  %v9823_v59 = vld [vmem:[%s13577_s3 + $0x114] sm:$0xf0]  ;;  %v2952_v48 = vadd.f32 %v2951_v25, %v11043_v34 }
 0x227   : > { %v8549_v20 = vor.u32 %v9823_v59, %v8548_v3  ;;  %3829 = vperm.xlu0 %10099, %v3615_v39   ;;  %v11315_v60 = vpop.permute.xlu1 %2070  ;;  %v3618_v3 = vld [vmem:[%s10279_s16 + $0x540] sm:$0xff] }
 0x228   : > { %v2781_v29 = vadd.f32 %v2780_v40, %v2612_v4  ;;  %v3121_v16 = vadd.f32 %v3120_v37, %v2952_v48  ;;  %v11313_v40 = vpop.permute.xlu2 %2045  ;;  %v11317_v4 = vpop.permute.xlu0 %2065 }
 0x22a   : > { %v3270_v51 = vmax.f32 %v2781_v29, 0.0  ;;  %v3273_v37 = vmax.f32 %v3121_v16, 0.0  ;;  %v3608_v16 = vld [vmem:[%s10279_s16 + $0x4f0] sm:$0xff] }
 0x22b   : > { %3779 = vperm.xlu2 %10101, %v3605_v7   ;;  %3849 = vperm.xlu1 %10100, %v3619_v12   ;;  %v9824_v12 = vld [vmem:[%s13577_s3 + $0x124] sm:$0xf] }
 0x22c   : > { %v3382_v5 = vpack.c.bf16 %v3271_v53, %v3270_v51  ;;  %v2782_v8 = vpop.f32.mrf.mxu3 }
 0x22d   : > { %v2613_v15 = vpop.f32.mrf.mxu2  ;;  %v2954_v26 = vpop.f32.mrf.mxu0 }
 0x22e   : > { %3446 = vst [vmem:[%s10477_s24 + $0x280] sm:$0xff] %v3382_v5  ;;  %v2614_v21 = vadd.f32 %v2613_v15, %v11043_v34  ;;  %v3123_v25 = vpop.f32.mrf.mxu1  ;;  %v2955_v29 = vadd.f32 %v2954_v26, %v11037_v32 }
 0x22f   : > { %3844 = vperm.xlu0 %10099, %v3618_v3   ;;  %v8558_v3 = vld [vmem:[%s13577_s3 + $0x128] sm:$0xf0] }
 0x230   : > { %v2783_v53 = vadd.f32 %v2782_v8, %v2614_v21  ;;  %2993 = vmatmul.bf16.gmra.mxu0 %v8549_v20  ;;  %v3124_v39 = vadd.f32 %v3123_v25, %v2955_v29  ;;  %v11327_v5 = vpop.permute.xlu2 %2060  ;;  %v11329_v8 = vpop.permute.xlu1 %2085  ;;  %v3622_v21 = vld [vmem:[%s10279_s16 + $0x560] sm:$0xff] }
 0x231   : > { %8755 = vmatmul.msk.bf16.gmra.mxu3 %vm931_vm0, %v8553_v55  ;;  %8787 = vmatmul.msk.bf16.gmra.mxu1 %vm931_vm0, %v8553_v55  ;;  %13674 = vst [vmem:[#allocation5_spill] sm:$0xff] %v11329_v8  ;;  %v11331_v15 = vpop.permute.xlu0 %2080  ;;  %v8556_v25 = vld [vmem:[%s13577_s3 + $0x120] sm:$0xf] }
 0x232   : > { %v3272_v59 = vmax.f32 %v2783_v53, 0.0  ;;  %2655 = vmatmul.bf16.gmra.mxu2 %v8549_v20  ;;  %v3275_v26 = vmax.f32 %v3124_v39, 0.0  ;;  %v3621_v53 = vld [vmem:[%s10279_s16 + $0x558] sm:$0xff] }
 0x233   : > { %3794 = vperm.xlu2 %10101, %v3608_v16   ;;  %3864 = vperm.xlu1 %10100, %v3622_v21  }
 0x234   : > { %v3383_v34 = vpack.c.bf16 %v3273_v37, %v3272_v59  ;;  %v2785_v51 = vpop.f32.mrf.mxu3 }
 0x235   : > { %v2616_v48 = vpop.f32.mrf.mxu2  ;;  %v2956_v56 = vpop.f32.mrf.mxu0 }
 0x236   : > { %3447 = vst [vmem:[%s10477_s24 + $0x288] sm:$0xff] %v3383_v34  ;;  %v2617_v17 = vadd.f32 %v2616_v48, %v11037_v32  ;;  %v3125_v20 = vpop.f32.mrf.mxu1  ;;  %v9825_v32 = vld [vmem:[%s13577_s3 + $0x124] sm:$0xf0]  ;;  %v2957_v7 = vadd.f32 %v2956_v56, %v11081_v46  ;;  %v8561_v48 = vor.u32 %v9824_v12, %v8558_v3 }
 0x237   : > { %v8557_v34 = vor.u32 %v9825_v32, %v8556_v25  ;;  %3859 = vperm.xlu0 %10099, %v3621_v53   ;;  %v3611_v32 = vld [vmem:[%s10279_s16 + $0x508] sm:$0xff]  ;;  %v3625_v53 = vld [vmem:[%s10279_s16 + $0x578] sm:$0xff] }
 0x238   : > { %v2786_v55 = vadd.f32 %v2785_v51, %v2617_v17  ;;  %v3126_v56 = vadd.f32 %v3125_v20, %v2957_v7  ;;  %v11353_v8 = vpop.permute.xlu1 %3654  ;;  %v3624_v20 = vld [vmem:[%s10279_s16 + $0x570] sm:$0xff] }
 0x239   : > { %13675 = vst [vmem:[#allocation6_spill] sm:$0xff] %v11353_v8  ;;  %v11355_v21 = vpop.permute.xlu0 %3649  ;;  %v9938_v8 = vld [vmem:[%s10290_s29 + $0xb4] sm:$0xf] }
 0x23a   : > { %v3274_v29 = vmax.f32 %v2786_v55, 0.0  ;;  %v11351_v55 = vpop.permute.xlu2 %2075  ;;  %13676 = vst [vmem:[#allocation7_spill] sm:$0xff] %v11355_v21  ;;  %v9160_v21 = vld [vmem:[%s10290_s29 + $0xb8] sm:$0xf0] }
 0x23b   : > { %3809 = vperm.xlu2 %10101, %v3611_v32   ;;  %3879 = vperm.xlu1 %10100, %v3625_v53   ;;  %v3614_v53 = vld [vmem:[%s10279_s16 + $0x520] sm:$0xff] }
 0x23c   : > { %v3384_v37 = vpack.c.bf16 %v3275_v26, %v3274_v29  ;;  %v2787_v59 = vpop.f32.mrf.mxu3 }
 0x23d   : > { %v2618_v39 = vpop.f32.mrf.mxu2  ;;  %v2959_v51 = vpop.f32.mrf.mxu0 }
 0x23e   : > { %3448 = vst [vmem:[%s10477_s24 + $0x290] sm:$0xff] %v3384_v37  ;;  %v2619_v17 = vadd.f32 %v2618_v39, %v11081_v46  ;;  %v3128_v16 = vpop.f32.mrf.mxu1  ;;  %v2960_v25 = vadd.f32 %v2959_v51, %v11059_v31  ;;  %v3277_v46 = vmax.f32 %v3126_v56, 0.0  ;;  %v9158_v51 = vld [vmem:[%s10290_s29 + $0xb0] sm:$0xf]  ;;  %v9939_v56 = vld [vmem:[%s10290_s29 + $0xb4] sm:$0xf0] }
 0x23f   : > { %3874 = vperm.xlu0 %10099, %v3624_v20   ;;  %v3628_v20 = vld [vmem:[%s10279_s16 + $0x590] sm:$0xff] }
 0x240   : > { %v2788_v26 = vadd.f32 %v2787_v59, %v2619_v17  ;;  %2998 = vmatmul.bf16.gmra.mxu0 %v8557_v34  ;;  %v3129_v12 = vadd.f32 %v3128_v16, %v2960_v25 }
 0x241   : > { %8756 = vmatmul.msk.bf16.gmra.mxu3 %vm931_vm0, %v8561_v48  ;;  %8788 = vmatmul.msk.bf16.gmra.mxu1 %vm931_vm0, %v8561_v48  ;;  %v11371_v32 = vpop.permute.xlu0 %3664 }
 0x242   : > { %v3276_v29 = vmax.f32 %v2788_v26, 0.0  ;;  %2660 = vmatmul.bf16.gmra.mxu2 %v8557_v34  ;;  %v11367_v17 = vpop.permute.xlu2 %3644  ;;  %v11369_v34 = vpop.permute.xlu1 %3669  ;;  %v9159_v26 = vor.u32 %v9939_v56, %v9158_v51  ;;  %13679 = vst [vmem:[#allocation10_spill] sm:$0xff] %v11371_v32  ;;  %v3279_v16 = vmax.f32 %v3129_v12, 0.0  ;;  %v9826_v12 = vld [vmem:[%s13577_s3 + $0x134] sm:$0xf] }
 0x243   : > { %13677 = vst [vmem:[#allocation8_spill] sm:$0xff] %v11367_v17  ;;  %3824 = vperm.xlu2 %10101, %v3614_v53   ;;  %3894 = vperm.xlu1 %10100, %v3628_v20   ;;  %v9163_v20 = vor.u32 %v9938_v8, %v9160_v21 }
 0x244   : > { %v3385_v7 = vpack.c.bf16 %v3277_v46, %v3276_v29  ;;  %v2790_v3 = vpop.f32.mrf.mxu3  ;;  %13678 = vst [vmem:[#allocation9_spill] sm:$0xff] %v11369_v34  ;;  %v8564_v46 = vld [vmem:[%s13577_s3 + $0x130] sm:$0xf]  ;;  %4441 = vmatpush.bf16.msra.mxu3 %v9159_v26  ;;  %v3627_v29 = vld [vmem:[%s10279_s16 + $0x588] sm:$0xff] }
 0x245   : > { %v2621_v37 = vpop.f32.mrf.mxu2  ;;  %v2961_v59 = vpop.f32.mrf.mxu0  ;;  %4779 = vmatpush.bf16.msra.mxu0 %v9163_v20 }
 0x246   : > { %3449 = vst [vmem:[%s10477_s24 + $0x298] sm:$0xff] %v3385_v7  ;;  %v2622_v39 = vadd.f32 %v2621_v37, %v11059_v31  ;;  %v3130_v48 = vpop.f32.mrf.mxu1  ;;  %v9827_v31 = vld [vmem:[%s13577_s3 + $0x134] sm:$0xf0]  ;;  %v2962_v37 = vadd.f32 %v2961_v59, %v11057_v47 }
 0x247   : > { %v8565_v56 = vor.u32 %v9827_v31, %v8564_v46  ;;  %3889 = vperm.xlu0 %10099, %v3627_v29  }
 0x248   : > { %v2791_v25 = vadd.f32 %v2790_v3, %v2622_v39  ;;  %v8566_v3 = vld [vmem:[%s13577_s3 + $0x138] sm:$0xf0]  ;;  %v3131_v34 = vadd.f32 %v3130_v48, %v2962_v37 }
 0x249   : > { %v8569_v59 = vor.u32 %v9826_v12, %v8566_v3  ;;  %v11397_v46 = vpop.permute.xlu0 %3679  ;;  %v3631_v12 = vld [vmem:[%s10279_s16 + $0x5a8] sm:$0xff] }
 0x24a   : > { %v3278_v7 = vmax.f32 %v2791_v25, 0.0  ;;  %v11393_v17 = vpop.permute.xlu2 %3659  ;;  %v11395_v53 = vpop.permute.xlu1 %3684  ;;  %v3281_v48 = vmax.f32 %v3131_v34, 0.0 }
 0x24b   : > { %13680 = vst [vmem:[#allocation11_spill] sm:$0xff] %v11395_v53  ;;  %3909 = vperm.xlu1 %10100, %v3631_v12  }
 0x24c   : > { %v3386_v39 = vpack.c.bf16 %v3279_v16, %v3278_v7  ;;  %v2792_v51 = vpop.f32.mrf.mxu3  ;;  %v3617_v7 = vld [vmem:[%s10279_s16 + $0x538] sm:$0xff] }
 0x24d   : > { %v2623_v26 = vpop.f32.mrf.mxu2  ;;  %v2964_v25 = vpop.f32.mrf.mxu0  ;;  %3839 = vperm.xlu2 %10101, %v3617_v7   ;;  %v3634_v7 = vld [vmem:[%s10279_s16 + $0x5c0] sm:$0xff] }
 0x24e   : > { %3450 = vst [vmem:[%s10477_s24 + $0x2a0] sm:$0xff] %v3386_v39  ;;  %v2624_v32 = vadd.f32 %v2623_v26, %v11057_v47  ;;  %v3133_v16 = vpop.f32.mrf.mxu1  ;;  %v2965_v29 = vadd.f32 %v2964_v25, %v11095_v58  ;;  %v3630_v47 = vld [vmem:[%s10279_s16 + $0x5a0] sm:$0xff] }
 0x24f   : > { %3904 = vperm.xlu0 %10099, %v3630_v47  }
 0x250   : > { %v2793_v31 = vadd.f32 %v2792_v51, %v2624_v32  ;;  %3003 = vmatmul.bf16.gmra.mxu0 %v8565_v56  ;;  %v3134_v21 = vadd.f32 %v3133_v16, %v2965_v29  ;;  %v8572_v16 = vld [vmem:[%s13577_s3 + $0x140] sm:$0xf]  ;;  %v3633_v29 = vld [vmem:[%s10279_s16 + $0x5b8] sm:$0xff] }
 0x251   : > { %8757 = vmatmul.msk.bf16.gmra.mxu3 %vm931_vm0, %v8569_v59  ;;  %8789 = vmatmul.msk.bf16.gmra.mxu1 %vm931_vm0, %v8569_v59  ;;  %v11411_v25 = vpop.permute.xlu0 %3694 }
 0x252   : > { %v3280_v37 = vmax.f32 %v2793_v31, 0.0  ;;  %2665 = vmatmul.bf16.gmra.mxu2 %v8565_v56  ;;  %v11407_v26 = vpop.permute.xlu2 %3674  ;;  %v11409_v34 = vpop.permute.xlu1 %3699  ;;  %13682 = vst [vmem:[#allocation13_spill] sm:$0xff] %v11411_v25  ;;  %v3283_v59 = vmax.f32 %v3134_v21, 0.0  ;;  %v3620_v31 = vld [vmem:[%s10279_s16 + $0x550] sm:$0xff] }
 0x253   : > { %13681 = vst [vmem:[#allocation12_spill] sm:$0xff] %v11409_v34  ;;  %3924 = vperm.xlu1 %10100, %v3634_v7  }
 0x254   : > { %v3387_v8 = vpack.c.bf16 %v3281_v48, %v3280_v37  ;;  %v2795_v32 = vpop.f32.mrf.mxu3  ;;  %v9828_v48 = vld [vmem:[%s13577_s3 + $0x144] sm:$0xf]  ;;  %v8574_v37 = vld [vmem:[%s13577_s3 + $0x148] sm:$0xf0] }
 0x255   : > { %v2626_v3 = vpop.f32.mrf.mxu2  ;;  %v2966_v39 = vpop.f32.mrf.mxu0  ;;  %3854 = vperm.xlu2 %10101, %v3620_v31  }
 0x256   : > { %3451 = vst [vmem:[%s10477_s24 + $0x2a8] sm:$0xff] %v3387_v8  ;;  %v2627_v51 = vadd.f32 %v2626_v3, %v11095_v58  ;;  %v3135_v56 = vpop.f32.mrf.mxu1  ;;  %v9829_v58 = vld [vmem:[%s13577_s3 + $0x144] sm:$0xf0]  ;;  %v2967_v47 = vadd.f32 %v2966_v39, %v11085_v41  ;;  %v8577_v39 = vor.u32 %v9828_v48, %v8574_v37 }
 0x257   : > { %3919 = vperm.xlu0 %10099, %v3633_v29   ;;  %v3637_v29 = vld [vmem:[%s10279_s16 + $0x5d8] sm:$0xff] }
 0x258   : > { %v2796_v20 = vadd.f32 %v2795_v32, %v2627_v51  ;;  %v8573_v32 = vor.u32 %v9829_v58, %v8572_v16  ;;  %v3623_v58 = vld [vmem:[%s10279_s16 + $0x568] sm:$0xff] }
 0x259   : > { %v11435_v7 = vpop.permute.xlu0 %3709 }
 0x25a   : > { %v3282_v12 = vmax.f32 %v2796_v20, 0.0  ;;  %v3136_v20 = vadd.f32 %v3135_v56, %v2967_v47  ;;  %v11431_v25 = vpop.permute.xlu2 %3689  ;;  %v11433_v53 = vpop.permute.xlu1 %3714  ;;  %13684 = vst [vmem:[#allocation15_spill] sm:$0xff] %v11435_v7 }
 0x25b   : > { %13683 = vst [vmem:[#allocation14_spill] sm:$0xff] %v11433_v53  ;;  %3939 = vperm.xlu1 %10100, %v3637_v29   ;;  %v3640_v29 = vld [vmem:[%s10279_s16 + $0x5f0] sm:$0xff] }
 0x25c   : > { %v3388_v8 = vpack.c.bf16 %v3283_v59, %v3282_v12  ;;  %v2797_v21 = vpop.f32.mrf.mxu3  ;;  %v3636_v12 = vld [vmem:[%s10279_s16 + $0x5d0] sm:$0xff]  ;;  %v3285_v56 = vmax.f32 %v3136_v20, 0.0 }
 0x25d   : > { %v2628_v3 = vpop.f32.mrf.mxu2  ;;  %v2969_v51 = vpop.f32.mrf.mxu0  ;;  %3869 = vperm.xlu2 %10101, %v3623_v58   ;;  %v3626_v58 = vld [vmem:[%s10279_s16 + $0x580] sm:$0xff] }
 0x25e   : > { %3452 = vst [vmem:[%s10477_s24 + $0x2b0] sm:$0xff] %v3388_v8  ;;  %v2629_v34 = vadd.f32 %v2628_v3, %v11085_v41  ;;  %v3138_v31 = vpop.f32.mrf.mxu1  ;;  %v2970_v16 = vadd.f32 %v2969_v51, %v11083_v38 }
 0x25f   : > { %3934 = vperm.xlu0 %10099, %v3636_v12  }
 0x260   : > { %v2798_v59 = vadd.f32 %v2797_v21, %v2629_v34  ;;  %3008 = vmatmul.bf16.gmra.mxu0 %v8573_v32  ;;  %v3139_v34 = vadd.f32 %v3138_v31, %v2970_v16  ;;  %v8580_v31 = vld [vmem:[%s13577_s3 + $0x150] sm:$0xf]  ;;  %v3639_v16 = vld [vmem:[%s10279_s16 + $0x5e8] sm:$0xff] }
 0x261   : > { %8758 = vmatmul.msk.bf16.gmra.mxu3 %vm931_vm0, %v8577_v39  ;;  %8790 = vmatmul.msk.bf16.gmra.mxu1 %vm931_vm0, %v8577_v39  ;;  %v11449_v39 = vpop.permute.xlu0 %3724 }
 0x262   : > { %v3284_v47 = vmax.f32 %v2798_v59, 0.0  ;;  %2670 = vmatmul.bf16.gmra.mxu2 %v8573_v32  ;;  %v11445_v3 = vpop.permute.xlu2 %3704  ;;  %v11447_v51 = vpop.permute.xlu1 %3729  ;;  %13686 = vst [vmem:[#allocation17_spill] sm:$0xff] %v11449_v39  ;;  %v3287_v20 = vmax.f32 %v3139_v34, 0.0 }
 0x263   : > { %13685 = vst [vmem:[#allocation16_spill] sm:$0xff] %v11447_v51  ;;  %3954 = vperm.xlu1 %10100, %v3640_v29  }
 0x264   : > { %v3389_v41 = vpack.c.bf16 %v3285_v56, %v3284_v47  ;;  %v2800_v48 = vpop.f32.mrf.mxu3  ;;  %v9830_v47 = vld [vmem:[%s13577_s3 + $0x154] sm:$0xf] }
 0x265   : > { %v2631_v37 = vpop.f32.mrf.mxu2  ;;  %v2971_v8 = vpop.f32.mrf.mxu0  ;;  %3884 = vperm.xlu2 %10101, %v3626_v58  }
 0x266   : > { %3453 = vst [vmem:[%s10477_s24 + $0x2b8] sm:$0xff] %v3389_v41  ;;  %v2632_v21 = vadd.f32 %v2631_v37, %v11083_v38  ;;  %v3140_v32 = vpop.f32.mrf.mxu1  ;;  %v9831_v38 = vld [vmem:[%s13577_s3 + $0x154] sm:$0xf0]  ;;  %v2972_v56 = vadd.f32 %v2971_v8, %v11119_v28  ;;  %v8582_v41 = vld [vmem:[%s13577_s3 + $0x158] sm:$0xf0] }
 0x267   : > { %v8581_v37 = vor.u32 %v9831_v38, %v8580_v31  ;;  %3949 = vperm.xlu0 %10099, %v3639_v16   ;;  %v8585_v8 = vor.u32 %v9830_v47, %v8582_v41  ;;  %v3629_v38 = vld [vmem:[%s10279_s16 + $0x598] sm:$0xff]  ;;  %v5453_v16 = vld [vmem:[%s10279_s16 + $0x608] sm:$0xff] }
 0x268   : > { %v2801_v59 = vadd.f32 %v2800_v48, %v2632_v21  ;;  %v3141_v51 = vadd.f32 %v3140_v32, %v2972_v56 }
 0x269   : > { %v11473_v29 = vpop.permute.xlu0 %3739 }
 0x26a   : > { %v3286_v12 = vmax.f32 %v2801_v59, 0.0  ;;  %v11469_v53 = vpop.permute.xlu2 %3719  ;;  %v11471_v7 = vpop.permute.xlu1 %3744  ;;  %13688 = vst [vmem:[#allocation19_spill] sm:$0xff] %v11473_v29  ;;  %v3289_v32 = vmax.f32 %v3141_v51, 0.0 }
 0x26b   : > { %13687 = vst [vmem:[#allocation18_spill] sm:$0xff] %v11471_v7  ;;  %5523 = vperm.xlu1 %10100, %v5453_v16   ;;  %v5456_v16 = vld [vmem:[%s10279_s16 + $0x620] sm:$0xff] }
 0x26c   : > { %v3390_v34 = vpack.c.bf16 %v3287_v20, %v3286_v12  ;;  %v2802_v48 = vpop.f32.mrf.mxu3  ;;  %v5452_v12 = vld [vmem:[%s10279_s16 + $0x600] sm:$0xff] }
 0x26d   : > { %v2633_v21 = vpop.f32.mrf.mxu2  ;;  %v2974_v59 = vpop.f32.mrf.mxu0  ;;  %3899 = vperm.xlu2 %10101, %v3629_v38   ;;  %v3632_v38 = vld [vmem:[%s10279_s16 + $0x5b0] sm:$0xff] }
 0x26e   : > { %3454 = vst [vmem:[%s10477_s24 + $0x2c0] sm:$0xff] %v3390_v34  ;;  %v2634_v39 = vadd.f32 %v2633_v21, %v11119_v28  ;;  %v3143_v58 = vpop.f32.mrf.mxu1  ;;  %v2975_v31 = vadd.f32 %v2974_v59, %v11099_v63 }
 0x26f   : > { %5518 = vperm.xlu0 %10099, %v5452_v12  }
 0x270   : > { %v2803_v20 = vadd.f32 %v2802_v48, %v2634_v39  ;;  %3013 = vmatmul.bf16.gmra.mxu0 %v8581_v37  ;;  %v3144_v39 = vadd.f32 %v3143_v58, %v2975_v31  ;;  %v8588_v58 = vld [vmem:[%s13577_s3 + $0x160] sm:$0xf]  ;;  %v5455_v31 = vld [vmem:[%s10279_s16 + $0x618] sm:$0xff] }
 0x271   : > { %8759 = vmatmul.msk.bf16.gmra.mxu3 %vm931_vm0, %v8585_v8  ;;  %8791 = vmatmul.msk.bf16.gmra.mxu1 %vm931_vm0, %v8585_v8  ;;  %v11487_v59 = vpop.permute.xlu0 %3754 }
 0x272   : > { %v3288_v56 = vmax.f32 %v2803_v20, 0.0  ;;  %2675 = vmatmul.bf16.gmra.mxu2 %v8581_v37  ;;  %v11483_v21 = vpop.permute.xlu2 %3734  ;;  %v11485_v51 = vpop.permute.xlu1 %3759  ;;  %13690 = vst [vmem:[#allocation21_spill] sm:$0xff] %v11487_v59  ;;  %v3291_v8 = vmax.f32 %v3144_v39, 0.0 }
 0x273   : > { %13689 = vst [vmem:[#allocation20_spill] sm:$0xff] %v11485_v51  ;;  %5538 = vperm.xlu1 %10100, %v5456_v16  }
 0x274   : > { %v3391_v28 = vpack.c.bf16 %v3289_v32, %v3288_v56  ;;  %v2805_v47 = vpop.f32.mrf.mxu3  ;;  %v9832_v56 = vld [vmem:[%s13577_s3 + $0x164] sm:$0xf] }
 0x275   : > { %v2636_v41 = vpop.f32.mrf.mxu2  ;;  %v2976_v34 = vpop.f32.mrf.mxu0  ;;  %3914 = vperm.xlu2 %10101, %v3632_v38  }
 0x276   : > { %3455 = vst [vmem:[%s10477_s24 + $0x2c8] sm:$0xff] %v3391_v28  ;;  %v2637_v48 = vadd.f32 %v2636_v41, %v11099_v63  ;;  %v3145_v37 = vpop.f32.mrf.mxu1  ;;  %v9833_v63 = vld [vmem:[%s13577_s3 + $0x164] sm:$0xf0]  ;;  %v2977_v32 = vadd.f32 %v2976_v34, %v11097_v1  ;;  %v8590_v28 = vld [vmem:[%s13577_s3 + $0x168] sm:$0xf0] }
 0x277   : > { %v8589_v41 = vor.u32 %v9833_v63, %v8588_v58  ;;  %5533 = vperm.xlu0 %10099, %v5455_v31   ;;  %v8593_v34 = vor.u32 %v9832_v56, %v8590_v28  ;;  %v3635_v63 = vld [vmem:[%s10279_s16 + $0x5c8] sm:$0xff]  ;;  %v5459_v31 = vld [vmem:[%s10279_s16 + $0x638] sm:$0xff] }
 0x278   : > { %v2806_v20 = vadd.f32 %v2805_v47, %v2637_v48  ;;  %v3146_v51 = vadd.f32 %v3145_v37, %v2977_v32  ;;  %v5458_v37 = vld [vmem:[%s10279_s16 + $0x630] sm:$0xff] }
 0x279   : > { %v11511_v16 = vpop.permute.xlu0 %3769 }
 0x27a   : > { %v3290_v12 = vmax.f32 %v2806_v20, 0.0  ;;  %v11507_v7 = vpop.permute.xlu2 %3749  ;;  %v11509_v29 = vpop.permute.xlu1 %3774  ;;  %13692 = vst [vmem:[#allocation23_spill] sm:$0xff] %v11511_v16  ;;  %v9152_v16 = vld [vmem:[%s10290_s29 + $0xa8] sm:$0xf0] }
 0x27b   : > { %13691 = vst [vmem:[#allocation22_spill] sm:$0xff] %v11509_v29  ;;  %5553 = vperm.xlu1 %10100, %v5459_v31   ;;  %v3638_v31 = vld [vmem:[%s10279_s16 + $0x5e0] sm:$0xff] }
 0x27c   : > { %v3392_v39 = vpack.c.bf16 %v3291_v8, %v3290_v12  ;;  %v2807_v47 = vpop.f32.mrf.mxu3  ;;  %v9936_v29 = vld [vmem:[%s10290_s29 + $0xa4] sm:$0xf] }
 0x27d   : > { %v2638_v48 = vpop.f32.mrf.mxu2  ;;  %v2979_v20 = vpop.f32.mrf.mxu0  ;;  %3929 = vperm.xlu2 %10101, %v3635_v63  }
 0x27e   : > { %3456 = vst [vmem:[%s10477_s24 + $0x2d0] sm:$0xff] %v3392_v39  ;;  %v2639_v59 = vadd.f32 %v2638_v48, %v11097_v1  ;;  %v3148_v38 = vpop.f32.mrf.mxu1  ;;  %v2980_v58 = vadd.f32 %v2979_v20, %v11133_v27  ;;  %v3293_v1 = vmax.f32 %v3146_v51, 0.0  ;;  %v9150_v48 = vld [vmem:[%s10290_s29 + $0xa0] sm:$0xf]  ;;  %v9937_v51 = vld [vmem:[%s10290_s29 + $0xa4] sm:$0xf0] }
 0x27f   : > { %5548 = vperm.xlu0 %10099, %v5458_v37   ;;  %v5462_v37 = vld [vmem:[%s10279_s16 + $0x650] sm:$0xff] }
 0x280   : > { %v2808_v8 = vadd.f32 %v2807_v47, %v2639_v59  ;;  %3018 = vmatmul.bf16.gmra.mxu0 %v8589_v41  ;;  %v3149_v59 = vadd.f32 %v3148_v38, %v2980_v58 }
 0x281   : > { %8760 = vmatmul.msk.bf16.gmra.mxu3 %vm931_vm0, %v8593_v34  ;;  %8792 = vmatmul.msk.bf16.gmra.mxu1 %vm931_vm0, %v8593_v34  ;;  %v11527_v63 = vpop.permute.xlu0 %3784 }
 0x282   : > { %v3292_v12 = vmax.f32 %v2808_v8, 0.0  ;;  %2680 = vmatmul.bf16.gmra.mxu2 %v8589_v41  ;;  %v11523_v20 = vpop.permute.xlu2 %3764  ;;  %v11525_v41 = vpop.permute.xlu1 %3789  ;;  %v9151_v8 = vor.u32 %v9937_v51, %v9150_v48  ;;  %13695 = vst [vmem:[#allocation26_spill] sm:$0xff] %v11527_v63  ;;  %v3295_v38 = vmax.f32 %v3149_v59, 0.0  ;;  %v9834_v59 = vld [vmem:[%s13577_s3 + $0x174] sm:$0xf] }
 0x283   : > { %13693 = vst [vmem:[#allocation24_spill] sm:$0xff] %v11523_v20  ;;  %5568 = vperm.xlu1 %10100, %v5462_v37   ;;  %v9155_v37 = vor.u32 %v9936_v29, %v9152_v16 }
 0x284   : > { %v3393_v32 = vpack.c.bf16 %v3293_v1, %v3292_v12  ;;  %v2810_v56 = vpop.f32.mrf.mxu3  ;;  %13694 = vst [vmem:[#allocation25_spill] sm:$0xff] %v11525_v41  ;;  %v8596_v1 = vld [vmem:[%s13577_s3 + $0x170] sm:$0xf]  ;;  %4442 = vmatpush.bf16.msra.mxu3 %v9151_v8  ;;  %v5461_v12 = vld [vmem:[%s10279_s16 + $0x648] sm:$0xff] }
 0x285   : > { %v2641_v28 = vpop.f32.mrf.mxu2  ;;  %v2981_v39 = vpop.f32.mrf.mxu0  ;;  %3944 = vperm.xlu2 %10101, %v3638_v31   ;;  %4780 = vmatpush.bf16.msra.mxu0 %v9155_v37 }
 0x286   : > { %3457 = vst [vmem:[%s10477_s24 + $0x2d8] sm:$0xff] %v3393_v32  ;;  %v2642_v47 = vadd.f32 %v2641_v28, %v11133_v27  ;;  %v3150_v34 = vpop.f32.mrf.mxu1  ;;  %v9835_v27 = vld [vmem:[%s13577_s3 + $0x174] sm:$0xf0]  ;;  %v2982_v28 = vadd.f32 %v2981_v39, %v11123_v35 }
 0x287   : > { %v8597_v51 = vor.u32 %v9835_v27, %v8596_v1  ;;  %5563 = vperm.xlu0 %10099, %v5461_v12  }
 0x288   : > { %v2811_v58 = vadd.f32 %v2810_v56, %v2642_v47  ;;  %v8598_v56 = vld [vmem:[%s13577_s3 + $0x178] sm:$0xf0]  ;;  %v3151_v41 = vadd.f32 %v3150_v34, %v2982_v28 }
 0x289   : > { %v8601_v39 = vor.u32 %v9834_v59, %v8598_v56  ;;  %v11553_v1 = vpop.permute.xlu0 %3799  ;;  %v5465_v59 = vld [vmem:[%s10279_s16 + $0x668] sm:$0xff] }
 0x28a   : > { %v3294_v32 = vmax.f32 %v2811_v58, 0.0  ;;  %v11549_v20 = vpop.permute.xlu2 %3779  ;;  %v11551_v31 = vpop.permute.xlu1 %3804  ;;  %v3297_v34 = vmax.f32 %v3151_v41, 0.0 }
 0x28b   : > { %13696 = vst [vmem:[#allocation27_spill] sm:$0xff] %v11551_v31  ;;  %5583 = vperm.xlu1 %10100, %v5465_v59  }
 0x28c   : > { %v3394_v47 = vpack.c.bf16 %v3295_v38, %v3294_v32  ;;  %v2812_v48 = vpop.f32.mrf.mxu3  ;;  %v3641_v32 = vld [vmem:[%s10279_s16 + $0x5f8] sm:$0xff] }
 0x28d   : > { %v2643_v8 = vpop.f32.mrf.mxu2  ;;  %v2984_v58 = vpop.f32.mrf.mxu0  ;;  %3959 = vperm.xlu2 %10101, %v3641_v32   ;;  %v5468_v32 = vld [vmem:[%s10279_s16 + $0x680] sm:$0xff] }
 0x28e   : > { %3458 = vst [vmem:[%s10477_s24 + $0x2e0] sm:$0xff] %v3394_v47  ;;  %v2644_v63 = vadd.f32 %v2643_v8, %v11123_v35  ;;  %v3153_v38 = vpop.f32.mrf.mxu1  ;;  %v2985_v12 = vadd.f32 %v2984_v58, %v11121_v30  ;;  %v5464_v35 = vld [vmem:[%s10279_s16 + $0x660] sm:$0xff] }
 0x28f   : > { %5578 = vperm.xlu0 %10099, %v5464_v35  }
 0x290   : > { %v2813_v27 = vadd.f32 %v2812_v48, %v2644_v63  ;;  %3023 = vmatmul.bf16.gmra.mxu0 %v8597_v51  ;;  %v3154_v16 = vadd.f32 %v3153_v38, %v2985_v12  ;;  %v8604_v38 = vld [vmem:[%s13577_s3 + $0x180] sm:$0xf]  ;;  %v5467_v12 = vld [vmem:[%s10279_s16 + $0x678] sm:$0xff] }
 0x291   : > { %8761 = vmatmul.msk.bf16.gmra.mxu3 %vm931_vm0, %v8601_v39  ;;  %8793 = vmatmul.msk.bf16.gmra.mxu1 %vm931_vm0, %v8601_v39  ;;  %v11567_v58 = vpop.permute.xlu0 %3814 }
 0x292   : > { %v3296_v28 = vmax.f32 %v2813_v27, 0.0  ;;  %2685 = vmatmul.bf16.gmra.mxu2 %v8597_v51  ;;  %v11563_v8 = vpop.permute.xlu2 %3794  ;;  %v11565_v41 = vpop.permute.xlu1 %3819  ;;  %13698 = vst [vmem:[#allocation29_spill] sm:$0xff] %v11567_v58  ;;  %v3299_v39 = vmax.f32 %v3154_v16, 0.0  ;;  %v5454_v27 = vld [vmem:[%s10279_s16 + $0x610] sm:$0xff] }
 0x293   : > { %13697 = vst [vmem:[#allocation28_spill] sm:$0xff] %v11565_v41  ;;  %5598 = vperm.xlu1 %10100, %v5468_v32  }
 0x294   : > { %v3395_v29 = vpack.c.bf16 %v3297_v34, %v3296_v28  ;;  %v2815_v63 = vpop.f32.mrf.mxu3  ;;  %v9836_v34 = vld [vmem:[%s13577_s3 + $0x184] sm:$0xf]  ;;  %v8606_v28 = vld [vmem:[%s13577_s3 + $0x188] sm:$0xf0] }
 0x295   : > { %v2646_v56 = vpop.f32.mrf.mxu2  ;;  %v2986_v47 = vpop.f32.mrf.mxu0  ;;  %5528 = vperm.xlu2 %10101, %v5454_v27  }
 0x296   : > { %3459 = vst [vmem:[%s10477_s24 + $0x2e8] sm:$0xff] %v3395_v29  ;;  %v2647_v48 = vadd.f32 %v2646_v56, %v11121_v30  ;;  %v3155_v51 = vpop.f32.mrf.mxu1  ;;  %v9837_v30 = vld [vmem:[%s13577_s3 + $0x184] sm:$0xf0]  ;;  %v2987_v35 = vadd.f32 %v2986_v47, %v11157_v61  ;;  %v8609_v47 = vor.u32 %v9836_v34, %v8606_v28 }
 0x297   : > { %5593 = vperm.xlu0 %10099, %v5467_v12   ;;  %v5471_v12 = vld [vmem:[%s10279_s16 + $0x698] sm:$0xff] }
 0x298   : > { %v2816_v37 = vadd.f32 %v2815_v63, %v2647_v48  ;;  %v8605_v63 = vor.u32 %v9837_v30, %v8604_v38  ;;  %v5457_v30 = vld [vmem:[%s10279_s16 + $0x628] sm:$0xff] }
 0x299   : > { %v11591_v32 = vpop.permute.xlu0 %3829 }
 0x29a   : > { %v3298_v59 = vmax.f32 %v2816_v37, 0.0  ;;  %v3156_v37 = vadd.f32 %v3155_v51, %v2987_v35  ;;  %v11587_v58 = vpop.permute.xlu2 %3809  ;;  %v11589_v31 = vpop.permute.xlu1 %3834  ;;  %13700 = vst [vmem:[#allocation31_spill] sm:$0xff] %v11591_v32 }
 0x29b   : > { %13699 = vst [vmem:[#allocation30_spill] sm:$0xff] %v11589_v31  ;;  %5613 = vperm.xlu1 %10100, %v5471_v12   ;;  %v5474_v12 = vld [vmem:[%s10279_s16 + $0x6b0] sm:$0xff] }
 0x29c   : > { %v3396_v29 = vpack.c.bf16 %v3299_v39, %v3298_v59  ;;  %v2817_v16 = vpop.f32.mrf.mxu3  ;;  %v5470_v59 = vld [vmem:[%s10279_s16 + $0x690] sm:$0xff]  ;;  %v3301_v51 = vmax.f32 %v3156_v37, 0.0 }
 0x29d   : > { %v2648_v56 = vpop.f32.mrf.mxu2  ;;  %v2989_v48 = vpop.f32.mrf.mxu0  ;;  %5543 = vperm.xlu2 %10101, %v5457_v30   ;;  %v5460_v30 = vld [vmem:[%s10279_s16 + $0x640] sm:$0xff] }
 0x29e   : > { %3460 = vst [vmem:[%s10477_s24 + $0x2f0] sm:$0xff] %v3396_v29  ;;  %v2649_v41 = vadd.f32 %v2648_v56, %v11157_v61  ;;  %v3158_v27 = vpop.f32.mrf.mxu1  ;;  %v2990_v38 = vadd.f32 %v2989_v48, %v11137_v11 }
 0x29f   : > { %5608 = vperm.xlu0 %10099, %v5470_v59  }
 0x2a0   : > { %v2818_v39 = vadd.f32 %v2817_v16, %v2649_v41  ;;  %3028 = vmatmul.bf16.gmra.mxu0 %v8605_v63  ;;  %v3159_v41 = vadd.f32 %v3158_v27, %v2990_v38  ;;  %v8612_v27 = vld [vmem:[%s13577_s3 + $0x190] sm:$0xf]  ;;  %v5473_v38 = vld [vmem:[%s10279_s16 + $0x6a8] sm:$0xff] }
 0x2a1   : > { %8762 = vmatmul.msk.bf16.gmra.mxu3 %vm931_vm0, %v8609_v47  ;;  %8794 = vmatmul.msk.bf16.gmra.mxu1 %vm931_vm0, %v8609_v47  ;;  %v11605_v47 = vpop.permute.xlu0 %3844 }
 0x2a2   : > { %v3300_v35 = vmax.f32 %v2818_v39, 0.0  ;;  %2690 = vmatmul.bf16.gmra.mxu2 %v8605_v63  ;;  %v11601_v56 = vpop.permute.xlu2 %3824  ;;  %v11603_v48 = vpop.permute.xlu1 %3849  ;;  %13702 = vst [vmem:[#allocation33_spill] sm:$0xff] %v11605_v47  ;;  %v3303_v37 = vmax.f32 %v3159_v41, 0.0 }
 0x2a3   : > { %13701 = vst [vmem:[#allocation32_spill] sm:$0xff] %v11603_v48  ;;  %5628 = vperm.xlu1 %10100, %v5474_v12  }
 0x2a4   : > { %v3397_v61 = vpack.c.bf16 %v3301_v51, %v3300_v35  ;;  %v2820_v34 = vpop.f32.mrf.mxu3  ;;  %v9838_v35 = vld [vmem:[%s13577_s3 + $0x194] sm:$0xf] }
 0x2a5   : > { %v2651_v28 = vpop.f32.mrf.mxu2  ;;  %v2991_v29 = vpop.f32.mrf.mxu0  ;;  %5558 = vperm.xlu2 %10101, %v5460_v30  }
 0x2a6   : > { %3461 = vst [vmem:[%s10477_s24 + $0x2f8] sm:$0xff] %v3397_v61  ;;  %v2652_v16 = vadd.f32 %v2651_v28, %v11137_v11  ;;  %v3160_v63 = vpop.f32.mrf.mxu1  ;;  %v9839_v11 = vld [vmem:[%s13577_s3 + $0x194] sm:$0xf0]  ;;  %v2992_v51 = vadd.f32 %v2991_v29, %v11135_v42  ;;  %v8614_v61 = vld [vmem:[%s13577_s3 + $0x198] sm:$0xf0] }
 0x2a7   : > { %v8613_v28 = vor.u32 %v9839_v11, %v8612_v27  ;;  %5623 = vperm.xlu0 %10099, %v5473_v38   ;;  %v8617_v29 = vor.u32 %v9838_v35, %v8614_v61  ;;  %v5463_v11 = vld [vmem:[%s10279_s16 + $0x658] sm:$0xff]  ;;  %v5477_v38 = vld [vmem:[%s10279_s16 + $0x6c8] sm:$0xff] }
 0x2a8   : > { %v2821_v39 = vadd.f32 %v2820_v34, %v2652_v16  ;;  %v3161_v48 = vadd.f32 %v3160_v63, %v2992_v51 }
 0x2a9   : > { %v11629_v12 = vpop.permute.xlu0 %3859 }
 0x2aa   : > { %v3302_v59 = vmax.f32 %v2821_v39, 0.0  ;;  %v11625_v31 = vpop.permute.xlu2 %3839  ;;  %v11627_v32 = vpop.permute.xlu1 %3864  ;;  %13704 = vst [vmem:[#allocation35_spill] sm:$0xff] %v11629_v12  ;;  %v3305_v63 = vmax.f32 %v3161_v48, 0.0 }
 0x2ab   : > { %13703 = vst [vmem:[#allocation34_spill] sm:$0xff] %v11627_v32  ;;  %5643 = vperm.xlu1 %10100, %v5477_v38   ;;  %v5480_v38 = vld [vmem:[%s10279_s16 + $0x6e0] sm:$0xff] }
 0x2ac   : > { %v3398_v41 = vpack.c.bf16 %v3303_v37, %v3302_v59  ;;  %v2822_v34 = vpop.f32.mrf.mxu3  ;;  %v5476_v59 = vld [vmem:[%s10279_s16 + $0x6c0] sm:$0xff] }
 0x2ad   : > { %v2653_v16 = vpop.f32.mrf.mxu2  ;;  %v2994_v39 = vpop.f32.mrf.mxu0  ;;  %5573 = vperm.xlu2 %10101, %v5463_v11   ;;  %v5466_v11 = vld [vmem:[%s10279_s16 + $0x670] sm:$0xff] }
 0x2ae   : > { %3462 = vst [vmem:[%s10477_s24 + $0x300] sm:$0xff] %v3398_v41  ;;  %v2654_v47 = vadd.f32 %v2653_v16, %v11135_v42  ;;  %v3163_v30 = vpop.f32.mrf.mxu1  ;;  %v2995_v27 = vadd.f32 %v2994_v39, %v11171_v0 }
 0x2af   : > { %5638 = vperm.xlu0 %10099, %v5476_v59  }
 0x2b0   : > { %v2823_v37 = vadd.f32 %v2822_v34, %v2654_v47  ;;  %3033 = vmatmul.bf16.gmra.mxu0 %v8613_v28  ;;  %v3164_v47 = vadd.f32 %v3163_v30, %v2995_v27  ;;  %v8620_v30 = vld [vmem:[%s13577_s3 + $0x1a0] sm:$0xf]  ;;  %v5479_v27 = vld [vmem:[%s10279_s16 + $0x6d8] sm:$0xff] }
 0x2b1   : > { %8763 = vmatmul.msk.bf16.gmra.mxu3 %vm931_vm0, %v8617_v29  ;;  %8795 = vmatmul.msk.bf16.gmra.mxu1 %vm931_vm0, %v8617_v29  ;;  %v11643_v39 = vpop.permute.xlu0 %3874 }
 0x2b2   : > { %v3304_v51 = vmax.f32 %v2823_v37, 0.0  ;;  %2695 = vmatmul.bf16.gmra.mxu2 %v8613_v28  ;;  %v11639_v16 = vpop.permute.xlu2 %3854  ;;  %v11641_v48 = vpop.permute.xlu1 %3879  ;;  %13706 = vst [vmem:[#allocation37_spill] sm:$0xff] %v11643_v39  ;;  %v3307_v29 = vmax.f32 %v3164_v47, 0.0 }
 0x2b3   : > { %13705 = vst [vmem:[#allocation36_spill] sm:$0xff] %v11641_v48  ;;  %5658 = vperm.xlu1 %10100, %v5480_v38  }
 0x2b4   : > { %v3399_v42 = vpack.c.bf16 %v3305_v63, %v3304_v51  ;;  %v2825_v35 = vpop.f32.mrf.mxu3  ;;  %v9840_v51 = vld [vmem:[%s13577_s3 + $0x1a4] sm:$0xf] }
 0x2b5   : > { %v2656_v61 = vpop.f32.mrf.mxu2  ;;  %v2996_v41 = vpop.f32.mrf.mxu0  ;;  %5588 = vperm.xlu2 %10101, %v5466_v11  }
 0x2b6   : > { %3463 = vst [vmem:[%s10477_s24 + $0x308] sm:$0xff] %v3399_v42  ;;  %v2657_v34 = vadd.f32 %v2656_v61, %v11171_v0  ;;  %v3165_v28 = vpop.f32.mrf.mxu1  ;;  %v9841_v0 = vld [vmem:[%s13577_s3 + $0x1a4] sm:$0xf0]  ;;  %v2997_v63 = vadd.f32 %v2996_v41, %v11161_v19  ;;  %v8622_v42 = vld [vmem:[%s13577_s3 + $0x1a8] sm:$0xf0] }
 0x2b7   : > { %v8621_v61 = vor.u32 %v9841_v0, %v8620_v30  ;;  %5653 = vperm.xlu0 %10099, %v5479_v27   ;;  %v8625_v41 = vor.u32 %v9840_v51, %v8622_v42  ;;  %v5469_v0 = vld [vmem:[%s10279_s16 + $0x688] sm:$0xff]  ;;  %v5483_v27 = vld [vmem:[%s10279_s16 + $0x6f8] sm:$0xff] }
 0x2b8   : > { %v2826_v37 = vadd.f32 %v2825_v35, %v2657_v34  ;;  %v3166_v48 = vadd.f32 %v3165_v28, %v2997_v63  ;;  %v5482_v28 = vld [vmem:[%s10279_s16 + $0x6f0] sm:$0xff] }
 0x2b9   : > { %v11667_v38 = vpop.permute.xlu0 %3889 }
 0x2ba   : > { %v3306_v59 = vmax.f32 %v2826_v37, 0.0  ;;  %v11663_v32 = vpop.permute.xlu2 %3869  ;;  %v11665_v12 = vpop.permute.xlu1 %3894  ;;  %13708 = vst [vmem:[#allocation39_spill] sm:$0xff] %v11667_v38  ;;  %v9144_v38 = vld [vmem:[%s10290_s29 + $0x98] sm:$0xf0] }
 0x2bb   : > { %13707 = vst [vmem:[#allocation38_spill] sm:$0xff] %v11665_v12  ;;  %5673 = vperm.xlu1 %10100, %v5483_v27   ;;  %v5472_v27 = vld [vmem:[%s10279_s16 + $0x6a0] sm:$0xff]  ;;  %v9934_v12 = vld [vmem:[%s10290_s29 + $0x94] sm:$0xf] }
 0x2bc   : > { %v3400_v47 = vpack.c.bf16 %v3307_v29, %v3306_v59  ;;  %v2827_v35 = vpop.f32.mrf.mxu3 }
 0x2bd   : > { %v2658_v34 = vpop.f32.mrf.mxu2  ;;  %v2999_v37 = vpop.f32.mrf.mxu0  ;;  %5603 = vperm.xlu2 %10101, %v5469_v0  }
 0x2be   : > { %3464 = vst [vmem:[%s10477_s24 + $0x310] sm:$0xff] %v3400_v47  ;;  %v2659_v39 = vadd.f32 %v2658_v34, %v11161_v19  ;;  %v3168_v11 = vpop.f32.mrf.mxu1  ;;  %v3000_v30 = vadd.f32 %v2999_v37, %v11159_v52  ;;  %v3309_v19 = vmax.f32 %v3166_v48, 0.0  ;;  %v9142_v34 = vld [vmem:[%s10290_s29 + $0x90] sm:$0xf]  ;;  %v9935_v48 = vld [vmem:[%s10290_s29 + $0x94] sm:$0xf0] }
 0x2bf   : > { %5668 = vperm.xlu0 %10099, %v5482_v28   ;;  %v5486_v28 = vld [vmem:[%s10279_s16 + $0x710] sm:$0xff] }
 0x2c0   : > { %v2828_v29 = vadd.f32 %v2827_v35, %v2659_v39  ;;  %3038 = vmatmul.bf16.gmra.mxu0 %v8621_v61  ;;  %v3169_v39 = vadd.f32 %v3168_v11, %v3000_v30 }
 0x2c1   : > { %8764 = vmatmul.msk.bf16.gmra.mxu3 %vm931_vm0, %v8625_v41  ;;  %8796 = vmatmul.msk.bf16.gmra.mxu1 %vm931_vm0, %v8625_v41  ;;  %v11683_v0 = vpop.permute.xlu0 %3904 }
 0x2c2   : > { %v3308_v59 = vmax.f32 %v2828_v29, 0.0  ;;  %2700 = vmatmul.bf16.gmra.mxu2 %v8621_v61  ;;  %v11679_v37 = vpop.permute.xlu2 %3884  ;;  %v11681_v61 = vpop.permute.xlu1 %3909  ;;  %v9143_v29 = vor.u32 %v9935_v48, %v9142_v34  ;;  %13711 = vst [vmem:[#allocation42_spill] sm:$0xff] %v11683_v0  ;;  %v3311_v11 = vmax.f32 %v3169_v39, 0.0  ;;  %v9842_v39 = vld [vmem:[%s13577_s3 + $0x1b4] sm:$0xf] }
 0x2c3   : > { %13709 = vst [vmem:[#allocation40_spill] sm:$0xff] %v11679_v37  ;;  %5688 = vperm.xlu1 %10100, %v5486_v28   ;;  %v9147_v28 = vor.u32 %v9934_v12, %v9144_v38 }
 0x2c4   : > { %v3401_v63 = vpack.c.bf16 %v3309_v19, %v3308_v59  ;;  %v2830_v51 = vpop.f32.mrf.mxu3  ;;  %13710 = vst [vmem:[#allocation41_spill] sm:$0xff] %v11681_v61  ;;  %v8628_v19 = vld [vmem:[%s13577_s3 + $0x1b0] sm:$0xf]  ;;  %4443 = vmatpush.bf16.msra.mxu3 %v9143_v29  ;;  %v5485_v59 = vld [vmem:[%s10279_s16 + $0x708] sm:$0xff] }
 0x2c5   : > { %v2661_v42 = vpop.f32.mrf.mxu2  ;;  %v3001_v47 = vpop.f32.mrf.mxu0  ;;  %5618 = vperm.xlu2 %10101, %v5472_v27   ;;  %4781 = vmatpush.bf16.msra.mxu0 %v9147_v28 }
 0x2c6   : > { %3465 = vst [vmem:[%s10477_s24 + $0x318] sm:$0xff] %v3401_v63  ;;  %v2662_v35 = vadd.f32 %v2661_v42, %v11159_v52  ;;  %v3170_v41 = vpop.f32.mrf.mxu1  ;;  %v9843_v52 = vld [vmem:[%s13577_s3 + $0x1b4] sm:$0xf0]  ;;  %v3002_v42 = vadd.f32 %v3001_v47, %v11195_v50 }
 0x2c7   : > { %v8629_v48 = vor.u32 %v9843_v52, %v8628_v19  ;;  %5683 = vperm.xlu0 %10099, %v5485_v59  }
 0x2c8   : > { %v2831_v30 = vadd.f32 %v2830_v51, %v2662_v35  ;;  %v8630_v51 = vld [vmem:[%s13577_s3 + $0x1b8] sm:$0xf0]  ;;  %v3171_v61 = vadd.f32 %v3170_v41, %v3002_v42 }
 0x2c9   : > { %v8633_v47 = vor.u32 %v9842_v39, %v8630_v51  ;;  %v11709_v19 = vpop.permute.xlu0 %3919  ;;  %v5489_v39 = vld [vmem:[%s10279_s16 + $0x728] sm:$0xff] }
 0x2ca   : > { %v3310_v63 = vmax.f32 %v2831_v30, 0.0  ;;  %v11705_v37 = vpop.permute.xlu2 %3899  ;;  %v11707_v27 = vpop.permute.xlu1 %3924  ;;  %v3313_v41 = vmax.f32 %v3171_v61, 0.0 }
 0x2cb   : > { %13712 = vst [vmem:[#allocation43_spill] sm:$0xff] %v11707_v27  ;;  %5703 = vperm.xlu1 %10100, %v5489_v39  }
 0x2cc   : > { %v3402_v35 = vpack.c.bf16 %v3311_v11, %v3310_v63  ;;  %v2832_v34 = vpop.f32.mrf.mxu3  ;;  %v5475_v63 = vld [vmem:[%s10279_s16 + $0x6b8] sm:$0xff] }
 0x2cd   : > { %v2663_v29 = vpop.f32.mrf.mxu2  ;;  %v3004_v30 = vpop.f32.mrf.mxu0  ;;  %5633 = vperm.xlu2 %10101, %v5475_v63   ;;  %v5492_v63 = vld [vmem:[%s10279_s16 + $0x740] sm:$0xff] }
 0x2ce   : > { %3466 = vst [vmem:[%s10477_s24 + $0x320] sm:$0xff] %v3402_v35  ;;  %v2664_v0 = vadd.f32 %v2663_v29, %v11195_v50  ;;  %v3173_v11 = vpop.f32.mrf.mxu1  ;;  %v3005_v59 = vadd.f32 %v3004_v30, %v11175_v33  ;;  %v5488_v50 = vld [vmem:[%s10279_s16 + $0x720] sm:$0xff] }
 0x2cf   : > { %5698 = vperm.xlu0 %10099, %v5488_v50  }
 0x2d0   : > { %v2833_v52 = vadd.f32 %v2832_v34, %v2664_v0  ;;  %3043 = vmatmul.bf16.gmra.mxu0 %v8629_v48  ;;  %v3174_v38 = vadd.f32 %v3173_v11, %v3005_v59  ;;  %v8636_v11 = vld [vmem:[%s13577_s3 + $0x1c0] sm:$0xf]  ;;  %v5491_v59 = vld [vmem:[%s10279_s16 + $0x738] sm:$0xff] }
 0x2d1   : > { %8765 = vmatmul.msk.bf16.gmra.mxu3 %vm931_vm0, %v8633_v47  ;;  %8797 = vmatmul.msk.bf16.gmra.mxu1 %vm931_vm0, %v8633_v47  ;;  %v11723_v30 = vpop.permute.xlu0 %3934 }
 0x2d2   : > { %v3312_v42 = vmax.f32 %v2833_v52, 0.0  ;;  %2705 = vmatmul.bf16.gmra.mxu2 %v8629_v48  ;;  %v11719_v29 = vpop.permute.xlu2 %3914  ;;  %v11721_v61 = vpop.permute.xlu1 %3939  ;;  %13714 = vst [vmem:[#allocation45_spill] sm:$0xff] %v11723_v30  ;;  %v3315_v47 = vmax.f32 %v3174_v38, 0.0  ;;  %v5478_v52 = vld [vmem:[%s10279_s16 + $0x6d0] sm:$0xff] }
 0x2d3   : > { %13713 = vst [vmem:[#allocation44_spill] sm:$0xff] %v11721_v61  ;;  %5718 = vperm.xlu1 %10100, %v5492_v63  }
 0x2d4   : > { %v3403_v12 = vpack.c.bf16 %v3313_v41, %v3312_v42  ;;  %v2835_v0 = vpop.f32.mrf.mxu3  ;;  %v9844_v41 = vld [vmem:[%s13577_s3 + $0x1c4] sm:$0xf]  ;;  %v8638_v42 = vld [vmem:[%s13577_s3 + $0x1c8] sm:$0xf0] }
 0x2d5   : > { %v2666_v51 = vpop.f32.mrf.mxu2  ;;  %v3006_v35 = vpop.f32.mrf.mxu0  ;;  %5648 = vperm.xlu2 %10101, %v5478_v52  }
 0x2d6   : > { %3467 = vst [vmem:[%s10477_s24 + $0x328] sm:$0xff] %v3403_v12  ;;  %v2667_v34 = vadd.f32 %v2666_v51, %v11175_v33  ;;  %v3175_v48 = vpop.f32.mrf.mxu1  ;;  %v9845_v33 = vld [vmem:[%s13577_s3 + $0x1c4] sm:$0xf0]  ;;  %v3007_v50 = vadd.f32 %v3006_v35, %v11173_v62  ;;  %v8641_v35 = vor.u32 %v9844_v41, %v8638_v42 }
 0x2d7   : > { %5713 = vperm.xlu0 %10099, %v5491_v59   ;;  %v5495_v59 = vld [vmem:[%s10279_s16 + $0x758] sm:$0xff] }
 0x2d8   : > { %v2836_v28 = vadd.f32 %v2835_v0, %v2667_v34  ;;  %v8637_v0 = vor.u32 %v9845_v33, %v8636_v11  ;;  %v5481_v33 = vld [vmem:[%s10279_s16 + $0x6e8] sm:$0xff] }
 0x2d9   : > { %v11747_v63 = vpop.permute.xlu0 %3949 }
 0x2da   : > { %v3314_v39 = vmax.f32 %v2836_v28, 0.0  ;;  %v3176_v28 = vadd.f32 %v3175_v48, %v3007_v50  ;;  %v11743_v30 = vpop.permute.xlu2 %3929  ;;  %v11745_v27 = vpop.permute.xlu1 %3954  ;;  %13716 = vst [vmem:[#allocation47_spill] sm:$0xff] %v11747_v63 }
 0x2db   : > { %13715 = vst [vmem:[#allocation46_spill] sm:$0xff] %v11745_v27  ;;  %5733 = vperm.xlu1 %10100, %v5495_v59   ;;  %v5498_v59 = vld [vmem:[%s10279_s16 + $0x770] sm:$0xff] }
 0x2dc   : > { %v3404_v12 = vpack.c.bf16 %v3315_v47, %v3314_v39  ;;  %v2837_v38 = vpop.f32.mrf.mxu3  ;;  %v5494_v39 = vld [vmem:[%s10279_s16 + $0x750] sm:$0xff]  ;;  %v3317_v48 = vmax.f32 %v3176_v28, 0.0 }
 0x2dd   : > { %v2668_v51 = vpop.f32.mrf.mxu2  ;;  %v3009_v34 = vpop.f32.mrf.mxu0  ;;  %5663 = vperm.xlu2 %10101, %v5481_v33   ;;  %v5484_v33 = vld [vmem:[%s10279_s16 + $0x700] sm:$0xff] }
 0x2de   : > { %3468 = vst [vmem:[%s10477_s24 + $0x330] sm:$0xff] %v3404_v12  ;;  %v2669_v61 = vadd.f32 %v2668_v51, %v11173_v62  ;;  %v3178_v52 = vpop.f32.mrf.mxu1  ;;  %v3010_v11 = vadd.f32 %v3009_v34, %v11211_v18 }
 0x2df   : > { %5728 = vperm.xlu0 %10099, %v5494_v39  }
 0x2e0   : > { %v2838_v47 = vadd.f32 %v2837_v38, %v2669_v61  ;;  %3048 = vmatmul.bf16.gmra.mxu0 %v8637_v0  ;;  %v3179_v61 = vadd.f32 %v3178_v52, %v3010_v11  ;;  %v8644_v52 = vld [vmem:[%s13577_s3 + $0x1d0] sm:$0xf]  ;;  %v5497_v11 = vld [vmem:[%s10279_s16 + $0x768] sm:$0xff] }
 0x2e1   : > { %8766 = vmatmul.msk.bf16.gmra.mxu3 %vm931_vm0, %v8641_v35  ;;  %8798 = vmatmul.msk.bf16.gmra.mxu1 %vm931_vm0, %v8641_v35  ;;  %v11761_v35 = vpop.permute.xlu0 %5518 }
 0x2e2   : > { %v3316_v50 = vmax.f32 %v2838_v47, 0.0  ;;  %2710 = vmatmul.bf16.gmra.mxu2 %v8637_v0  ;;  %v11757_v51 = vpop.permute.xlu2 %3944  ;;  %v11759_v34 = vpop.permute.xlu1 %5523  ;;  %13718 = vst [vmem:[#allocation49_spill] sm:$0xff] %v11761_v35  ;;  %v3319_v28 = vmax.f32 %v3179_v61, 0.0 }
 0x2e3   : > { %13717 = vst [vmem:[#allocation48_spill] sm:$0xff] %v11759_v34  ;;  %5748 = vperm.xlu1 %10100, %v5498_v59  }
 0x2e4   : > { %v3405_v62 = vpack.c.bf16 %v3317_v48, %v3316_v50  ;;  %v2840_v41 = vpop.f32.mrf.mxu3  ;;  %v9846_v50 = vld [vmem:[%s13577_s3 + $0x1d4] sm:$0xf] }
 0x2e5   : > { %v2671_v42 = vpop.f32.mrf.mxu2  ;;  %v3011_v12 = vpop.f32.mrf.mxu0  ;;  %5678 = vperm.xlu2 %10101, %v5484_v33  }
 0x2e6   : > { %3469 = vst [vmem:[%s10477_s24 + $0x338] sm:$0xff] %v3405_v62  ;;  %v2672_v38 = vadd.f32 %v2671_v42, %v11211_v18  ;;  %v3180_v0 = vpop.f32.mrf.mxu1  ;;  %v9847_v18 = vld [vmem:[%s13577_s3 + $0x1d4] sm:$0xf0]  ;;  %v3012_v48 = vadd.f32 %v3011_v12, %v11199_v23  ;;  %v8646_v62 = vld [vmem:[%s13577_s3 + $0x1d8] sm:$0xf0] }
 0x2e7   : > { %v8645_v42 = vor.u32 %v9847_v18, %v8644_v52  ;;  %5743 = vperm.xlu0 %10099, %v5497_v11   ;;  %v8649_v12 = vor.u32 %v9846_v50, %v8646_v62  ;;  %v5487_v18 = vld [vmem:[%s10279_s16 + $0x718] sm:$0xff]  ;;  %v5501_v11 = vld [vmem:[%s10279_s16 + $0x788] sm:$0xff] }
 0x2e8   : > { %v2841_v47 = vadd.f32 %v2840_v41, %v2672_v38  ;;  %v3181_v34 = vadd.f32 %v3180_v0, %v3012_v48 }
 0x2e9   : > { %v11785_v59 = vpop.permute.xlu0 %5533 }
 0x2ea   : > { %v3318_v39 = vmax.f32 %v2841_v47, 0.0  ;;  %v11781_v27 = vpop.permute.xlu2 %3959  ;;  %v11783_v63 = vpop.permute.xlu1 %5538  ;;  %13720 = vst [vmem:[#allocation51_spill] sm:$0xff] %v11785_v59  ;;  %v3321_v0 = vmax.f32 %v3181_v34, 0.0 }
 0x2eb   : > { %13719 = vst [vmem:[#allocation50_spill] sm:$0xff] %v11783_v63  ;;  %5763 = vperm.xlu1 %10100, %v5501_v11   ;;  %v5504_v11 = vld [vmem:[%s10279_s16 + $0x7a0] sm:$0xff] }
 0x2ec   : > { %v3406_v61 = vpack.c.bf16 %v3319_v28, %v3318_v39  ;;  %v2842_v41 = vpop.f32.mrf.mxu3  ;;  %v5500_v39 = vld [vmem:[%s10279_s16 + $0x780] sm:$0xff] }
 0x2ed   : > { %v2673_v38 = vpop.f32.mrf.mxu2  ;;  %v3014_v47 = vpop.f32.mrf.mxu0  ;;  %5693 = vperm.xlu2 %10101, %v5487_v18   ;;  %v5490_v18 = vld [vmem:[%s10279_s16 + $0x730] sm:$0xff] }
 0x2ee   : > { %3470 = vst [vmem:[%s10477_s24 + $0x340] sm:$0xff] %v3406_v61  ;;  %v2674_v35 = vadd.f32 %v2673_v38, %v11199_v23  ;;  %v3183_v33 = vpop.f32.mrf.mxu1  ;;  %v3015_v52 = vadd.f32 %v3014_v47, %v11197_v43 }
 0x2ef   : > { %5758 = vperm.xlu0 %10099, %v5500_v39  }
 0x2f0   : > { %v2843_v28 = vadd.f32 %v2842_v41, %v2674_v35  ;;  %3053 = vmatmul.bf16.gmra.mxu0 %v8645_v42  ;;  %v3184_v35 = vadd.f32 %v3183_v33, %v3015_v52  ;;  %v8652_v33 = vld [vmem:[%s13577_s3 + $0x1e0] sm:$0xf]  ;;  %v5503_v52 = vld [vmem:[%s10279_s16 + $0x798] sm:$0xff] }
 0x2f1   : > { %8767 = vmatmul.msk.bf16.gmra.mxu3 %vm931_vm0, %v8649_v12  ;;  %8799 = vmatmul.msk.bf16.gmra.mxu1 %vm931_vm0, %v8649_v12  ;;  %v11799_v47 = vpop.permute.xlu0 %5548 }
 0x2f2   : > { %v3320_v48 = vmax.f32 %v2843_v28, 0.0  ;;  %2715 = vmatmul.bf16.gmra.mxu2 %v8645_v42  ;;  %v11795_v38 = vpop.permute.xlu2 %5528  ;;  %v11797_v34 = vpop.permute.xlu1 %5553  ;;  %13722 = vst [vmem:[#allocation53_spill] sm:$0xff] %v11799_v47  ;;  %v3323_v12 = vmax.f32 %v3184_v35, 0.0 }
 0x2f3   : > { %13721 = vst [vmem:[#allocation52_spill] sm:$0xff] %v11797_v34  ;;  %5778 = vperm.xlu1 %10100, %v5504_v11  }
 0x2f4   : > { %v3407_v23 = vpack.c.bf16 %v3321_v0, %v3320_v48  ;;  %v2845_v50 = vpop.f32.mrf.mxu3  ;;  %v9848_v48 = vld [vmem:[%s13577_s3 + $0x1e4] sm:$0xf] }
 0x2f5   : > { %v2676_v62 = vpop.f32.mrf.mxu2  ;;  %v3016_v61 = vpop.f32.mrf.mxu0  ;;  %5708 = vperm.xlu2 %10101, %v5490_v18  }
 0x2f6   : > { %3471 = vst [vmem:[%s10477_s24 + $0x348] sm:$0xff] %v3407_v23  ;;  %v2677_v41 = vadd.f32 %v2676_v62, %v11197_v43  ;;  %v3185_v42 = vpop.f32.mrf.mxu1  ;;  %v9849_v43 = vld [vmem:[%s13577_s3 + $0x1e4] sm:$0xf0]  ;;  %v3017_v0 = vadd.f32 %v3016_v61, %v11237_v49  ;;  %v8654_v23 = vld [vmem:[%s13577_s3 + $0x1e8] sm:$0xf0] }
 0x2f7   : > { %v8653_v62 = vor.u32 %v9849_v43, %v8652_v33  ;;  %5773 = vperm.xlu0 %10099, %v5503_v52   ;;  %v8657_v61 = vor.u32 %v9848_v48, %v8654_v23  ;;  %v5493_v43 = vld [vmem:[%s10279_s16 + $0x748] sm:$0xff]  ;;  %v5507_v52 = vld [vmem:[%s10279_s16 + $0x7b8] sm:$0xff] }
 0x2f8   : > { %v2846_v28 = vadd.f32 %v2845_v50, %v2677_v41  ;;  %v3186_v34 = vadd.f32 %v3185_v42, %v3017_v0  ;;  %v5506_v42 = vld [vmem:[%s10279_s16 + $0x7b0] sm:$0xff] }
 0x2f9   : > { %v11823_v11 = vpop.permute.xlu0 %5563 }
 0x2fa   : > { %v3322_v39 = vmax.f32 %v2846_v28, 0.0  ;;  %v11819_v63 = vpop.permute.xlu2 %5543  ;;  %v11821_v59 = vpop.permute.xlu1 %5568  ;;  %13724 = vst [vmem:[#allocation55_spill] sm:$0xff] %v11823_v11  ;;  %v10030_v11 = vld [vmem:[%s10290_s29 + $0x194] sm:$0xf] }
 0x2fb   : > { %13723 = vst [vmem:[#allocation54_spill] sm:$0xff] %v11821_v59  ;;  %5793 = vperm.xlu1 %10100, %v5507_v52  }
 0x2fc   : > { %v3408_v35 = vpack.c.bf16 %v3323_v12, %v3322_v39  ;;  %v2847_v50 = vpop.f32.mrf.mxu3 }
 0x2fd   : > { %v2678_v41 = vpop.f32.mrf.mxu2  ;;  %v3019_v28 = vpop.f32.mrf.mxu0  ;;  %5723 = vperm.xlu2 %10101, %v5493_v43  }
 0x2fe   : > { %3472 = vst [vmem:[%s10477_s24 + $0x350] sm:$0xff] %v3408_v35  ;;  %v2679_v47 = vadd.f32 %v2678_v41, %v11237_v49  ;;  %v3188_v18 = vpop.f32.mrf.mxu1  ;;  %v3020_v33 = vadd.f32 %v3019_v28, %v11215_v22  ;;  %v3325_v49 = vmax.f32 %v3186_v34, 0.0  ;;  %v9672_v34 = vld [vmem:[%s10290_s29 + $0x190] sm:$0xf]  ;;  %v10031_v41 = vld [vmem:[%s10290_s29 + $0x194] sm:$0xf0] }
 0x2ff   : > { %5788 = vperm.xlu0 %10099, %v5506_v42  }
 0x300   : > { %v2848_v12 = vadd.f32 %v2847_v50, %v2679_v47  ;;  %3058 = vmatmul.bf16.gmra.mxu0 %v8653_v62  ;;  %v3189_v0 = vadd.f32 %v3188_v18, %v3020_v33  ;;  %v9680_v18 = vld [vmem:[%s10290_s29 + $0x1a0] sm:$0xf]  ;;  %v10033_v33 = vld [vmem:[%s10290_s29 + $0x1a4] sm:$0xf0] }
 0x301   : > { %8768 = vmatmul.msk.bf16.gmra.mxu3 %vm931_vm0, %v8657_v61  ;;  %8800 = vmatmul.msk.bf16.gmra.mxu1 %vm931_vm0, %v8657_v61  ;;  %v11839_v43 = vpop.permute.xlu0 %5578 }
 0x302   : > { %v3324_v39 = vmax.f32 %v2848_v12, 0.0  ;;  %2720 = vmatmul.bf16.gmra.mxu2 %v8653_v62  ;;  %v11835_v62 = vpop.permute.xlu2 %5558  ;;  %v11837_v28 = vpop.permute.xlu1 %5583  ;;  %v9673_v12 = vor.u32 %v10031_v41, %v9672_v34  ;;  %13727 = vst [vmem:[#allocation58_spill] sm:$0xff] %v11839_v43  ;;  %v3327_v52 = vmax.f32 %v3189_v0, 0.0  ;;  %v5509_v34 = vld [vmem:[%s10279_s16 + $0x7c8] sm:$0xff]  ;;  %v9850_v0 = vld [vmem:[%s13577_s3 + $0x1f4] sm:$0xf] }
 0x303   : > { %13725 = vst [vmem:[#allocation56_spill] sm:$0xff] %v11835_v62  ;;  %v9674_v62 = vld [vmem:[%s10290_s29 + $0x198] sm:$0xf0] }
 0x304   : > { %v3409_v47 = vpack.c.bf16 %v3325_v49, %v3324_v39  ;;  %v2850_v48 = vpop.f32.mrf.mxu3  ;;  %13726 = vst [vmem:[#allocation57_spill] sm:$0xff] %v11837_v28  ;;  %v9681_v49 = vor.u32 %v10033_v33, %v9680_v18  ;;  %v5496_v39 = vld [vmem:[%s10279_s16 + $0x760] sm:$0xff]  ;;  %6310 = vmatpush.bf16.msrb.mxu3 %v9673_v12 }
 0x305   : > { %v2681_v23 = vpop.f32.mrf.mxu2  ;;  %v3021_v35 = vpop.f32.mrf.mxu0  ;;  %5738 = vperm.xlu2 %10101, %v5496_v39  }
 0x306   : > { %3473 = vst [vmem:[%s10477_s24 + $0x358] sm:$0xff] %v3409_v47  ;;  %v2682_v50 = vadd.f32 %v2681_v23, %v11215_v22  ;;  %v3190_v61 = vpop.f32.mrf.mxu1  ;;  %v5510_v47 = vld [vmem:[%s10279_s16 + $0x7d0] sm:$0xff]  ;;  %v9851_v23 = vld [vmem:[%s13577_s3 + $0x1f4] sm:$0xf0]  ;;  %v3022_v28 = vadd.f32 %v3021_v35, %v11213_v2  ;;  %6486 = vmatpush.bf16.msrb.mxu2 %v9681_v49 }
 0x307   : > { %v8660_v22 = vld [vmem:[%s13577_s3 + $0x1f0] sm:$0xf]  ;;  %5808 = vperm.xlu1 %10100, %v5510_v47   ;;  %5803 = vperm.xlu0 %10099, %v5509_v34   ;;  %v9677_v47 = vor.u32 %v10030_v11, %v9674_v62 }
 0x308   : > { %v2851_v42 = vadd.f32 %v2850_v48, %v2682_v50  ;;  %v8662_v48 = vld [vmem:[%s13577_s3 + $0x1f8] sm:$0xf0]  ;;  %v8661_v18 = vor.u32 %v9851_v23, %v8660_v22  ;;  %v3191_v43 = vadd.f32 %v3190_v61, %v3022_v28  ;;  %v10032_v22 = vld [vmem:[%s10290_s29 + $0x1a4] sm:$0xf]  ;;  %v9682_v23 = vld [vmem:[%s10290_s29 + $0x1a8] sm:$0xf0] }
 0x309   : > { %v11869_v34 = vpop.permute.xlu0 %5593  ;;  %v9685_v28 = vor.u32 %v10032_v22, %v9682_v23  ;;  %6648 = vmatpush.bf16.msrb.mxu0 %v9677_v47  ;;  %v5513_v61 = vld [vmem:[%s10279_s16 + $0x7e8] sm:$0xff] }
 0x30a   : > { %v3326_v41 = vmax.f32 %v2851_v42, 0.0  ;;  %v8665_v42 = vor.u32 %v9850_v0, %v8662_v48  ;;  %v11863_v49 = vpop.permute.xlu2 %5573  ;;  %13730 = vst [vmem:[#allocation61_spill] sm:$0xff] %v11869_v34  ;;  %v5512_v48 = vld [vmem:[%s10279_s16 + $0x7e0] sm:$0xff] }
 0x30b   : > { %13728 = vst [vmem:[#allocation59_spill] sm:$0xff] %v11863_v49  ;;  %6824 = vmatpush.bf16.msrb.mxu1 %v9685_v28  ;;  %v5502_v28 = vld [vmem:[%s10279_s16 + $0x790] sm:$0xff] }
 0x30c   : > { %v3410_v50 = vpack.c.bf16 %v3327_v52, %v3326_v41  ;;  %v2852_v12 = vpop.f32.mrf.mxu3  ;;  %v11865_v52 = vpop.permute.xlu1 %5598 }
 0x30d   : > { %v2683_v35 = vpop.f32.mrf.mxu2  ;;  %v3024_v33 = vpop.f32.mrf.mxu0  ;;  %13729 = vst [vmem:[#allocation60_spill] sm:$0xff] %v11865_v52 }
 0x30e   : > { %3474 = vst [vmem:[%s10477_s24 + $0x360] sm:$0xff] %v3410_v50  ;;  %v2684_v59 = vadd.f32 %v2683_v35, %v11213_v2  ;;  %v3193_v39 = vpop.f32.mrf.mxu1  ;;  %v3025_v0 = vadd.f32 %v3024_v33, %v11251_v9  ;;  %v5499_v2 = vld [vmem:[%s10279_s16 + $0x778] sm:$0xff]  ;;  %v3329_v50 = vmax.f32 %v3191_v43, 0.0 }
 0x30f   : > { %5753 = vperm.xlu2 %10101, %v5499_v2   ;;  %5823 = vperm.xlu1 %10100, %v5513_v61   ;;  %v8886_v61 = vld [vmem:[%s13577_s3 + $0x200] sm:$0xf] }
 0x310   : > { %v2853_v41 = vadd.f32 %v2852_v12, %v2684_v59  ;;  %3063 = vmatmul.bf16.gmra.mxu0 %v8661_v18  ;;  %v3194_v11 = vadd.f32 %v3193_v39, %v3025_v0  ;;  %5818 = vperm.xlu0 %10099, %v5512_v48   ;;  %v7242_v12 = vld [vmem:[%s10279_s16 + $0x800] sm:$0xff]  ;;  %v5515_v48 = vld [vmem:[%s10279_s16 + $0x7f8] sm:$0xff] }
 0x311   : > { %8769 = vmatmul.msk.bf16.gmra.mxu3 %vm931_vm0, %v8665_v42  ;;  %8801 = vmatmul.msk.bf16.gmra.mxu1 %vm931_vm0, %v8665_v42  ;;  %v7306_v22 = vmax.f32 %v7242_v12, 0.0 }
 0x312   : > { %v3328_v35 = vmax.f32 %v2853_v41, 0.0  ;;  %2725 = vmatmul.bf16.gmra.mxu2 %v8661_v18  ;;  %v11880_v23 = vpop.permute.xlu2 %5588  ;;  %v11884_v41 = vpop.permute.xlu0 %5608  ;;  %v3331_v39 = vmax.f32 %v3194_v11, 0.0  ;;  %v8888_v11 = vld [vmem:[%s13577_s3 + $0x208] sm:$0xf0] }
 0x313   : > { %13731 = vst [vmem:[#allocation62_spill] sm:$0xff] %v11880_v23  ;;  %v7370_v2 = vpack.c.bf16 %v7306_v22, %v7306_v22  ;;  %v7245_v22 = vld [vmem:[%s10279_s16 + $0x818] sm:$0xff] }
 0x314   : > { %v3411_v59 = vpack.c.bf16 %v3329_v50, %v3328_v35  ;;  %v2855_v62 = vpop.f32.mrf.mxu3  ;;  %v11882_v18 = vpop.permute.xlu1 %5613  ;;  %13733 = vst [vmem:[#allocation64_spill] sm:$0xff] %v11884_v41 }
 0x315   : > { %v2686_v33 = vpop.f32.mrf.mxu2  ;;  %v3026_v47 = vpop.f32.mrf.mxu0  ;;  %13732 = vst [vmem:[#allocation63_spill] sm:$0xff] %v11882_v18 }
 0x316   : > { %3475 = vst [vmem:[%s10477_s24 + $0x368] sm:$0xff] %v3411_v59  ;;  %v2687_v43 = vadd.f32 %v2686_v33, %v11251_v9  ;;  %v3195_v42 = vpop.f32.mrf.mxu1  ;;  %v9871_v9 = vld [vmem:[%s13577_s3 + $0x204] sm:$0xf0]  ;;  %v3027_v35 = vadd.f32 %v3026_v47, %v11241_v13  ;;  %v9870_v59 = vld [vmem:[%s13577_s3 + $0x204] sm:$0xf]  ;;  %v7309_v47 = vmax.f32 %v7245_v22, 0.0 }
 0x317   : > { %5768 = vperm.xlu2 %10101, %v5502_v28   ;;  %v8887_v33 = vor.u32 %v9871_v9, %v8886_v61  ;;  %7436 = vperm.xlu1 %10100, %v7370_v2   ;;  %v8891_v23 = vor.u32 %v9870_v59, %v8888_v11  ;;  %v7247_v11 = vld [vmem:[%s10279_s16 + $0x828] sm:$0xff] }
 0x318   : > { %v2856_v0 = vadd.f32 %v2855_v62, %v2687_v43  ;;  %5833 = vperm.xlu0 %10099, %v5515_v48   ;;  %v7244_v43 = vld [vmem:[%s10279_s16 + $0x810] sm:$0xff]  ;;  %v3196_v52 = vadd.f32 %v3195_v42, %v3027_v35  ;;  %v5505_v48 = vld [vmem:[%s10279_s16 + $0x7a8] sm:$0xff] }
 0x319   : > { %v7308_v41 = vmax.f32 %v7244_v43, 0.0 }
 0x31a   : > { %v3330_v50 = vmax.f32 %v2856_v0, 0.0  ;;  %v11905_v49 = vpop.permute.xlu2 %5603  ;;  %v11909_v61 = vpop.permute.xlu0 %5623  ;;  %v3333_v42 = vmax.f32 %v3196_v52, 0.0 }
 0x31b   : > { %13735 = vst [vmem:[#allocation66_spill] sm:$0xff] %v11909_v61 }
 0x31c   : > { %v3412_v62 = vpack.c.bf16 %v3331_v39, %v3330_v50  ;;  %v2857_v12 = vpop.f32.mrf.mxu3  ;;  %v11907_v28 = vpop.permute.xlu1 %5628  ;;  %v7373_v50 = vpack.c.bf16 %v7309_v47, %v7309_v47 }
 0x31d   : > { %v2688_v0 = vpop.f32.mrf.mxu2  ;;  %v3029_v18 = vpop.f32.mrf.mxu0  ;;  %13734 = vst [vmem:[#allocation65_spill] sm:$0xff] %v11907_v28 }
 0x31e   : > { %3476 = vst [vmem:[%s10477_s24 + $0x370] sm:$0xff] %v3412_v62  ;;  %v2689_v34 = vadd.f32 %v2688_v0, %v11241_v13  ;;  %v3198_v39 = vpop.f32.mrf.mxu1  ;;  %v3030_v9 = vadd.f32 %v3029_v18, %v11239_v45  ;;  %v7372_v62 = vpack.c.bf16 %v7308_v41, %v7308_v41  ;;  %v7248_v18 = vld [vmem:[%s10279_s16 + $0x830] sm:$0xff] }
 0x31f   : > { %5783 = vperm.xlu2 %10101, %v5505_v48   ;;  %7463 = vperm.xlu1 %10100, %v7373_v50   ;;  %v7312_v41 = vmax.f32 %v7248_v18, 0.0 }
 0x320   : > { %v2858_v2 = vadd.f32 %v2857_v12, %v2689_v34  ;;  %4782 = vmatmul.bf16.vlgmr.msra.gmra.mxu0 %v8887_v33  ;;  %v3199_v59 = vadd.f32 %v3198_v39, %v3030_v9  ;;  %7454 = vperm.xlu0 %10099, %v7372_v62   ;;  %v5508_v9 = vld [vmem:[%s10279_s16 + $0x7c0] sm:$0xff]  ;;  %v8894_v62 = vld [vmem:[%s13577_s3 + $0x210] sm:$0xf] }
 0x321   : > { %4444 = vmatmul.bf16.vlgmr.msra.gmra.mxu3 %v8887_v33  ;;  %9244 = vmatmul.msk.bf16.vlgmr.msra.gmra.mxu1 %vm931_vm0, %v8891_v23  ;;  %v7311_v33 = vmax.f32 %v7247_v11, 0.0  ;;  %v7376_v48 = vpack.c.bf16 %v7312_v41, %v7312_v41  ;;  %v7250_v41 = vld [vmem:[%s10279_s16 + $0x840] sm:$0xff] }
 0x322   : > { %v3332_v13 = vmax.f32 %v2858_v2, 0.0  ;;  %9212 = vmatmul.msk.bf16.vlgmr.msra.gmra.mxu2 %vm931_vm0, %v8891_v23  ;;  %v11919_v43 = vpop.permute.xlu2 %5618  ;;  %v11923_v47 = vpop.permute.xlu0 %5638  ;;  %v3335_v39 = vmax.f32 %v3199_v59, 0.0  ;;  %v8896_v59 = vld [vmem:[%s13577_s3 + $0x218] sm:$0xf0] }
 0x323   : > { %13737 = vst [vmem:[#allocation68_spill] sm:$0xff] %v11923_v47  ;;  %v7375_v50 = vpack.c.bf16 %v7311_v33, %v7311_v33 }
 0x324   : > { %v3413_v35 = vpack.c.bf16 %v3333_v42, %v3332_v13  ;;  %v2860_v34 = vpop.f32.mrf.mxu3  ;;  %v11921_v0 = vpop.permute.xlu1 %5643 }
 0x325   : > { %v2691_v12 = vpop.f32.mrf.mxu2  ;;  %v3031_v22 = vpop.f32.mrf.mxu0  ;;  %13736 = vst [vmem:[#allocation67_spill] sm:$0xff] %v11921_v0 }
 0x326   : > { %3477 = vst [vmem:[%s10477_s24 + $0x378] sm:$0xff] %v3413_v35  ;;  %v2692_v52 = vadd.f32 %v2691_v12, %v11239_v45  ;;  %v3200_v23 = vpop.f32.mrf.mxu1  ;;  %v9873_v45 = vld [vmem:[%s13577_s3 + $0x214] sm:$0xf0]  ;;  %v3032_v13 = vadd.f32 %v3031_v22, %v11275_v54  ;;  %v9872_v35 = vld [vmem:[%s13577_s3 + $0x214] sm:$0xf]  ;;  %v7251_v12 = vld [vmem:[%s10279_s16 + $0x848] sm:$0xff] }
 0x327   : > { %5798 = vperm.xlu2 %10101, %v5508_v9   ;;  %v8895_v11 = vor.u32 %v9873_v45, %v8894_v62  ;;  %7490 = vperm.xlu1 %10100, %v7376_v48   ;;  %v7315_v22 = vmax.f32 %v7251_v12, 0.0  ;;  %v8899_v28 = vor.u32 %v9872_v35, %v8896_v59  ;;  %v5511_v45 = vld [vmem:[%s10279_s16 + $0x7d8] sm:$0xff]  ;;  %v7254_v59 = vld [vmem:[%s10279_s16 + $0x860] sm:$0xff] }
 0x328   : > { %v2861_v2 = vadd.f32 %v2860_v34, %v2692_v52  ;;  %7481 = vperm.xlu0 %10099, %v7375_v50   ;;  %v3201_v0 = vadd.f32 %v3200_v23, %v3032_v13 }
 0x32a   : > { %v3334_v42 = vmax.f32 %v2861_v2, 0.0  ;;  %v7314_v2 = vmax.f32 %v7250_v41, 0.0  ;;  %v11943_v61 = vpop.permute.xlu2 %5633  ;;  %v11947_v62 = vpop.permute.xlu0 %5653  ;;  %v3337_v23 = vmax.f32 %v3201_v0, 0.0 }
 0x32b   : > { %13738 = vst [vmem:[#allocation69_spill] sm:$0xff] %v11943_v61 }
 0x32c   : > { %v3414_v34 = vpack.c.bf16 %v3335_v39, %v3334_v42  ;;  %v2862_v18 = vpop.f32.mrf.mxu3  ;;  %v11945_v9 = vpop.permute.xlu1 %5658  ;;  %13740 = vst [vmem:[#allocation71_spill] sm:$0xff] %v11947_v62  ;;  %v7379_v42 = vpack.c.bf16 %v7315_v22, %v7315_v22 }
 0x32d   : > { %v2693_v33 = vpop.f32.mrf.mxu2  ;;  %v3034_v52 = vpop.f32.mrf.mxu0  ;;  %13739 = vst [vmem:[#allocation70_spill] sm:$0xff] %v11945_v9 }
 0x32e   : > { %3478 = vst [vmem:[%s10477_s24 + $0x380] sm:$0xff] %v3414_v34  ;;  %v2694_v47 = vadd.f32 %v2693_v33, %v11275_v54  ;;  %v3203_v39 = vpop.f32.mrf.mxu1  ;;  %v3035_v50 = vadd.f32 %v3034_v52, %v11255_v24  ;;  %v7378_v34 = vpack.c.bf16 %v7314_v2, %v7314_v2  ;;  %v7318_v33 = vmax.f32 %v7254_v59, 0.0 }
 0x32f   : > { %5813 = vperm.xlu2 %10101, %v5511_v45   ;;  %7517 = vperm.xlu1 %10100, %v7379_v42  }
 0x330   : > { %v2863_v48 = vadd.f32 %v2862_v18, %v2694_v47  ;;  %4787 = vmatmul.bf16.gmra.mxu0 %v8895_v11  ;;  %v3204_v35 = vadd.f32 %v3203_v39, %v3035_v50  ;;  %7508 = vperm.xlu0 %10099, %v7378_v34   ;;  %v7253_v18 = vld [vmem:[%s10279_s16 + $0x858] sm:$0xff]  ;;  %v5514_v50 = vld [vmem:[%s10279_s16 + $0x7f0] sm:$0xff]  ;;  %v7382_v45 = vpack.c.bf16 %v7318_v33, %v7318_v33  ;;  %v8902_v34 = vld [vmem:[%s13577_s3 + $0x220] sm:$0xf] }
 0x331   : > { %4449 = vmatmul.bf16.gmra.mxu3 %v8895_v11  ;;  %9245 = vmatmul.msk.bf16.gmra.mxu1 %vm931_vm0, %v8899_v28  ;;  %v7317_v11 = vmax.f32 %v7253_v18, 0.0  ;;  %v7257_v33 = vld [vmem:[%s10279_s16 + $0x878] sm:$0xff] }
 0x332   : > { %v3336_v54 = vmax.f32 %v2863_v48, 0.0  ;;  %9213 = vmatmul.msk.bf16.gmra.mxu2 %vm931_vm0, %v8899_v28  ;;  %v11957_v52 = vpop.permute.xlu2 %5648  ;;  %v11961_v2 = vpop.permute.xlu0 %5668  ;;  %v3339_v39 = vmax.f32 %v3204_v35, 0.0  ;;  %v8904_v35 = vld [vmem:[%s13577_s3 + $0x228] sm:$0xf0] }
 0x333   : > { %13741 = vst [vmem:[#allocation72_spill] sm:$0xff] %v11957_v52  ;;  %v7381_v42 = vpack.c.bf16 %v7317_v11, %v7317_v11  ;;  %v7256_v11 = vld [vmem:[%s10279_s16 + $0x870] sm:$0xff] }
 0x334   : > { %v3415_v13 = vpack.c.bf16 %v3337_v23, %v3336_v54  ;;  %v2865_v47 = vpop.f32.mrf.mxu3  ;;  %v11959_v22 = vpop.permute.xlu1 %5673  ;;  %13743 = vst [vmem:[#allocation74_spill] sm:$0xff] %v11961_v2  ;;  %v7320_v2 = vmax.f32 %v7256_v11, 0.0 }
 0x335   : > { %v2696_v12 = vpop.f32.mrf.mxu2  ;;  %v3036_v41 = vpop.f32.mrf.mxu0  ;;  %13742 = vst [vmem:[#allocation73_spill] sm:$0xff] %v11959_v22  ;;  %v7321_v22 = vmax.f32 %v7257_v33, 0.0 }
 0x336   : > { %3479 = vst [vmem:[%s10477_s24 + $0x388] sm:$0xff] %v3415_v13  ;;  %v2697_v0 = vadd.f32 %v2696_v12, %v11255_v24  ;;  %v3205_v28 = vpop.f32.mrf.mxu1  ;;  %v9875_v24 = vld [vmem:[%s13577_s3 + $0x224] sm:$0xf0]  ;;  %v3037_v54 = vadd.f32 %v3036_v41, %v11253_v6  ;;  %v9874_v13 = vld [vmem:[%s13577_s3 + $0x224] sm:$0xf] }
 0x337   : > { %5828 = vperm.xlu2 %10101, %v5514_v50   ;;  %v8903_v18 = vor.u32 %v9875_v24, %v8902_v34  ;;  %7544 = vperm.xlu1 %10100, %v7382_v45   ;;  %v7243_v12 = vld [vmem:[%s10279_s16 + $0x808] sm:$0xff]  ;;  %v8907_v52 = vor.u32 %v9874_v13, %v8904_v35 }
 0x338   : > { %v2866_v48 = vadd.f32 %v2865_v47, %v2697_v0  ;;  %7535 = vperm.xlu0 %10099, %v7381_v42   ;;  %v3206_v9 = vadd.f32 %v3205_v28, %v3037_v54  ;;  %v7384_v28 = vpack.c.bf16 %v7320_v2, %v7320_v2 }
 0x33a   : > { %v3338_v23 = vmax.f32 %v2866_v48, 0.0  ;;  %v7307_v48 = vmax.f32 %v7243_v12, 0.0  ;;  %v11982_v61 = vpop.permute.xlu2 %5663  ;;  %v11986_v45 = vpop.permute.xlu0 %5683 }
 0x33b   : > { %13745 = vst [vmem:[#allocation76_spill] sm:$0xff] %v11986_v45 }
 0x33c   : > { %v3416_v47 = vpack.c.bf16 %v3339_v39, %v3338_v23  ;;  %v2867_v59 = vpop.f32.mrf.mxu3  ;;  %v11984_v39 = vpop.permute.xlu1 %5688  ;;  %v7371_v42 = vpack.c.bf16 %v7307_v48, %v7307_v48  ;;  %v7385_v23 = vpack.c.bf16 %v7321_v22, %v7321_v22  ;;  %v7259_v22 = vld [vmem:[%s10279_s16 + $0x888] sm:$0xff] }
 0x33d   : > { %v2698_v0 = vpop.f32.mrf.mxu2  ;;  %v3039_v41 = vpop.f32.mrf.mxu0  ;;  %13744 = vst [vmem:[#allocation75_spill] sm:$0xff] %v11984_v39  ;;  %v7323_v33 = vmax.f32 %v7259_v22, 0.0 }
 0x33e   : > { %3480 = vst [vmem:[%s10477_s24 + $0x390] sm:$0xff] %v3416_v47  ;;  %v2699_v62 = vadd.f32 %v2698_v0, %v11253_v6  ;;  %v3208_v50 = vpop.f32.mrf.mxu1  ;;  %v3040_v24 = vadd.f32 %v3039_v41, %v11289_v44  ;;  %v3341_v6 = vmax.f32 %v3206_v9, 0.0  ;;  %v7246_v47 = vld [vmem:[%s10279_s16 + $0x820] sm:$0xff]  ;;  %v10029_v0 = vld [vmem:[%s10290_s29 + $0x184] sm:$0xf0] }
 0x33f   : > { %7445 = vperm.xlu2 %10101, %v7371_v42   ;;  %7571 = vperm.xlu1 %10100, %v7385_v23   ;;  %v7310_v9 = vmax.f32 %v7246_v47, 0.0 }
 0x340   : > { %v2868_v34 = vadd.f32 %v2867_v59, %v2699_v62  ;;  %4792 = vmatmul.bf16.gmra.mxu0 %v8903_v18  ;;  %v3209_v62 = vadd.f32 %v3208_v50, %v3040_v24  ;;  %7562 = vperm.xlu0 %10099, %v7384_v28   ;;  %v7260_v59 = vld [vmem:[%s10279_s16 + $0x890] sm:$0xff] }
 0x341   : > { %4454 = vmatmul.bf16.gmra.mxu3 %v8903_v18  ;;  %9246 = vmatmul.msk.bf16.gmra.mxu1 %vm931_vm0, %v8907_v52  ;;  %v7324_v12 = vmax.f32 %v7260_v59, 0.0  ;;  %v7374_v24 = vpack.c.bf16 %v7310_v9, %v7310_v9 }
 0x342   : > { %v3340_v54 = vmax.f32 %v2868_v34, 0.0  ;;  %9214 = vmatmul.msk.bf16.gmra.mxu2 %vm931_vm0, %v8907_v52  ;;  %v9664_v52 = vld [vmem:[%s10290_s29 + $0x180] sm:$0xf]  ;;  %v11998_v41 = vpop.permute.xlu2 %5678  ;;  %v12002_v34 = vpop.permute.xlu0 %5698  ;;  %v3343_v23 = vmax.f32 %v3209_v62, 0.0  ;;  %v9876_v62 = vld [vmem:[%s13577_s3 + $0x234] sm:$0xf] }
 0x343   : > { %13746 = vst [vmem:[#allocation77_spill] sm:$0xff] %v11998_v41  ;;  %v9665_v42 = vor.u32 %v10029_v0, %v9664_v52 }
 0x344   : > { %v3417_v13 = vpack.c.bf16 %v3341_v6, %v3340_v54  ;;  %v2870_v35 = vpop.f32.mrf.mxu3  ;;  %v12000_v48 = vpop.permute.xlu1 %5703  ;;  %13748 = vst [vmem:[#allocation79_spill] sm:$0xff] %v12002_v34  ;;  %v7388_v6 = vpack.c.bf16 %v7324_v12, %v7324_v12  ;;  %v7387_v54 = vpack.c.bf16 %v7323_v33, %v7323_v33  ;;  %v7249_v12 = vld [vmem:[%s10279_s16 + $0x838] sm:$0xff]  ;;  %v7263_v33 = vld [vmem:[%s10279_s16 + $0x8a8] sm:$0xff] }
 0x345   : > { %v2701_v2 = vpop.f32.mrf.mxu2  ;;  %v3041_v18 = vpop.f32.mrf.mxu0  ;;  %13747 = vst [vmem:[#allocation78_spill] sm:$0xff] %v12000_v48  ;;  %6311 = vmatpush.bf16.msrb.mxu3 %v9665_v42  ;;  %v7313_v0 = vmax.f32 %v7249_v12, 0.0  ;;  %v7327_v42 = vmax.f32 %v7263_v33, 0.0  ;;  %v7266_v33 = vld [vmem:[%s10279_s16 + $0x8c0] sm:$0xff] }
 0x346   : > { %3481 = vst [vmem:[%s10477_s24 + $0x398] sm:$0xff] %v3417_v13  ;;  %v2702_v11 = vadd.f32 %v2701_v2, %v11289_v44  ;;  %v3210_v50 = vpop.f32.mrf.mxu1  ;;  %v8910_v44 = vld [vmem:[%s13577_s3 + $0x230] sm:$0xf]  ;;  %v9877_v13 = vld [vmem:[%s13577_s3 + $0x234] sm:$0xf0]  ;;  %v3042_v59 = vadd.f32 %v3041_v18, %v11279_v14  ;;  %v7262_v18 = vld [vmem:[%s10279_s16 + $0x8a0] sm:$0xff] }
 0x347   : > { %7472 = vperm.xlu2 %10101, %v7374_v24   ;;  %v8911_v9 = vor.u32 %v9877_v13, %v8910_v44  ;;  %7598 = vperm.xlu1 %10100, %v7388_v6   ;;  %v7377_v45 = vpack.c.bf16 %v7313_v0, %v7313_v0  ;;  %v7330_v0 = vmax.f32 %v7266_v33, 0.0  ;;  %v7255_v33 = vld [vmem:[%s10279_s16 + $0x868] sm:$0xff] }
 0x348   : > { %v2871_v28 = vadd.f32 %v2870_v35, %v2702_v11  ;;  %v8912_v35 = vld [vmem:[%s13577_s3 + $0x238] sm:$0xf0]  ;;  %7589 = vperm.xlu0 %10099, %v7387_v54   ;;  %v3211_v48 = vadd.f32 %v3210_v50, %v3042_v59  ;;  %v7391_v50 = vpack.c.bf16 %v7327_v42, %v7327_v42 }
 0x349   : > { %v8915_v24 = vor.u32 %v9876_v62, %v8912_v35 }
 0x34a   : > { %v3342_v47 = vmax.f32 %v2871_v28, 0.0  ;;  %v7326_v28 = vmax.f32 %v7262_v18, 0.0  ;;  %v12024_v39 = vpop.permute.xlu2 %5693  ;;  %v12028_v13 = vpop.permute.xlu0 %5713  ;;  %v3345_v59 = vmax.f32 %v3211_v48, 0.0  ;;  %v7265_v18 = vld [vmem:[%s10279_s16 + $0x8b8] sm:$0xff] }
 0x34b   : > { %v7329_v48 = vmax.f32 %v7265_v18, 0.0  ;;  %v7269_v18 = vld [vmem:[%s10279_s16 + $0x8d8] sm:$0xff] }
 0x34c   : > { %v3418_v22 = vpack.c.bf16 %v3343_v23, %v3342_v47  ;;  %v2872_v2 = vpop.f32.mrf.mxu3  ;;  %v10028_v23 = vld [vmem:[%s10290_s29 + $0x184] sm:$0xf]  ;;  %v9666_v47 = vld [vmem:[%s10290_s29 + $0x188] sm:$0xf0]  ;;  %v12026_v44 = vpop.permute.xlu1 %5718 }
 0x34d   : > { %v2703_v11 = vpop.f32.mrf.mxu2  ;;  %v3044_v52 = vpop.f32.mrf.mxu0  ;;  %13749 = vst [vmem:[#allocation80_spill] sm:$0xff] %v12026_v44  ;;  %v9669_v54 = vor.u32 %v10028_v23, %v9666_v47 }
 0x34e   : > { %3482 = vst [vmem:[%s10477_s24 + $0x3a0] sm:$0xff] %v3418_v22  ;;  %v2704_v34 = vadd.f32 %v2703_v11, %v11279_v14  ;;  %v3213_v6 = vpop.f32.mrf.mxu1  ;;  %v3045_v12 = vadd.f32 %v3044_v52, %v11277_v57  ;;  %v7390_v14 = vpack.c.bf16 %v7326_v28, %v7326_v28 }
 0x34f   : > { %6649 = vmatpush.bf16.msrb.mxu0 %v9669_v54  ;;  %7499 = vperm.xlu2 %10101, %v7377_v45   ;;  %v7394_v54 = vpack.c.bf16 %v7330_v0, %v7330_v0  ;;  %v7319_v0 = vmax.f32 %v7255_v33, 0.0  ;;  %v7271_v33 = vld [vmem:[%s10279_s16 + $0x8e8] sm:$0xff] }
 0x350   : > { %v2873_v41 = vadd.f32 %v2872_v2, %v2704_v34  ;;  %4797 = vmatmul.bf16.gmra.mxu0 %v8911_v9  ;;  %v3214_v34 = vadd.f32 %v3213_v6, %v3045_v12  ;;  %7625 = vperm.xlu1 %10100, %v7391_v50   ;;  %v7252_v2 = vld [vmem:[%s10279_s16 + $0x850] sm:$0xff]  ;;  %v7393_v12 = vpack.c.bf16 %v7329_v48, %v7329_v48  ;;  %v8918_v50 = vld [vmem:[%s13577_s3 + $0x240] sm:$0xf]  ;;  %v7333_v48 = vmax.f32 %v7269_v18, 0.0 }
 0x351   : > { %4459 = vmatmul.bf16.gmra.mxu3 %v8911_v9  ;;  %9247 = vmatmul.msk.bf16.gmra.mxu1 %vm931_vm0, %v8915_v24  ;;  %v7316_v9 = vmax.f32 %v7252_v2, 0.0 }
 0x352   : > { %v3344_v62 = vmax.f32 %v2873_v41, 0.0  ;;  %9215 = vmatmul.msk.bf16.gmra.mxu2 %vm931_vm0, %v8915_v24  ;;  %7616 = vperm.xlu0 %10099, %v7390_v14   ;;  %v12038_v42 = vpop.permute.xlu2 %5708  ;;  %v12042_v24 = vpop.permute.xlu0 %5728  ;;  %v3347_v47 = vmax.f32 %v3214_v34, 0.0 }
 0x353   : > { %13751 = vst [vmem:[#allocation82_spill] sm:$0xff] %v12042_v24  ;;  %v7380_v23 = vpack.c.bf16 %v7316_v9, %v7316_v9 }
 0x354   : > { %v3419_v35 = vpack.c.bf16 %v3345_v59, %v3344_v62  ;;  %v2875_v22 = vpop.f32.mrf.mxu3  ;;  %v12040_v28 = vpop.permute.xlu1 %5733  ;;  %v9878_v62 = vld [vmem:[%s13577_s3 + $0x244] sm:$0xf] }
 0x355   : > { %v2706_v11 = vpop.f32.mrf.mxu2  ;;  %v3046_v52 = vpop.f32.mrf.mxu0  ;;  %13750 = vst [vmem:[#allocation81_spill] sm:$0xff] %v12040_v28 }
 0x356   : > { %3483 = vst [vmem:[%s10477_s24 + $0x3a8] sm:$0xff] %v3419_v35  ;;  %v2707_v41 = vadd.f32 %v2706_v11, %v11277_v57  ;;  %v3215_v45 = vpop.f32.mrf.mxu1  ;;  %v9879_v57 = vld [vmem:[%s13577_s3 + $0x244] sm:$0xf0]  ;;  %v3047_v59 = vadd.f32 %v3046_v52, %v11313_v40  ;;  %v8920_v35 = vld [vmem:[%s13577_s3 + $0x248] sm:$0xf0]  ;;  %v7268_v11 = vld [vmem:[%s10279_s16 + $0x8d0] sm:$0xff] }
 0x357   : > { %7526 = vperm.xlu2 %10101, %v7380_v23   ;;  %v8919_v2 = vor.u32 %v9879_v57, %v8918_v50  ;;  %v8923_v24 = vor.u32 %v9878_v62, %v8920_v35 }
 0x358   : > { %v2876_v6 = vadd.f32 %v2875_v22, %v2707_v41  ;;  %7652 = vperm.xlu1 %10100, %v7394_v54   ;;  %v7332_v41 = vmax.f32 %v7268_v11, 0.0 }
 0x35a   : > { %v3346_v14 = vmax.f32 %v2876_v6, 0.0  ;;  %7643 = vperm.xlu0 %10099, %v7393_v12   ;;  %v3216_v6 = vadd.f32 %v3215_v45, %v3047_v59  ;;  %v12062_v44 = vpop.permute.xlu2 %5723  ;;  %v12066_v54 = vpop.permute.xlu0 %5743  ;;  %v7383_v12 = vpack.c.bf16 %v7319_v0, %v7319_v0  ;;  %v7396_v45 = vpack.c.bf16 %v7332_v41, %v7332_v41 }
 0x35b   : > { %13753 = vst [vmem:[#allocation84_spill] sm:$0xff] %v12066_v54 }
 0x35c   : > { %v3420_v34 = vpack.c.bf16 %v3347_v47, %v3346_v14  ;;  %v2877_v22 = vpop.f32.mrf.mxu3  ;;  %v12064_v23 = vpop.permute.xlu1 %5748  ;;  %v7397_v14 = vpack.c.bf16 %v7333_v48, %v7333_v48 }
 0x35d   : > { %v2708_v9 = vpop.f32.mrf.mxu2  ;;  %v3049_v52 = vpop.f32.mrf.mxu0  ;;  %13752 = vst [vmem:[#allocation83_spill] sm:$0xff] %v12064_v23 }
 0x35e   : > { %3484 = vst [vmem:[%s10477_s24 + $0x3b0] sm:$0xff] %v3420_v34  ;;  %v2709_v28 = vadd.f32 %v2708_v9, %v11313_v40  ;;  %v3218_v47 = vpop.f32.mrf.mxu1  ;;  %v3050_v57 = vadd.f32 %v3049_v52, %v11293_v10  ;;  %v3349_v40 = vmax.f32 %v3216_v6, 0.0  ;;  %v7258_v34 = vld [vmem:[%s10279_s16 + $0x880] sm:$0xff]  ;;  %v7335_v52 = vmax.f32 %v7271_v33, 0.0  ;;  %v7261_v33 = vld [vmem:[%s10279_s16 + $0x898] sm:$0xff] }
 0x35f   : > { %7553 = vperm.xlu2 %10101, %v7383_v12   ;;  %v7322_v9 = vmax.f32 %v7258_v34, 0.0 }
 0x360   : > { %v2878_v50 = vadd.f32 %v2877_v22, %v2709_v28  ;;  %4802 = vmatmul.bf16.gmra.mxu0 %v8919_v2  ;;  %v3219_v35 = vadd.f32 %v3218_v47, %v3050_v57  ;;  %7679 = vperm.xlu1 %10100, %v7397_v14   ;;  %v7272_v22 = vld [vmem:[%s10279_s16 + $0x8f0] sm:$0xff]  ;;  %v7399_v14 = vpack.c.bf16 %v7335_v52, %v7335_v52  ;;  %v7325_v52 = vmax.f32 %v7261_v33, 0.0  ;;  %v7277_v33 = vld [vmem:[%s10279_s16 + $0x918] sm:$0xff] }
 0x361   : > { %4464 = vmatmul.bf16.gmra.mxu3 %v8919_v2  ;;  %9248 = vmatmul.msk.bf16.gmra.mxu1 %vm931_vm0, %v8923_v24  ;;  %v7336_v2 = vmax.f32 %v7272_v22, 0.0  ;;  %v7386_v47 = vpack.c.bf16 %v7322_v9, %v7322_v9  ;;  %v7274_v9 = vld [vmem:[%s10279_s16 + $0x900] sm:$0xff] }
 0x362   : > { %v3348_v59 = vmax.f32 %v2878_v50, 0.0  ;;  %9216 = vmatmul.msk.bf16.gmra.mxu2 %vm931_vm0, %v8923_v24  ;;  %7670 = vperm.xlu0 %10099, %v7396_v45   ;;  %v12076_v48 = vpop.permute.xlu2 %5738  ;;  %v12080_v6 = vpop.permute.xlu0 %5758  ;;  %v3351_v12 = vmax.f32 %v3219_v35, 0.0  ;;  %v8926_v45 = vld [vmem:[%s13577_s3 + $0x250] sm:$0xf]  ;;  %v8928_v35 = vld [vmem:[%s13577_s3 + $0x258] sm:$0xf0] }
 0x363   : > { %13755 = vst [vmem:[#allocation86_spill] sm:$0xff] %v12080_v6  ;;  %v7400_v57 = vpack.c.bf16 %v7336_v2, %v7336_v2 }
 0x364   : > { %v3421_v62 = vpack.c.bf16 %v3349_v40, %v3348_v59  ;;  %v2880_v28 = vpop.f32.mrf.mxu3  ;;  %v12078_v24 = vpop.permute.xlu1 %5763 }
 0x365   : > { %v2711_v18 = vpop.f32.mrf.mxu2  ;;  %v3051_v11 = vpop.f32.mrf.mxu0  ;;  %13754 = vst [vmem:[#allocation85_spill] sm:$0xff] %v12078_v24 }
 0x366   : > { %3485 = vst [vmem:[%s10477_s24 + $0x3b8] sm:$0xff] %v3421_v62  ;;  %v2712_v0 = vadd.f32 %v2711_v18, %v11293_v10  ;;  %v3220_v41 = vpop.f32.mrf.mxu1  ;;  %v9881_v10 = vld [vmem:[%s13577_s3 + $0x254] sm:$0xf0]  ;;  %v3052_v59 = vadd.f32 %v3051_v11, %v11291_v36  ;;  %v9880_v62 = vld [vmem:[%s13577_s3 + $0x254] sm:$0xf]  ;;  %v7275_v18 = vld [vmem:[%s10279_s16 + $0x908] sm:$0xff] }
 0x367   : > { %7580 = vperm.xlu2 %10101, %v7386_v47   ;;  %v8927_v22 = vor.u32 %v9881_v10, %v8926_v45  ;;  %v8931_v23 = vor.u32 %v9880_v62, %v8928_v35 }
 0x368   : > { %v2881_v50 = vadd.f32 %v2880_v28, %v2712_v0  ;;  %7706 = vperm.xlu1 %10100, %v7400_v57   ;;  %v7339_v0 = vmax.f32 %v7275_v18, 0.0  ;;  %v3221_v24 = vadd.f32 %v3220_v41, %v3052_v59 }
 0x36a   : > { %v3350_v40 = vmax.f32 %v2881_v50, 0.0  ;;  %7697 = vperm.xlu0 %10099, %v7399_v14   ;;  %v7338_v50 = vmax.f32 %v7274_v9, 0.0  ;;  %v12100_v54 = vpop.permute.xlu2 %5753  ;;  %v12104_v57 = vpop.permute.xlu0 %5773  ;;  %v7389_v14 = vpack.c.bf16 %v7325_v52, %v7325_v52 }
 0x36b   : > { %13757 = vst [vmem:[#allocation88_spill] sm:$0xff] %v12104_v57 }
 0x36c   : > { %v3422_v28 = vpack.c.bf16 %v3351_v12, %v3350_v40  ;;  %v2882_v34 = vpop.f32.mrf.mxu3  ;;  %v12102_v47 = vpop.permute.xlu1 %5778  ;;  %v7403_v40 = vpack.c.bf16 %v7339_v0, %v7339_v0  ;;  %v7402_v41 = vpack.c.bf16 %v7338_v50, %v7338_v50 }
 0x36d   : > { %v2713_v2 = vpop.f32.mrf.mxu2  ;;  %v3054_v11 = vpop.f32.mrf.mxu0  ;;  %13756 = vst [vmem:[#allocation87_spill] sm:$0xff] %v12102_v47 }
 0x36e   : > { %3486 = vst [vmem:[%s10477_s24 + $0x3c0] sm:$0xff] %v3422_v28  ;;  %v2714_v6 = vadd.f32 %v2713_v2, %v11291_v36  ;;  %v3223_v12 = vpop.f32.mrf.mxu1  ;;  %v3055_v10 = vadd.f32 %v3054_v11, %v11327_v5  ;;  %v3353_v36 = vmax.f32 %v3221_v24, 0.0  ;;  %v7264_v28 = vld [vmem:[%s10279_s16 + $0x8b0] sm:$0xff]  ;;  %v7341_v24 = vmax.f32 %v7277_v33, 0.0  ;;  %v7267_v33 = vld [vmem:[%s10279_s16 + $0x8c8] sm:$0xff] }
 0x36f   : > { %7607 = vperm.xlu2 %10101, %v7389_v14   ;;  %v7328_v2 = vmax.f32 %v7264_v28, 0.0 }
 0x370   : > { %v2883_v45 = vadd.f32 %v2882_v34, %v2714_v6  ;;  %4807 = vmatmul.bf16.gmra.mxu0 %v8927_v22  ;;  %v3224_v35 = vadd.f32 %v3223_v12, %v3055_v10  ;;  %7733 = vperm.xlu1 %10100, %v7403_v40   ;;  %v7278_v34 = vld [vmem:[%s10279_s16 + $0x920] sm:$0xff]  ;;  %v7405_v40 = vpack.c.bf16 %v7341_v24, %v7341_v24  ;;  %v7331_v24 = vmax.f32 %v7267_v33, 0.0  ;;  %v7283_v33 = vld [vmem:[%s10279_s16 + $0x948] sm:$0xff] }
 0x371   : > { %4469 = vmatmul.bf16.gmra.mxu3 %v8927_v22  ;;  %9249 = vmatmul.msk.bf16.gmra.mxu1 %vm931_vm0, %v8931_v23  ;;  %v7342_v22 = vmax.f32 %v7278_v34, 0.0  ;;  %v7392_v12 = vpack.c.bf16 %v7328_v2, %v7328_v2  ;;  %v7280_v2 = vld [vmem:[%s10279_s16 + $0x930] sm:$0xff] }
 0x372   : > { %v3352_v59 = vmax.f32 %v2883_v45, 0.0  ;;  %9217 = vmatmul.msk.bf16.gmra.mxu2 %vm931_vm0, %v8931_v23  ;;  %7724 = vperm.xlu0 %10099, %v7402_v41   ;;  %v12114_v52 = vpop.permute.xlu2 %5768  ;;  %v12118_v50 = vpop.permute.xlu0 %5788  ;;  %v3355_v14 = vmax.f32 %v3224_v35, 0.0  ;;  %v8934_v41 = vld [vmem:[%s13577_s3 + $0x260] sm:$0xf]  ;;  %v8936_v35 = vld [vmem:[%s13577_s3 + $0x268] sm:$0xf0] }
 0x373   : > { %13759 = vst [vmem:[#allocation90_spill] sm:$0xff] %v12118_v50  ;;  %v7406_v10 = vpack.c.bf16 %v7342_v22, %v7342_v22 }
 0x374   : > { %v3423_v62 = vpack.c.bf16 %v3353_v36, %v3352_v59  ;;  %v2885_v6 = vpop.f32.mrf.mxu3  ;;  %v12116_v23 = vpop.permute.xlu1 %5793 }
 0x375   : > { %v2716_v18 = vpop.f32.mrf.mxu2  ;;  %v3056_v9 = vpop.f32.mrf.mxu0  ;;  %13758 = vst [vmem:[#allocation89_spill] sm:$0xff] %v12116_v23 }
 0x376   : > { %3487 = vst [vmem:[%s10477_s24 + $0x3c8] sm:$0xff] %v3423_v62  ;;  %v2717_v11 = vadd.f32 %v2716_v18, %v11327_v5  ;;  %v3225_v0 = vpop.f32.mrf.mxu1  ;;  %v9883_v5 = vld [vmem:[%s13577_s3 + $0x264] sm:$0xf0]  ;;  %v3057_v59 = vadd.f32 %v3056_v9, %v11317_v4  ;;  %v9882_v62 = vld [vmem:[%s13577_s3 + $0x264] sm:$0xf]  ;;  %v7281_v18 = vld [vmem:[%s10279_s16 + $0x938] sm:$0xff] }
 0x377   : > { %7634 = vperm.xlu2 %10101, %v7392_v12   ;;  %v8935_v34 = vor.u32 %v9883_v5, %v8934_v41  ;;  %v8939_v47 = vor.u32 %v9882_v62, %v8936_v35 }
 0x378   : > { %v2886_v45 = vadd.f32 %v2885_v6, %v2717_v11  ;;  %7760 = vperm.xlu1 %10100, %v7406_v10   ;;  %v7345_v11 = vmax.f32 %v7281_v18, 0.0  ;;  %v3226_v23 = vadd.f32 %v3225_v0, %v3057_v59 }
 0x37a   : > { %v3354_v36 = vmax.f32 %v2886_v45, 0.0  ;;  %7751 = vperm.xlu0 %10099, %v7405_v40   ;;  %v7344_v45 = vmax.f32 %v7280_v2, 0.0  ;;  %v12138_v57 = vpop.permute.xlu2 %5783  ;;  %v12142_v10 = vpop.permute.xlu0 %5803  ;;  %v7395_v40 = vpack.c.bf16 %v7331_v24, %v7331_v24  ;;  %v10027_v24 = vld [vmem:[%s10290_s29 + $0x174] sm:$0xf0] }
 0x37b   : > { %13761 = vst [vmem:[#allocation92_spill] sm:$0xff] %v12142_v10 }
 0x37c   : > { %v3424_v6 = vpack.c.bf16 %v3355_v14, %v3354_v36  ;;  %v2887_v28 = vpop.f32.mrf.mxu3  ;;  %v12140_v12 = vpop.permute.xlu1 %5808  ;;  %v7409_v36 = vpack.c.bf16 %v7345_v11, %v7345_v11  ;;  %v7408_v0 = vpack.c.bf16 %v7344_v45, %v7344_v45 }
 0x37d   : > { %v2718_v22 = vpop.f32.mrf.mxu2  ;;  %v3059_v9 = vpop.f32.mrf.mxu0  ;;  %13760 = vst [vmem:[#allocation91_spill] sm:$0xff] %v12140_v12 }
 0x37e   : > { %3488 = vst [vmem:[%s10477_s24 + $0x3d0] sm:$0xff] %v3424_v6  ;;  %v2719_v50 = vadd.f32 %v2718_v22, %v11317_v4  ;;  %v3228_v14 = vpop.f32.mrf.mxu1  ;;  %v3060_v5 = vadd.f32 %v3059_v9, %v11315_v60  ;;  %v3357_v4 = vmax.f32 %v3226_v23, 0.0  ;;  %v7270_v6 = vld [vmem:[%s10279_s16 + $0x8e0] sm:$0xff]  ;;  %v7347_v22 = vmax.f32 %v7283_v33, 0.0 }
 0x37f   : > { %7661 = vperm.xlu2 %10101, %v7395_v40   ;;  %v7334_v23 = vmax.f32 %v7270_v6, 0.0 }
 0x380   : > { %v2888_v41 = vadd.f32 %v2887_v28, %v2719_v50  ;;  %4812 = vmatmul.bf16.gmra.mxu0 %v8935_v34  ;;  %v3229_v50 = vadd.f32 %v3228_v14, %v3060_v5  ;;  %7787 = vperm.xlu1 %10100, %v7409_v36   ;;  %v7284_v28 = vld [vmem:[%s10279_s16 + $0x950] sm:$0xff] }
 0x381   : > { %4474 = vmatmul.bf16.gmra.mxu3 %v8935_v34  ;;  %9250 = vmatmul.msk.bf16.gmra.mxu1 %vm931_vm0, %v8939_v47  ;;  %v7348_v2 = vmax.f32 %v7284_v28, 0.0  ;;  %v7398_v5 = vpack.c.bf16 %v7334_v23, %v7334_v23 }
 0x382   : > { %v3356_v59 = vmax.f32 %v2888_v41, 0.0  ;;  %9218 = vmatmul.msk.bf16.gmra.mxu2 %vm931_vm0, %v8939_v47  ;;  %7778 = vperm.xlu0 %10099, %v7408_v0   ;;  %v9656_v47 = vld [vmem:[%s10290_s29 + $0x170] sm:$0xf]  ;;  %v12154_v11 = vpop.permute.xlu2 %5798  ;;  %v12158_v41 = vpop.permute.xlu0 %5818  ;;  %v3359_v36 = vmax.f32 %v3229_v50, 0.0  ;;  %v9884_v50 = vld [vmem:[%s13577_s3 + $0x274] sm:$0xf] }
 0x383   : > { %13762 = vst [vmem:[#allocation93_spill] sm:$0xff] %v12154_v11  ;;  %v9657_v40 = vor.u32 %v10027_v24, %v9656_v47 }
 0x384   : > { %v3425_v62 = vpack.c.bf16 %v3357_v4, %v3356_v59  ;;  %v2890_v35 = vpop.f32.mrf.mxu3  ;;  %v12156_v45 = vpop.permute.xlu1 %5823  ;;  %13764 = vst [vmem:[#allocation95_spill] sm:$0xff] %v12158_v41  ;;  %v7412_v4 = vpack.c.bf16 %v7348_v2, %v7348_v2  ;;  %v7411_v59 = vpack.c.bf16 %v7347_v22, %v7347_v22  ;;  %v7273_v2 = vld [vmem:[%s10279_s16 + $0x8f8] sm:$0xff]  ;;  %v7287_v22 = vld [vmem:[%s10279_s16 + $0x968] sm:$0xff] }
 0x385   : > { %v2721_v18 = vpop.f32.mrf.mxu2  ;;  %v3061_v34 = vpop.f32.mrf.mxu0  ;;  %13763 = vst [vmem:[#allocation94_spill] sm:$0xff] %v12156_v45  ;;  %6312 = vmatpush.bf16.msrb.mxu3 %v9657_v40  ;;  %v10026_v40 = vld [vmem:[%s10290_s29 + $0x174] sm:$0xf]  ;;  %v7351_v11 = vmax.f32 %v7287_v22, 0.0  ;;  %v7289_v22 = vld [vmem:[%s10279_s16 + $0x978] sm:$0xff] }
 0x386   : > { %3489 = vst [vmem:[%s10477_s24 + $0x3d8] sm:$0xff] %v3425_v62  ;;  %v2722_v9 = vadd.f32 %v2721_v18, %v11315_v60  ;;  %v3230_v14 = vpop.f32.mrf.mxu1  ;;  %v8942_v60 = vld [vmem:[%s13577_s3 + $0x270] sm:$0xf]  ;;  %v9885_v62 = vld [vmem:[%s13577_s3 + $0x274] sm:$0xf0]  ;;  %v3062_v28 = vadd.f32 %v3061_v34, %v11351_v55 }
 0x387   : > { %7688 = vperm.xlu2 %10101, %v7398_v5   ;;  %v8943_v23 = vor.u32 %v9885_v62, %v8942_v60  ;;  %v10183_v5 = vmov 839922192  }
 0x388   : > { %v2891_v0 = vadd.f32 %v2890_v35, %v2722_v9  ;;  %v8944_v35 = vld [vmem:[%s13577_s3 + $0x278] sm:$0xf0]  ;;  %7814 = vperm.xlu1 %10100, %v7412_v4   ;;  %v7286_v9 = vld [vmem:[%s10279_s16 + $0x960] sm:$0xff]  ;;  %v3231_v45 = vadd.f32 %v3230_v14, %v3062_v28  ;;  %v7415_v28 = vpack.c.bf16 %v7351_v11, %v7351_v11 }
 0x389   : > { %v8947_v24 = vor.u32 %v9884_v50, %v8944_v35  ;;  %v7350_v50 = vmax.f32 %v7286_v9, 0.0  ;;  %v7290_v11 = vld [vmem:[%s10279_s16 + $0x980] sm:$0xff] }
 0x38a   : > { %v3358_v6 = vmax.f32 %v2891_v0, 0.0  ;;  %7805 = vperm.xlu0 %10099, %v7411_v59   ;;  %v9658_v0 = vld [vmem:[%s10290_s29 + $0x178] sm:$0xf0]  ;;  %v12180_v10 = vpop.permute.xlu2 %5813  ;;  %v12183_v62 = vpop.permute.xlu0 %5833 }
 0x38b   : > { %v9661_v12 = vor.u32 %v10026_v40, %v9658_v0  ;;  %13765 = vst [vmem:[#allocation96_spill] sm:$0xff] %v12183_v62  ;;  %v7354_v0 = vmax.f32 %v7290_v11, 0.0  ;;  %v13767_v62 = vld [vmem:[#allocation8_spill] sm:$0xff] }
 0x38c   : > { %v3426_v33 = vpack.c.bf16 %v3359_v36, %v3358_v6  ;;  %v2892_v18 = vpop.f32.mrf.mxu3  ;;  %v7440_v36 = vunpack.c.l.s4 %v10183_v5  ;;  %v7437_v60 = vpop.permute.xlu1 %7436  ;;  %v7337_v6 = vmax.f32 %v7273_v2, 0.0  ;;  %v7353_v5 = vmax.f32 %v7289_v22, 0.0 }
 0x38d   : > { %v2723_v34 = vpop.f32.mrf.mxu2  ;;  %v3064_v47 = vpop.f32.mrf.mxu0  ;;  %6650 = vmatpush.bf16.msrb.mxu0 %v9661_v12  ;;  %v7276_v12 = vld [vmem:[%s10279_s16 + $0x910] sm:$0xff] }
 0x38e   : > { %3490 = vst [vmem:[%s10477_s24 + $0x3e0] sm:$0xff] %v3426_v33  ;;  %v2724_v41 = vadd.f32 %v2723_v34, %v11351_v55  ;;  %v3065_v4 = vadd.f32 %v3064_v47, %v11331_v15  ;;  %v3233_v59 = vpop.f32.mrf.mxu1  ;;  %v12185_v14 = vunpack.c.0.s8 %v7440_v36  ;;  %v7401_v55 = vpack.c.bf16 %v7337_v6, %v7337_v6 }
 0x38f   : > { %v7414_v33 = vpack.c.bf16 %v7350_v50, %v7350_v50  ;;  %v3361_v34 = vmax.f32 %v3231_v45, 0.0  ;;  %v7340_v40 = vmax.f32 %v7276_v12, 0.0  ;;  %v8952_v12 = vld [vmem:[%s13577_s3 + $0x288] sm:$0xf0] }
 0x390   : > { %v2893_v35 = vadd.f32 %v2892_v18, %v2724_v41  ;;  %4817 = vmatmul.bf16.gmra.mxu0 %v8943_v23  ;;  %v7442_v41 = vperm.slane %v7437_v60, %v12185_v14  ;;  %v3234_v18 = vadd.f32 %v3233_v59, %v3065_v4  ;;  %7715 = vperm.xlu2 %10101, %v7401_v55  }
 0x391   : > { %4479 = vmatmul.bf16.gmra.mxu3 %v8943_v23  ;;  %9251 = vmatmul.msk.bf16.gmra.mxu1 %vm931_vm0, %v8947_v24 }
 0x392   : > { %v3360_v47 = vmax.f32 %v2893_v35, 0.0  ;;  %9219 = vmatmul.msk.bf16.gmra.mxu2 %vm931_vm0, %v8947_v24  ;;  %8010 = vst [vmem:[%s10477_s24 + $0x800] sm:$0xff] %v7442_v41  ;;  %7841 = vperm.xlu1 %10100, %v7415_v28   ;;  %v12196_v36 = vpop.permute.xlu2 %5828  ;;  %v3363_v4 = vmax.f32 %v3234_v18, 0.0  ;;  %v7455_v50 = vpop.permute.xlu0 %7454  ;;  %v7404_v35 = vpack.c.bf16 %v7340_v40, %v7340_v40  ;;  %v13766_v18 = vld [vmem:[#allocation5_spill] sm:$0xff]  ;;  %v7279_v40 = vld [vmem:[%s10279_s16 + $0x928] sm:$0xff] }
 0x393   : > { %7832 = vperm.xlu0 %10099, %v7414_v33   ;;  %v7460_v28 = vperm.slane %v7455_v50, %v12185_v14  ;;  %v7418_v33 = vpack.c.bf16 %v7354_v0, %v7354_v0  ;;  %v7293_v0 = vld [vmem:[%s10279_s16 + $0x998] sm:$0xff] }
 0x394   : > { %v3427_v2 = vpack.c.bf16 %v3361_v34, %v3360_v47  ;;  %v2895_v23 = vpop.f32.mrf.mxu3  ;;  %v7464_v60 = vpop.permute.xlu1 %7463  ;;  %v7417_v34 = vpack.c.bf16 %v7353_v5, %v7353_v5  ;;  %v9887_v47 = vld [vmem:[%s13577_s3 + $0x284] sm:$0xf0]  ;;  %v7292_v5 = vld [vmem:[%s10279_s16 + $0x990] sm:$0xff] }
 0x395   : > { %v2726_v9 = vpop.f32.mrf.mxu2  ;;  %v3066_v45 = vpop.f32.mrf.mxu0  ;;  %v7469_v6 = vperm.slane %v7464_v60, %v12185_v14  ;;  %8012 = vst [vmem:[%s10477_s24 + $0x810] sm:$0xff] %v7460_v28  ;;  %v7343_v60 = vmax.f32 %v7279_v40, 0.0  ;;  %v7356_v50 = vmax.f32 %v7292_v5, 0.0 }
 0x396   : > { %3491 = vst [vmem:[%s10477_s24 + $0x3e8] sm:$0xff] %v3427_v2  ;;  %v2727_v24 = vadd.f32 %v2726_v9, %v11331_v15  ;;  %v3235_v59 = vpop.f32.mrf.mxu1  ;;  %v8950_v15 = vld [vmem:[%s13577_s3 + $0x280] sm:$0xf]  ;;  %v3067_v2 = vadd.f32 %v3066_v45, %v13766_v18 }
 0x397   : > { %8013 = vst [vmem:[%s10477_s24 + $0x818] sm:$0xff] %v7469_v6  ;;  %v8951_v9 = vor.u32 %v9887_v47, %v8950_v15  ;;  %v7357_v6 = vmax.f32 %v7293_v0, 0.0  ;;  %v7407_v0 = vpack.c.bf16 %v7343_v60, %v7343_v60  ;;  %v7296_v60 = vld [vmem:[%s10279_s16 + $0x9b0] sm:$0xff] }
 0x398   : > { %v2896_v55 = vadd.f32 %v2895_v23, %v2727_v24  ;;  %v9886_v23 = vld [vmem:[%s13577_s3 + $0x284] sm:$0xf]  ;;  %7742 = vperm.xlu2 %10101, %v7404_v35  }
 0x39a   : > { %v3362_v41 = vmax.f32 %v2896_v55, 0.0  ;;  %7868 = vperm.xlu1 %10100, %v7418_v33   ;;  %v3236_v55 = vadd.f32 %v3235_v59, %v3067_v2  ;;  %v7482_v40 = vpop.permute.xlu0 %7481  ;;  %v7420_v2 = vpack.c.bf16 %v7356_v50, %v7356_v50 }
 0x39b   : > { %7859 = vperm.xlu0 %10099, %v7417_v34   ;;  %v7487_v59 = vperm.slane %v7482_v40, %v12185_v14 }
 0x39c   : > { %v3428_v11 = vpack.c.bf16 %v3363_v4, %v3362_v41  ;;  %v2897_v22 = vpop.f32.mrf.mxu3  ;;  %v8955_v4 = vor.u32 %v9886_v23, %v8952_v12  ;;  %v7446_v41 = vpop.permute.xlu2 %7445  ;;  %v3365_v23 = vmax.f32 %v3236_v55, 0.0 }
 0x39d   : > { %v2728_v45 = vpop.f32.mrf.mxu2  ;;  %v4783_v24 = vpop.f32.mrf.mxu0  ;;  %v7451_v34 = vperm.slane %v7446_v41, %v12185_v14  ;;  %8015 = vst [vmem:[%s10477_s24 + $0x828] sm:$0xff] %v7487_v59  ;;  %v13768_v59 = vld [vmem:[#allocation7_spill] sm:$0xff] }
 0x39e   : > { %3492 = vst [vmem:[%s10477_s24 + $0x3f0] sm:$0xff] %v3428_v11  ;;  %v2729_v28 = vadd.f32 %v2728_v45, %v13766_v18  ;;  %v4784_v35 = vadd.f32 %v4783_v24, %v13767_v62  ;;  %v7491_v15 = vpop.permute.xlu1 %7490  ;;  %v4952_v33 = vpop.f32.mrf.mxu1  ;;  %v7421_v18 = vpack.c.bf16 %v7357_v6, %v7357_v6  ;;  %v7282_v24 = vld [vmem:[%s10279_s16 + $0x940] sm:$0xff] }
 0x39f   : > { %v7496_v47 = vperm.slane %v7491_v15, %v12185_v14  ;;  %8011 = vst [vmem:[%s10477_s24 + $0x808] sm:$0xff] %v7451_v34 }
 0x3a0   : > { %v2898_v5 = vadd.f32 %v2897_v22, %v2729_v28  ;;  %4822 = vmatmul.bf16.gmra.mxu0 %v8951_v9  ;;  %v4953_v11 = vadd.f32 %v4952_v33, %v4784_v35  ;;  %7769 = vperm.xlu2 %10101, %v7407_v0   ;;  %v7346_v28 = vmax.f32 %v7282_v24, 0.0  ;;  %v7360_v35 = vmax.f32 %v7296_v60, 0.0  ;;  %v9888_v60 = vld [vmem:[%s13577_s3 + $0x294] sm:$0xf] }
 0x3a1   : > { %4484 = vmatmul.bf16.gmra.mxu3 %v8951_v9  ;;  %9252 = vmatmul.msk.bf16.gmra.mxu1 %vm931_vm0, %v8955_v4  ;;  %8016 = vst [vmem:[%s10477_s24 + $0x830] sm:$0xff] %v7496_v47  ;;  %v7295_v9 = vld [vmem:[%s10279_s16 + $0x9a8] sm:$0xff] }
 0x3a2   : > { %v3364_v12 = vmax.f32 %v2898_v5, 0.0  ;;  %9220 = vmatmul.msk.bf16.gmra.mxu2 %vm931_vm0, %v8955_v4  ;;  %7895 = vperm.xlu1 %10100, %v7421_v18   ;;  %v7359_v41 = vmax.f32 %v7295_v9, 0.0  ;;  %v5113_v4 = vmax.f32 %v4953_v11, 0.0  ;;  %v7509_v5 = vpop.permute.xlu0 %7508  ;;  %v8960_v9 = vld [vmem:[%s13577_s3 + $0x298] sm:$0xf0] }
 0x3a3   : > { %7886 = vperm.xlu0 %10099, %v7420_v2   ;;  %v7514_v2 = vperm.slane %v7509_v5, %v12185_v14  ;;  %v13769_v5 = vld [vmem:[#allocation6_spill] sm:$0xff] }
 0x3a4   : > { %v3429_v22 = vpack.c.bf16 %v3365_v23, %v3364_v12  ;;  %v4445_v45 = vpop.f32.mrf.mxu3  ;;  %v7473_v15 = vpop.permute.xlu2 %7472  ;;  %v7424_v23 = vpack.c.bf16 %v7360_v35, %v7360_v35  ;;  %v7423_v12 = vpack.c.bf16 %v7359_v41, %v7359_v41  ;;  %v7299_v35 = vld [vmem:[%s10279_s16 + $0x9c8] sm:$0xff]  ;;  %v7298_v41 = vld [vmem:[%s10279_s16 + $0x9c0] sm:$0xff] }
 0x3a5   : > { %v4446_v6 = vadd.f32 %v4445_v45, %v13767_v62  ;;  %v4614_v50 = vpop.f32.mrf.mxu2  ;;  %v4785_v55 = vpop.f32.mrf.mxu0  ;;  %v7478_v40 = vperm.slane %v7473_v15, %v12185_v14  ;;  %v7410_v62 = vpack.c.bf16 %v7346_v28, %v7346_v28  ;;  %v9889_v45 = vld [vmem:[%s13577_s3 + $0x294] sm:$0xf0]  ;;  %8018 = vst [vmem:[%s10477_s24 + $0x840] sm:$0xff] %v7514_v2  ;;  %v8963_v2 = vor.u32 %v9888_v60, %v8960_v9 }
 0x3a6   : > { %3493 = vst [vmem:[%s10477_s24 + $0x3f8] sm:$0xff] %v3429_v22  ;;  %v7518_v33 = vpop.permute.xlu1 %7517  ;;  %v4954_v47 = vpop.f32.mrf.mxu1  ;;  %v4786_v18 = vadd.f32 %v4785_v55, %v13768_v59  ;;  %v8958_v22 = vld [vmem:[%s13577_s3 + $0x290] sm:$0xf]  ;;  %v7285_v28 = vld [vmem:[%s10279_s16 + $0x958] sm:$0xff] }
 0x3a7   : > { %v4615_v34 = vadd.f32 %v4614_v50, %v4446_v6  ;;  %v7523_v0 = vperm.slane %v7518_v33, %v12185_v14  ;;  %8014 = vst [vmem:[%s10477_s24 + $0x820] sm:$0xff] %v7478_v40  ;;  %v8959_v55 = vor.u32 %v9889_v45, %v8958_v22  ;;  %v7363_v40 = vmax.f32 %v7299_v35, 0.0 }
 0x3a8   : > { %7796 = vperm.xlu2 %10101, %v7410_v62   ;;  %v4955_v6 = vadd.f32 %v4954_v47, %v4786_v18 }
 0x3a9   : > { %v5112_v11 = vmax.f32 %v4615_v34, 0.0  ;;  %8019 = vst [vmem:[%s10477_s24 + $0x848] sm:$0xff] %v7523_v0  ;;  %v7349_v34 = vmax.f32 %v7285_v28, 0.0  ;;  %v7362_v0 = vmax.f32 %v7298_v41, 0.0 }
 0x3aa   : > { %7922 = vperm.xlu1 %10100, %v7424_v23   ;;  %v5115_v60 = vmax.f32 %v4955_v6, 0.0  ;;  %v7301_v6 = vld [vmem:[%s10279_s16 + $0x9d8] sm:$0xff] }
 0x3ab   : > { %v5240_v24 = vpack.c.bf16 %v5113_v4, %v5112_v11  ;;  %7913 = vperm.xlu0 %10099, %v7423_v12   ;;  %v7413_v45 = vpack.c.bf16 %v7349_v34, %v7349_v34  ;;  %v7426_v28 = vpack.c.bf16 %v7362_v0, %v7362_v0 }
 0x3ac   : > { %v4447_v50 = vpop.f32.mrf.mxu3  ;;  %v7500_v47 = vpop.permute.xlu2 %7499 }
 0x3ad   : > { %5304 = vst [vmem:[%s10477_s24 + $0x400] sm:$0xff] %v5240_v24  ;;  %v4448_v4 = vadd.f32 %v4447_v50, %v13768_v59  ;;  %v4616_v15 = vpop.f32.mrf.mxu2  ;;  %v4788_v33 = vpop.f32.mrf.mxu0  ;;  %v7505_v12 = vperm.slane %v7500_v47, %v12185_v14  ;;  %v7427_v50 = vpack.c.bf16 %v7363_v40, %v7363_v40  ;;  %v7365_v47 = vmax.f32 %v7301_v6, 0.0 }
 0x3ae   : > { %v4789_v11 = vadd.f32 %v4788_v33, %v13769_v5  ;;  %v7545_v62 = vpop.permute.xlu1 %7544  ;;  %v4957_v23 = vpop.f32.mrf.mxu1  ;;  %v7302_v33 = vld [vmem:[%s10279_s16 + $0x9e0] sm:$0xff] }
 0x3af   : > { %v4617_v18 = vadd.f32 %v4616_v15, %v4448_v4  ;;  %v7550_v22 = vperm.slane %v7545_v62, %v12185_v14  ;;  %v7536_v59 = vpop.permute.xlu0 %7535  ;;  %8017 = vst [vmem:[%s10477_s24 + $0x838] sm:$0xff] %v7505_v12  ;;  %v7288_v15 = vld [vmem:[%s10279_s16 + $0x970] sm:$0xff] }
 0x3b0   : > { %4827 = vmatmul.bf16.gmra.mxu0 %v8959_v55  ;;  %v7541_v24 = vperm.slane %v7536_v59, %v12185_v14  ;;  %v4958_v35 = vadd.f32 %v4957_v23, %v4789_v11  ;;  %7823 = vperm.xlu2 %10101, %v7413_v45   ;;  %v7352_v0 = vmax.f32 %v7288_v15, 0.0  ;;  %v7366_v11 = vmax.f32 %v7302_v33, 0.0  ;;  %v9890_v15 = vld [vmem:[%s13577_s3 + $0x2a4] sm:$0xf]  ;;  %v8968_v33 = vld [vmem:[%s13577_s3 + $0x2a8] sm:$0xf0] }
 0x3b1   : > { %v5114_v9 = vmax.f32 %v4617_v18, 0.0  ;;  %4489 = vmatmul.bf16.gmra.mxu3 %v8959_v55  ;;  %9253 = vmatmul.msk.bf16.gmra.mxu1 %vm931_vm0, %v8963_v2  ;;  %8022 = vst [vmem:[%s10477_s24 + $0x860] sm:$0xff] %v7550_v22 }
 0x3b2   : > { %9221 = vmatmul.msk.bf16.gmra.mxu2 %vm931_vm0, %v8963_v2  ;;  %8021 = vst [vmem:[%s10477_s24 + $0x858] sm:$0xff] %v7541_v24  ;;  %7949 = vperm.xlu1 %10100, %v7427_v50   ;;  %v5117_v62 = vmax.f32 %v4958_v35, 0.0  ;;  %v7416_v24 = vpack.c.bf16 %v7352_v0, %v7352_v0  ;;  %v8966_v35 = vld [vmem:[%s13577_s3 + $0x2a0] sm:$0xf]  ;;  %v7305_v0 = vld [vmem:[%s10279_s16 + $0x9f8] sm:$0xff] }
 0x3b3   : > { %v5241_v41 = vpack.c.bf16 %v5115_v60, %v5114_v9  ;;  %7940 = vperm.xlu0 %10099, %v7426_v28   ;;  %v7430_v28 = vpack.c.bf16 %v7366_v11, %v7366_v11  ;;  %v7429_v60 = vpack.c.bf16 %v7365_v47, %v7365_v47  ;;  %v7304_v11 = vld [vmem:[%s10279_s16 + $0x9f0] sm:$0xff] }
 0x3b4   : > { %v4450_v4 = vpop.f32.mrf.mxu3  ;;  %v7527_v2 = vpop.permute.xlu2 %7526 }
 0x3b5   : > { %5305 = vst [vmem:[%s10477_s24 + $0x408] sm:$0xff] %v5241_v41  ;;  %v4451_v34 = vadd.f32 %v4450_v4, %v13769_v5  ;;  %v4619_v55 = vpop.f32.mrf.mxu2  ;;  %v4790_v40 = vpop.f32.mrf.mxu0  ;;  %v7532_v22 = vperm.slane %v7527_v2, %v12185_v14  ;;  %v9891_v41 = vld [vmem:[%s13577_s3 + $0x2a4] sm:$0xf0] }
 0x3b6   : > { %v7572_v18 = vpop.permute.xlu1 %7571  ;;  %v4959_v12 = vpop.f32.mrf.mxu1  ;;  %v4791_v5 = vadd.f32 %v4790_v40, %v11393_v17  ;;  %v7291_v40 = vld [vmem:[%s10279_s16 + $0x988] sm:$0xff] }
 0x3b7   : > { %v4620_v23 = vadd.f32 %v4619_v55, %v4451_v34  ;;  %v7577_v59 = vperm.slane %v7572_v18, %v12185_v14  ;;  %v7563_v45 = vpop.permute.xlu0 %7562  ;;  %8020 = vst [vmem:[%s10477_s24 + $0x850] sm:$0xff] %v7532_v22  ;;  %v8967_v55 = vor.u32 %v9891_v41, %v8966_v35  ;;  %v7355_v18 = vmax.f32 %v7291_v40, 0.0 }
 0x3b8   : > { %v7568_v50 = vperm.slane %v7563_v45, %v12185_v14  ;;  %7850 = vperm.xlu2 %10101, %v7416_v24   ;;  %v4960_v6 = vadd.f32 %v4959_v12, %v4791_v5  ;;  %v7368_v22 = vmax.f32 %v7304_v11, 0.0 }
 0x3b9   : > { %v5116_v9 = vmax.f32 %v4620_v23, 0.0  ;;  %8025 = vst [vmem:[%s10477_s24 + $0x878] sm:$0xff] %v7577_v59  ;;  %v7369_v23 = vmax.f32 %v7305_v0, 0.0  ;;  %v13770_v59 = vld [vmem:[#allocation10_spill] sm:$0xff]  ;;  %v7419_v35 = vpack.c.bf16 %v7355_v18, %v7355_v18 }
 0x3ba   : > { %8024 = vst [vmem:[%s10477_s24 + $0x870] sm:$0xff] %v7568_v50  ;;  %7976 = vperm.xlu1 %10100, %v7430_v28   ;;  %v8971_v50 = vor.u32 %v9890_v15, %v8968_v33  ;;  %v5119_v15 = vmax.f32 %v4960_v6, 0.0  ;;  %v10025_v18 = vld [vmem:[%s10290_s29 + $0x164] sm:$0xf0] }
 0x3bb   : > { %v5242_v4 = vpack.c.bf16 %v5117_v62, %v5116_v9  ;;  %7967 = vperm.xlu0 %10099, %v7429_v60  }
 0x3bc   : > { %v4452_v34 = vpop.f32.mrf.mxu3  ;;  %v7554_v12 = vpop.permute.xlu2 %7553 }
 0x3bd   : > { %5306 = vst [vmem:[%s10477_s24 + $0x410] sm:$0xff] %v5242_v4  ;;  %v4453_v47 = vadd.f32 %v4452_v34, %v11393_v17  ;;  %v4621_v62 = vpop.f32.mrf.mxu2  ;;  %v4793_v2 = vpop.f32.mrf.mxu0  ;;  %v7559_v60 = vperm.slane %v7554_v12, %v12185_v14  ;;  %v7433_v4 = vpack.c.bf16 %v7369_v23, %v7369_v23  ;;  %v7432_v34 = vpack.c.bf16 %v7368_v22, %v7368_v22 }
 0x3be   : > { %v4794_v45 = vadd.f32 %v4793_v2, %v13770_v59  ;;  %v7599_v24 = vpop.permute.xlu1 %7598  ;;  %v4962_v28 = vpop.f32.mrf.mxu1  ;;  %v9648_v2 = vld [vmem:[%s10290_s29 + $0x160] sm:$0xf] }
 0x3bf   : > { %v4622_v5 = vadd.f32 %v4621_v62, %v4453_v47  ;;  %v7604_v9 = vperm.slane %v7599_v24, %v12185_v14  ;;  %v7590_v17 = vpop.permute.xlu0 %7589  ;;  %8023 = vst [vmem:[%s10477_s24 + $0x868] sm:$0xff] %v7559_v60  ;;  %v7294_v47 = vld [vmem:[%s10279_s16 + $0x9a0] sm:$0xff] }
 0x3c0   : > { %4832 = vmatmul.bf16.gmra.mxu0 %v8967_v55  ;;  %v7595_v41 = vperm.slane %v7590_v17, %v12185_v14  ;;  %v4963_v40 = vadd.f32 %v4962_v28, %v4794_v45  ;;  %7877 = vperm.xlu2 %10101, %v7419_v35   ;;  %v7358_v23 = vmax.f32 %v7294_v47, 0.0  ;;  %v9649_v45 = vor.u32 %v10025_v18, %v9648_v2 }
 0x3c1   : > { %v5118_v33 = vmax.f32 %v4622_v5, 0.0  ;;  %4494 = vmatmul.bf16.gmra.mxu3 %v8967_v55  ;;  %9254 = vmatmul.msk.bf16.gmra.mxu1 %vm931_vm0, %v8971_v50  ;;  %8028 = vst [vmem:[%s10477_s24 + $0x890] sm:$0xff] %v7604_v9 }
 0x3c2   : > { %9222 = vmatmul.msk.bf16.gmra.mxu2 %vm931_vm0, %v8971_v50  ;;  %8027 = vst [vmem:[%s10477_s24 + $0x888] sm:$0xff] %v7595_v41  ;;  %8003 = vperm.xlu1 %10100, %v7433_v4   ;;  %v5121_v22 = vmax.f32 %v4963_v40, 0.0  ;;  %v13771_v41 = vld [vmem:[#allocation9_spill] sm:$0xff]  ;;  %v9892_v40 = vld [vmem:[%s13577_s3 + $0x2b4] sm:$0xf] }
 0x3c3   : > { %v5243_v0 = vpack.c.bf16 %v5119_v15, %v5118_v33  ;;  %7994 = vperm.xlu0 %10099, %v7432_v34   ;;  %6313 = vmatpush.bf16.msrb.mxu3 %v9649_v45  ;;  %v8974_v34 = vld [vmem:[%s13577_s3 + $0x2b0] sm:$0xf]  ;;  %v9893_v15 = vld [vmem:[%s13577_s3 + $0x2b4] sm:$0xf0] }
 0x3c4   : > { %v4455_v11 = vpop.f32.mrf.mxu3  ;;  %v7581_v50 = vpop.permute.xlu2 %7580  ;;  %v8975_v47 = vor.u32 %v9893_v15, %v8974_v34 }
 0x3c5   : > { %5307 = vst [vmem:[%s10477_s24 + $0x418] sm:$0xff] %v5243_v0  ;;  %v4456_v6 = vadd.f32 %v4455_v11, %v13770_v59  ;;  %v4624_v55 = vpop.f32.mrf.mxu2  ;;  %v4795_v62 = vpop.f32.mrf.mxu0  ;;  %v7586_v28 = vperm.slane %v7581_v50, %v12185_v14  ;;  %v7422_v59 = vpack.c.bf16 %v7358_v23, %v7358_v23  ;;  %v8976_v0 = vld [vmem:[%s13577_s3 + $0x2b8] sm:$0xf0]  ;;  %v10024_v23 = vld [vmem:[%s10290_s29 + $0x164] sm:$0xf] }
 0x3c6   : > { %v7626_v12 = vpop.permute.xlu1 %7625  ;;  %v4964_v5 = vpop.f32.mrf.mxu1  ;;  %v4796_v4 = vadd.f32 %v4795_v62, %v13771_v41 }
 0x3c7   : > { %v4625_v24 = vadd.f32 %v4624_v55, %v4456_v6  ;;  %v7631_v60 = vperm.slane %v7626_v12, %v12185_v14  ;;  %v7617_v9 = vpop.permute.xlu0 %7616  ;;  %8026 = vst [vmem:[%s10477_s24 + $0x880] sm:$0xff] %v7586_v28  ;;  %v7297_v6 = vld [vmem:[%s10279_s16 + $0x9b8] sm:$0xff]  ;;  %v8979_v12 = vor.u32 %v9892_v40, %v8976_v0 }
 0x3c8   : > { %v7622_v17 = vperm.slane %v7617_v9, %v12185_v14  ;;  %7904 = vperm.xlu2 %10101, %v7422_v59   ;;  %v4965_v55 = vadd.f32 %v4964_v5, %v4796_v4  ;;  %v7361_v45 = vmax.f32 %v7297_v6, 0.0 }
 0x3c9   : > { %v5120_v35 = vmax.f32 %v4625_v24, 0.0  ;;  %8031 = vst [vmem:[%s10477_s24 + $0x8a8] sm:$0xff] %v7631_v60 }
 0x3ca   : > { %8030 = vst [vmem:[%s10477_s24 + $0x8a0] sm:$0xff] %v7622_v17  ;;  %v5123_v34 = vmax.f32 %v4965_v55, 0.0 }
 0x3cb   : > { %v5244_v33 = vpack.c.bf16 %v5121_v22, %v5120_v35  ;;  %v9650_v22 = vld [vmem:[%s10290_s29 + $0x168] sm:$0xf0] }
 0x3cc   : > { %v4457_v11 = vpop.f32.mrf.mxu3  ;;  %v9653_v24 = vor.u32 %v10024_v23, %v9650_v22  ;;  %v7608_v28 = vpop.permute.xlu2 %7607 }
 0x3cd   : > { %5308 = vst [vmem:[%s10477_s24 + $0x420] sm:$0xff] %v5244_v33  ;;  %v4458_v62 = vadd.f32 %v4457_v11, %v13771_v41  ;;  %v4626_v2 = vpop.f32.mrf.mxu2  ;;  %v4798_v18 = vpop.f32.mrf.mxu0  ;;  %v7613_v17 = vperm.slane %v7608_v28, %v12185_v14  ;;  %v7425_v41 = vpack.c.bf16 %v7361_v45, %v7361_v45  ;;  %v7300_v11 = vld [vmem:[%s10279_s16 + $0x9d0] sm:$0xff] }
 0x3ce   : > { %v4799_v50 = vadd.f32 %v4798_v18, %v11407_v26  ;;  %v7653_v60 = vpop.permute.xlu1 %7652  ;;  %v4967_v59 = vpop.f32.mrf.mxu1  ;;  %6651 = vmatpush.bf16.msrb.mxu0 %v9653_v24 }
 0x3cf   : > { %v4627_v9 = vadd.f32 %v4626_v2, %v4458_v62  ;;  %v7658_v5 = vperm.slane %v7653_v60, %v12185_v14  ;;  %v7644_v35 = vpop.permute.xlu0 %7643  ;;  %8029 = vst [vmem:[%s10477_s24 + $0x898] sm:$0xff] %v7613_v17  ;;  %v9895_v17 = vld [vmem:[%s13577_s3 + $0x2c4] sm:$0xf0] }
 0x3d0   : > { %4837 = vmatmul.bf16.gmra.mxu0 %v8975_v47  ;;  %v7649_v4 = vperm.slane %v7644_v35, %v12185_v14  ;;  %v4968_v33 = vadd.f32 %v4967_v59, %v4799_v50  ;;  %7931 = vperm.xlu2 %10101, %v7425_v41   ;;  %v8982_v59 = vld [vmem:[%s13577_s3 + $0x2c0] sm:$0xf]  ;;  %v9894_v35 = vld [vmem:[%s13577_s3 + $0x2c4] sm:$0xf]  ;;  %v8984_v41 = vld [vmem:[%s13577_s3 + $0x2c8] sm:$0xf0] }
 0x3d1   : > { %v5122_v15 = vmax.f32 %v4627_v9, 0.0  ;;  %4499 = vmatmul.bf16.gmra.mxu3 %v8975_v47  ;;  %9255 = vmatmul.msk.bf16.gmra.mxu1 %vm931_vm0, %v8979_v12  ;;  %8034 = vst [vmem:[%s10477_s24 + $0x8c0] sm:$0xff] %v7658_v5  ;;  %v7364_v47 = vmax.f32 %v7300_v11, 0.0 }
 0x3d2   : > { %9223 = vmatmul.msk.bf16.gmra.mxu2 %vm931_vm0, %v8979_v12  ;;  %8033 = vst [vmem:[%s10477_s24 + $0x8b8] sm:$0xff] %v7649_v4  ;;  %v5125_v2 = vmax.f32 %v4968_v33, 0.0 }
 0x3d3   : > { %v5245_v40 = vpack.c.bf16 %v5123_v34, %v5122_v15  ;;  %v7428_v28 = vpack.c.bf16 %v7364_v47, %v7364_v47  ;;  %v8983_v34 = vor.u32 %v9895_v17, %v8982_v59  ;;  %v7303_v15 = vld [vmem:[%s10279_s16 + $0x9e8] sm:$0xff]  ;;  %v8987_v47 = vor.u32 %v9894_v35, %v8984_v41 }
 0x3d4   : > { %v4460_v0 = vpop.f32.mrf.mxu3  ;;  %v7635_v18 = vpop.permute.xlu2 %7634 }
 0x3d5   : > { %5309 = vst [vmem:[%s10477_s24 + $0x428] sm:$0xff] %v5245_v40  ;;  %v4461_v6 = vadd.f32 %v4460_v0, %v11407_v26  ;;  %v4629_v62 = vpop.f32.mrf.mxu2  ;;  %v4800_v55 = vpop.f32.mrf.mxu0  ;;  %v7640_v50 = vperm.slane %v7635_v18, %v12185_v14 }
 0x3d6   : > { %v7680_v23 = vpop.permute.xlu1 %7679  ;;  %v4969_v45 = vpop.f32.mrf.mxu1  ;;  %v4801_v9 = vadd.f32 %v4800_v55, %v11397_v46 }
 0x3d7   : > { %v4630_v22 = vadd.f32 %v4629_v62, %v4461_v6  ;;  %v7685_v12 = vperm.slane %v7680_v23, %v12185_v14  ;;  %v7671_v24 = vpop.permute.xlu0 %7670  ;;  %8032 = vst [vmem:[%s10477_s24 + $0x8b0] sm:$0xff] %v7640_v50  ;;  %v7367_v6 = vmax.f32 %v7303_v15, 0.0  ;;  %v13772_v62 = vld [vmem:[#allocation11_spill] sm:$0xff] }
 0x3d8   : > { %v7676_v26 = vperm.slane %v7671_v24, %v12185_v14  ;;  %7958 = vperm.xlu2 %10101, %v7428_v28   ;;  %v4970_v33 = vadd.f32 %v4969_v45, %v4801_v9 }
 0x3d9   : > { %v5124_v60 = vmax.f32 %v4630_v22, 0.0  ;;  %8037 = vst [vmem:[%s10477_s24 + $0x8d8] sm:$0xff] %v7685_v12 }
 0x3da   : > { %8036 = vst [vmem:[%s10477_s24 + $0x8d0] sm:$0xff] %v7676_v26  ;;  %v5127_v28 = vmax.f32 %v4970_v33, 0.0 }
 0x3db   : > { %v5246_v5 = vpack.c.bf16 %v5125_v2, %v5124_v60 }
 0x3dc   : > { %v4462_v4 = vpop.f32.mrf.mxu3  ;;  %v7662_v2 = vpop.permute.xlu2 %7661 }
 0x3dd   : > { %5310 = vst [vmem:[%s10477_s24 + $0x430] sm:$0xff] %v5246_v5  ;;  %v4463_v40 = vadd.f32 %v4462_v4, %v11397_v46  ;;  %v4631_v0 = vpop.f32.mrf.mxu2  ;;  %v4803_v11 = vpop.f32.mrf.mxu0  ;;  %v7667_v50 = vperm.slane %v7662_v2, %v12185_v14  ;;  %v7431_v46 = vpack.c.bf16 %v7367_v6, %v7367_v6  ;;  %v9897_v2 = vld [vmem:[%s13577_s3 + $0x2d4] sm:$0xf0] }
 0x3de   : > { %v4804_v55 = vadd.f32 %v4803_v11, %v13772_v62  ;;  %v7707_v18 = vpop.permute.xlu1 %7706  ;;  %v4972_v22 = vpop.f32.mrf.mxu1 }
 0x3df   : > { %v4632_v23 = vadd.f32 %v4631_v0, %v4463_v40  ;;  %v7712_v12 = vperm.slane %v7707_v18, %v12185_v14  ;;  %v7698_v45 = vpop.permute.xlu0 %7697  ;;  %8035 = vst [vmem:[%s10477_s24 + $0x8c8] sm:$0xff] %v7667_v50 }
 0x3e0   : > { %4842 = vmatmul.bf16.gmra.mxu0 %v8983_v34  ;;  %v7703_v24 = vperm.slane %v7698_v45, %v12185_v14  ;;  %v4973_v9 = vadd.f32 %v4972_v22, %v4804_v55  ;;  %7985 = vperm.xlu2 %10101, %v7431_v46   ;;  %v8992_v22 = vld [vmem:[%s13577_s3 + $0x2d8] sm:$0xf0] }
 0x3e1   : > { %v5126_v26 = vmax.f32 %v4632_v23, 0.0  ;;  %4504 = vmatmul.bf16.gmra.mxu3 %v8983_v34  ;;  %9256 = vmatmul.msk.bf16.gmra.mxu1 %vm931_vm0, %v8987_v47  ;;  %8040 = vst [vmem:[%s10477_s24 + $0x8f0] sm:$0xff] %v7712_v12  ;;  %v9896_v23 = vld [vmem:[%s13577_s3 + $0x2d4] sm:$0xf] }
 0x3e2   : > { %9224 = vmatmul.msk.bf16.gmra.mxu2 %vm931_vm0, %v8987_v47  ;;  %8039 = vst [vmem:[%s10477_s24 + $0x8e8] sm:$0xff] %v7703_v24  ;;  %v5129_v34 = vmax.f32 %v4973_v9, 0.0  ;;  %v8990_v47 = vld [vmem:[%s13577_s3 + $0x2d0] sm:$0xf] }
 0x3e3   : > { %v5247_v60 = vpack.c.bf16 %v5127_v28, %v5126_v26  ;;  %v8991_v12 = vor.u32 %v9897_v2, %v8990_v47  ;;  %v8995_v26 = vor.u32 %v9896_v23, %v8992_v22 }
 0x3e4   : > { %v4465_v59 = vpop.f32.mrf.mxu3  ;;  %v7689_v41 = vpop.permute.xlu2 %7688 }
 0x3e5   : > { %5311 = vst [vmem:[%s10477_s24 + $0x438] sm:$0xff] %v5247_v60  ;;  %v4466_v17 = vadd.f32 %v4465_v59, %v13772_v62  ;;  %v4634_v5 = vpop.f32.mrf.mxu2  ;;  %v4805_v35 = vpop.f32.mrf.mxu0  ;;  %v7694_v40 = vperm.slane %v7689_v41, %v12185_v14 }
 0x3e6   : > { %v7734_v4 = vpop.permute.xlu1 %7733  ;;  %v4974_v33 = vpop.f32.mrf.mxu1  ;;  %v4806_v62 = vadd.f32 %v4805_v35, %v11431_v25 }
 0x3e7   : > { %v4635_v15 = vadd.f32 %v4634_v5, %v4466_v17  ;;  %v7739_v0 = vperm.slane %v7734_v4, %v12185_v14  ;;  %v7725_v11 = vpop.permute.xlu0 %7724  ;;  %8038 = vst [vmem:[%s10477_s24 + $0x8e0] sm:$0xff] %v7694_v40  ;;  %v13773_v17 = vld [vmem:[#allocation13_spill] sm:$0xff] }
 0x3e8   : > { %v7730_v6 = vperm.slane %v7725_v11, %v12185_v14  ;;  %v4975_v45 = vadd.f32 %v4974_v33, %v4806_v62 }
 0x3e9   : > { %v5128_v55 = vmax.f32 %v4635_v15, 0.0  ;;  %8043 = vst [vmem:[%s10477_s24 + $0x908] sm:$0xff] %v7739_v0 }
 0x3ea   : > { %8042 = vst [vmem:[%s10477_s24 + $0x900] sm:$0xff] %v7730_v6  ;;  %v5131_v15 = vmax.f32 %v4975_v45, 0.0 }
 0x3eb   : > { %v5248_v18 = vpack.c.bf16 %v5129_v34, %v5128_v55 }
 0x3ec   : > { %v4467_v50 = vpop.f32.mrf.mxu3  ;;  %v7716_v60 = vpop.permute.xlu2 %7715 }
 0x3ed   : > { %5312 = vst [vmem:[%s10477_s24 + $0x440] sm:$0xff] %v5248_v18  ;;  %v4468_v46 = vadd.f32 %v4467_v50, %v11431_v25  ;;  %v4636_v24 = vpop.f32.mrf.mxu2  ;;  %v4808_v28 = vpop.f32.mrf.mxu0  ;;  %v7721_v41 = vperm.slane %v7716_v60, %v12185_v14  ;;  %v8998_v60 = vld [vmem:[%s13577_s3 + $0x2e0] sm:$0xf] }
 0x3ee   : > { %v7761_v9 = vpop.permute.xlu1 %7760  ;;  %v4809_v5 = vadd.f32 %v4808_v28, %v13773_v17  ;;  %v4977_v35 = vpop.f32.mrf.mxu1  ;;  %v13774_v28 = vld [vmem:[#allocation12_spill] sm:$0xff] }
 0x3ef   : > { %v4637_v59 = vadd.f32 %v4636_v24, %v4468_v46  ;;  %v7766_v4 = vperm.slane %v7761_v9, %v12185_v14  ;;  %v7752_v34 = vpop.permute.xlu0 %7751  ;;  %8041 = vst [vmem:[%s10477_s24 + $0x8f8] sm:$0xff] %v7721_v41  ;;  %v9899_v9 = vld [vmem:[%s13577_s3 + $0x2e4] sm:$0xf0] }
 0x3f0   : > { %4847 = vmatmul.bf16.gmra.mxu0 %v8991_v12  ;;  %v7757_v25 = vperm.slane %v7752_v34, %v12185_v14  ;;  %v4978_v0 = vadd.f32 %v4977_v35, %v4809_v5  ;;  %v9000_v5 = vld [vmem:[%s13577_s3 + $0x2e8] sm:$0xf0]  ;;  %v8999_v41 = vor.u32 %v9899_v9, %v8998_v60  ;;  %v10023_v60 = vld [vmem:[%s10290_s29 + $0x154] sm:$0xf0] }
 0x3f1   : > { %v5130_v33 = vmax.f32 %v4637_v59, 0.0  ;;  %4509 = vmatmul.bf16.gmra.mxu3 %v8991_v12  ;;  %9257 = vmatmul.msk.bf16.gmra.mxu1 %vm931_vm0, %v8995_v26  ;;  %8046 = vst [vmem:[%s10477_s24 + $0x920] sm:$0xff] %v7766_v4 }
 0x3f2   : > { %9225 = vmatmul.msk.bf16.gmra.mxu2 %vm931_vm0, %v8995_v26  ;;  %8045 = vst [vmem:[%s10477_s24 + $0x918] sm:$0xff] %v7757_v25  ;;  %v5133_v18 = vmax.f32 %v4978_v0, 0.0 }
 0x3f3   : > { %v5249_v40 = vpack.c.bf16 %v5131_v15, %v5130_v33 }
 0x3f4   : > { %v4470_v11 = vpop.f32.mrf.mxu3  ;;  %v7743_v47 = vpop.permute.xlu2 %7742 }
 0x3f5   : > { %5313 = vst [vmem:[%s10477_s24 + $0x448] sm:$0xff] %v5249_v40  ;;  %v4471_v6 = vadd.f32 %v4470_v11, %v13773_v17  ;;  %v4639_v55 = vpop.f32.mrf.mxu2  ;;  %v4810_v62 = vpop.f32.mrf.mxu0  ;;  %v7748_v50 = vperm.slane %v7743_v47, %v12185_v14  ;;  %v9898_v17 = vld [vmem:[%s13577_s3 + $0x2e4] sm:$0xf] }
 0x3f6   : > { %v7788_v2 = vpop.permute.xlu1 %7787  ;;  %v4979_v22 = vpop.f32.mrf.mxu1  ;;  %v4811_v26 = vadd.f32 %v4810_v62, %v13774_v28  ;;  %v9003_v33 = vor.u32 %v9898_v17, %v9000_v5 }
 0x3f7   : > { %v4640_v23 = vadd.f32 %v4639_v55, %v4471_v6  ;;  %v7793_v12 = vperm.slane %v7788_v2, %v12185_v14  ;;  %v7779_v45 = vpop.permute.xlu0 %7778  ;;  %8044 = vst [vmem:[%s10477_s24 + $0x910] sm:$0xff] %v7748_v50 }
 0x3f8   : > { %v7784_v46 = vperm.slane %v7779_v45, %v12185_v14  ;;  %v4980_v4 = vadd.f32 %v4979_v22, %v4811_v26  ;;  %v9640_v26 = vld [vmem:[%s10290_s29 + $0x150] sm:$0xf] }
 0x3f9   : > { %v5132_v24 = vmax.f32 %v4640_v23, 0.0  ;;  %8049 = vst [vmem:[%s10477_s24 + $0x938] sm:$0xff] %v7793_v12  ;;  %v9641_v9 = vor.u32 %v10023_v60, %v9640_v26 }
 0x3fa   : > { %8048 = vst [vmem:[%s10477_s24 + $0x930] sm:$0xff] %v7784_v46  ;;  %v5135_v23 = vmax.f32 %v4980_v4, 0.0 }
 0x3fb   : > { %v5250_v59 = vpack.c.bf16 %v5133_v18, %v5132_v24  ;;  %6314 = vmatpush.bf16.msrb.mxu3 %v9641_v9  ;;  %v13776_v9 = vld [vmem:[#allocation14_spill] sm:$0xff] }
 0x3fc   : > { %v4472_v35 = vpop.f32.mrf.mxu3  ;;  %v7770_v40 = vpop.permute.xlu2 %7769 }
 0x3fd   : > { %5314 = vst [vmem:[%s10477_s24 + $0x450] sm:$0xff] %v5250_v59  ;;  %v4473_v34 = vadd.f32 %v4472_v35, %v13774_v28  ;;  %v4641_v25 = vpop.f32.mrf.mxu2  ;;  %v4813_v15 = vpop.f32.mrf.mxu0  ;;  %v7775_v62 = vperm.slane %v7770_v40, %v12185_v14 }
 0x3fe   : > { %v7815_v0 = vpop.permute.xlu1 %7814  ;;  %v4814_v6 = vadd.f32 %v4813_v15, %v11445_v3  ;;  %v4982_v55 = vpop.f32.mrf.mxu1 }
 0x3ff   : > { %v4642_v11 = vadd.f32 %v4641_v25, %v4473_v34  ;;  %v7820_v47 = vperm.slane %v7815_v0, %v12185_v14  ;;  %v7806_v2 = vpop.permute.xlu0 %7805  ;;  %8047 = vst [vmem:[%s10477_s24 + $0x928] sm:$0xff] %v7775_v62  ;;  %v9006_v0 = vld [vmem:[%s13577_s3 + $0x2f0] sm:$0xf]  ;;  %v9008_v62 = vld [vmem:[%s13577_s3 + $0x2f8] sm:$0xf0] }
 0x400   : > { %4852 = vmatmul.bf16.gmra.mxu0 %v8999_v41  ;;  %v7811_v18 = vperm.slane %v7806_v2, %v12185_v14  ;;  %v4983_v12 = vadd.f32 %v4982_v55, %v4814_v6  ;;  %v9900_v55 = vld [vmem:[%s13577_s3 + $0x2f4] sm:$0xf] }
 0x401   : > { %v5134_v22 = vmax.f32 %v4642_v11, 0.0  ;;  %4514 = vmatmul.bf16.gmra.mxu3 %v8999_v41  ;;  %9258 = vmatmul.msk.bf16.gmra.mxu1 %vm931_vm0, %v9003_v33  ;;  %8052 = vst [vmem:[%s10477_s24 + $0x950] sm:$0xff] %v7820_v47  ;;  %v9901_v11 = vld [vmem:[%s13577_s3 + $0x2f4] sm:$0xf0] }
 0x402   : > { %9226 = vmatmul.msk.bf16.gmra.mxu2 %vm931_vm0, %v9003_v33  ;;  %8051 = vst [vmem:[%s10477_s24 + $0x948] sm:$0xff] %v7811_v18  ;;  %v5137_v5 = vmax.f32 %v4983_v12, 0.0  ;;  %v13775_v33 = vld [vmem:[#allocation15_spill] sm:$0xff]  ;;  %v9007_v2 = vor.u32 %v9901_v11, %v9006_v0 }
 0x403   : > { %v5251_v50 = vpack.c.bf16 %v5135_v23, %v5134_v22  ;;  %v10022_v12 = vld [vmem:[%s10290_s29 + $0x154] sm:$0xf] }
 0x404   : > { %v4475_v45 = vpop.f32.mrf.mxu3  ;;  %v7797_v59 = vpop.permute.xlu2 %7796 }
 0x405   : > { %5315 = vst [vmem:[%s10477_s24 + $0x458] sm:$0xff] %v5251_v50  ;;  %v4476_v46 = vadd.f32 %v4475_v45, %v11445_v3  ;;  %v4644_v24 = vpop.f32.mrf.mxu2  ;;  %v4815_v28 = vpop.f32.mrf.mxu0  ;;  %v7802_v4 = vperm.slane %v7797_v59, %v12185_v14  ;;  %v9642_v45 = vld [vmem:[%s10290_s29 + $0x158] sm:$0xf0] }
 0x406   : > { %v7842_v17 = vpop.permute.xlu1 %7841  ;;  %v4984_v41 = vpop.f32.mrf.mxu1  ;;  %v4816_v40 = vadd.f32 %v4815_v28, %v13775_v33 }
 0x407   : > { %v4645_v35 = vadd.f32 %v4644_v24, %v4476_v46  ;;  %v7847_v34 = vperm.slane %v7842_v17, %v12185_v14  ;;  %v7833_v25 = vpop.permute.xlu0 %7832  ;;  %8050 = vst [vmem:[%s10477_s24 + $0x940] sm:$0xff] %v7802_v4  ;;  %v9011_v46 = vor.u32 %v9900_v55, %v9008_v62  ;;  %v9645_v24 = vor.u32 %v10022_v12, %v9642_v45 }
 0x408   : > { %v7838_v3 = vperm.slane %v7833_v25, %v12185_v14  ;;  %v4985_v18 = vadd.f32 %v4984_v41, %v4816_v40 }
 0x409   : > { %v5136_v15 = vmax.f32 %v4645_v35, 0.0  ;;  %8055 = vst [vmem:[%s10477_s24 + $0x968] sm:$0xff] %v7847_v34  ;;  %6652 = vmatpush.bf16.msrb.mxu0 %v9645_v24  ;;  %v9903_v24 = vld [vmem:[%s13577_s3 + $0x304] sm:$0xf0] }
 0x40a   : > { %8054 = vst [vmem:[%s10477_s24 + $0x960] sm:$0xff] %v7838_v3  ;;  %v5139_v34 = vmax.f32 %v4985_v18, 0.0 }
 0x40b   : > { %v5252_v6 = vpack.c.bf16 %v5137_v5, %v5136_v15 }
 0x40c   : > { %v4477_v47 = vpop.f32.mrf.mxu3  ;;  %v7824_v28 = vpop.permute.xlu2 %7823 }
 0x40d   : > { %5316 = vst [vmem:[%s10477_s24 + $0x460] sm:$0xff] %v5252_v6  ;;  %v4478_v23 = vadd.f32 %v4477_v47, %v13775_v33  ;;  %v4646_v22 = vpop.f32.mrf.mxu2  ;;  %v4818_v50 = vpop.f32.mrf.mxu0  ;;  %v7829_v5 = vperm.slane %v7824_v28, %v12185_v14 }
 0x40e   : > { %v7869_v26 = vpop.permute.xlu1 %7868  ;;  %v4819_v59 = vadd.f32 %v4818_v50, %v13776_v9  ;;  %v4987_v17 = vpop.f32.mrf.mxu1 }
 0x40f   : > { %v4647_v60 = vadd.f32 %v4646_v22, %v4478_v23  ;;  %v7874_v35 = vperm.slane %v7869_v26, %v12185_v14  ;;  %v7860_v41 = vpop.permute.xlu0 %7859  ;;  %8053 = vst [vmem:[%s10477_s24 + $0x958] sm:$0xff] %v7829_v5  ;;  %v9902_v26 = vld [vmem:[%s13577_s3 + $0x304] sm:$0xf] }
 0x410   : > { %4857 = vmatmul.bf16.gmra.mxu0 %v9007_v2  ;;  %v7865_v4 = vperm.slane %v7860_v41, %v12185_v14  ;;  %v4988_v15 = vadd.f32 %v4987_v17, %v4819_v59 }
 0x411   : > { %v5138_v25 = vmax.f32 %v4647_v60, 0.0  ;;  %4519 = vmatmul.bf16.gmra.mxu3 %v9007_v2  ;;  %9259 = vmatmul.msk.bf16.gmra.mxu1 %vm931_vm0, %v9011_v46  ;;  %8058 = vst [vmem:[%s10477_s24 + $0x980] sm:$0xff] %v7874_v35  ;;  %v9016_v60 = vld [vmem:[%s13577_s3 + $0x308] sm:$0xf0] }
 0x412   : > { %9227 = vmatmul.msk.bf16.gmra.mxu2 %vm931_vm0, %v9011_v46  ;;  %8057 = vst [vmem:[%s10477_s24 + $0x978] sm:$0xff] %v7865_v4  ;;  %v5141_v62 = vmax.f32 %v4988_v15, 0.0  ;;  %v9014_v46 = vld [vmem:[%s13577_s3 + $0x300] sm:$0xf]  ;;  %v9019_v4 = vor.u32 %v9902_v26, %v9016_v60 }
 0x413   : > { %v5253_v3 = vpack.c.bf16 %v5139_v34, %v5138_v25  ;;  %v9015_v59 = vor.u32 %v9903_v24, %v9014_v46  ;;  %v13777_v15 = vld [vmem:[#allocation17_spill] sm:$0xff] }
 0x414   : > { %v4480_v33 = vpop.f32.mrf.mxu3  ;;  %v7851_v6 = vpop.permute.xlu2 %7850 }
 0x415   : > { %5317 = vst [vmem:[%s10477_s24 + $0x468] sm:$0xff] %v5253_v3  ;;  %v4481_v40 = vadd.f32 %v4480_v33, %v13776_v9  ;;  %v4649_v0 = vpop.f32.mrf.mxu2  ;;  %v4820_v11 = vpop.f32.mrf.mxu0  ;;  %v7856_v18 = vperm.slane %v7851_v6, %v12185_v14 }
 0x416   : > { %v7896_v55 = vpop.permute.xlu1 %7895  ;;  %v4989_v2 = vpop.f32.mrf.mxu1  ;;  %v4821_v45 = vadd.f32 %v4820_v11, %v11469_v53 }
 0x417   : > { %v4650_v47 = vadd.f32 %v4649_v0, %v4481_v40  ;;  %v7901_v23 = vperm.slane %v7896_v55, %v12185_v14  ;;  %v7887_v22 = vpop.permute.xlu0 %7886  ;;  %8056 = vst [vmem:[%s10477_s24 + $0x970] sm:$0xff] %v7856_v18 }
 0x418   : > { %v7892_v50 = vperm.slane %v7887_v22, %v12185_v14  ;;  %v4990_v17 = vadd.f32 %v4989_v2, %v4821_v45 }
 0x419   : > { %v5140_v12 = vmax.f32 %v4650_v47, 0.0  ;;  %8061 = vst [vmem:[%s10477_s24 + $0x998] sm:$0xff] %v7901_v23 }
 0x41a   : > { %8060 = vst [vmem:[%s10477_s24 + $0x990] sm:$0xff] %v7892_v50  ;;  %v5143_v55 = vmax.f32 %v4990_v17, 0.0 }
 0x41b   : > { %v5254_v28 = vpack.c.bf16 %v5141_v62, %v5140_v12 }
 0x41c   : > { %v4482_v9 = vpop.f32.mrf.mxu3  ;;  %v7878_v34 = vpop.permute.xlu2 %7877 }
 0x41d   : > { %5318 = vst [vmem:[%s10477_s24 + $0x470] sm:$0xff] %v5254_v28  ;;  %v4483_v5 = vadd.f32 %v4482_v9, %v11469_v53  ;;  %v4651_v35 = vpop.f32.mrf.mxu2  ;;  %v4823_v41 = vpop.f32.mrf.mxu0  ;;  %v7883_v0 = vperm.slane %v7878_v34, %v12185_v14 }
 0x41e   : > { %v7923_v25 = vpop.permute.xlu1 %7922  ;;  %v4824_v33 = vadd.f32 %v4823_v41, %v13777_v15  ;;  %v4992_v40 = vpop.f32.mrf.mxu1  ;;  %v9022_v41 = vld [vmem:[%s13577_s3 + $0x310] sm:$0xf] }
 0x41f   : > { %v4652_v3 = vadd.f32 %v4651_v35, %v4483_v5  ;;  %v7928_v11 = vperm.slane %v7923_v25, %v12185_v14  ;;  %v7914_v6 = vpop.permute.xlu0 %7913  ;;  %8059 = vst [vmem:[%s10477_s24 + $0x988] sm:$0xff] %v7883_v0  ;;  %v13778_v5 = vld [vmem:[#allocation16_spill] sm:$0xff]  ;;  %v9904_v25 = vld [vmem:[%s13577_s3 + $0x314] sm:$0xf] }
 0x420   : > { %4862 = vmatmul.bf16.gmra.mxu0 %v9015_v59  ;;  %v7919_v53 = vperm.slane %v7914_v6, %v12185_v14  ;;  %v4993_v2 = vadd.f32 %v4992_v40, %v4824_v33 }
 0x421   : > { %v5142_v62 = vmax.f32 %v4652_v3, 0.0  ;;  %4524 = vmatmul.bf16.gmra.mxu3 %v9015_v59  ;;  %9260 = vmatmul.msk.bf16.gmra.mxu1 %vm931_vm0, %v9019_v4  ;;  %8064 = vst [vmem:[%s10477_s24 + $0x9b0] sm:$0xff] %v7928_v11  ;;  %v9024_v3 = vld [vmem:[%s13577_s3 + $0x318] sm:$0xf0] }
 0x422   : > { %9228 = vmatmul.msk.bf16.gmra.mxu2 %vm931_vm0, %v9019_v4  ;;  %8063 = vst [vmem:[%s10477_s24 + $0x9a8] sm:$0xff] %v7919_v53  ;;  %v5145_v46 = vmax.f32 %v4993_v2, 0.0  ;;  %v9905_v4 = vld [vmem:[%s13577_s3 + $0x314] sm:$0xf0]  ;;  %v9027_v53 = vor.u32 %v9904_v25, %v9024_v3 }
 0x423   : > { %v5255_v47 = vpack.c.bf16 %v5143_v55, %v5142_v62  ;;  %v9023_v33 = vor.u32 %v9905_v4, %v9022_v41 }
 0x424   : > { %v4485_v18 = vpop.f32.mrf.mxu3  ;;  %v7905_v12 = vpop.permute.xlu2 %7904 }
 0x425   : > { %5319 = vst [vmem:[%s10477_s24 + $0x478] sm:$0xff] %v5255_v47  ;;  %v4486_v23 = vadd.f32 %v4485_v18, %v13777_v15  ;;  %v4654_v22 = vpop.f32.mrf.mxu2  ;;  %v4825_v50 = vpop.f32.mrf.mxu0  ;;  %v7910_v26 = vperm.slane %v7905_v12, %v12185_v14 }
 0x426   : > { %v7950_v45 = vpop.permute.xlu1 %7949  ;;  %v4994_v28 = vpop.f32.mrf.mxu1  ;;  %v4826_v35 = vadd.f32 %v4825_v50, %v13778_v5 }
 0x427   : > { %v4655_v24 = vadd.f32 %v4654_v22, %v4486_v23  ;;  %v7955_v60 = vperm.slane %v7950_v45, %v12185_v14  ;;  %v7941_v9 = vpop.permute.xlu0 %7940  ;;  %8062 = vst [vmem:[%s10477_s24 + $0x9a0] sm:$0xff] %v7910_v26 }
 0x428   : > { %v7946_v59 = vperm.slane %v7941_v9, %v12185_v14  ;;  %v4995_v40 = vadd.f32 %v4994_v28, %v4826_v35 }
 0x429   : > { %v5144_v17 = vmax.f32 %v4655_v24, 0.0  ;;  %8067 = vst [vmem:[%s10477_s24 + $0x9c8] sm:$0xff] %v7955_v60 }
 0x42a   : > { %8066 = vst [vmem:[%s10477_s24 + $0x9c0] sm:$0xff] %v7946_v59  ;;  %v5147_v45 = vmax.f32 %v4995_v40, 0.0 }
 0x42b   : > { %v5256_v34 = vpack.c.bf16 %v5145_v46, %v5144_v17 }
 0x42c   : > { %v4487_v15 = vpop.f32.mrf.mxu3  ;;  %v7932_v55 = vpop.permute.xlu2 %7931 }
 0x42d   : > { %5320 = vst [vmem:[%s10477_s24 + $0x480] sm:$0xff] %v5256_v34  ;;  %v4488_v0 = vadd.f32 %v4487_v15, %v13778_v5  ;;  %v4656_v11 = vpop.f32.mrf.mxu2  ;;  %v4828_v6 = vpop.f32.mrf.mxu0  ;;  %v7937_v23 = vperm.slane %v7932_v55, %v12185_v14  ;;  %v9032_v55 = vld [vmem:[%s13577_s3 + $0x328] sm:$0xf0] }
 0x42e   : > { %v7977_v62 = vpop.permute.xlu1 %7976  ;;  %v4829_v2 = vadd.f32 %v4828_v6, %v11483_v21  ;;  %v4997_v18 = vpop.f32.mrf.mxu1 }
 0x42f   : > { %v4657_v47 = vadd.f32 %v4656_v11, %v4488_v0  ;;  %v7982_v22 = vperm.slane %v7977_v62, %v12185_v14  ;;  %v7968_v50 = vpop.permute.xlu0 %7967  ;;  %8065 = vst [vmem:[%s10477_s24 + $0x9b8] sm:$0xff] %v7937_v23  ;;  %v9030_v0 = vld [vmem:[%s13577_s3 + $0x320] sm:$0xf]  ;;  %v9907_v11 = vld [vmem:[%s13577_s3 + $0x324] sm:$0xf0] }
 0x430   : > { %4867 = vmatmul.bf16.gmra.mxu0 %v9023_v33  ;;  %v7973_v12 = vperm.slane %v7968_v50, %v12185_v14  ;;  %v4998_v28 = vadd.f32 %v4997_v18, %v4829_v2 }
 0x431   : > { %v5146_v46 = vmax.f32 %v4657_v47, 0.0  ;;  %4529 = vmatmul.bf16.gmra.mxu3 %v9023_v33  ;;  %9261 = vmatmul.msk.bf16.gmra.mxu1 %vm931_vm0, %v9027_v53  ;;  %8070 = vst [vmem:[%s10477_s24 + $0x9e0] sm:$0xff] %v7982_v22  ;;  %v9031_v47 = vor.u32 %v9907_v11, %v9030_v0  ;;  %v9038_v0 = vld [vmem:[%s13577_s3 + $0x330] sm:$0xf]  ;;  %v9909_v11 = vld [vmem:[%s13577_s3 + $0x334] sm:$0xf0] }
 0x432   : > { %9229 = vmatmul.msk.bf16.gmra.mxu2 %vm931_vm0, %v9027_v53  ;;  %8069 = vst [vmem:[%s10477_s24 + $0x9d8] sm:$0xff] %v7973_v12  ;;  %v5149_v35 = vmax.f32 %v4998_v28, 0.0  ;;  %v9906_v53 = vld [vmem:[%s13577_s3 + $0x324] sm:$0xf] }
 0x433   : > { %v5257_v24 = vpack.c.bf16 %v5147_v45, %v5146_v46  ;;  %v9035_v50 = vor.u32 %v9906_v53, %v9032_v55  ;;  %v13780_v46 = vld [vmem:[#allocation18_spill] sm:$0xff]  ;;  %v9908_v53 = vld [vmem:[%s13577_s3 + $0x334] sm:$0xf]  ;;  %v9040_v55 = vld [vmem:[%s13577_s3 + $0x338] sm:$0xf0] }
 0x434   : > { %v4490_v26 = vpop.f32.mrf.mxu3  ;;  %v7959_v17 = vpop.permute.xlu2 %7958 }
 0x435   : > { %5321 = vst [vmem:[%s10477_s24 + $0x488] sm:$0xff] %v5257_v24  ;;  %v4491_v60 = vadd.f32 %v4490_v26, %v11483_v21  ;;  %v4659_v9 = vpop.f32.mrf.mxu2  ;;  %v4830_v59 = vpop.f32.mrf.mxu0  ;;  %v7964_v34 = vperm.slane %v7959_v17, %v12185_v14  ;;  %v13779_v21 = vld [vmem:[#allocation19_spill] sm:$0xff] }
 0x436   : > { %v8004_v5 = vpop.permute.xlu1 %8003  ;;  %v4999_v4 = vpop.f32.mrf.mxu1  ;;  %v4831_v40 = vadd.f32 %v4830_v59, %v13779_v21 }
 0x437   : > { %v4660_v41 = vadd.f32 %v4659_v9, %v4491_v60  ;;  %v8009_v25 = vperm.slane %v8004_v5, %v12185_v14  ;;  %v7995_v3 = vpop.permute.xlu0 %7994  ;;  %8068 = vst [vmem:[%s10477_s24 + $0x9d0] sm:$0xff] %v7964_v34  ;;  %v9632_v34 = vld [vmem:[%s10290_s29 + $0x140] sm:$0xf] }
 0x438   : > { %v8000_v15 = vperm.slane %v7995_v3, %v12185_v14  ;;  %v5000_v2 = vadd.f32 %v4999_v4, %v4831_v40 }
 0x439   : > { %v5148_v33 = vmax.f32 %v4660_v41, 0.0  ;;  %8073 = vst [vmem:[%s10477_s24 + $0x9f8] sm:$0xff] %v8009_v25 }
 0x43a   : > { %8072 = vst [vmem:[%s10477_s24 + $0x9f0] sm:$0xff] %v8000_v15  ;;  %v5151_v60 = vmax.f32 %v5000_v2, 0.0 }
 0x43b   : > { %v5258_v6 = vpack.c.bf16 %v5149_v35, %v5148_v33 }
 0x43c   : > { %v4492_v62 = vpop.f32.mrf.mxu3  ;;  %v7986_v12 = vpop.permute.xlu2 %7985 }
 0x43d   : > { %5322 = vst [vmem:[%s10477_s24 + $0x490] sm:$0xff] %v5258_v6  ;;  %v4493_v18 = vadd.f32 %v4492_v62, %v13779_v21  ;;  %v4661_v23 = vpop.f32.mrf.mxu2  ;;  %v4833_v22 = vpop.f32.mrf.mxu0  ;;  %v7991_v26 = vperm.slane %v7986_v12, %v12185_v14  ;;  %v10021_v14 = vld [vmem:[%s10290_s29 + $0x144] sm:$0xf0]  ;;  %v9634_v12 = vld [vmem:[%s10290_s29 + $0x148] sm:$0xf0] }
 0x43e   : > { %v4834_v24 = vadd.f32 %v4833_v22, %v13780_v46  ;;  %v5002_v28 = vpop.f32.mrf.mxu1  ;;  %v9633_v25 = vor.u32 %v10021_v14, %v9632_v34 }
 0x43f   : > { %v4662_v45 = vadd.f32 %v4661_v23, %v4493_v18  ;;  %8071 = vst [vmem:[%s10477_s24 + $0x9e8] sm:$0xff] %v7991_v26 }
 0x440   : > { %4872 = vmatmul.bf16.gmra.mxu0 %v9031_v47  ;;  %v5003_v17 = vadd.f32 %v5002_v28, %v4834_v24  ;;  %6315 = vmatpush.bf16.msrb.mxu3 %v9633_v25 }
 0x441   : > { %v5150_v9 = vmax.f32 %v4662_v45, 0.0  ;;  %4534 = vmatmul.bf16.gmra.mxu3 %v9031_v47  ;;  %9262 = vmatmul.msk.bf16.gmra.mxu1 %vm931_vm0, %v9035_v50  ;;  %v9039_v47 = vor.u32 %v9909_v11, %v9038_v0  ;;  %v9043_v45 = vor.u32 %v9908_v53, %v9040_v55  ;;  %v9910_v11 = vld [vmem:[%s13577_s3 + $0x344] sm:$0xf] }
 0x442   : > { %9230 = vmatmul.msk.bf16.gmra.mxu2 %vm931_vm0, %v9035_v50  ;;  %v5153_v3 = vmax.f32 %v5003_v17, 0.0  ;;  %v10020_v50 = vld [vmem:[%s10290_s29 + $0x144] sm:$0xf] }
 0x443   : > { %v5259_v59 = vpack.c.bf16 %v5151_v60, %v5150_v9  ;;  %v13781_v9 = vld [vmem:[#allocation21_spill] sm:$0xff] }
 0x444   : > { %v4495_v5 = vpop.f32.mrf.mxu3 }
 0x445   : > { %5323 = vst [vmem:[%s10477_s24 + $0x498] sm:$0xff] %v5259_v59  ;;  %v4496_v35 = vadd.f32 %v4495_v5, %v13780_v46  ;;  %v4664_v41 = vpop.f32.mrf.mxu2  ;;  %v4835_v4 = vpop.f32.mrf.mxu0  ;;  %v9637_v46 = vor.u32 %v10020_v50, %v9634_v12 }
 0x446   : > { %v5004_v33 = vpop.f32.mrf.mxu1  ;;  %v4836_v40 = vadd.f32 %v4835_v4, %v11507_v7 }
 0x447   : > { %v4665_v15 = vadd.f32 %v4664_v41, %v4496_v35  ;;  %6653 = vmatpush.bf16.msrb.mxu0 %v9637_v46  ;;  %v13783_v46 = vld [vmem:[#allocation24_spill] sm:$0xff] }
 0x448   : > { %v5005_v2 = vadd.f32 %v5004_v33, %v4836_v40  ;;  %v9911_v40 = vld [vmem:[%s13577_s3 + $0x344] sm:$0xf0] }
 0x449   : > { %v5152_v21 = vmax.f32 %v4665_v15, 0.0  ;;  %v13782_v15 = vld [vmem:[#allocation20_spill] sm:$0xff] }
 0x44a   : > { %v5155_v26 = vmax.f32 %v5005_v2, 0.0 }
 0x44b   : > { %v5260_v6 = vpack.c.bf16 %v5153_v3, %v5152_v21  ;;  %v9046_v21 = vld [vmem:[%s13577_s3 + $0x340] sm:$0xf] }
 0x44c   : > { %v4497_v62 = vpop.f32.mrf.mxu3  ;;  %v9047_v55 = vor.u32 %v9911_v40, %v9046_v21 }
 0x44d   : > { %5324 = vst [vmem:[%s10477_s24 + $0x4a0] sm:$0xff] %v5260_v6  ;;  %v4498_v18 = vadd.f32 %v4497_v62, %v11507_v7  ;;  %v4666_v23 = vpop.f32.mrf.mxu2  ;;  %v4838_v22 = vpop.f32.mrf.mxu0  ;;  %v9048_v6 = vld [vmem:[%s13577_s3 + $0x348] sm:$0xf0] }
 0x44e   : > { %v5007_v28 = vpop.f32.mrf.mxu1  ;;  %v4839_v59 = vadd.f32 %v4838_v22, %v13781_v9 }
 0x44f   : > { %v4667_v24 = vadd.f32 %v4666_v23, %v4498_v18  ;;  %v9051_v23 = vor.u32 %v9910_v11, %v9048_v6 }
 0x450   : > { %4877 = vmatmul.bf16.gmra.mxu0 %v9039_v47  ;;  %v5008_v5 = vadd.f32 %v5007_v28, %v4839_v59 }
 0x451   : > { %v5154_v60 = vmax.f32 %v4667_v24, 0.0  ;;  %4539 = vmatmul.bf16.gmra.mxu3 %v9039_v47  ;;  %9263 = vmatmul.msk.bf16.gmra.mxu1 %vm931_vm0, %v9043_v45 }
 0x452   : > { %9231 = vmatmul.msk.bf16.gmra.mxu2 %vm931_vm0, %v9043_v45  ;;  %v5157_v25 = vmax.f32 %v5008_v5, 0.0 }
 0x453   : > { %v5261_v7 = vpack.c.bf16 %v5155_v26, %v5154_v60 }
 0x454   : > { %v4500_v17 = vpop.f32.mrf.mxu3 }
 0x455   : > { %5325 = vst [vmem:[%s10477_s24 + $0x4a8] sm:$0xff] %v5261_v7  ;;  %v4501_v35 = vadd.f32 %v4500_v17, %v13781_v9  ;;  %v4669_v41 = vpop.f32.mrf.mxu2  ;;  %v4840_v4 = vpop.f32.mrf.mxu0 }
 0x456   : > { %v5009_v14 = vpop.f32.mrf.mxu1  ;;  %v4841_v33 = vadd.f32 %v4840_v4, %v13782_v15  ;;  %v13784_v4 = vld [vmem:[#allocation23_spill] sm:$0xff] }
 0x457   : > { %v4670_v34 = vadd.f32 %v4669_v41, %v4501_v35 }
 0x458   : > { %v5010_v62 = vadd.f32 %v5009_v14, %v4841_v33  ;;  %v9054_v14 = vld [vmem:[%s13577_s3 + $0x350] sm:$0xf]  ;;  %v9056_v33 = vld [vmem:[%s13577_s3 + $0x358] sm:$0xf0] }
 0x459   : > { %v5156_v3 = vmax.f32 %v4670_v34, 0.0 }
 0x45a   : > { %v5159_v12 = vmax.f32 %v5010_v62, 0.0 }
 0x45b   : > { %v5262_v0 = vpack.c.bf16 %v5157_v25, %v5156_v3  ;;  %v9913_v25 = vld [vmem:[%s13577_s3 + $0x354] sm:$0xf0] }
 0x45c   : > { %v4502_v53 = vpop.f32.mrf.mxu3  ;;  %v9055_v40 = vor.u32 %v9913_v25, %v9054_v14 }
 0x45d   : > { %5326 = vst [vmem:[%s10477_s24 + $0x4b0] sm:$0xff] %v5262_v0  ;;  %v4503_v47 = vadd.f32 %v4502_v53, %v13782_v15  ;;  %v4671_v2 = vpop.f32.mrf.mxu2  ;;  %v4843_v18 = vpop.f32.mrf.mxu0  ;;  %v9912_v15 = vld [vmem:[%s13577_s3 + $0x354] sm:$0xf] }
 0x45e   : > { %v5012_v50 = vpop.f32.mrf.mxu1  ;;  %v4844_v24 = vadd.f32 %v4843_v18, %v13783_v46 }
 0x45f   : > { %v4672_v22 = vadd.f32 %v4671_v2, %v4503_v47 }
 0x460   : > { %4882 = vmatmul.bf16.gmra.mxu0 %v9047_v55  ;;  %v5013_v60 = vadd.f32 %v5012_v50, %v4844_v24 }
 0x461   : > { %v5158_v45 = vmax.f32 %v4672_v22, 0.0  ;;  %4544 = vmatmul.bf16.gmra.mxu3 %v9047_v55  ;;  %9264 = vmatmul.msk.bf16.gmra.mxu1 %vm931_vm0, %v9051_v23  ;;  %v9059_v55 = vor.u32 %v9912_v15, %v9056_v33 }
 0x462   : > { %9232 = vmatmul.msk.bf16.gmra.mxu2 %vm931_vm0, %v9051_v23  ;;  %v5161_v35 = vmax.f32 %v5013_v60, 0.0  ;;  %v13785_v23 = vld [vmem:[#allocation22_spill] sm:$0xff] }
 0x463   : > { %v5263_v28 = vpack.c.bf16 %v5159_v12, %v5158_v45 }
 0x464   : > { %v4505_v26 = vpop.f32.mrf.mxu3 }
 0x465   : > { %5327 = vst [vmem:[%s10477_s24 + $0x4b8] sm:$0xff] %v5263_v28  ;;  %v4506_v9 = vadd.f32 %v4505_v26, %v13783_v46  ;;  %v4674_v59 = vpop.f32.mrf.mxu2  ;;  %v4845_v7 = vpop.f32.mrf.mxu0 }
 0x466   : > { %v5014_v5 = vpop.f32.mrf.mxu1  ;;  %v4846_v34 = vadd.f32 %v4845_v7, %v13784_v4 }
 0x467   : > { %v4675_v17 = vadd.f32 %v4674_v59, %v4506_v9 }
 0x468   : > { %v5015_v0 = vadd.f32 %v5014_v5, %v4846_v34  ;;  %v9915_v5 = vld [vmem:[%s13577_s3 + $0x364] sm:$0xf0] }
 0x469   : > { %v5160_v41 = vmax.f32 %v4675_v17, 0.0  ;;  %v9062_v17 = vld [vmem:[%s13577_s3 + $0x360] sm:$0xf] }
 0x46a   : > { %v5163_v2 = vmax.f32 %v5015_v0, 0.0  ;;  %v9063_v14 = vor.u32 %v9915_v5, %v9062_v17  ;;  %v9916_v17 = vld [vmem:[%s13577_s3 + $0x374] sm:$0xf]  ;;  %v9072_v5 = vld [vmem:[%s13577_s3 + $0x378] sm:$0xf0] }
 0x46b   : > { %v5264_v3 = vpack.c.bf16 %v5161_v35, %v5160_v41  ;;  %v9914_v41 = vld [vmem:[%s13577_s3 + $0x364] sm:$0xf] }
 0x46c   : > { %v4507_v21 = vpop.f32.mrf.mxu3 }
 0x46d   : > { %5328 = vst [vmem:[%s10477_s24 + $0x4c0] sm:$0xff] %v5264_v3  ;;  %v4508_v11 = vadd.f32 %v4507_v21, %v13784_v4  ;;  %v4676_v6 = vpop.f32.mrf.mxu2  ;;  %v4848_v53 = vpop.f32.mrf.mxu0  ;;  %v9064_v4 = vld [vmem:[%s13577_s3 + $0x368] sm:$0xf0] }
 0x46e   : > { %v5017_v47 = vpop.f32.mrf.mxu1  ;;  %v4849_v22 = vadd.f32 %v4848_v53, %v13785_v23  ;;  %v9067_v21 = vor.u32 %v9914_v41, %v9064_v4  ;;  %v13786_v53 = vld [vmem:[#allocation26_spill] sm:$0xff] }
 0x46f   : > { %v4677_v62 = vadd.f32 %v4676_v6, %v4508_v11 }
 0x470   : > { %4887 = vmatmul.bf16.gmra.mxu0 %v9055_v40  ;;  %v5018_v45 = vadd.f32 %v5017_v47, %v4849_v22  ;;  %v9624_v22 = vld [vmem:[%s10290_s29 + $0x130] sm:$0xf] }
 0x471   : > { %v5162_v18 = vmax.f32 %v4677_v62, 0.0  ;;  %4549 = vmatmul.bf16.gmra.mxu3 %v9055_v40  ;;  %9265 = vmatmul.msk.bf16.gmra.mxu1 %vm931_vm0, %v9059_v55 }
 0x472   : > { %9233 = vmatmul.msk.bf16.gmra.mxu2 %vm931_vm0, %v9059_v55  ;;  %v5165_v9 = vmax.f32 %v5018_v45, 0.0 }
 0x473   : > { %v5265_v50 = vpack.c.bf16 %v5163_v2, %v5162_v18 }
 0x474   : > { %v4510_v12 = vpop.f32.mrf.mxu3 }
 0x475   : > { %5329 = vst [vmem:[%s10477_s24 + $0x4c8] sm:$0xff] %v5265_v50  ;;  %v4511_v46 = vadd.f32 %v4510_v12, %v13785_v23  ;;  %v4679_v24 = vpop.f32.mrf.mxu2  ;;  %v4850_v28 = vpop.f32.mrf.mxu0  ;;  %v10019_v50 = vld [vmem:[%s10290_s29 + $0x134] sm:$0xf0] }
 0x476   : > { %v5019_v60 = vpop.f32.mrf.mxu1  ;;  %v4851_v7 = vadd.f32 %v4850_v28, %v11549_v20  ;;  %v9625_v12 = vor.u32 %v10019_v50, %v9624_v22 }
 0x477   : > { %v4680_v26 = vadd.f32 %v4679_v24, %v4511_v46 }
 0x478   : > { %v5020_v25 = vadd.f32 %v5019_v60, %v4851_v7  ;;  %6316 = vmatpush.bf16.msrb.mxu3 %v9625_v12 }
 0x479   : > { %v5164_v59 = vmax.f32 %v4680_v26, 0.0  ;;  %v13787_v26 = vld [vmem:[#allocation25_spill] sm:$0xff] }
 0x47a   : > { %v5167_v11 = vmax.f32 %v5020_v25, 0.0 }
 0x47b   : > { %v5266_v35 = vpack.c.bf16 %v5165_v9, %v5164_v59  ;;  %v9070_v9 = vld [vmem:[%s13577_s3 + $0x370] sm:$0xf]  ;;  %v9917_v59 = vld [vmem:[%s13577_s3 + $0x374] sm:$0xf0] }
 0x47c   : > { %v4512_v34 = vpop.f32.mrf.mxu3  ;;  %v9071_v41 = vor.u32 %v9917_v59, %v9070_v9 }
 0x47d   : > { %5330 = vst [vmem:[%s10477_s24 + $0x4d0] sm:$0xff] %v5266_v35  ;;  %v4513_v3 = vadd.f32 %v4512_v34, %v11549_v20  ;;  %v4681_v15 = vpop.f32.mrf.mxu2  ;;  %v4853_v33 = vpop.f32.mrf.mxu0 }
 0x47e   : > { %v5022_v0 = vpop.f32.mrf.mxu1  ;;  %v4854_v55 = vadd.f32 %v4853_v33, %v13786_v53  ;;  %v9075_v33 = vor.u32 %v9916_v17, %v9072_v5 }
 0x47f   : > { %v4682_v40 = vadd.f32 %v4681_v15, %v4513_v3  ;;  %v10018_v3 = vld [vmem:[%s10290_s29 + $0x134] sm:$0xf]  ;;  %v9626_v15 = vld [vmem:[%s10290_s29 + $0x138] sm:$0xf0] }
 0x480   : > { %4892 = vmatmul.bf16.gmra.mxu0 %v9063_v14  ;;  %v5023_v20 = vadd.f32 %v5022_v0, %v4854_v55 }
 0x481   : > { %v5166_v6 = vmax.f32 %v4682_v40, 0.0  ;;  %4554 = vmatmul.bf16.gmra.mxu3 %v9063_v14  ;;  %9266 = vmatmul.msk.bf16.gmra.mxu1 %vm931_vm0, %v9067_v21 }
 0x482   : > { %9234 = vmatmul.msk.bf16.gmra.mxu2 %vm931_vm0, %v9067_v21  ;;  %v5169_v24 = vmax.f32 %v5023_v20, 0.0  ;;  %v9629_v21 = vor.u32 %v10018_v3, %v9626_v15 }
 0x483   : > { %v5267_v62 = vpack.c.bf16 %v5167_v11, %v5166_v6 }
 0x484   : > { %v4515_v47 = vpop.f32.mrf.mxu3  ;;  %6654 = vmatpush.bf16.msrb.mxu0 %v9629_v21 }
 0x485   : > { %5331 = vst [vmem:[%s10477_s24 + $0x4d8] sm:$0xff] %v5267_v62  ;;  %v4516_v2 = vadd.f32 %v4515_v47, %v13786_v53  ;;  %v4684_v18 = vpop.f32.mrf.mxu2  ;;  %v4855_v23 = vpop.f32.mrf.mxu0 }
 0x486   : > { %v5024_v46 = vpop.f32.mrf.mxu1  ;;  %v4856_v60 = vadd.f32 %v4855_v23, %v13787_v26 }
 0x487   : > { %v4685_v45 = vadd.f32 %v4684_v18, %v4516_v2 }
 0x488   : > { %v5025_v4 = vadd.f32 %v5024_v46, %v4856_v60  ;;  %v9078_v46 = vld [vmem:[%s13577_s3 + $0x380] sm:$0xf] }
 0x489   : > { %v5168_v28 = vmax.f32 %v4685_v45, 0.0 }
 0x48a   : > { %v5171_v11 = vmax.f32 %v5025_v4, 0.0 }
 0x48b   : > { %v5268_v7 = vpack.c.bf16 %v5169_v24, %v5168_v28  ;;  %v9919_v24 = vld [vmem:[%s13577_s3 + $0x384] sm:$0xf0] }
 0x48c   : > { %v4517_v35 = vpop.f32.mrf.mxu3  ;;  %v9079_v9 = vor.u32 %v9919_v24, %v9078_v46 }
 0x48d   : > { %5332 = vst [vmem:[%s10477_s24 + $0x4e0] sm:$0xff] %v5268_v7  ;;  %v4518_v34 = vadd.f32 %v4517_v35, %v13787_v26  ;;  %v4686_v14 = vpop.f32.mrf.mxu2  ;;  %v4858_v25 = vpop.f32.mrf.mxu0  ;;  %v9080_v26 = vld [vmem:[%s13577_s3 + $0x388] sm:$0xf0] }
 0x48e   : > { %v5027_v0 = vpop.f32.mrf.mxu1  ;;  %v4859_v53 = vadd.f32 %v4858_v25, %v11563_v8  ;;  %v13788_v25 = vld [vmem:[#allocation27_spill] sm:$0xff] }
 0x48f   : > { %v4687_v40 = vadd.f32 %v4686_v14, %v4518_v34 }
 0x490   : > { %4897 = vmatmul.bf16.gmra.mxu0 %v9071_v41  ;;  %v5028_v47 = vadd.f32 %v5027_v0, %v4859_v53 }
 0x491   : > { %v5170_v6 = vmax.f32 %v4687_v40, 0.0  ;;  %4559 = vmatmul.bf16.gmra.mxu3 %v9071_v41  ;;  %9267 = vmatmul.msk.bf16.gmra.mxu1 %vm931_vm0, %v9075_v33 }
 0x492   : > { %9235 = vmatmul.msk.bf16.gmra.mxu2 %vm931_vm0, %v9075_v33  ;;  %v5173_v50 = vmax.f32 %v5028_v47, 0.0  ;;  %v9086_v47 = vld [vmem:[%s13577_s3 + $0x390] sm:$0xf] }
 0x493   : > { %v5269_v55 = vpack.c.bf16 %v5171_v11, %v5170_v6 }
 0x494   : > { %v4520_v62 = vpop.f32.mrf.mxu3 }
 0x495   : > { %5333 = vst [vmem:[%s10477_s24 + $0x4e8] sm:$0xff] %v5269_v55  ;;  %v4521_v20 = vadd.f32 %v4520_v62, %v11563_v8  ;;  %v4689_v2 = vpop.f32.mrf.mxu2  ;;  %v4860_v18 = vpop.f32.mrf.mxu0  ;;  %v9918_v8 = vld [vmem:[%s13577_s3 + $0x384] sm:$0xf] }
 0x496   : > { %v5029_v22 = vpop.f32.mrf.mxu1  ;;  %v4861_v45 = vadd.f32 %v4860_v18, %v11553_v1  ;;  %v9083_v35 = vor.u32 %v9918_v8, %v9080_v26  ;;  %v9920_v18 = vld [vmem:[%s13577_s3 + $0x394] sm:$0xf] }
 0x497   : > { %v4690_v23 = vadd.f32 %v4689_v2, %v4521_v20  ;;  %v9921_v20 = vld [vmem:[%s13577_s3 + $0x394] sm:$0xf0] }
 0x498   : > { %v5030_v59 = vadd.f32 %v5029_v22, %v4861_v45 }
 0x499   : > { %v5172_v12 = vmax.f32 %v4690_v23, 0.0  ;;  %v9088_v23 = vld [vmem:[%s13577_s3 + $0x398] sm:$0xf0] }
 0x49a   : > { %v5175_v34 = vmax.f32 %v5030_v59, 0.0  ;;  %v13789_v59 = vld [vmem:[#allocation29_spill] sm:$0xff] }
 0x49b   : > { %v5270_v28 = vpack.c.bf16 %v5173_v50, %v5172_v12  ;;  %v9087_v50 = vor.u32 %v9921_v20, %v9086_v47 }
 0x49c   : > { %v4522_v60 = vpop.f32.mrf.mxu3 }
 0x49d   : > { %5334 = vst [vmem:[%s10477_s24 + $0x4f0] sm:$0xff] %v5270_v28  ;;  %v4523_v7 = vadd.f32 %v4522_v60, %v11553_v1  ;;  %v4691_v17 = vpop.f32.mrf.mxu2  ;;  %v4863_v5 = vpop.f32.mrf.mxu0  ;;  %v9091_v28 = vor.u32 %v9920_v18, %v9088_v23 }
 0x49e   : > { %v5032_v4 = vpop.f32.mrf.mxu1  ;;  %v4864_v3 = vadd.f32 %v4863_v5, %v13788_v25 }
 0x49f   : > { %v4692_v41 = vadd.f32 %v4691_v17, %v4523_v7 }
 0x4a0   : > { %4902 = vmatmul.bf16.gmra.mxu0 %v9079_v9  ;;  %v5033_v21 = vadd.f32 %v5032_v4, %v4864_v3 }
 0x4a1   : > { %v5174_v14 = vmax.f32 %v4692_v41, 0.0  ;;  %4564 = vmatmul.bf16.gmra.mxu3 %v9079_v9  ;;  %9268 = vmatmul.msk.bf16.gmra.mxu1 %vm931_vm0, %v9083_v35 }
 0x4a2   : > { %9236 = vmatmul.msk.bf16.gmra.mxu2 %vm931_vm0, %v9083_v35  ;;  %v5177_v53 = vmax.f32 %v5033_v21, 0.0  ;;  %v9094_v21 = vld [vmem:[%s13577_s3 + $0x3a0] sm:$0xf] }
 0x4a3   : > { %v5271_v15 = vpack.c.bf16 %v5175_v34, %v5174_v14 }
 0x4a4   : > { %v4525_v33 = vpop.f32.mrf.mxu3 }
 0x4a5   : > { %5335 = vst [vmem:[%s10477_s24 + $0x4f8] sm:$0xff] %v5271_v15  ;;  %v4526_v1 = vadd.f32 %v4525_v33, %v13788_v25  ;;  %v4694_v40 = vpop.f32.mrf.mxu2  ;;  %v4865_v0 = vpop.f32.mrf.mxu0  ;;  %v13790_v15 = vld [vmem:[#allocation28_spill] sm:$0xff] }
 0x4a6   : > { %v5034_v6 = vpop.f32.mrf.mxu1  ;;  %v4866_v62 = vadd.f32 %v4865_v0, %v11587_v58  ;;  %v9922_v0 = vld [vmem:[%s13577_s3 + $0x3a4] sm:$0xf] }
 0x4a7   : > { %v4695_v11 = vadd.f32 %v4694_v40, %v4526_v1  ;;  %v9923_v1 = vld [vmem:[%s13577_s3 + $0x3a4] sm:$0xf0] }
 0x4a8   : > { %v5035_v12 = vadd.f32 %v5034_v6, %v4866_v62 }
 0x4a9   : > { %v5176_v55 = vmax.f32 %v4695_v11, 0.0  ;;  %v9096_v11 = vld [vmem:[%s13577_s3 + $0x3a8] sm:$0xf0] }
 0x4aa   : > { %v5179_v60 = vmax.f32 %v5035_v12, 0.0 }
 0x4ab   : > { %v5272_v2 = vpack.c.bf16 %v5177_v53, %v5176_v55  ;;  %v9095_v53 = vor.u32 %v9923_v1, %v9094_v21 }
 0x4ac   : > { %v4527_v22 = vpop.f32.mrf.mxu3 }
 0x4ad   : > { %5336 = vst [vmem:[%s10477_s24 + $0x500] sm:$0xff] %v5272_v2  ;;  %v4528_v45 = vadd.f32 %v4527_v22, %v11587_v58  ;;  %v4696_v46 = vpop.f32.mrf.mxu2  ;;  %v4868_v24 = vpop.f32.mrf.mxu0  ;;  %v9099_v2 = vor.u32 %v9922_v0, %v9096_v11  ;;  %v10016_v0 = vld [vmem:[%s10290_s29 + $0x124] sm:$0xf]  ;;  %v9618_v11 = vld [vmem:[%s10290_s29 + $0x128] sm:$0xf0] }
 0x4ae   : > { %v5037_v26 = vpop.f32.mrf.mxu1  ;;  %v4869_v7 = vadd.f32 %v4868_v24, %v13789_v59 }
 0x4af   : > { %v4697_v8 = vadd.f32 %v4696_v46, %v4528_v45 }
 0x4b0   : > { %4907 = vmatmul.bf16.gmra.mxu0 %v9087_v50  ;;  %v5038_v35 = vadd.f32 %v5037_v26, %v4869_v7 }
 0x4b1   : > { %v5178_v9 = vmax.f32 %v4697_v8, 0.0  ;;  %4569 = vmatmul.bf16.gmra.mxu3 %v9087_v50  ;;  %9269 = vmatmul.msk.bf16.gmra.mxu1 %vm931_vm0, %v9091_v28 }
 0x4b2   : > { %9237 = vmatmul.msk.bf16.gmra.mxu2 %vm931_vm0, %v9091_v28  ;;  %v5181_v25 = vmax.f32 %v5038_v35, 0.0 }
 0x4b3   : > { %v5273_v17 = vpack.c.bf16 %v5179_v60, %v5178_v9  ;;  %v9616_v60 = vld [vmem:[%s10290_s29 + $0x120] sm:$0xf]  ;;  %v10017_v9 = vld [vmem:[%s10290_s29 + $0x124] sm:$0xf0] }
 0x4b4   : > { %v4530_v5 = vpop.f32.mrf.mxu3 }
 0x4b5   : > { %5337 = vst [vmem:[%s10477_s24 + $0x508] sm:$0xff] %v5273_v17  ;;  %v4531_v58 = vadd.f32 %v4530_v5, %v13789_v59  ;;  %v4699_v41 = vpop.f32.mrf.mxu2  ;;  %v4870_v4 = vpop.f32.mrf.mxu0  ;;  %v9617_v59 = vor.u32 %v10017_v9, %v9616_v60  ;;  %v9110_v9 = vld [vmem:[%s13577_s3 + $0x3c0] sm:$0xf] }
 0x4b6   : > { %v5039_v14 = vpop.f32.mrf.mxu1  ;;  %v4871_v33 = vadd.f32 %v4870_v4, %v13790_v15  ;;  %v9102_v4 = vld [vmem:[%s13577_s3 + $0x3b0] sm:$0xf] }
 0x4b7   : > { %v4700_v34 = vadd.f32 %v4699_v41, %v4531_v58  ;;  %6317 = vmatpush.bf16.msrb.mxu3 %v9617_v59  ;;  %v13791_v58 = vld [vmem:[#allocation31_spill] sm:$0xff]  ;;  %v9927_v59 = vld [vmem:[%s13577_s3 + $0x3c4] sm:$0xf0] }
 0x4b8   : > { %v5040_v55 = vadd.f32 %v5039_v14, %v4871_v33  ;;  %v9924_v14 = vld [vmem:[%s13577_s3 + $0x3b4] sm:$0xf] }
 0x4b9   : > { %v5180_v3 = vmax.f32 %v4700_v34, 0.0 }
 0x4ba   : > { %v5183_v22 = vmax.f32 %v5040_v55, 0.0 }
 0x4bb   : > { %v5274_v40 = vpack.c.bf16 %v5181_v25, %v5180_v3  ;;  %v9104_v25 = vld [vmem:[%s13577_s3 + $0x3b8] sm:$0xf0] }
 0x4bc   : > { %v4532_v6 = vpop.f32.mrf.mxu3 }
 0x4bd   : > { %5338 = vst [vmem:[%s10477_s24 + $0x510] sm:$0xff] %v5274_v40  ;;  %v4533_v62 = vadd.f32 %v4532_v6, %v13790_v15  ;;  %v4701_v47 = vpop.f32.mrf.mxu2  ;;  %v4873_v20 = vpop.f32.mrf.mxu0  ;;  %v9107_v6 = vor.u32 %v9924_v14, %v9104_v25 }
 0x4be   : > { %v5042_v23 = vpop.f32.mrf.mxu1  ;;  %v4874_v12 = vadd.f32 %v4873_v20, %v11601_v56 }
 0x4bf   : > { %v4702_v18 = vadd.f32 %v4701_v47, %v4533_v62 }
 0x4c0   : > { %4912 = vmatmul.bf16.gmra.mxu0 %v9095_v53  ;;  %v5043_v24 = vadd.f32 %v5042_v23, %v4874_v12 }
 0x4c1   : > { %v5182_v50 = vmax.f32 %v4702_v18, 0.0  ;;  %4574 = vmatmul.bf16.gmra.mxu3 %v9095_v53  ;;  %9270 = vmatmul.msk.bf16.gmra.mxu1 %vm931_vm0, %v9099_v2  ;;  %v9621_v53 = vor.u32 %v10016_v0, %v9618_v11 }
 0x4c2   : > { %9238 = vmatmul.msk.bf16.gmra.mxu2 %vm931_vm0, %v9099_v2  ;;  %v5185_v5 = vmax.f32 %v5043_v24, 0.0  ;;  %v13792_v2 = vld [vmem:[#allocation30_spill] sm:$0xff] }
 0x4c3   : > { %v5275_v45 = vpack.c.bf16 %v5183_v22, %v5182_v50  ;;  %6655 = vmatpush.bf16.msrb.mxu0 %v9621_v53 }
 0x4c4   : > { %v4535_v46 = vpop.f32.mrf.mxu3 }
 0x4c5   : > { %5339 = vst [vmem:[%s10477_s24 + $0x518] sm:$0xff] %v5275_v45  ;;  %v4536_v28 = vadd.f32 %v4535_v46, %v11601_v56  ;;  %v4704_v8 = vpop.f32.mrf.mxu2  ;;  %v4875_v26 = vpop.f32.mrf.mxu0  ;;  %v9925_v56 = vld [vmem:[%s13577_s3 + $0x3b4] sm:$0xf0] }
 0x4c6   : > { %v5044_v17 = vpop.f32.mrf.mxu1  ;;  %v4876_v41 = vadd.f32 %v4875_v26, %v13791_v58  ;;  %v9103_v15 = vor.u32 %v9925_v56, %v9102_v4 }
 0x4c7   : > { %v4705_v7 = vadd.f32 %v4704_v8, %v4536_v28 }
 0x4c8   : > { %v5045_v33 = vadd.f32 %v5044_v17, %v4876_v41  ;;  %v9926_v17 = vld [vmem:[%s13577_s3 + $0x3c4] sm:$0xf] }
 0x4c9   : > { %v5184_v35 = vmax.f32 %v4705_v7, 0.0 }
 0x4ca   : > { %v5187_v47 = vmax.f32 %v5045_v33, 0.0 }
 0x4cb   : > { %v5276_v34 = vpack.c.bf16 %v5185_v5, %v5184_v35  ;;  %v9112_v5 = vld [vmem:[%s13577_s3 + $0x3c8] sm:$0xf0] }
 0x4cc   : > { %v4537_v3 = vpop.f32.mrf.mxu3  ;;  %v9115_v14 = vor.u32 %v9926_v17, %v9112_v5 }
 0x4cd   : > { %5340 = vst [vmem:[%s10477_s24 + $0x520] sm:$0xff] %v5276_v34  ;;  %v4538_v21 = vadd.f32 %v4537_v3, %v13791_v58  ;;  %v4706_v1 = vpop.f32.mrf.mxu2  ;;  %v4878_v40 = vpop.f32.mrf.mxu0  ;;  %v9111_v58 = vor.u32 %v9927_v59, %v9110_v9 }
 0x4ce   : > { %v5047_v62 = vpop.f32.mrf.mxu1  ;;  %v4879_v18 = vadd.f32 %v4878_v40, %v13792_v2 }
 0x4cf   : > { %v4707_v55 = vadd.f32 %v4706_v1, %v4538_v21  ;;  %v13793_v21 = vld [vmem:[#allocation33_spill] sm:$0xff] }
 0x4d0   : > { %4917 = vmatmul.bf16.gmra.mxu0 %v9103_v15  ;;  %v5048_v50 = vadd.f32 %v5047_v62, %v4879_v18 }
 0x4d1   : > { %v5186_v20 = vmax.f32 %v4707_v55, 0.0  ;;  %4579 = vmatmul.bf16.gmra.mxu3 %v9103_v15  ;;  %9271 = vmatmul.msk.bf16.gmra.mxu1 %vm931_vm0, %v9107_v6 }
 0x4d2   : > { %9239 = vmatmul.msk.bf16.gmra.mxu2 %vm931_vm0, %v9107_v6  ;;  %v5189_v8 = vmax.f32 %v5048_v50, 0.0 }
 0x4d3   : > { %v5277_v23 = vpack.c.bf16 %v5187_v47, %v5186_v20 }
 0x4d4   : > { %v4540_v22 = vpop.f32.mrf.mxu3 }
 0x4d5   : > { %5341 = vst [vmem:[%s10477_s24 + $0x528] sm:$0xff] %v5277_v23  ;;  %v4541_v12 = vadd.f32 %v4540_v22, %v13792_v2  ;;  %v4709_v45 = vpop.f32.mrf.mxu2  ;;  %v4880_v46 = vpop.f32.mrf.mxu0  ;;  %v13794_v2 = vld [vmem:[#allocation32_spill] sm:$0xff]  ;;  %v9118_v23 = vld [vmem:[%s13577_s3 + $0x3d0] sm:$0xf] }
 0x4d6   : > { %v5049_v28 = vpop.f32.mrf.mxu1  ;;  %v4881_v60 = vadd.f32 %v4880_v46, %v11625_v31  ;;  %v9929_v22 = vld [vmem:[%s13577_s3 + $0x3d4] sm:$0xf0] }
 0x4d7   : > { %v4710_v24 = vadd.f32 %v4709_v45, %v4541_v12  ;;  %v9928_v12 = vld [vmem:[%s13577_s3 + $0x3d4] sm:$0xf]  ;;  %v9120_v45 = vld [vmem:[%s13577_s3 + $0x3d8] sm:$0xf0] }
 0x4d8   : > { %v5050_v41 = vadd.f32 %v5049_v28, %v4881_v60  ;;  %v9123_v9 = vor.u32 %v9928_v12, %v9120_v45  ;;  %v13796_v12 = vld [vmem:[#allocation34_spill] sm:$0xff] }
 0x4d9   : > { %v5188_v26 = vmax.f32 %v4710_v24, 0.0  ;;  %v9119_v24 = vor.u32 %v9929_v22, %v9118_v23 }
 0x4da   : > { %v5191_v15 = vmax.f32 %v5050_v41, 0.0 }
 0x4db   : > { %v5278_v7 = vpack.c.bf16 %v5189_v8, %v5188_v26 }
 0x4dc   : > { %v4542_v35 = vpop.f32.mrf.mxu3 }
 0x4dd   : > { %5342 = vst [vmem:[%s10477_s24 + $0x530] sm:$0xff] %v5278_v7  ;;  %v4543_v4 = vadd.f32 %v4542_v35, %v11625_v31  ;;  %v4711_v56 = vpop.f32.mrf.mxu2  ;;  %v4883_v34 = vpop.f32.mrf.mxu0 }
 0x4de   : > { %v5052_v3 = vpop.f32.mrf.mxu1  ;;  %v4884_v1 = vadd.f32 %v4883_v34, %v13793_v21 }
 0x4df   : > { %v4712_v25 = vadd.f32 %v4711_v56, %v4543_v4 }
 0x4e0   : > { %4922 = vmatmul.bf16.gmra.mxu0 %v9111_v58  ;;  %v5053_v11 = vadd.f32 %v5052_v3, %v4884_v1 }
 0x4e1   : > { %v5190_v33 = vmax.f32 %v4712_v25, 0.0  ;;  %4584 = vmatmul.bf16.gmra.mxu3 %v9111_v58  ;;  %9272 = vmatmul.msk.bf16.gmra.mxu1 %vm931_vm0, %v9115_v14 }
 0x4e2   : > { %9240 = vmatmul.msk.bf16.gmra.mxu2 %vm931_vm0, %v9115_v14  ;;  %v5193_v47 = vmax.f32 %v5053_v11, 0.0 }
 0x4e3   : > { %v5279_v40 = vpack.c.bf16 %v5191_v15, %v5190_v33 }
 0x4e4   : > { %v4545_v0 = vpop.f32.mrf.mxu3 }
 0x4e5   : > { %5343 = vst [vmem:[%s10477_s24 + $0x538] sm:$0xff] %v5279_v40  ;;  %v4546_v31 = vadd.f32 %v4545_v0, %v13793_v21  ;;  %v4714_v6 = vpop.f32.mrf.mxu2  ;;  %v4885_v53 = vpop.f32.mrf.mxu0  ;;  %v13795_v21 = vld [vmem:[#allocation35_spill] sm:$0xff]  ;;  %v9126_v40 = vld [vmem:[%s13577_s3 + $0x3e0] sm:$0xf]  ;;  %v9931_v0 = vld [vmem:[%s13577_s3 + $0x3e4] sm:$0xf0] }
 0x4e6   : > { %v5054_v62 = vpop.f32.mrf.mxu1  ;;  %v4886_v18 = vadd.f32 %v4885_v53, %v13794_v2  ;;  %v9127_v53 = vor.u32 %v9931_v0, %v9126_v40 }
 0x4e7   : > { %v4715_v55 = vadd.f32 %v4714_v6, %v4546_v31  ;;  %v9128_v31 = vld [vmem:[%s13577_s3 + $0x3e8] sm:$0xf0] }
 0x4e8   : > { %v5055_v28 = vadd.f32 %v5054_v62, %v4886_v18 }
 0x4e9   : > { %v5192_v20 = vmax.f32 %v4715_v55, 0.0 }
 0x4ea   : > { %v5195_v17 = vmax.f32 %v5055_v28, 0.0 }
 0x4eb   : > { %v5280_v50 = vpack.c.bf16 %v5193_v47, %v5192_v20 }
 0x4ec   : > { %v4547_v46 = vpop.f32.mrf.mxu3 }
 0x4ed   : > { %5344 = vst [vmem:[%s10477_s24 + $0x540] sm:$0xff] %v5280_v50  ;;  %v4548_v8 = vadd.f32 %v4547_v46, %v13794_v2  ;;  %v4716_v26 = vpop.f32.mrf.mxu2  ;;  %v4888_v60 = vpop.f32.mrf.mxu0 }
 0x4ee   : > { %v5057_v7 = vpop.f32.mrf.mxu1  ;;  %v4889_v35 = vadd.f32 %v4888_v60, %v11639_v16 }
 0x4ef   : > { %v4717_v59 = vadd.f32 %v4716_v26, %v4548_v8 }
 0x4f0   : > { %4927 = vmatmul.bf16.gmra.mxu0 %v9119_v24  ;;  %v5058_v4 = vadd.f32 %v5057_v7, %v4889_v35  ;;  %v9134_v35 = vld [vmem:[%s13577_s3 + $0x3f0] sm:$0xf] }
 0x4f1   : > { %v5194_v5 = vmax.f32 %v4717_v59, 0.0  ;;  %4589 = vmatmul.bf16.gmra.mxu3 %v9119_v24  ;;  %9273 = vmatmul.msk.bf16.gmra.mxu1 %vm931_vm0, %v9123_v9 }
 0x4f2   : > { %9241 = vmatmul.msk.bf16.gmra.mxu2 %vm931_vm0, %v9123_v9  ;;  %v5197_v15 = vmax.f32 %v5058_v4, 0.0  ;;  %v9932_v4 = vld [vmem:[%s13577_s3 + $0x3f4] sm:$0xf] }
 0x4f3   : > { %v5281_v58 = vpack.c.bf16 %v5195_v17, %v5194_v5 }
 0x4f4   : > { %v4550_v41 = vpop.f32.mrf.mxu3 }
 0x4f5   : > { %5345 = vst [vmem:[%s10477_s24 + $0x548] sm:$0xff] %v5281_v58  ;;  %v4551_v56 = vadd.f32 %v4550_v41, %v11639_v16  ;;  %v4719_v34 = vpop.f32.mrf.mxu2  ;;  %v4890_v14 = vpop.f32.mrf.mxu0  ;;  %v9930_v16 = vld [vmem:[%s13577_s3 + $0x3e4] sm:$0xf]  ;;  %v9933_v58 = vld [vmem:[%s13577_s3 + $0x3f4] sm:$0xf0] }
 0x4f6   : > { %v5059_v3 = vpop.f32.mrf.mxu1  ;;  %v4891_v1 = vadd.f32 %v4890_v14, %v13795_v21  ;;  %v9131_v2 = vor.u32 %v9930_v16, %v9128_v31  ;;  %v9135_v14 = vor.u32 %v9933_v58, %v9134_v35  ;;  %v13797_v16 = vld [vmem:[#allocation37_spill] sm:$0xff] }
 0x4f7   : > { %v4720_v25 = vadd.f32 %v4719_v34, %v4551_v56  ;;  %v9136_v56 = vld [vmem:[%s13577_s3 + $0x3f8] sm:$0xf0] }
 0x4f8   : > { %v5060_v55 = vadd.f32 %v5059_v3, %v4891_v1 }
 0x4f9   : > { %v5196_v33 = vmax.f32 %v4720_v25, 0.0 }
 0x4fa   : > { %v5199_v22 = vmax.f32 %v5060_v55, 0.0 }
 0x4fb   : > { %v5282_v11 = vpack.c.bf16 %v5197_v15, %v5196_v33 }
 0x4fc   : > { %v4552_v6 = vpop.f32.mrf.mxu3 }
 0x4fd   : > { %5346 = vst [vmem:[%s10477_s24 + $0x550] sm:$0xff] %v5282_v11  ;;  %v4553_v62 = vadd.f32 %v4552_v6, %v13795_v21  ;;  %v4721_v47 = vpop.f32.mrf.mxu2  ;;  %v4893_v20 = vpop.f32.mrf.mxu0  ;;  %v9139_v21 = vor.u32 %v9932_v4, %v9136_v56  ;;  %v13799_v4 = vld [vmem:[#allocation40_spill] sm:$0xff] }
 0x4fe   : > { %v5062_v23 = vpop.f32.mrf.mxu1  ;;  %v4894_v45 = vadd.f32 %v4893_v20, %v13796_v12 }
 0x4ff   : > { %v4722_v18 = vadd.f32 %v4721_v47, %v4553_v62 }
 0x500   : > { %4932 = vmatmul.bf16.gmra.mxu0 %v9127_v53  ;;  %v5063_v28 = vadd.f32 %v5062_v23, %v4894_v45  ;;  %v9953_v45 = vld [vmem:[%s13577_s3 + $0x404] sm:$0xf0] }
 0x501   : > { %v5198_v50 = vmax.f32 %v4722_v18, 0.0  ;;  %4594 = vmatmul.bf16.gmra.mxu3 %v9127_v53  ;;  %9274 = vmatmul.msk.bf16.gmra.mxu1 %vm931_vm0, %v9131_v2 }
 0x502   : > { %9242 = vmatmul.msk.bf16.gmra.mxu2 %vm931_vm0, %v9131_v2  ;;  %v5201_v7 = vmax.f32 %v5063_v28, 0.0  ;;  %v9362_v28 = vld [vmem:[%s13577_s3 + $0x408] sm:$0xf0] }
 0x503   : > { %v5283_v46 = vpack.c.bf16 %v5199_v22, %v5198_v50  ;;  %v13798_v22 = vld [vmem:[#allocation36_spill] sm:$0xff] }
 0x504   : > { %v4555_v24 = vpop.f32.mrf.mxu3 }
 0x505   : > { %5347 = vst [vmem:[%s10477_s24 + $0x558] sm:$0xff] %v5283_v46  ;;  %v4556_v8 = vadd.f32 %v4555_v24, %v13796_v12  ;;  %v4724_v26 = vpop.f32.mrf.mxu2  ;;  %v4895_v60 = vpop.f32.mrf.mxu0  ;;  %v9360_v12 = vld [vmem:[%s13577_s3 + $0x400] sm:$0xf]  ;;  %v9952_v24 = vld [vmem:[%s13577_s3 + $0x404] sm:$0xf] }
 0x506   : > { %v5064_v59 = vpop.f32.mrf.mxu1  ;;  %v4896_v5 = vadd.f32 %v4895_v60, %v11663_v32 }
 0x507   : > { %v4725_v9 = vadd.f32 %v4724_v26, %v4556_v8  ;;  %v9361_v26 = vor.u32 %v9953_v45, %v9360_v12 }
 0x508   : > { %v5065_v25 = vadd.f32 %v5064_v59, %v4896_v5 }
 0x509   : > { %v5200_v17 = vmax.f32 %v4725_v9, 0.0 }
 0x50a   : > { %v5203_v0 = vmax.f32 %v5065_v25, 0.0 }
 0x50b   : > { %v5284_v41 = vpack.c.bf16 %v5201_v7, %v5200_v17  ;;  %v9365_v17 = vor.u32 %v9952_v24, %v9362_v28  ;;  %v13801_v24 = vld [vmem:[#allocation38_spill] sm:$0xff] }
 0x50c   : > { %v4557_v34 = vpop.f32.mrf.mxu3 }
 0x50d   : > { %5348 = vst [vmem:[%s10477_s24 + $0x560] sm:$0xff] %v5284_v41  ;;  %v4558_v3 = vadd.f32 %v4557_v34, %v11663_v32  ;;  %v4726_v15 = vpop.f32.mrf.mxu2  ;;  %v4898_v33 = vpop.f32.mrf.mxu0 }
 0x50e   : > { %v5067_v40 = vpop.f32.mrf.mxu1  ;;  %v4899_v31 = vadd.f32 %v4898_v33, %v13797_v16 }
 0x50f   : > { %v4727_v1 = vadd.f32 %v4726_v15, %v4558_v3 }
 0x510   : > { %4937 = vmatmul.bf16.gmra.mxu0 %v9135_v14  ;;  %v5068_v55 = vadd.f32 %v5067_v40, %v4899_v31  ;;  %v9368_v31 = vld [vmem:[%s13577_s3 + $0x410] sm:$0xf] }
 0x511   : > { %v5202_v11 = vmax.f32 %v4727_v1, 0.0  ;;  %4599 = vmatmul.bf16.gmra.mxu3 %v9135_v14  ;;  %9275 = vmatmul.msk.bf16.gmra.mxu1 %vm931_vm0, %v9139_v21 }
 0x512   : > { %9243 = vmatmul.msk.bf16.gmra.mxu2 %vm931_vm0, %v9139_v21  ;;  %v5205_v18 = vmax.f32 %v5068_v55, 0.0  ;;  %v9954_v55 = vld [vmem:[%s13577_s3 + $0x414] sm:$0xf] }
 0x513   : > { %v5285_v6 = vpack.c.bf16 %v5203_v0, %v5202_v11  ;;  %v13800_v11 = vld [vmem:[#allocation39_spill] sm:$0xff] }
 0x514   : > { %v4560_v53 = vpop.f32.mrf.mxu3 }
 0x515   : > { %5349 = vst [vmem:[%s10477_s24 + $0x568] sm:$0xff] %v5285_v6  ;;  %v4561_v32 = vadd.f32 %v4560_v53, %v13797_v16  ;;  %v4729_v62 = vpop.f32.mrf.mxu2  ;;  %v4900_v47 = vpop.f32.mrf.mxu0  ;;  %v9955_v6 = vld [vmem:[%s13577_s3 + $0x414] sm:$0xf0] }
 0x516   : > { %v5069_v2 = vpop.f32.mrf.mxu1  ;;  %v4901_v50 = vadd.f32 %v4900_v47, %v13798_v22  ;;  %v9369_v47 = vor.u32 %v9955_v6, %v9368_v31 }
 0x517   : > { %v4730_v20 = vadd.f32 %v4729_v62, %v4561_v32  ;;  %v9370_v32 = vld [vmem:[%s13577_s3 + $0x418] sm:$0xf0] }
 0x518   : > { %v5070_v60 = vadd.f32 %v5069_v2, %v4901_v50 }
 0x519   : > { %v5204_v23 = vmax.f32 %v4730_v20, 0.0 }
 0x51a   : > { %v5207_v58 = vmax.f32 %v5070_v60, 0.0 }
 0x51b   : > { %v5286_v46 = vpack.c.bf16 %v5205_v18, %v5204_v23 }
 0x51c   : > { %v4562_v8 = vpop.f32.mrf.mxu3 }
 0x51d   : > { %5350 = vst [vmem:[%s10477_s24 + $0x570] sm:$0xff] %v5286_v46  ;;  %v4563_v9 = vadd.f32 %v4562_v8, %v13798_v22  ;;  %v4731_v59 = vpop.f32.mrf.mxu2  ;;  %v4903_v7 = vpop.f32.mrf.mxu0  ;;  %v9373_v22 = vor.u32 %v9954_v55, %v9370_v32 }
 0x51e   : > { %v5072_v35 = vpop.f32.mrf.mxu1  ;;  %v4904_v56 = vadd.f32 %v4903_v7, %v13799_v4 }
 0x51f   : > { %v4732_v5 = vadd.f32 %v4731_v59, %v4563_v9 }
 0x520   : > { %6656 = vmatmul.bf16.vlgmr.msrb.gmra.mxu0 %v9361_v26  ;;  %v5073_v25 = vadd.f32 %v5072_v35, %v4904_v56  ;;  %v9957_v56 = vld [vmem:[%s13577_s3 + $0x424] sm:$0xf0] }
 0x521   : > { %v5206_v41 = vmax.f32 %v4732_v5, 0.0  ;;  %6318 = vmatmul.bf16.vlgmr.msrb.gmra.mxu3 %v9361_v26  ;;  %9718 = vmatmul.msk.bf16.vlgmr.msrb.gmra.mxu1 %vm931_vm0, %v9365_v17 }
 0x522   : > { %9686 = vmatmul.msk.bf16.vlgmr.msrb.gmra.mxu2 %vm931_vm0, %v9365_v17  ;;  %v5209_v40 = vmax.f32 %v5073_v25, 0.0  ;;  %v9378_v25 = vld [vmem:[%s13577_s3 + $0x428] sm:$0xf0] }
 0x523   : > { %v5287_v34 = vpack.c.bf16 %v5207_v58, %v5206_v41 }
 0x524   : > { %v4565_v14 = vpop.f32.mrf.mxu3 }
 0x525   : > { %5351 = vst [vmem:[%s10477_s24 + $0x578] sm:$0xff] %v5287_v34  ;;  %v4566_v3 = vadd.f32 %v4565_v14, %v13799_v4  ;;  %v4734_v15 = vpop.f32.mrf.mxu2  ;;  %v4905_v33 = vpop.f32.mrf.mxu0  ;;  %v9376_v4 = vld [vmem:[%s13577_s3 + $0x420] sm:$0xf]  ;;  %v9956_v14 = vld [vmem:[%s13577_s3 + $0x424] sm:$0xf] }
 0x526   : > { %v5074_v1 = vpop.f32.mrf.mxu1  ;;  %v4906_v16 = vadd.f32 %v4905_v33, %v13800_v11 }
 0x527   : > { %v4735_v21 = vadd.f32 %v4734_v15, %v4566_v3  ;;  %v9377_v15 = vor.u32 %v9957_v56, %v9376_v4 }
 0x528   : > { %v5075_v20 = vadd.f32 %v5074_v1, %v4906_v16 }
 0x529   : > { %v5208_v0 = vmax.f32 %v4735_v21, 0.0 }
 0x52a   : > { %v5211_v45 = vmax.f32 %v5075_v20, 0.0 }
 0x52b   : > { %v5288_v53 = vpack.c.bf16 %v5209_v40, %v5208_v0  ;;  %v9381_v0 = vor.u32 %v9956_v14, %v9378_v25 }
 0x52c   : > { %v4567_v62 = vpop.f32.mrf.mxu3 }
 0x52d   : > { %5352 = vst [vmem:[%s10477_s24 + $0x580] sm:$0xff] %v5288_v53  ;;  %v4568_v2 = vadd.f32 %v4567_v62, %v13800_v11  ;;  %v4736_v18 = vpop.f32.mrf.mxu2  ;;  %v4908_v23 = vpop.f32.mrf.mxu0  ;;  %v13802_v53 = vld [vmem:[#allocation42_spill] sm:$0xff] }
 0x52e   : > { %v5077_v12 = vpop.f32.mrf.mxu1  ;;  %v4909_v28 = vadd.f32 %v4908_v23, %v13801_v24 }
 0x52f   : > { %v4737_v50 = vadd.f32 %v4736_v18, %v4568_v2 }
 0x530   : > { %6661 = vmatmul.bf16.gmra.mxu0 %v9369_v47  ;;  %v5078_v60 = vadd.f32 %v5077_v12, %v4909_v28  ;;  %v13803_v12 = vld [vmem:[#allocation41_spill] sm:$0xff] }
 0x531   : > { %v5210_v46 = vmax.f32 %v4737_v50, 0.0  ;;  %6323 = vmatmul.bf16.gmra.mxu3 %v9369_v47  ;;  %9719 = vmatmul.msk.bf16.gmra.mxu1 %vm931_vm0, %v9373_v22 }
 0x532   : > { %9687 = vmatmul.msk.bf16.gmra.mxu2 %vm931_vm0, %v9373_v22  ;;  %v5213_v35 = vmax.f32 %v5078_v60, 0.0 }
 0x533   : > { %v5289_v8 = vpack.c.bf16 %v5211_v45, %v5210_v46  ;;  %v9384_v46 = vld [vmem:[%s13577_s3 + $0x430] sm:$0xf] }
 0x534   : > { %v4570_v26 = vpop.f32.mrf.mxu3 }
 0x535   : > { %5353 = vst [vmem:[%s10477_s24 + $0x588] sm:$0xff] %v5289_v8  ;;  %v4571_v9 = vadd.f32 %v4570_v26, %v13801_v24  ;;  %v4739_v59 = vpop.f32.mrf.mxu2  ;;  %v4910_v7 = vpop.f32.mrf.mxu0  ;;  %v9959_v24 = vld [vmem:[%s13577_s3 + $0x434] sm:$0xf0]  ;;  %v9958_v8 = vld [vmem:[%s13577_s3 + $0x434] sm:$0xf] }
 0x536   : > { %v5079_v5 = vpop.f32.mrf.mxu1  ;;  %v4911_v41 = vadd.f32 %v4910_v7, %v11705_v37  ;;  %v9386_v26 = vld [vmem:[%s13577_s3 + $0x438] sm:$0xf0] }
 0x537   : > { %v4740_v17 = vadd.f32 %v4739_v59, %v4571_v9  ;;  %v9385_v9 = vor.u32 %v9959_v24, %v9384_v46 }
 0x538   : > { %v5080_v33 = vadd.f32 %v5079_v5, %v4911_v41 }
 0x539   : > { %v5212_v58 = vmax.f32 %v4740_v17, 0.0 }
 0x53a   : > { %v5215_v31 = vmax.f32 %v5080_v33, 0.0 }
 0x53b   : > { %v5290_v34 = vpack.c.bf16 %v5213_v35, %v5212_v58  ;;  %v9389_v35 = vor.u32 %v9958_v8, %v9386_v26 }
 0x53c   : > { %v4572_v3 = vpop.f32.mrf.mxu3 }
 0x53d   : > { %5354 = vst [vmem:[%s10477_s24 + $0x590] sm:$0xff] %v5290_v34  ;;  %v4573_v21 = vadd.f32 %v4572_v3, %v11705_v37  ;;  %v4741_v1 = vpop.f32.mrf.mxu2  ;;  %v4913_v40 = vpop.f32.mrf.mxu0 }
 0x53e   : > { %v5082_v16 = vpop.f32.mrf.mxu1  ;;  %v4914_v55 = vadd.f32 %v4913_v40, %v13802_v53 }
 0x53f   : > { %v4742_v11 = vadd.f32 %v4741_v1, %v4573_v21 }
 0x540   : > { %6666 = vmatmul.bf16.gmra.mxu0 %v9377_v15  ;;  %v5083_v47 = vadd.f32 %v5082_v16, %v4914_v55  ;;  %v9394_v55 = vld [vmem:[%s13577_s3 + $0x448] sm:$0xf0] }
 0x541   : > { %v5214_v6 = vmax.f32 %v4742_v11, 0.0  ;;  %6328 = vmatmul.bf16.gmra.mxu3 %v9377_v15  ;;  %9720 = vmatmul.msk.bf16.gmra.mxu1 %vm931_vm0, %v9381_v0 }
 0x542   : > { %9688 = vmatmul.msk.bf16.gmra.mxu2 %vm931_vm0, %v9381_v0  ;;  %v5217_v22 = vmax.f32 %v5083_v47, 0.0 }
 0x543   : > { %v5291_v32 = vpack.c.bf16 %v5215_v31, %v5214_v6  ;;  %v9392_v31 = vld [vmem:[%s13577_s3 + $0x440] sm:$0xf]  ;;  %v9961_v6 = vld [vmem:[%s13577_s3 + $0x444] sm:$0xf0] }
 0x544   : > { %v4575_v62 = vpop.f32.mrf.mxu3 }
 0x545   : > { %5355 = vst [vmem:[%s10477_s24 + $0x598] sm:$0xff] %v5291_v32  ;;  %v4576_v37 = vadd.f32 %v4575_v62, %v13802_v53  ;;  %v4744_v20 = vpop.f32.mrf.mxu2  ;;  %v4915_v2 = vpop.f32.mrf.mxu0  ;;  %v9393_v62 = vor.u32 %v9961_v6, %v9392_v31 }
 0x546   : > { %v5084_v23 = vpop.f32.mrf.mxu1  ;;  %v4916_v45 = vadd.f32 %v4915_v2, %v13803_v12 }
 0x547   : > { %v4745_v18 = vadd.f32 %v4744_v20, %v4576_v37 }
 0x548   : > { %v5085_v59 = vadd.f32 %v5084_v23, %v4916_v45  ;;  %v13804_v45 = vld [vmem:[#allocation43_spill] sm:$0xff] }
 0x549   : > { %v5216_v50 = vmax.f32 %v4745_v18, 0.0 }
 0x54a   : > { %v5219_v4 = vmax.f32 %v5085_v59, 0.0 }
 0x54b   : > { %v5292_v28 = vpack.c.bf16 %v5217_v22, %v5216_v50 }
 0x54c   : > { %v4577_v60 = vpop.f32.mrf.mxu3 }
 0x54d   : > { %5356 = vst [vmem:[%s10477_s24 + $0x5a0] sm:$0xff] %v5292_v28  ;;  %v4578_v7 = vadd.f32 %v4577_v60, %v13803_v12  ;;  %v4746_v17 = vpop.f32.mrf.mxu2  ;;  %v4918_v5 = vpop.f32.mrf.mxu0 }
 0x54e   : > { %v5087_v41 = vpop.f32.mrf.mxu1  ;;  %v4919_v34 = vadd.f32 %v4918_v5, %v11719_v29 }
 0x54f   : > { %v4747_v58 = vadd.f32 %v4746_v17, %v4578_v7 }
 0x550   : > { %6671 = vmatmul.bf16.gmra.mxu0 %v9385_v9  ;;  %v5088_v3 = vadd.f32 %v5087_v41, %v4919_v34 }
 0x551   : > { %v5218_v56 = vmax.f32 %v4747_v58, 0.0  ;;  %6333 = vmatmul.bf16.gmra.mxu3 %v9385_v9  ;;  %9721 = vmatmul.msk.bf16.gmra.mxu1 %vm931_vm0, %v9389_v35  ;;  %v9963_v58 = vld [vmem:[%s13577_s3 + $0x454] sm:$0xf0] }
 0x552   : > { %9689 = vmatmul.msk.bf16.gmra.mxu2 %vm931_vm0, %v9389_v35  ;;  %v5221_v0 = vmax.f32 %v5088_v3, 0.0  ;;  %v9400_v35 = vld [vmem:[%s13577_s3 + $0x450] sm:$0xf] }
 0x553   : > { %v5293_v14 = vpack.c.bf16 %v5219_v4, %v5218_v56  ;;  %v9962_v4 = vld [vmem:[%s13577_s3 + $0x454] sm:$0xf]  ;;  %v9402_v56 = vld [vmem:[%s13577_s3 + $0x458] sm:$0xf0] }
 0x554   : > { %v4580_v25 = vpop.f32.mrf.mxu3 }
 0x555   : > { %5357 = vst [vmem:[%s10477_s24 + $0x5a8] sm:$0xff] %v5293_v14  ;;  %v4581_v15 = vadd.f32 %v4580_v25, %v11719_v29  ;;  %v4749_v33 = vpop.f32.mrf.mxu2  ;;  %v4920_v21 = vpop.f32.mrf.mxu0  ;;  %v9960_v29 = vld [vmem:[%s13577_s3 + $0x444] sm:$0xf]  ;;  %v9401_v14 = vor.u32 %v9963_v58, %v9400_v35 }
 0x556   : > { %v5089_v40 = vpop.f32.mrf.mxu1  ;;  %v4921_v16 = vadd.f32 %v4920_v21, %v11709_v19  ;;  %v9397_v18 = vor.u32 %v9960_v29, %v9394_v55  ;;  %v9405_v21 = vor.u32 %v9962_v4, %v9402_v56 }
 0x557   : > { %v4750_v1 = vadd.f32 %v4749_v33, %v4581_v15 }
 0x558   : > { %v5090_v47 = vadd.f32 %v5089_v40, %v4921_v16  ;;  %v13805_v16 = vld [vmem:[#allocation45_spill] sm:$0xff] }
 0x559   : > { %v5220_v11 = vmax.f32 %v4750_v1, 0.0 }
 0x55a   : > { %v5223_v50 = vmax.f32 %v5090_v47, 0.0 }
 0x55b   : > { %v5294_v53 = vpack.c.bf16 %v5221_v0, %v5220_v11 }
 0x55c   : > { %v4582_v32 = vpop.f32.mrf.mxu3 }
 0x55d   : > { %5358 = vst [vmem:[%s10477_s24 + $0x5b0] sm:$0xff] %v5294_v53  ;;  %v4583_v37 = vadd.f32 %v4582_v32, %v11709_v19  ;;  %v4751_v20 = vpop.f32.mrf.mxu2  ;;  %v4923_v2 = vpop.f32.mrf.mxu0 }
 0x55e   : > { %v5092_v22 = vpop.f32.mrf.mxu1  ;;  %v4924_v46 = vadd.f32 %v4923_v2, %v13804_v45  ;;  %v13806_v2 = vld [vmem:[#allocation44_spill] sm:$0xff] }
 0x55f   : > { %v4752_v23 = vadd.f32 %v4751_v20, %v4583_v37 }
 0x560   : > { %6676 = vmatmul.bf16.gmra.mxu0 %v9393_v62  ;;  %v5093_v8 = vadd.f32 %v5092_v22, %v4924_v46  ;;  %v9965_v22 = vld [vmem:[%s13577_s3 + $0x464] sm:$0xf0] }
 0x561   : > { %v5222_v12 = vmax.f32 %v4752_v23, 0.0  ;;  %6338 = vmatmul.bf16.gmra.mxu3 %v9393_v62  ;;  %9722 = vmatmul.msk.bf16.gmra.mxu1 %vm931_vm0, %v9397_v18  ;;  %v9408_v23 = vld [vmem:[%s13577_s3 + $0x460] sm:$0xf] }
 0x562   : > { %9690 = vmatmul.msk.bf16.gmra.mxu2 %vm931_vm0, %v9397_v18  ;;  %v5225_v7 = vmax.f32 %v5093_v8, 0.0 }
 0x563   : > { %v5295_v24 = vpack.c.bf16 %v5223_v50, %v5222_v12  ;;  %v9964_v12 = vld [vmem:[%s13577_s3 + $0x464] sm:$0xf] }
 0x564   : > { %v4585_v28 = vpop.f32.mrf.mxu3 }
 0x565   : > { %5359 = vst [vmem:[%s10477_s24 + $0x5b8] sm:$0xff] %v5295_v24  ;;  %v4586_v19 = vadd.f32 %v4585_v28, %v13804_v45  ;;  %v4754_v26 = vpop.f32.mrf.mxu2  ;;  %v4925_v60 = vpop.f32.mrf.mxu0  ;;  %v9410_v45 = vld [vmem:[%s13577_s3 + $0x468] sm:$0xf0]  ;;  %v9409_v24 = vor.u32 %v9965_v22, %v9408_v23 }
 0x566   : > { %v5094_v59 = vpop.f32.mrf.mxu1  ;;  %v4926_v5 = vadd.f32 %v4925_v60, %v11743_v30  ;;  %v9413_v60 = vor.u32 %v9964_v12, %v9410_v45 }
 0x567   : > { %v4755_v9 = vadd.f32 %v4754_v26, %v4586_v19 }
 0x568   : > { %v5095_v25 = vadd.f32 %v5094_v59, %v4926_v5 }
 0x569   : > { %v5224_v17 = vmax.f32 %v4755_v9, 0.0 }
 0x56a   : > { %v5227_v0 = vmax.f32 %v5095_v25, 0.0 }
 0x56b   : > { %v5296_v41 = vpack.c.bf16 %v5225_v7, %v5224_v17 }
 0x56c   : > { %v4587_v34 = vpop.f32.mrf.mxu3 }
 0x56d   : > { %5360 = vst [vmem:[%s10477_s24 + $0x5c0] sm:$0xff] %v5296_v41  ;;  %v4588_v3 = vadd.f32 %v4587_v34, %v11743_v30  ;;  %v4756_v15 = vpop.f32.mrf.mxu2  ;;  %v4928_v33 = vpop.f32.mrf.mxu0 }
 0x56e   : > { %v5097_v40 = vpop.f32.mrf.mxu1  ;;  %v4929_v31 = vadd.f32 %v4928_v33, %v13805_v16  ;;  %v13807_v33 = vld [vmem:[#allocation47_spill] sm:$0xff] }
 0x56f   : > { %v4757_v1 = vadd.f32 %v4756_v15, %v4588_v3 }
 0x570   : > { %6681 = vmatmul.bf16.gmra.mxu0 %v9401_v14  ;;  %v5098_v29 = vadd.f32 %v5097_v40, %v4929_v31  ;;  %v9967_v40 = vld [vmem:[%s13577_s3 + $0x474] sm:$0xf0] }
 0x571   : > { %v5226_v11 = vmax.f32 %v4757_v1, 0.0  ;;  %6343 = vmatmul.bf16.gmra.mxu3 %v9401_v14  ;;  %9723 = vmatmul.msk.bf16.gmra.mxu1 %vm931_vm0, %v9405_v21  ;;  %v9416_v1 = vld [vmem:[%s13577_s3 + $0x470] sm:$0xf] }
 0x572   : > { %9691 = vmatmul.msk.bf16.gmra.mxu2 %vm931_vm0, %v9405_v21  ;;  %v5229_v37 = vmax.f32 %v5098_v29, 0.0  ;;  %v9417_v31 = vor.u32 %v9967_v40, %v9416_v1 }
 0x573   : > { %v5297_v6 = vpack.c.bf16 %v5227_v0, %v5226_v11  ;;  %v9418_v11 = vld [vmem:[%s13577_s3 + $0x478] sm:$0xf0] }
 0x574   : > { %v4590_v53 = vpop.f32.mrf.mxu3 }
 0x575   : > { %5361 = vst [vmem:[%s10477_s24 + $0x5c8] sm:$0xff] %v5297_v6  ;;  %v4591_v30 = vadd.f32 %v4590_v53, %v13805_v16  ;;  %v4759_v55 = vpop.f32.mrf.mxu2  ;;  %v4930_v32 = vpop.f32.mrf.mxu0 }
 0x576   : > { %v5099_v47 = vpop.f32.mrf.mxu1  ;;  %v4931_v18 = vadd.f32 %v4930_v32, %v13806_v2 }
 0x577   : > { %v4760_v62 = vadd.f32 %v4759_v55, %v4591_v30 }
 0x578   : > { %v5100_v28 = vadd.f32 %v5099_v47, %v4931_v18 }
 0x579   : > { %v5228_v20 = vmax.f32 %v4760_v62, 0.0 }
 0x57a   : > { %v5231_v7 = vmax.f32 %v5100_v28, 0.0 }
 0x57b   : > { %v5298_v50 = vpack.c.bf16 %v5229_v37, %v5228_v20  ;;  %v13808_v20 = vld [vmem:[#allocation46_spill] sm:$0xff] }
 0x57c   : > { %v4592_v46 = vpop.f32.mrf.mxu3 }
 0x57d   : > { %5362 = vst [vmem:[%s10477_s24 + $0x5d0] sm:$0xff] %v5298_v50  ;;  %v4593_v8 = vadd.f32 %v4592_v46, %v13806_v2  ;;  %v4761_v19 = vpop.f32.mrf.mxu2  ;;  %v4933_v26 = vpop.f32.mrf.mxu0 }
 0x57e   : > { %v5102_v59 = vpop.f32.mrf.mxu1  ;;  %v4934_v5 = vadd.f32 %v4933_v26, %v11757_v51  ;;  %v9424_v26 = vld [vmem:[%s13577_s3 + $0x480] sm:$0xf] }
 0x57f   : > { %v4762_v9 = vadd.f32 %v4761_v19, %v4593_v8 }
 0x580   : > { %6686 = vmatmul.bf16.gmra.mxu0 %v9409_v24  ;;  %v5103_v41 = vadd.f32 %v5102_v59, %v4934_v5  ;;  %v9968_v59 = vld [vmem:[%s13577_s3 + $0x484] sm:$0xf] }
 0x581   : > { %v5230_v17 = vmax.f32 %v4762_v9, 0.0  ;;  %6348 = vmatmul.bf16.gmra.mxu3 %v9409_v24  ;;  %9724 = vmatmul.msk.bf16.gmra.mxu1 %vm931_vm0, %v9413_v60 }
 0x582   : > { %9692 = vmatmul.msk.bf16.gmra.mxu2 %vm931_vm0, %v9413_v60  ;;  %v5233_v3 = vmax.f32 %v5103_v41, 0.0  ;;  %v9969_v60 = vld [vmem:[%s13577_s3 + $0x484] sm:$0xf0] }
 0x583   : > { %v5299_v35 = vpack.c.bf16 %v5231_v7, %v5230_v17  ;;  %v9426_v7 = vld [vmem:[%s13577_s3 + $0x488] sm:$0xf0]  ;;  %v9425_v5 = vor.u32 %v9969_v60, %v9424_v26 }
 0x584   : > { %v4595_v58 = vpop.f32.mrf.mxu3 }
 0x585   : > { %5363 = vst [vmem:[%s10477_s24 + $0x5d8] sm:$0xff] %v5299_v35  ;;  %v4596_v4 = vadd.f32 %v4595_v58, %v11757_v51  ;;  %v4764_v56 = vpop.f32.mrf.mxu2  ;;  %v4935_v34 = vpop.f32.mrf.mxu0  ;;  %v9966_v51 = vld [vmem:[%s13577_s3 + $0x474] sm:$0xf] }
 0x586   : > { %v5104_v25 = vpop.f32.mrf.mxu1  ;;  %v4936_v21 = vadd.f32 %v4935_v34, %v13807_v33  ;;  %v9421_v55 = vor.u32 %v9966_v51, %v9418_v11 }
 0x587   : > { %v4765_v14 = vadd.f32 %v4764_v56, %v4596_v4  ;;  %v9429_v56 = vor.u32 %v9968_v59, %v9426_v7 }
 0x588   : > { %v5105_v6 = vadd.f32 %v5104_v25, %v4936_v21 }
 0x589   : > { %v5232_v15 = vmax.f32 %v4765_v14, 0.0 }
 0x58a   : > { %v5235_v47 = vmax.f32 %v5105_v6, 0.0 }
 0x58b   : > { %v5300_v0 = vpack.c.bf16 %v5233_v3, %v5232_v15  ;;  %v13809_v15 = vld [vmem:[#allocation49_spill] sm:$0xff] }
 0x58c   : > { %v4597_v16 = vpop.f32.mrf.mxu3 }
 0x58d   : > { %5364 = vst [vmem:[%s10477_s24 + $0x5e0] sm:$0xff] %v5300_v0  ;;  %v4598_v53 = vadd.f32 %v4597_v16, %v13807_v33  ;;  %v4766_v29 = vpop.f32.mrf.mxu2  ;;  %v4938_v30 = vpop.f32.mrf.mxu0 }
 0x58e   : > { %v5107_v62 = vpop.f32.mrf.mxu1  ;;  %v4939_v2 = vadd.f32 %v4938_v30, %v13808_v20  ;;  %v9432_v30 = vld [vmem:[%s13577_s3 + $0x490] sm:$0xf] }
 0x58f   : > { %v4767_v32 = vadd.f32 %v4766_v29, %v4598_v53  ;;  %v13810_v53 = vld [vmem:[#allocation48_spill] sm:$0xff] }
 0x590   : > { %6691 = vmatmul.bf16.gmra.mxu0 %v9417_v31  ;;  %v5108_v22 = vadd.f32 %v5107_v62, %v4939_v2  ;;  %v9970_v62 = vld [vmem:[%s13577_s3 + $0x494] sm:$0xf] }
 0x591   : > { %v5234_v37 = vmax.f32 %v4767_v32, 0.0  ;;  %6353 = vmatmul.bf16.gmra.mxu3 %v9417_v31  ;;  %9725 = vmatmul.msk.bf16.gmra.mxu1 %vm931_vm0, %v9421_v55 }
 0x592   : > { %9693 = vmatmul.msk.bf16.gmra.mxu2 %vm931_vm0, %v9421_v55  ;;  %v5237_v28 = vmax.f32 %v5108_v22, 0.0  ;;  %v9971_v55 = vld [vmem:[%s13577_s3 + $0x494] sm:$0xf0] }
 0x593   : > { %v5301_v18 = vpack.c.bf16 %v5235_v47, %v5234_v37  ;;  %v9434_v47 = vld [vmem:[%s13577_s3 + $0x498] sm:$0xf0] }
 0x594   : > { %v4600_v23 = vpop.f32.mrf.mxu3 }
 0x595   : > { %5365 = vst [vmem:[%s10477_s24 + $0x5e8] sm:$0xff] %v5301_v18  ;;  %v4601_v50 = vadd.f32 %v4600_v23, %v13808_v20  ;;  %v4769_v12 = vpop.f32.mrf.mxu2  ;;  %v4940_v45 = vpop.f32.mrf.mxu0  ;;  %v9433_v20 = vor.u32 %v9971_v55, %v9432_v30 }
 0x596   : > { %v5109_v24 = vpop.f32.mrf.mxu1  ;;  %v4941_v19 = vadd.f32 %v4940_v45, %v11781_v27 }
 0x597   : > { %v4770_v46 = vadd.f32 %v4769_v12, %v4601_v50  ;;  %v9437_v50 = vor.u32 %v9970_v62, %v9434_v47 }
 0x598   : > { %v5110_v35 = vadd.f32 %v5109_v24, %v4941_v19 }
 0x599   : > { %v5236_v8 = vmax.f32 %v4770_v46, 0.0 }
 0x59a   : > { %v5239_v25 = vmax.f32 %v5110_v35, 0.0 }
 0x59b   : > { %v5302_v9 = vpack.c.bf16 %v5237_v28, %v5236_v8 }
 0x59c   : > { %v4602_v17 = vpop.f32.mrf.mxu3 }
 0x59d   : > { %5366 = vst [vmem:[%s10477_s24 + $0x5f0] sm:$0xff] %v5302_v9  ;;  %v4603_v58 = vadd.f32 %v4602_v17, %v11781_v27  ;;  %v4771_v41 = vpop.f32.mrf.mxu2  ;;  %v6657_v4 = vpop.f32.mrf.mxu0 }
 0x59e   : > { %v6826_v14 = vpop.f32.mrf.mxu1  ;;  %v6658_v33 = vadd.f32 %v6657_v4, %v13809_v15  ;;  %v9440_v4 = vld [vmem:[%s13577_s3 + $0x4a0] sm:$0xf] }
 0x59f   : > { %v4772_v34 = vadd.f32 %v4771_v41, %v4603_v58  ;;  %v13811_v58 = vld [vmem:[#allocation51_spill] sm:$0xff] }
 0x5a0   : > { %6696 = vmatmul.bf16.gmra.mxu0 %v9425_v5  ;;  %v6827_v40 = vadd.f32 %v6826_v14, %v6658_v33  ;;  %v9442_v14 = vld [vmem:[%s13577_s3 + $0x4a8] sm:$0xf0] }
 0x5a1   : > { %v5238_v3 = vmax.f32 %v4772_v34, 0.0  ;;  %6358 = vmatmul.bf16.gmra.mxu3 %v9425_v5  ;;  %9726 = vmatmul.msk.bf16.gmra.mxu1 %vm931_vm0, %v9429_v56 }
 0x5a2   : > { %9694 = vmatmul.msk.bf16.gmra.mxu2 %vm931_vm0, %v9429_v56  ;;  %v6987_v31 = vmax.f32 %v6827_v40, 0.0  ;;  %v9973_v56 = vld [vmem:[%s13577_s3 + $0x4a4] sm:$0xf0] }
 0x5a3   : > { %v5303_v21 = vpack.c.bf16 %v5239_v25, %v5238_v3  ;;  %v9441_v3 = vor.u32 %v9973_v56, %v9440_v4 }
 0x5a4   : > { %v6319_v1 = vpop.f32.mrf.mxu3 }
 0x5a5   : > { %5367 = vst [vmem:[%s10477_s24 + $0x5f8] sm:$0xff] %v5303_v21  ;;  %v6320_v27 = vadd.f32 %v6319_v1, %v13809_v15  ;;  %v6488_v0 = vpop.f32.mrf.mxu2  ;;  %v6659_v51 = vpop.f32.mrf.mxu0 }
 0x5a6   : > { %v6828_v16 = vpop.f32.mrf.mxu1  ;;  %v6660_v29 = vadd.f32 %v6659_v51, %v13810_v53 }
 0x5a7   : > { %v6489_v11 = vadd.f32 %v6488_v0, %v6320_v27 }
 0x5a8   : > { %v6829_v2 = vadd.f32 %v6828_v16, %v6660_v29  ;;  %v13812_v16 = vld [vmem:[#allocation50_spill] sm:$0xff] }
 0x5a9   : > { %v6986_v6 = vmax.f32 %v6489_v11, 0.0 }
 0x5aa   : > { %v6989_v46 = vmax.f32 %v6829_v2, 0.0 }
 0x5ab   : > { %v7114_v32 = vpack.c.bf16 %v6987_v31, %v6986_v6 }
 0x5ac   : > { %v6321_v37 = vpop.f32.mrf.mxu3 }
 0x5ad   : > { %7178 = vst [vmem:[%s10477_s24 + $0x600] sm:$0xff] %v7114_v32  ;;  %v6322_v18 = vadd.f32 %v6321_v37, %v13810_v53  ;;  %v6490_v23 = vpop.f32.mrf.mxu2  ;;  %v6662_v22 = vpop.f32.mrf.mxu0 }
 0x5ae   : > { %v6831_v45 = vpop.f32.mrf.mxu1  ;;  %v6663_v28 = vadd.f32 %v6662_v22, %v11795_v38 }
 0x5af   : > { %v6491_v12 = vadd.f32 %v6490_v23, %v6322_v18  ;;  %v9448_v18 = vld [vmem:[%s13577_s3 + $0x4b0] sm:$0xf]  ;;  %v9975_v23 = vld [vmem:[%s13577_s3 + $0x4b4] sm:$0xf0] }
 0x5b0   : > { %6701 = vmatmul.bf16.gmra.mxu0 %v9433_v20  ;;  %v6832_v26 = vadd.f32 %v6831_v45, %v6663_v28 }
 0x5b1   : > { %v6988_v24 = vmax.f32 %v6491_v12, 0.0  ;;  %6363 = vmatmul.bf16.gmra.mxu3 %v9433_v20  ;;  %9727 = vmatmul.msk.bf16.gmra.mxu1 %vm931_vm0, %v9437_v50  ;;  %v9450_v12 = vld [vmem:[%s13577_s3 + $0x4b8] sm:$0xf0] }
 0x5b2   : > { %9695 = vmatmul.msk.bf16.gmra.mxu2 %vm931_vm0, %v9437_v50  ;;  %v6991_v5 = vmax.f32 %v6832_v26, 0.0  ;;  %v9974_v50 = vld [vmem:[%s13577_s3 + $0x4b4] sm:$0xf] }
 0x5b3   : > { %v7115_v8 = vpack.c.bf16 %v6989_v46, %v6988_v24  ;;  %v9449_v46 = vor.u32 %v9975_v23, %v9448_v18  ;;  %v9453_v26 = vor.u32 %v9974_v50, %v9450_v12 }
 0x5b4   : > { %v6324_v19 = vpop.f32.mrf.mxu3 }
 0x5b5   : > { %7179 = vst [vmem:[%s10477_s24 + $0x608] sm:$0xff] %v7115_v8  ;;  %v6325_v60 = vadd.f32 %v6324_v19, %v11795_v38  ;;  %v6493_v9 = vpop.f32.mrf.mxu2  ;;  %v6664_v59 = vpop.f32.mrf.mxu0  ;;  %v9972_v38 = vld [vmem:[%s13577_s3 + $0x4a4] sm:$0xf] }
 0x5b6   : > { %v6833_v17 = vpop.f32.mrf.mxu1  ;;  %v6665_v41 = vadd.f32 %v6664_v59, %v13811_v58  ;;  %v9445_v40 = vor.u32 %v9972_v38, %v9442_v14 }
 0x5b7   : > { %v6494_v7 = vadd.f32 %v6493_v9, %v6325_v60 }
 0x5b8   : > { %v6834_v15 = vadd.f32 %v6833_v17, %v6665_v41  ;;  %v13813_v17 = vld [vmem:[#allocation53_spill] sm:$0xff] }
 0x5b9   : > { %v6990_v35 = vmax.f32 %v6494_v7, 0.0 }
 0x5ba   : > { %v6993_v51 = vmax.f32 %v6834_v15, 0.0 }
 0x5bb   : > { %v7116_v34 = vpack.c.bf16 %v6991_v5, %v6990_v35 }
 0x5bc   : > { %v6326_v25 = vpop.f32.mrf.mxu3 }
 0x5bd   : > { %7180 = vst [vmem:[%s10477_s24 + $0x610] sm:$0xff] %v7116_v34  ;;  %v6327_v33 = vadd.f32 %v6326_v25, %v13811_v58  ;;  %v6495_v21 = vpop.f32.mrf.mxu2  ;;  %v6667_v1 = vpop.f32.mrf.mxu0 }
 0x5be   : > { %v6836_v0 = vpop.f32.mrf.mxu1  ;;  %v6668_v31 = vadd.f32 %v6667_v1, %v13812_v16 }
 0x5bf   : > { %v6496_v27 = vadd.f32 %v6495_v21, %v6327_v33  ;;  %v9456_v33 = vld [vmem:[%s13577_s3 + $0x4c0] sm:$0xf]  ;;  %v9977_v21 = vld [vmem:[%s13577_s3 + $0x4c4] sm:$0xf0] }
 0x5c0   : > { %6706 = vmatmul.bf16.gmra.mxu0 %v9441_v3  ;;  %v6837_v29 = vadd.f32 %v6836_v0, %v6668_v31 }
 0x5c1   : > { %v6992_v11 = vmax.f32 %v6496_v27, 0.0  ;;  %6368 = vmatmul.bf16.gmra.mxu3 %v9441_v3  ;;  %9728 = vmatmul.msk.bf16.gmra.mxu1 %vm931_vm0, %v9445_v40  ;;  %v13814_v3 = vld [vmem:[#allocation52_spill] sm:$0xff]  ;;  %v9458_v27 = vld [vmem:[%s13577_s3 + $0x4c8] sm:$0xf0] }
 0x5c2   : > { %9696 = vmatmul.msk.bf16.gmra.mxu2 %vm931_vm0, %v9445_v40  ;;  %v6995_v37 = vmax.f32 %v6837_v29, 0.0  ;;  %v9976_v40 = vld [vmem:[%s13577_s3 + $0x4c4] sm:$0xf] }
 0x5c3   : > { %v7117_v6 = vpack.c.bf16 %v6993_v51, %v6992_v11  ;;  %v9457_v51 = vor.u32 %v9977_v21, %v9456_v33 }
 0x5c4   : > { %v6329_v53 = vpop.f32.mrf.mxu3 }
 0x5c5   : > { %7181 = vst [vmem:[%s10477_s24 + $0x618] sm:$0xff] %v7117_v6  ;;  %v6330_v30 = vadd.f32 %v6329_v53, %v13812_v16  ;;  %v6498_v55 = vpop.f32.mrf.mxu2  ;;  %v6669_v32 = vpop.f32.mrf.mxu0  ;;  %v9461_v53 = vor.u32 %v9976_v40, %v9458_v27 }
 0x5c6   : > { %v6838_v47 = vpop.f32.mrf.mxu1  ;;  %v6670_v2 = vadd.f32 %v6669_v32, %v11819_v63 }
 0x5c7   : > { %v6499_v62 = vadd.f32 %v6498_v55, %v6330_v30 }
 0x5c8   : > { %v6839_v24 = vadd.f32 %v6838_v47, %v6670_v2 }
 0x5c9   : > { %v6994_v20 = vmax.f32 %v6499_v62, 0.0  ;;  %v13815_v62 = vld [vmem:[#allocation56_spill] sm:$0xff] }
 0x5ca   : > { %v6997_v59 = vmax.f32 %v6839_v24, 0.0  ;;  %v13816_v24 = vld [vmem:[#allocation55_spill] sm:$0xff] }
 0x5cb   : > { %v7118_v22 = vpack.c.bf16 %v6995_v37, %v6994_v20 }
 0x5cc   : > { %v6331_v45 = vpop.f32.mrf.mxu3 }
 0x5cd   : > { %7182 = vst [vmem:[%s10477_s24 + $0x620] sm:$0xff] %v7118_v22  ;;  %v6332_v28 = vadd.f32 %v6331_v45, %v11819_v63  ;;  %v6500_v8 = vpop.f32.mrf.mxu2  ;;  %v6672_v19 = vpop.f32.mrf.mxu0 }
 0x5ce   : > { %v6841_v9 = vpop.f32.mrf.mxu1  ;;  %v6673_v5 = vadd.f32 %v6672_v19, %v13813_v17  ;;  %v9979_v19 = vld [vmem:[%s13577_s3 + $0x4d4] sm:$0xf0] }
 0x5cf   : > { %v6501_v60 = vadd.f32 %v6500_v8, %v6332_v28  ;;  %v9464_v8 = vld [vmem:[%s13577_s3 + $0x4d0] sm:$0xf] }
 0x5d0   : > { %6711 = vmatmul.bf16.gmra.mxu0 %v9449_v46  ;;  %v6842_v41 = vadd.f32 %v6841_v9, %v6673_v5  ;;  %v9466_v9 = vld [vmem:[%s13577_s3 + $0x4d8] sm:$0xf0] }
 0x5d1   : > { %v6996_v7 = vmax.f32 %v6501_v60, 0.0  ;;  %6373 = vmatmul.bf16.gmra.mxu3 %v9449_v46  ;;  %9729 = vmatmul.msk.bf16.gmra.mxu1 %vm931_vm0, %v9453_v26  ;;  %v9978_v60 = vld [vmem:[%s13577_s3 + $0x4d4] sm:$0xf] }
 0x5d2   : > { %9697 = vmatmul.msk.bf16.gmra.mxu2 %vm931_vm0, %v9453_v26  ;;  %v6999_v14 = vmax.f32 %v6842_v41, 0.0  ;;  %v9469_v41 = vor.u32 %v9978_v60, %v9466_v9 }
 0x5d3   : > { %v7119_v35 = vpack.c.bf16 %v6997_v59, %v6996_v7  ;;  %v9465_v7 = vor.u32 %v9979_v19, %v9464_v8 }
 0x5d4   : > { %v6334_v58 = vpop.f32.mrf.mxu3 }
 0x5d5   : > { %7183 = vst [vmem:[%s10477_s24 + $0x628] sm:$0xff] %v7119_v35  ;;  %v6335_v63 = vadd.f32 %v6334_v58, %v13813_v17  ;;  %v6503_v4 = vpop.f32.mrf.mxu2  ;;  %v6674_v56 = vpop.f32.mrf.mxu0 }
 0x5d6   : > { %v6843_v38 = vpop.f32.mrf.mxu1  ;;  %v6675_v15 = vadd.f32 %v6674_v56, %v13814_v3 }
 0x5d7   : > { %v6504_v34 = vadd.f32 %v6503_v4, %v6335_v63 }
 0x5d8   : > { %v6844_v11 = vadd.f32 %v6843_v38, %v6675_v15  ;;  %v13817_v38 = vld [vmem:[#allocation54_spill] sm:$0xff] }
 0x5d9   : > { %v6998_v25 = vmax.f32 %v6504_v34, 0.0 }
 0x5da   : > { %v7001_v55 = vmax.f32 %v6844_v11, 0.0  ;;  %v13818_v11 = vld [vmem:[#allocation59_spill] sm:$0xff] }
 0x5db   : > { %v7120_v1 = vpack.c.bf16 %v6999_v14, %v6998_v25 }
 0x5dc   : > { %v6336_v0 = vpop.f32.mrf.mxu3 }
 0x5dd   : > { %7184 = vst [vmem:[%s10477_s24 + $0x630] sm:$0xff] %v7120_v1  ;;  %v6337_v16 = vadd.f32 %v6336_v0, %v13814_v3  ;;  %v6505_v31 = vpop.f32.mrf.mxu2  ;;  %v6677_v6 = vpop.f32.mrf.mxu0 }
 0x5de   : > { %v6846_v30 = vpop.f32.mrf.mxu1  ;;  %v6678_v47 = vadd.f32 %v6677_v6, %v13815_v62  ;;  %v9981_v6 = vld [vmem:[%s13577_s3 + $0x4e4] sm:$0xf0] }
 0x5df   : > { %v6506_v29 = vadd.f32 %v6505_v31, %v6337_v16  ;;  %v9472_v31 = vld [vmem:[%s13577_s3 + $0x4e0] sm:$0xf] }
 0x5e0   : > { %6716 = vmatmul.bf16.gmra.mxu0 %v9457_v51  ;;  %v6847_v2 = vadd.f32 %v6846_v30, %v6678_v47  ;;  %v9474_v30 = vld [vmem:[%s13577_s3 + $0x4e8] sm:$0xf0] }
 0x5e1   : > { %v7000_v32 = vmax.f32 %v6506_v29, 0.0  ;;  %6378 = vmatmul.bf16.gmra.mxu3 %v9457_v51  ;;  %9730 = vmatmul.msk.bf16.gmra.mxu1 %vm931_vm0, %v9461_v53  ;;  %v9980_v29 = vld [vmem:[%s13577_s3 + $0x4e4] sm:$0xf] }
 0x5e2   : > { %9698 = vmatmul.msk.bf16.gmra.mxu2 %vm931_vm0, %v9461_v53  ;;  %v7003_v45 = vmax.f32 %v6847_v2, 0.0  ;;  %v9477_v2 = vor.u32 %v9980_v29, %v9474_v30 }
 0x5e3   : > { %v7121_v37 = vpack.c.bf16 %v7001_v55, %v7000_v32  ;;  %v9473_v32 = vor.u32 %v9981_v6, %v9472_v31 }
 0x5e4   : > { %v6339_v20 = vpop.f32.mrf.mxu3 }
 0x5e5   : > { %7185 = vst [vmem:[%s10477_s24 + $0x638] sm:$0xff] %v7121_v37  ;;  %v6340_v18 = vadd.f32 %v6339_v20, %v13815_v62  ;;  %v6508_v23 = vpop.f32.mrf.mxu2  ;;  %v6679_v22 = vpop.f32.mrf.mxu0 }
 0x5e6   : > { %v6848_v12 = vpop.f32.mrf.mxu1  ;;  %v6680_v28 = vadd.f32 %v6679_v22, %v13816_v24 }
 0x5e7   : > { %v6509_v50 = vadd.f32 %v6508_v23, %v6340_v18 }
 0x5e8   : > { %v6849_v17 = vadd.f32 %v6848_v12, %v6680_v28  ;;  %v13819_v12 = vld [vmem:[#allocation58_spill] sm:$0xff] }
 0x5e9   : > { %v7002_v46 = vmax.f32 %v6509_v50, 0.0 }
 0x5ea   : > { %v7005_v56 = vmax.f32 %v6849_v17, 0.0  ;;  %v13820_v17 = vld [vmem:[#allocation57_spill] sm:$0xff] }
 0x5eb   : > { %v7122_v26 = vpack.c.bf16 %v7003_v45, %v7002_v46 }
 0x5ec   : > { %v6341_v59 = vpop.f32.mrf.mxu3 }
 0x5ed   : > { %7186 = vst [vmem:[%s10477_s24 + $0x640] sm:$0xff] %v7122_v26  ;;  %v6342_v5 = vadd.f32 %v6341_v59, %v13816_v24  ;;  %v6510_v35 = vpop.f32.mrf.mxu2  ;;  %v6682_v58 = vpop.f32.mrf.mxu0 }
 0x5ee   : > { %v6851_v4 = vpop.f32.mrf.mxu1  ;;  %v6683_v14 = vadd.f32 %v6682_v58, %v13817_v38  ;;  %v9983_v58 = vld [vmem:[%s13577_s3 + $0x4f4] sm:$0xf0] }
 0x5ef   : > { %v6511_v63 = vadd.f32 %v6510_v35, %v6342_v5  ;;  %v9480_v35 = vld [vmem:[%s13577_s3 + $0x4f0] sm:$0xf] }
 0x5f0   : > { %6721 = vmatmul.bf16.gmra.mxu0 %v9465_v7  ;;  %v6852_v15 = vadd.f32 %v6851_v4, %v6683_v14  ;;  %v9482_v4 = vld [vmem:[%s13577_s3 + $0x4f8] sm:$0xf0] }
 0x5f1   : > { %v7004_v34 = vmax.f32 %v6511_v63, 0.0  ;;  %6383 = vmatmul.bf16.gmra.mxu3 %v9465_v7  ;;  %9731 = vmatmul.msk.bf16.gmra.mxu1 %vm931_vm0, %v9469_v41  ;;  %v9982_v63 = vld [vmem:[%s13577_s3 + $0x4f4] sm:$0xf] }
 0x5f2   : > { %9699 = vmatmul.msk.bf16.gmra.mxu2 %vm931_vm0, %v9469_v41  ;;  %v7007_v0 = vmax.f32 %v6852_v15, 0.0  ;;  %v9485_v15 = vor.u32 %v9982_v63, %v9482_v4 }
 0x5f3   : > { %v7123_v25 = vpack.c.bf16 %v7005_v56, %v7004_v34  ;;  %v9481_v34 = vor.u32 %v9983_v58, %v9480_v35 }
 0x5f4   : > { %v6344_v3 = vpop.f32.mrf.mxu3 }
 0x5f5   : > { %7187 = vst [vmem:[%s10477_s24 + $0x648] sm:$0xff] %v7123_v25  ;;  %v6345_v33 = vadd.f32 %v6344_v3, %v13817_v38  ;;  %v6513_v21 = vpop.f32.mrf.mxu2  ;;  %v6684_v1 = vpop.f32.mrf.mxu0 }
 0x5f6   : > { %v6853_v27 = vpop.f32.mrf.mxu1  ;;  %v6685_v16 = vadd.f32 %v6684_v1, %v13818_v11 }
 0x5f7   : > { %v6514_v40 = vadd.f32 %v6513_v21, %v6345_v33 }
 0x5f8   : > { %v6854_v62 = vadd.f32 %v6853_v27, %v6685_v16  ;;  %v13821_v27 = vld [vmem:[#allocation62_spill] sm:$0xff] }
 0x5f9   : > { %v7006_v51 = vmax.f32 %v6514_v40, 0.0 }
 0x5fa   : > { %v7009_v22 = vmax.f32 %v6854_v62, 0.0  ;;  %v13822_v62 = vld [vmem:[#allocation61_spill] sm:$0xff] }
 0x5fb   : > { %v7124_v53 = vpack.c.bf16 %v7007_v0, %v7006_v51 }
 0x5fc   : > { %v6346_v55 = vpop.f32.mrf.mxu3 }
 0x5fd   : > { %7188 = vst [vmem:[%s10477_s24 + $0x650] sm:$0xff] %v7124_v53  ;;  %v6347_v47 = vadd.f32 %v6346_v55, %v13818_v11  ;;  %v6515_v37 = vpop.f32.mrf.mxu2  ;;  %v6687_v20 = vpop.f32.mrf.mxu0 }
 0x5fe   : > { %v6856_v23 = vpop.f32.mrf.mxu1  ;;  %v6688_v45 = vadd.f32 %v6687_v20, %v13819_v12  ;;  %v9985_v20 = vld [vmem:[%s13577_s3 + $0x504] sm:$0xf0] }
 0x5ff   : > { %v6516_v18 = vadd.f32 %v6515_v37, %v6347_v47  ;;  %v9488_v37 = vld [vmem:[%s13577_s3 + $0x500] sm:$0xf] }
 0x600   : > { %6726 = vmatmul.bf16.gmra.mxu0 %v9473_v32  ;;  %v6857_v28 = vadd.f32 %v6856_v23, %v6688_v45  ;;  %v9490_v23 = vld [vmem:[%s13577_s3 + $0x508] sm:$0xf0] }
 0x601   : > { %v7008_v50 = vmax.f32 %v6516_v18, 0.0  ;;  %6388 = vmatmul.bf16.gmra.mxu3 %v9473_v32  ;;  %9732 = vmatmul.msk.bf16.gmra.mxu1 %vm931_vm0, %v9477_v2  ;;  %v9984_v18 = vld [vmem:[%s13577_s3 + $0x504] sm:$0xf] }
 0x602   : > { %9700 = vmatmul.msk.bf16.gmra.mxu2 %vm931_vm0, %v9477_v2  ;;  %v7011_v59 = vmax.f32 %v6857_v28, 0.0  ;;  %v9493_v28 = vor.u32 %v9984_v18, %v9490_v23 }
 0x603   : > { %v7125_v46 = vpack.c.bf16 %v7009_v22, %v7008_v50  ;;  %v9489_v50 = vor.u32 %v9985_v20, %v9488_v37 }
 0x604   : > { %v6349_v24 = vpop.f32.mrf.mxu3 }
 0x605   : > { %7189 = vst [vmem:[%s10477_s24 + $0x658] sm:$0xff] %v7125_v46  ;;  %v6350_v8 = vadd.f32 %v6349_v24, %v13819_v12  ;;  %v6518_v19 = vpop.f32.mrf.mxu2  ;;  %v6689_v26 = vpop.f32.mrf.mxu0 }
 0x606   : > { %v6858_v9 = vpop.f32.mrf.mxu1  ;;  %v6690_v5 = vadd.f32 %v6689_v26, %v13820_v17 }
 0x607   : > { %v6519_v60 = vadd.f32 %v6518_v19, %v6350_v8 }
 0x608   : > { %v6859_v38 = vadd.f32 %v6858_v9, %v6690_v5  ;;  %v13823_v9 = vld [vmem:[#allocation60_spill] sm:$0xff] }
 0x609   : > { %v7010_v7 = vmax.f32 %v6519_v60, 0.0 }
 0x60a   : > { %v7013_v1 = vmax.f32 %v6859_v38, 0.0 }
 0x60b   : > { %v7126_v41 = vpack.c.bf16 %v7011_v59, %v7010_v7 }
 0x60c   : > { %v6351_v56 = vpop.f32.mrf.mxu3 }
 0x60d   : > { %7190 = vst [vmem:[%s10477_s24 + $0x660] sm:$0xff] %v7126_v41  ;;  %v6352_v14 = vadd.f32 %v6351_v56, %v13820_v17  ;;  %v6520_v25 = vpop.f32.mrf.mxu2  ;;  %v6692_v3 = vpop.f32.mrf.mxu0 }
 0x60e   : > { %v6861_v21 = vpop.f32.mrf.mxu1  ;;  %v6693_v0 = vadd.f32 %v6692_v3, %v13821_v27 }
 0x60f   : > { %v6521_v33 = vadd.f32 %v6520_v25, %v6352_v14  ;;  %v9496_v14 = vld [vmem:[%s13577_s3 + $0x510] sm:$0xf]  ;;  %v9987_v25 = vld [vmem:[%s13577_s3 + $0x514] sm:$0xf0] }
 0x610   : > { %6731 = vmatmul.bf16.gmra.mxu0 %v9481_v34  ;;  %v6862_v16 = vadd.f32 %v6861_v21, %v6693_v0 }
 0x611   : > { %v7012_v40 = vmax.f32 %v6521_v33, 0.0  ;;  %6393 = vmatmul.bf16.gmra.mxu3 %v9481_v34  ;;  %9733 = vmatmul.msk.bf16.gmra.mxu1 %vm931_vm0, %v9485_v15  ;;  %v9498_v33 = vld [vmem:[%s13577_s3 + $0x518] sm:$0xf0] }
 0x612   : > { %9701 = vmatmul.msk.bf16.gmra.mxu2 %vm931_vm0, %v9485_v15  ;;  %v7015_v55 = vmax.f32 %v6862_v16, 0.0  ;;  %v9986_v15 = vld [vmem:[%s13577_s3 + $0x514] sm:$0xf] }
 0x613   : > { %v7127_v51 = vpack.c.bf16 %v7013_v1, %v7012_v40  ;;  %v9497_v1 = vor.u32 %v9987_v25, %v9496_v14 }
 0x614   : > { %v6354_v11 = vpop.f32.mrf.mxu3 }
 0x615   : > { %7191 = vst [vmem:[%s10477_s24 + $0x668] sm:$0xff] %v7127_v51  ;;  %v6355_v31 = vadd.f32 %v6354_v11, %v13821_v27  ;;  %v6523_v6 = vpop.f32.mrf.mxu2  ;;  %v6694_v53 = vpop.f32.mrf.mxu0  ;;  %v9501_v11 = vor.u32 %v9986_v15, %v9498_v33 }
 0x616   : > { %v6863_v30 = vpop.f32.mrf.mxu1  ;;  %v6695_v47 = vadd.f32 %v6694_v53, %v13822_v62 }
 0x617   : > { %v6524_v29 = vadd.f32 %v6523_v6, %v6355_v31 }
 0x618   : > { %v6864_v12 = vadd.f32 %v6863_v30, %v6695_v47 }
 0x619   : > { %v7014_v32 = vmax.f32 %v6524_v29, 0.0  ;;  %v13824_v29 = vld [vmem:[#allocation64_spill] sm:$0xff] }
 0x61a   : > { %v7017_v26 = vmax.f32 %v6864_v12, 0.0  ;;  %v9504_v12 = vld [vmem:[%s13577_s3 + $0x520] sm:$0xf] }
 0x61b   : > { %v7128_v2 = vpack.c.bf16 %v7015_v55, %v7014_v32 }
 0x61c   : > { %v6356_v22 = vpop.f32.mrf.mxu3 }
 0x61d   : > { %7192 = vst [vmem:[%s10477_s24 + $0x670] sm:$0xff] %v7128_v2  ;;  %v6357_v45 = vadd.f32 %v6356_v22, %v13822_v62  ;;  %v6525_v46 = vpop.f32.mrf.mxu2  ;;  %v6697_v24 = vpop.f32.mrf.mxu0  ;;  %v13825_v22 = vld [vmem:[#allocation63_spill] sm:$0xff] }
 0x61e   : > { %v6866_v19 = vpop.f32.mrf.mxu1  ;;  %v6698_v59 = vadd.f32 %v6697_v24, %v13823_v9  ;;  %v9988_v24 = vld [vmem:[%s13577_s3 + $0x524] sm:$0xf] }
 0x61f   : > { %v6526_v8 = vadd.f32 %v6525_v46, %v6357_v45  ;;  %v9989_v45 = vld [vmem:[%s13577_s3 + $0x524] sm:$0xf0] }
 0x620   : > { %6736 = vmatmul.bf16.gmra.mxu0 %v9489_v50  ;;  %v6867_v5 = vadd.f32 %v6866_v19, %v6698_v59  ;;  %v9505_v19 = vor.u32 %v9989_v45, %v9504_v12 }
 0x621   : > { %v7016_v60 = vmax.f32 %v6526_v8, 0.0  ;;  %6398 = vmatmul.bf16.gmra.mxu3 %v9489_v50  ;;  %9734 = vmatmul.msk.bf16.gmra.mxu1 %vm931_vm0, %v9493_v28 }
 0x622   : > { %9702 = vmatmul.msk.bf16.gmra.mxu2 %vm931_vm0, %v9493_v28  ;;  %v7019_v56 = vmax.f32 %v6867_v5, 0.0  ;;  %v9506_v28 = vld [vmem:[%s13577_s3 + $0x528] sm:$0xf0] }
 0x623   : > { %v7129_v7 = vpack.c.bf16 %v7017_v26, %v7016_v60 }
 0x624   : > { %v6359_v17 = vpop.f32.mrf.mxu3 }
 0x625   : > { %7193 = vst [vmem:[%s10477_s24 + $0x678] sm:$0xff] %v7129_v7  ;;  %v6360_v35 = vadd.f32 %v6359_v17, %v13823_v9  ;;  %v6528_v58 = vpop.f32.mrf.mxu2  ;;  %v6699_v41 = vpop.f32.mrf.mxu0  ;;  %v9509_v7 = vor.u32 %v9988_v24, %v9506_v28  ;;  %v13828_v28 = vld [vmem:[#allocation69_spill] sm:$0xff] }
 0x626   : > { %v6868_v4 = vpop.f32.mrf.mxu1  ;;  %v6700_v38 = vadd.f32 %v6699_v41, %v11905_v49 }
 0x627   : > { %v6529_v63 = vadd.f32 %v6528_v58, %v6360_v35 }
 0x628   : > { %v6869_v40 = vadd.f32 %v6868_v4, %v6700_v38 }
 0x629   : > { %v7018_v34 = vmax.f32 %v6529_v63, 0.0 }
 0x62a   : > { %v7021_v6 = vmax.f32 %v6869_v40, 0.0  ;;  %v9512_v40 = vld [vmem:[%s13577_s3 + $0x530] sm:$0xf] }
 0x62b   : > { %v7130_v3 = vpack.c.bf16 %v7019_v56, %v7018_v34 }
 0x62c   : > { %v6361_v21 = vpop.f32.mrf.mxu3 }
 0x62d   : > { %7194 = vst [vmem:[%s10477_s24 + $0x680] sm:$0xff] %v7130_v3  ;;  %v6362_v27 = vadd.f32 %v6361_v21, %v11905_v49  ;;  %v6530_v0 = vpop.f32.mrf.mxu2  ;;  %v6702_v51 = vpop.f32.mrf.mxu0  ;;  %v13826_v21 = vld [vmem:[#allocation66_spill] sm:$0xff] }
 0x62e   : > { %v6871_v31 = vpop.f32.mrf.mxu1  ;;  %v6703_v30 = vadd.f32 %v6702_v51, %v13824_v29  ;;  %v9514_v51 = vld [vmem:[%s13577_s3 + $0x538] sm:$0xf0] }
 0x62f   : > { %v6531_v16 = vadd.f32 %v6530_v0, %v6362_v27  ;;  %v9991_v27 = vld [vmem:[%s13577_s3 + $0x534] sm:$0xf0] }
 0x630   : > { %6741 = vmatmul.bf16.gmra.mxu0 %v9497_v1  ;;  %v6872_v62 = vadd.f32 %v6871_v31, %v6703_v30 }
 0x631   : > { %v7020_v53 = vmax.f32 %v6531_v16, 0.0  ;;  %6403 = vmatmul.bf16.gmra.mxu3 %v9497_v1  ;;  %9735 = vmatmul.msk.bf16.gmra.mxu1 %vm931_vm0, %v9501_v11  ;;  %v9513_v16 = vor.u32 %v9991_v27, %v9512_v40 }
 0x632   : > { %9703 = vmatmul.msk.bf16.gmra.mxu2 %vm931_vm0, %v9501_v11  ;;  %v7023_v18 = vmax.f32 %v6872_v62, 0.0 }
 0x633   : > { %v7131_v55 = vpack.c.bf16 %v7021_v6, %v7020_v53 }
 0x634   : > { %v6364_v32 = vpop.f32.mrf.mxu3 }
 0x635   : > { %7195 = vst [vmem:[%s10477_s24 + $0x688] sm:$0xff] %v7131_v55  ;;  %v6365_v49 = vadd.f32 %v6364_v32, %v13824_v29  ;;  %v6533_v47 = vpop.f32.mrf.mxu2  ;;  %v6704_v37 = vpop.f32.mrf.mxu0 }
 0x636   : > { %v6873_v2 = vpop.f32.mrf.mxu1  ;;  %v6705_v50 = vadd.f32 %v6704_v37, %v13825_v22 }
 0x637   : > { %v6534_v20 = vadd.f32 %v6533_v47, %v6365_v49  ;;  %v13827_v47 = vld [vmem:[#allocation65_spill] sm:$0xff] }
 0x638   : > { %v6874_v26 = vadd.f32 %v6873_v2, %v6705_v50 }
 0x639   : > { %v7022_v23 = vmax.f32 %v6534_v20, 0.0 }
 0x63a   : > { %v7025_v35 = vmax.f32 %v6874_v26, 0.0  ;;  %v9993_v26 = vld [vmem:[%s13577_s3 + $0x544] sm:$0xf0] }
 0x63b   : > { %v7132_v46 = vpack.c.bf16 %v7023_v18, %v7022_v23 }
 0x63c   : > { %v6366_v8 = vpop.f32.mrf.mxu3 }
 0x63d   : > { %7196 = vst [vmem:[%s10477_s24 + $0x690] sm:$0xff] %v7132_v46  ;;  %v6367_v60 = vadd.f32 %v6366_v8, %v13825_v22  ;;  %v6535_v9 = vpop.f32.mrf.mxu2  ;;  %v6707_v59 = vpop.f32.mrf.mxu0 }
 0x63e   : > { %v6876_v5 = vpop.f32.mrf.mxu1  ;;  %v6708_v41 = vadd.f32 %v6707_v59, %v11919_v43  ;;  %v9522_v59 = vld [vmem:[%s13577_s3 + $0x548] sm:$0xf0] }
 0x63f   : > { %v6536_v17 = vadd.f32 %v6535_v9, %v6367_v60  ;;  %v9992_v9 = vld [vmem:[%s13577_s3 + $0x544] sm:$0xf] }
 0x640   : > { %6746 = vmatmul.bf16.gmra.mxu0 %v9505_v19  ;;  %v6877_v56 = vadd.f32 %v6876_v5, %v6708_v41 }
 0x641   : > { %v7024_v58 = vmax.f32 %v6536_v17, 0.0  ;;  %6408 = vmatmul.bf16.gmra.mxu3 %v9505_v19  ;;  %9736 = vmatmul.msk.bf16.gmra.mxu1 %vm931_vm0, %v9509_v7  ;;  %v9520_v19 = vld [vmem:[%s13577_s3 + $0x540] sm:$0xf] }
 0x642   : > { %9704 = vmatmul.msk.bf16.gmra.mxu2 %vm931_vm0, %v9509_v7  ;;  %v7027_v15 = vmax.f32 %v6877_v56, 0.0  ;;  %v9521_v17 = vor.u32 %v9993_v26, %v9520_v19 }
 0x643   : > { %v7133_v63 = vpack.c.bf16 %v7025_v35, %v7024_v58 }
 0x644   : > { %v6369_v4 = vpop.f32.mrf.mxu3 }
 0x645   : > { %7197 = vst [vmem:[%s10477_s24 + $0x698] sm:$0xff] %v7133_v63  ;;  %v6370_v34 = vadd.f32 %v6369_v4, %v11919_v43  ;;  %v6538_v38 = vpop.f32.mrf.mxu2  ;;  %v6709_v14 = vpop.f32.mrf.mxu0  ;;  %v9990_v43 = vld [vmem:[%s13577_s3 + $0x534] sm:$0xf]  ;;  %v9525_v63 = vor.u32 %v9992_v9, %v9522_v59 }
 0x646   : > { %v6878_v3 = vpop.f32.mrf.mxu1  ;;  %v6710_v1 = vadd.f32 %v6709_v14, %v13826_v21  ;;  %v9517_v30 = vor.u32 %v9990_v43, %v9514_v51  ;;  %v13829_v14 = vld [vmem:[#allocation68_spill] sm:$0xff] }
 0x647   : > { %v6539_v25 = vadd.f32 %v6538_v38, %v6370_v34 }
 0x648   : > { %v6879_v31 = vadd.f32 %v6878_v3, %v6710_v1 }
 0x649   : > { %v7026_v33 = vmax.f32 %v6539_v25, 0.0 }
 0x64a   : > { %v7029_v62 = vmax.f32 %v6879_v31, 0.0  ;;  %v9528_v31 = vld [vmem:[%s13577_s3 + $0x550] sm:$0xf] }
 0x64b   : > { %v7134_v0 = vpack.c.bf16 %v7027_v15, %v7026_v33 }
 0x64c   : > { %v6371_v11 = vpop.f32.mrf.mxu3 }
 0x64d   : > { %7198 = vst [vmem:[%s10477_s24 + $0x6a0] sm:$0xff] %v7134_v0  ;;  %v6372_v6 = vadd.f32 %v6371_v11, %v13826_v21  ;;  %v6540_v53 = vpop.f32.mrf.mxu2  ;;  %v6712_v29 = vpop.f32.mrf.mxu0  ;;  %v13830_v11 = vld [vmem:[#allocation67_spill] sm:$0xff] }
 0x64e   : > { %v6881_v32 = vpop.f32.mrf.mxu1  ;;  %v6713_v37 = vadd.f32 %v6712_v29, %v13827_v47  ;;  %v9994_v29 = vld [vmem:[%s13577_s3 + $0x554] sm:$0xf] }
 0x64f   : > { %v6541_v55 = vadd.f32 %v6540_v53, %v6372_v6  ;;  %v9995_v6 = vld [vmem:[%s13577_s3 + $0x554] sm:$0xf0] }
 0x650   : > { %6751 = vmatmul.bf16.gmra.mxu0 %v9513_v16  ;;  %v6882_v18 = vadd.f32 %v6881_v32, %v6713_v37  ;;  %v9529_v32 = vor.u32 %v9995_v6, %v9528_v31 }
 0x651   : > { %v7028_v49 = vmax.f32 %v6541_v55, 0.0  ;;  %6413 = vmatmul.bf16.gmra.mxu3 %v9513_v16  ;;  %9737 = vmatmul.msk.bf16.gmra.mxu1 %vm931_vm0, %v9517_v30 }
 0x652   : > { %9705 = vmatmul.msk.bf16.gmra.mxu2 %vm931_vm0, %v9517_v30  ;;  %v7031_v46 = vmax.f32 %v6882_v18, 0.0  ;;  %v9530_v30 = vld [vmem:[%s13577_s3 + $0x558] sm:$0xf0] }
 0x653   : > { %v7135_v20 = vpack.c.bf16 %v7029_v62, %v7028_v49 }
 0x654   : > { %v6374_v2 = vpop.f32.mrf.mxu3 }
 0x655   : > { %7199 = vst [vmem:[%s10477_s24 + $0x6a8] sm:$0xff] %v7135_v20  ;;  %v6375_v23 = vadd.f32 %v6374_v2, %v13827_v47  ;;  %v6543_v22 = vpop.f32.mrf.mxu2  ;;  %v6714_v50 = vpop.f32.mrf.mxu0  ;;  %v9533_v20 = vor.u32 %v9994_v29, %v9530_v30 }
 0x656   : > { %v6883_v45 = vpop.f32.mrf.mxu1  ;;  %v6715_v8 = vadd.f32 %v6714_v50, %v13828_v28  ;;  %v13831_v50 = vld [vmem:[#allocation72_spill] sm:$0xff] }
 0x657   : > { %v6544_v12 = vadd.f32 %v6543_v22, %v6375_v23 }
 0x658   : > { %v6884_v5 = vadd.f32 %v6883_v45, %v6715_v8 }
 0x659   : > { %v7030_v24 = vmax.f32 %v6544_v12, 0.0 }
 0x65a   : > { %v7033_v34 = vmax.f32 %v6884_v5, 0.0  ;;  %v9536_v5 = vld [vmem:[%s13577_s3 + $0x560] sm:$0xf] }
 0x65b   : > { %v7136_v60 = vpack.c.bf16 %v7031_v46, %v7030_v24 }
 0x65c   : > { %v6376_v7 = vpop.f32.mrf.mxu3 }
 0x65d   : > { %7200 = vst [vmem:[%s10477_s24 + $0x6b0] sm:$0xff] %v7136_v60  ;;  %v6377_v35 = vadd.f32 %v6376_v7, %v13828_v28  ;;  %v6545_v58 = vpop.f32.mrf.mxu2  ;;  %v6717_v41 = vpop.f32.mrf.mxu0  ;;  %v13832_v7 = vld [vmem:[#allocation71_spill] sm:$0xff] }
 0x65e   : > { %v6886_v56 = vpop.f32.mrf.mxu1  ;;  %v6718_v25 = vadd.f32 %v6717_v41, %v13829_v14  ;;  %v9996_v41 = vld [vmem:[%s13577_s3 + $0x564] sm:$0xf] }
 0x65f   : > { %v6546_v4 = vadd.f32 %v6545_v58, %v6377_v35  ;;  %v9997_v35 = vld [vmem:[%s13577_s3 + $0x564] sm:$0xf0] }
 0x660   : > { %6756 = vmatmul.bf16.gmra.mxu0 %v9521_v17  ;;  %v6887_v33 = vadd.f32 %v6886_v56, %v6718_v25  ;;  %v9537_v56 = vor.u32 %v9997_v35, %v9536_v5 }
 0x661   : > { %v7032_v38 = vmax.f32 %v6546_v4, 0.0  ;;  %6418 = vmatmul.bf16.gmra.mxu3 %v9521_v17  ;;  %9738 = vmatmul.msk.bf16.gmra.mxu1 %vm931_vm0, %v9525_v63 }
 0x662   : > { %9706 = vmatmul.msk.bf16.gmra.mxu2 %vm931_vm0, %v9525_v63  ;;  %v7035_v43 = vmax.f32 %v6887_v33, 0.0  ;;  %v9538_v63 = vld [vmem:[%s13577_s3 + $0x568] sm:$0xf0] }
 0x663   : > { %v7137_v3 = vpack.c.bf16 %v7033_v34, %v7032_v38 }
 0x664   : > { %v6379_v15 = vpop.f32.mrf.mxu3 }
 0x665   : > { %7201 = vst [vmem:[%s10477_s24 + $0x6b8] sm:$0xff] %v7137_v3  ;;  %v6380_v21 = vadd.f32 %v6379_v15, %v13829_v14  ;;  %v6548_v1 = vpop.f32.mrf.mxu2  ;;  %v6719_v40 = vpop.f32.mrf.mxu0  ;;  %v9541_v3 = vor.u32 %v9996_v41, %v9538_v63  ;;  %v13835_v41 = vld [vmem:[#allocation73_spill] sm:$0xff] }
 0x666   : > { %v6888_v0 = vpop.f32.mrf.mxu1  ;;  %v6720_v16 = vadd.f32 %v6719_v40, %v13830_v11  ;;  %v13833_v40 = vld [vmem:[#allocation70_spill] sm:$0xff] }
 0x667   : > { %v6549_v27 = vadd.f32 %v6548_v1, %v6380_v21 }
 0x668   : > { %v6889_v62 = vadd.f32 %v6888_v0, %v6720_v16 }
 0x669   : > { %v7034_v51 = vmax.f32 %v6549_v27, 0.0 }
 0x66a   : > { %v7037_v23 = vmax.f32 %v6889_v62, 0.0  ;;  %v9999_v62 = vld [vmem:[%s13577_s3 + $0x574] sm:$0xf0] }
 0x66b   : > { %v7138_v53 = vpack.c.bf16 %v7035_v43, %v7034_v51 }
 0x66c   : > { %v6381_v55 = vpop.f32.mrf.mxu3 }
 0x66d   : > { %7202 = vst [vmem:[%s10477_s24 + $0x6c0] sm:$0xff] %v7138_v53  ;;  %v6382_v49 = vadd.f32 %v6381_v55, %v13830_v11  ;;  %v6550_v47 = vpop.f32.mrf.mxu2  ;;  %v6722_v37 = vpop.f32.mrf.mxu0 }
 0x66e   : > { %v6891_v18 = vpop.f32.mrf.mxu1  ;;  %v6723_v12 = vadd.f32 %v6722_v37, %v13831_v50  ;;  %v9546_v37 = vld [vmem:[%s13577_s3 + $0x578] sm:$0xf0] }
 0x66f   : > { %v6551_v2 = vadd.f32 %v6550_v47, %v6382_v49  ;;  %v9998_v47 = vld [vmem:[%s13577_s3 + $0x574] sm:$0xf] }
 0x670   : > { %6761 = vmatmul.bf16.gmra.mxu0 %v9529_v32  ;;  %v6892_v24 = vadd.f32 %v6891_v18, %v6723_v12  ;;  %v9549_v12 = vor.u32 %v9998_v47, %v9546_v37  ;;  %v13837_v37 = vld [vmem:[#allocation76_spill] sm:$0xff] }
 0x671   : > { %v7036_v22 = vmax.f32 %v6551_v2, 0.0  ;;  %6423 = vmatmul.bf16.gmra.mxu3 %v9529_v32  ;;  %9739 = vmatmul.msk.bf16.gmra.mxu1 %vm931_vm0, %v9533_v20  ;;  %v9544_v32 = vld [vmem:[%s13577_s3 + $0x570] sm:$0xf] }
 0x672   : > { %9707 = vmatmul.msk.bf16.gmra.mxu2 %vm931_vm0, %v9533_v20  ;;  %v7039_v9 = vmax.f32 %v6892_v24, 0.0  ;;  %v9545_v2 = vor.u32 %v9999_v62, %v9544_v32 }
 0x673   : > { %v7139_v45 = vpack.c.bf16 %v7037_v23, %v7036_v22 }
 0x674   : > { %v6384_v46 = vpop.f32.mrf.mxu3 }
 0x675   : > { %7203 = vst [vmem:[%s10477_s24 + $0x6c8] sm:$0xff] %v7139_v45  ;;  %v6385_v28 = vadd.f32 %v6384_v46, %v13831_v50  ;;  %v6553_v8 = vpop.f32.mrf.mxu2  ;;  %v6724_v19 = vpop.f32.mrf.mxu0 }
 0x676   : > { %v6893_v60 = vpop.f32.mrf.mxu1  ;;  %v6725_v17 = vadd.f32 %v6724_v19, %v13832_v7 }
 0x677   : > { %v6554_v26 = vadd.f32 %v6553_v8, %v6385_v28  ;;  %v13834_v8 = vld [vmem:[#allocation74_spill] sm:$0xff] }
 0x678   : > { %v6894_v34 = vadd.f32 %v6893_v60, %v6725_v17 }
 0x679   : > { %v7038_v59 = vmax.f32 %v6554_v26, 0.0 }
 0x67a   : > { %v7041_v21 = vmax.f32 %v6894_v34, 0.0 }
 0x67b   : > { %v7140_v58 = vpack.c.bf16 %v7039_v9, %v7038_v59 }
 0x67c   : > { %v6386_v4 = vpop.f32.mrf.mxu3 }
 0x67d   : > { %7204 = vst [vmem:[%s10477_s24 + $0x6d0] sm:$0xff] %v7140_v58  ;;  %v6387_v38 = vadd.f32 %v6386_v4, %v13832_v7  ;;  %v6555_v14 = vpop.f32.mrf.mxu2  ;;  %v6727_v25 = vpop.f32.mrf.mxu0  ;;  %v9552_v4 = vld [vmem:[%s13577_s3 + $0x580] sm:$0xf] }
 0x67e   : > { %v6896_v33 = vpop.f32.mrf.mxu1  ;;  %v6728_v27 = vadd.f32 %v6727_v25, %v13833_v40 }
 0x67f   : > { %v6556_v15 = vadd.f32 %v6555_v14, %v6387_v38  ;;  %v10000_v38 = vld [vmem:[%s13577_s3 + $0x584] sm:$0xf]  ;;  %v9554_v14 = vld [vmem:[%s13577_s3 + $0x588] sm:$0xf0] }
 0x680   : > { %6766 = vmatmul.bf16.gmra.mxu0 %v9537_v56  ;;  %v6897_v51 = vadd.f32 %v6896_v33, %v6728_v27 }
 0x681   : > { %v7040_v1 = vmax.f32 %v6556_v15, 0.0  ;;  %6428 = vmatmul.bf16.gmra.mxu3 %v9537_v56  ;;  %9740 = vmatmul.msk.bf16.gmra.mxu1 %vm931_vm0, %v9541_v3  ;;  %v10001_v56 = vld [vmem:[%s13577_s3 + $0x584] sm:$0xf0] }
 0x682   : > { %9708 = vmatmul.msk.bf16.gmra.mxu2 %vm931_vm0, %v9541_v3  ;;  %v7043_v29 = vmax.f32 %v6897_v51, 0.0  ;;  %v9553_v3 = vor.u32 %v10001_v56, %v9552_v4 }
 0x683   : > { %v7141_v0 = vpack.c.bf16 %v7041_v21, %v7040_v1 }
 0x684   : > { %v6389_v43 = vpop.f32.mrf.mxu3 }
 0x685   : > { %7205 = vst [vmem:[%s10477_s24 + $0x6d8] sm:$0xff] %v7141_v0  ;;  %v6390_v11 = vadd.f32 %v6389_v43, %v13833_v40  ;;  %v6558_v16 = vpop.f32.mrf.mxu2  ;;  %v6729_v31 = vpop.f32.mrf.mxu0  ;;  %v9557_v40 = vor.u32 %v10000_v38, %v9554_v14 }
 0x686   : > { %v6898_v53 = vpop.f32.mrf.mxu1  ;;  %v6730_v55 = vadd.f32 %v6729_v31, %v11982_v61 }
 0x687   : > { %v6559_v6 = vadd.f32 %v6558_v16, %v6390_v11  ;;  %v13836_v11 = vld [vmem:[#allocation77_spill] sm:$0xff] }
 0x688   : > { %v6899_v18 = vadd.f32 %v6898_v53, %v6730_v55 }
 0x689   : > { %v7042_v30 = vmax.f32 %v6559_v6, 0.0 }
 0x68a   : > { %v7045_v24 = vmax.f32 %v6899_v18, 0.0  ;;  %v10003_v18 = vld [vmem:[%s13577_s3 + $0x594] sm:$0xf0] }
 0x68b   : > { %v7142_v49 = vpack.c.bf16 %v7043_v29, %v7042_v30 }
 0x68c   : > { %v6391_v20 = vpop.f32.mrf.mxu3 }
 0x68d   : > { %7206 = vst [vmem:[%s10477_s24 + $0x6e0] sm:$0xff] %v7142_v49  ;;  %v6392_v23 = vadd.f32 %v6391_v20, %v11982_v61  ;;  %v6560_v22 = vpop.f32.mrf.mxu2  ;;  %v6732_v50 = vpop.f32.mrf.mxu0 }
 0x68e   : > { %v6901_v46 = vpop.f32.mrf.mxu1  ;;  %v6733_v19 = vadd.f32 %v6732_v50, %v13834_v8  ;;  %v9562_v50 = vld [vmem:[%s13577_s3 + $0x598] sm:$0xf0] }
 0x68f   : > { %v6561_v45 = vadd.f32 %v6560_v22, %v6392_v23  ;;  %v10002_v22 = vld [vmem:[%s13577_s3 + $0x594] sm:$0xf] }
 0x690   : > { %6771 = vmatmul.bf16.gmra.mxu0 %v9545_v2  ;;  %v6902_v9 = vadd.f32 %v6901_v46, %v6733_v19  ;;  %v9565_v19 = vor.u32 %v10002_v22, %v9562_v50  ;;  %v9576_v50 = vld [vmem:[%s13577_s3 + $0x5b0] sm:$0xf] }
 0x691   : > { %v7044_v28 = vmax.f32 %v6561_v45, 0.0  ;;  %6433 = vmatmul.bf16.gmra.mxu3 %v9545_v2  ;;  %9741 = vmatmul.msk.bf16.gmra.mxu1 %vm931_vm0, %v9549_v12  ;;  %v9560_v2 = vld [vmem:[%s13577_s3 + $0x590] sm:$0xf] }
 0x692   : > { %9709 = vmatmul.msk.bf16.gmra.mxu2 %vm931_vm0, %v9549_v12  ;;  %v7047_v35 = vmax.f32 %v6902_v9, 0.0  ;;  %v9561_v45 = vor.u32 %v10003_v18, %v9560_v2 }
 0x693   : > { %v7143_v26 = vpack.c.bf16 %v7045_v24, %v7044_v28 }
 0x694   : > { %v6394_v60 = vpop.f32.mrf.mxu3 }
 0x695   : > { %7207 = vst [vmem:[%s10477_s24 + $0x6e8] sm:$0xff] %v7143_v26  ;;  %v6395_v61 = vadd.f32 %v6394_v60, %v13834_v8  ;;  %v6563_v59 = vpop.f32.mrf.mxu2  ;;  %v6734_v7 = vpop.f32.mrf.mxu0 }
 0x696   : > { %v6903_v5 = vpop.f32.mrf.mxu1  ;;  %v6735_v63 = vadd.f32 %v6734_v7, %v13835_v41 }
 0x697   : > { %v6564_v17 = vadd.f32 %v6563_v59, %v6395_v61  ;;  %v13838_v59 = vld [vmem:[#allocation75_spill] sm:$0xff] }
 0x698   : > { %v6904_v15 = vadd.f32 %v6903_v5, %v6735_v63 }
 0x699   : > { %v7046_v58 = vmax.f32 %v6564_v17, 0.0 }
 0x69a   : > { %v7049_v43 = vmax.f32 %v6904_v15, 0.0 }
 0x69b   : > { %v7144_v34 = vpack.c.bf16 %v7047_v35, %v7046_v58 }
 0x69c   : > { %v6396_v25 = vpop.f32.mrf.mxu3 }
 0x69d   : > { %7208 = vst [vmem:[%s10477_s24 + $0x6f0] sm:$0xff] %v7144_v34  ;;  %v6397_v33 = vadd.f32 %v6396_v25, %v13835_v41  ;;  %v6565_v21 = vpop.f32.mrf.mxu2  ;;  %v6737_v1 = vpop.f32.mrf.mxu0  ;;  %v9568_v25 = vld [vmem:[%s13577_s3 + $0x5a0] sm:$0xf] }
 0x69e   : > { %v6906_v0 = vpop.f32.mrf.mxu1  ;;  %v6738_v16 = vadd.f32 %v6737_v1, %v13836_v11 }
 0x69f   : > { %v6566_v27 = vadd.f32 %v6565_v21, %v6397_v33  ;;  %v10004_v33 = vld [vmem:[%s13577_s3 + $0x5a4] sm:$0xf]  ;;  %v9570_v21 = vld [vmem:[%s13577_s3 + $0x5a8] sm:$0xf0] }
 0x6a0   : > { %6776 = vmatmul.bf16.gmra.mxu0 %v9553_v3  ;;  %v6907_v53 = vadd.f32 %v6906_v0, %v6738_v16 }
 0x6a1   : > { %v7048_v51 = vmax.f32 %v6566_v27, 0.0  ;;  %6438 = vmatmul.bf16.gmra.mxu3 %v9553_v3  ;;  %9742 = vmatmul.msk.bf16.gmra.mxu1 %vm931_vm0, %v9557_v40  ;;  %v10005_v3 = vld [vmem:[%s13577_s3 + $0x5a4] sm:$0xf0] }
 0x6a2   : > { %9710 = vmatmul.msk.bf16.gmra.mxu2 %vm931_vm0, %v9557_v40  ;;  %v7051_v49 = vmax.f32 %v6907_v53, 0.0  ;;  %v9569_v40 = vor.u32 %v10005_v3, %v9568_v25 }
 0x6a3   : > { %v7145_v31 = vpack.c.bf16 %v7049_v43, %v7048_v51 }
 0x6a4   : > { %v6399_v6 = vpop.f32.mrf.mxu3 }
 0x6a5   : > { %7209 = vst [vmem:[%s10477_s24 + $0x6f8] sm:$0xff] %v7145_v31  ;;  %v6400_v29 = vadd.f32 %v6399_v6, %v13836_v11  ;;  %v6568_v30 = vpop.f32.mrf.mxu2  ;;  %v6739_v55 = vpop.f32.mrf.mxu0  ;;  %v9573_v11 = vor.u32 %v10004_v33, %v9570_v21  ;;  %v9584_v33 = vld [vmem:[%s13577_s3 + $0x5c0] sm:$0xf]  ;;  %v10009_v21 = vld [vmem:[%s13577_s3 + $0x5c4] sm:$0xf0] }
 0x6a6   : > { %v6908_v62 = vpop.f32.mrf.mxu1  ;;  %v6740_v20 = vadd.f32 %v6739_v55, %v13837_v37 }
 0x6a7   : > { %v6569_v32 = vadd.f32 %v6568_v30, %v6400_v29  ;;  %v13839_v29 = vld [vmem:[#allocation79_spill] sm:$0xff] }
 0x6a8   : > { %v6909_v46 = vadd.f32 %v6908_v62, %v6740_v20 }
 0x6a9   : > { %v7050_v47 = vmax.f32 %v6569_v32, 0.0 }
 0x6aa   : > { %v7053_v9 = vmax.f32 %v6909_v46, 0.0  ;;  %v10006_v46 = vld [vmem:[%s13577_s3 + $0x5b4] sm:$0xf] }
 0x6ab   : > { %v7146_v23 = vpack.c.bf16 %v7051_v49, %v7050_v47 }
 0x6ac   : > { %v6401_v12 = vpop.f32.mrf.mxu3 }
 0x6ad   : > { %7210 = vst [vmem:[%s10477_s24 + $0x700] sm:$0xff] %v7146_v23  ;;  %v6402_v24 = vadd.f32 %v6401_v12, %v13837_v37  ;;  %v6570_v28 = vpop.f32.mrf.mxu2  ;;  %v6742_v8 = vpop.f32.mrf.mxu0  ;;  %v13840_v23 = vld [vmem:[#allocation78_spill] sm:$0xff]  ;;  %v10007_v12 = vld [vmem:[%s13577_s3 + $0x5b4] sm:$0xf0] }
 0x6ae   : > { %v6911_v60 = vpop.f32.mrf.mxu1  ;;  %v6743_v7 = vadd.f32 %v6742_v8, %v13838_v59  ;;  %v9577_v8 = vor.u32 %v10007_v12, %v9576_v50  ;;  %v9592_v50 = vld [vmem:[%s13577_s3 + $0x5d0] sm:$0xf]  ;;  %v10011_v12 = vld [vmem:[%s13577_s3 + $0x5d4] sm:$0xf0] }
 0x6af   : > { %v6571_v26 = vadd.f32 %v6570_v28, %v6402_v24  ;;  %v9578_v24 = vld [vmem:[%s13577_s3 + $0x5b8] sm:$0xf0] }
 0x6b0   : > { %6781 = vmatmul.bf16.gmra.mxu0 %v9561_v45  ;;  %v6912_v35 = vadd.f32 %v6911_v60, %v6743_v7 }
 0x6b1   : > { %v7052_v61 = vmax.f32 %v6571_v26, 0.0  ;;  %6443 = vmatmul.bf16.gmra.mxu3 %v9561_v45  ;;  %9743 = vmatmul.msk.bf16.gmra.mxu1 %vm931_vm0, %v9565_v19 }
 0x6b2   : > { %9711 = vmatmul.msk.bf16.gmra.mxu2 %vm931_vm0, %v9565_v19  ;;  %v7055_v34 = vmax.f32 %v6912_v35, 0.0 }
 0x6b3   : > { %v7147_v17 = vpack.c.bf16 %v7053_v9, %v7052_v61  ;;  %v9581_v61 = vor.u32 %v10006_v46, %v9578_v24  ;;  %v10010_v46 = vld [vmem:[%s13577_s3 + $0x5d4] sm:$0xf]  ;;  %v9594_v24 = vld [vmem:[%s13577_s3 + $0x5d8] sm:$0xf0] }
 0x6b4   : > { %v6404_v5 = vpop.f32.mrf.mxu3 }
 0x6b5   : > { %7211 = vst [vmem:[%s10477_s24 + $0x708] sm:$0xff] %v7147_v17  ;;  %v6405_v58 = vadd.f32 %v6404_v5, %v13838_v59  ;;  %v6573_v41 = vpop.f32.mrf.mxu2  ;;  %v6744_v63 = vpop.f32.mrf.mxu0 }
 0x6b6   : > { %v6913_v56 = vpop.f32.mrf.mxu1  ;;  %v6745_v14 = vadd.f32 %v6744_v63, %v12024_v39 }
 0x6b7   : > { %v6574_v4 = vadd.f32 %v6573_v41, %v6405_v58 }
 0x6b8   : > { %v6914_v27 = vadd.f32 %v6913_v56, %v6745_v14 }
 0x6b9   : > { %v7054_v38 = vmax.f32 %v6574_v4, 0.0 }
 0x6ba   : > { %v7057_v6 = vmax.f32 %v6914_v27, 0.0 }
 0x6bb   : > { %v7148_v15 = vpack.c.bf16 %v7055_v34, %v7054_v38 }
 0x6bc   : > { %v6406_v1 = vpop.f32.mrf.mxu3 }
 0x6bd   : > { %7212 = vst [vmem:[%s10477_s24 + $0x710] sm:$0xff] %v7148_v15  ;;  %v6407_v0 = vadd.f32 %v6406_v1, %v12024_v39  ;;  %v6575_v43 = vpop.f32.mrf.mxu2  ;;  %v6747_v51 = vpop.f32.mrf.mxu0 }
 0x6be   : > { %v6916_v31 = vpop.f32.mrf.mxu1  ;;  %v6748_v30 = vadd.f32 %v6747_v51, %v13839_v29 }
 0x6bf   : > { %v6576_v16 = vadd.f32 %v6575_v43, %v6407_v0  ;;  %v9585_v0 = vor.u32 %v10009_v21, %v9584_v33  ;;  %v9600_v21 = vld [vmem:[%s13577_s3 + $0x5e0] sm:$0xf] }
 0x6c0   : > { %6786 = vmatmul.bf16.gmra.mxu0 %v9569_v40  ;;  %v6917_v62 = vadd.f32 %v6916_v31, %v6748_v30 }
 0x6c1   : > { %v7056_v53 = vmax.f32 %v6576_v16, 0.0  ;;  %6448 = vmatmul.bf16.gmra.mxu3 %v9569_v40  ;;  %9744 = vmatmul.msk.bf16.gmra.mxu1 %vm931_vm0, %v9573_v11  ;;  %v9586_v40 = vld [vmem:[%s13577_s3 + $0x5c8] sm:$0xf0] }
 0x6c2   : > { %9712 = vmatmul.msk.bf16.gmra.mxu2 %vm931_vm0, %v9573_v11  ;;  %v7059_v2 = vmax.f32 %v6917_v62, 0.0 }
 0x6c3   : > { %v7149_v55 = vpack.c.bf16 %v7057_v6, %v7056_v53 }
 0x6c4   : > { %v6409_v32 = vpop.f32.mrf.mxu3 }
 0x6c5   : > { %7213 = vst [vmem:[%s10477_s24 + $0x718] sm:$0xff] %v7149_v55  ;;  %v6410_v39 = vadd.f32 %v6409_v32, %v13839_v29  ;;  %v6578_v49 = vpop.f32.mrf.mxu2  ;;  %v6749_v47 = vpop.f32.mrf.mxu0  ;;  %v13841_v55 = vld [vmem:[#allocation80_spill] sm:$0xff] }
 0x6c6   : > { %v6918_v20 = vpop.f32.mrf.mxu1  ;;  %v6750_v22 = vadd.f32 %v6749_v47, %v13840_v23 }
 0x6c7   : > { %v6579_v37 = vadd.f32 %v6578_v49, %v6410_v39 }
 0x6c8   : > { %v6919_v19 = vadd.f32 %v6918_v20, %v6750_v22 }
 0x6c9   : > { %v7058_v18 = vmax.f32 %v6579_v37, 0.0 }
 0x6ca   : > { %v7061_v17 = vmax.f32 %v6919_v19, 0.0 }
 0x6cb   : > { %v7150_v45 = vpack.c.bf16 %v7059_v2, %v7058_v18 }
 0x6cc   : > { %v6411_v28 = vpop.f32.mrf.mxu3 }
 0x6cd   : > { %7214 = vst [vmem:[%s10477_s24 + $0x720] sm:$0xff] %v7150_v45  ;;  %v6412_v26 = vadd.f32 %v6411_v28, %v13840_v23  ;;  %v6580_v60 = vpop.f32.mrf.mxu2  ;;  %v6752_v9 = vpop.f32.mrf.mxu0 }
 0x6ce   : > { %v6921_v7 = vpop.f32.mrf.mxu1  ;;  %v6753_v35 = vadd.f32 %v6752_v9, %v12038_v42 }
 0x6cf   : > { %v6581_v59 = vadd.f32 %v6580_v60, %v6412_v26 }
 0x6d0   : > { %6791 = vmatmul.bf16.gmra.mxu0 %v9577_v8  ;;  %v6922_v63 = vadd.f32 %v6921_v7, %v6753_v35  ;;  %v13842_v35 = vld [vmem:[#allocation82_spill] sm:$0xff] }
 0x6d1   : > { %v7060_v5 = vmax.f32 %v6581_v59, 0.0  ;;  %6453 = vmatmul.bf16.gmra.mxu3 %v9577_v8  ;;  %9745 = vmatmul.msk.bf16.gmra.mxu1 %vm931_vm0, %v9581_v61  ;;  %v9593_v8 = vor.u32 %v10011_v12, %v9592_v50  ;;  %v9608_v12 = vld [vmem:[%s13577_s3 + $0x5f0] sm:$0xf] }
 0x6d2   : > { %9713 = vmatmul.msk.bf16.gmra.mxu2 %vm931_vm0, %v9581_v61  ;;  %v7063_v25 = vmax.f32 %v6922_v63, 0.0  ;;  %v9597_v61 = vor.u32 %v10010_v46, %v9594_v24  ;;  %v9610_v24 = vld [vmem:[%s13577_s3 + $0x5f8] sm:$0xf0] }
 0x6d3   : > { %v7151_v58 = vpack.c.bf16 %v7061_v17, %v7060_v5 }
 0x6d4   : > { %v6414_v41 = vpop.f32.mrf.mxu3 }
 0x6d5   : > { %7215 = vst [vmem:[%s10477_s24 + $0x728] sm:$0xff] %v7151_v58  ;;  %v6415_v4 = vadd.f32 %v6414_v41, %v12038_v42  ;;  %v6583_v56 = vpop.f32.mrf.mxu2  ;;  %v6754_v34 = vpop.f32.mrf.mxu0  ;;  %v10008_v42 = vld [vmem:[%s13577_s3 + $0x5c4] sm:$0xf] }
 0x6d6   : > { %v6923_v14 = vpop.f32.mrf.mxu1  ;;  %v6755_v15 = vadd.f32 %v6754_v34, %v12028_v13  ;;  %v9589_v31 = vor.u32 %v10008_v42, %v9586_v40  ;;  %v10012_v40 = vld [vmem:[%s13577_s3 + $0x5e4] sm:$0xf] }
 0x6d7   : > { %v6584_v38 = vadd.f32 %v6583_v56, %v6415_v4 }
 0x6d8   : > { %v6924_v43 = vadd.f32 %v6923_v14, %v6755_v15  ;;  %v13843_v15 = vld [vmem:[#allocation81_spill] sm:$0xff] }
 0x6d9   : > { %v7062_v3 = vmax.f32 %v6584_v38, 0.0 }
 0x6da   : > { %v7065_v29 = vmax.f32 %v6924_v43, 0.0 }
 0x6db   : > { %v7152_v1 = vpack.c.bf16 %v7063_v25, %v7062_v3 }
 0x6dc   : > { %v6416_v27 = vpop.f32.mrf.mxu3 }
 0x6dd   : > { %7216 = vst [vmem:[%s10477_s24 + $0x730] sm:$0xff] %v7152_v1  ;;  %v6417_v51 = vadd.f32 %v6416_v27, %v12028_v13  ;;  %v6585_v11 = vpop.f32.mrf.mxu2  ;;  %v6757_v16 = vpop.f32.mrf.mxu0  ;;  %v10013_v1 = vld [vmem:[%s13577_s3 + $0x5e4] sm:$0xf0]  ;;  %v9602_v27 = vld [vmem:[%s13577_s3 + $0x5e8] sm:$0xf0] }
 0x6de   : > { %v6926_v53 = vpop.f32.mrf.mxu1  ;;  %v6758_v32 = vadd.f32 %v6757_v16, %v13841_v55  ;;  %v9601_v43 = vor.u32 %v10013_v1, %v9600_v21 }
 0x6df   : > { %v6586_v6 = vadd.f32 %v6585_v11, %v6417_v51 }
 0x6e0   : > { %6796 = vmatmul.bf16.gmra.mxu0 %v9585_v0  ;;  %v6927_v49 = vadd.f32 %v6926_v53, %v6758_v32 }
 0x6e1   : > { %v7064_v30 = vmax.f32 %v6586_v6, 0.0  ;;  %6458 = vmatmul.bf16.gmra.mxu3 %v9585_v0  ;;  %9746 = vmatmul.msk.bf16.gmra.mxu1 %vm931_vm0, %v9589_v31  ;;  %v9605_v6 = vor.u32 %v10012_v40, %v9602_v27 }
 0x6e2   : > { %9714 = vmatmul.msk.bf16.gmra.mxu2 %vm931_vm0, %v9589_v31  ;;  %v7067_v18 = vmax.f32 %v6927_v49, 0.0 }
 0x6e3   : > { %v7153_v62 = vpack.c.bf16 %v7065_v29, %v7064_v30 }
 0x6e4   : > { %v6419_v39 = vpop.f32.mrf.mxu3 }
 0x6e5   : > { %7217 = vst [vmem:[%s10477_s24 + $0x738] sm:$0xff] %v7153_v62  ;;  %v6420_v13 = vadd.f32 %v6419_v39, %v13841_v55  ;;  %v6588_v47 = vpop.f32.mrf.mxu2  ;;  %v6759_v37 = vpop.f32.mrf.mxu0 }
 0x6e6   : > { %v6928_v2 = vpop.f32.mrf.mxu1  ;;  %v6760_v22 = vadd.f32 %v6759_v37, %v12062_v44 }
 0x6e7   : > { %v6589_v20 = vadd.f32 %v6588_v47, %v6420_v13 }
 0x6e8   : > { %v6929_v19 = vadd.f32 %v6928_v2, %v6760_v22  ;;  %v13844_v22 = vld [vmem:[#allocation84_spill] sm:$0xff] }
 0x6e9   : > { %v7066_v23 = vmax.f32 %v6589_v20, 0.0 }
 0x6ea   : > { %v7069_v17 = vmax.f32 %v6929_v19, 0.0 }
 0x6eb   : > { %v7154_v45 = vpack.c.bf16 %v7067_v18, %v7066_v23 }
 0x6ec   : > { %v6421_v28 = vpop.f32.mrf.mxu3 }
 0x6ed   : > { %7218 = vst [vmem:[%s10477_s24 + $0x740] sm:$0xff] %v7154_v45  ;;  %v6422_v26 = vadd.f32 %v6421_v28, %v12062_v44  ;;  %v6590_v60 = vpop.f32.mrf.mxu2  ;;  %v6762_v9 = vpop.f32.mrf.mxu0  ;;  %v10015_v45 = vld [vmem:[%s13577_s3 + $0x5f4] sm:$0xf0] }
 0x6ee   : > { %v6931_v7 = vpop.f32.mrf.mxu1  ;;  %v6763_v58 = vadd.f32 %v6762_v9, %v13842_v35 }
 0x6ef   : > { %v6591_v59 = vadd.f32 %v6590_v60, %v6422_v26 }
 0x6f0   : > { %6801 = vmatmul.bf16.gmra.mxu0 %v9593_v8  ;;  %v6932_v4 = vadd.f32 %v6931_v7, %v6763_v58 }
 0x6f1   : > { %v7068_v5 = vmax.f32 %v6591_v59, 0.0  ;;  %6463 = vmatmul.bf16.gmra.mxu3 %v9593_v8  ;;  %9747 = vmatmul.msk.bf16.gmra.mxu1 %vm931_vm0, %v9597_v61  ;;  %v9609_v8 = vor.u32 %v10015_v45, %v9608_v12 }
 0x6f2   : > { %9715 = vmatmul.msk.bf16.gmra.mxu2 %vm931_vm0, %v9597_v61  ;;  %v7071_v25 = vmax.f32 %v6932_v4, 0.0 }
 0x6f3   : > { %v7155_v41 = vpack.c.bf16 %v7069_v17, %v7068_v5 }
 0x6f4   : > { %v6424_v63 = vpop.f32.mrf.mxu3 }
 0x6f5   : > { %7219 = vst [vmem:[%s10477_s24 + $0x748] sm:$0xff] %v7155_v41  ;;  %v6425_v44 = vadd.f32 %v6424_v63, %v13842_v35  ;;  %v6593_v56 = vpop.f32.mrf.mxu2  ;;  %v6764_v34 = vpop.f32.mrf.mxu0  ;;  %v13845_v35 = vld [vmem:[#allocation83_spill] sm:$0xff] }
 0x6f6   : > { %v6933_v14 = vpop.f32.mrf.mxu1  ;;  %v6765_v33 = vadd.f32 %v6764_v34, %v13843_v15 }
 0x6f7   : > { %v6594_v38 = vadd.f32 %v6593_v56, %v6425_v44 }
 0x6f8   : > { %v6934_v51 = vadd.f32 %v6933_v14, %v6765_v33 }
 0x6f9   : > { %v7070_v3 = vmax.f32 %v6594_v38, 0.0 }
 0x6fa   : > { %v7073_v30 = vmax.f32 %v6934_v51, 0.0 }
 0x6fb   : > { %v7156_v42 = vpack.c.bf16 %v7071_v25, %v7070_v3 }
 0x6fc   : > { %v6426_v0 = vpop.f32.mrf.mxu3 }
 0x6fd   : > { %7220 = vst [vmem:[%s10477_s24 + $0x750] sm:$0xff] %v7156_v42  ;;  %v6427_v11 = vadd.f32 %v6426_v0, %v13843_v15  ;;  %v6595_v16 = vpop.f32.mrf.mxu2  ;;  %v6767_v31 = vpop.f32.mrf.mxu0 }
 0x6fe   : > { %v6936_v29 = vpop.f32.mrf.mxu1  ;;  %v6768_v32 = vadd.f32 %v6767_v31, %v12076_v48 }
 0x6ff   : > { %v6596_v53 = vadd.f32 %v6595_v16, %v6427_v11  ;;  %v13846_v16 = vld [vmem:[#allocation86_spill] sm:$0xff] }
 0x700   : > { %6806 = vmatmul.bf16.gmra.mxu0 %v9601_v43  ;;  %v6937_v49 = vadd.f32 %v6936_v29, %v6768_v32 }
 0x701   : > { %v7072_v55 = vmax.f32 %v6596_v53, 0.0  ;;  %6468 = vmatmul.bf16.gmra.mxu3 %v9601_v43  ;;  %9748 = vmatmul.msk.bf16.gmra.mxu1 %vm931_vm0, %v9605_v6 }
 0x702   : > { %9716 = vmatmul.msk.bf16.gmra.mxu2 %vm931_vm0, %v9605_v6  ;;  %v7075_v18 = vmax.f32 %v6937_v49, 0.0 }
 0x703   : > { %v7157_v62 = vpack.c.bf16 %v7073_v30, %v7072_v55 }
 0x704   : > { %v6429_v39 = vpop.f32.mrf.mxu3 }
 0x705   : > { %7221 = vst [vmem:[%s10477_s24 + $0x758] sm:$0xff] %v7157_v62  ;;  %v6430_v13 = vadd.f32 %v6429_v39, %v12076_v48  ;;  %v6598_v47 = vpop.f32.mrf.mxu2  ;;  %v6769_v37 = vpop.f32.mrf.mxu0  ;;  %v10014_v48 = vld [vmem:[%s13577_s3 + $0x5f4] sm:$0xf] }
 0x706   : > { %v6938_v2 = vpop.f32.mrf.mxu1  ;;  %v6770_v50 = vadd.f32 %v6769_v37, %v13844_v22  ;;  %v9613_v61 = vor.u32 %v10014_v48, %v9610_v24 }
 0x707   : > { %v6599_v20 = vadd.f32 %v6598_v47, %v6430_v13  ;;  %v13847_v13 = vld [vmem:[#allocation85_spill] sm:$0xff] }
 0x708   : > { %v6939_v19 = vadd.f32 %v6938_v2, %v6770_v50 }
 0x709   : > { %v7074_v23 = vmax.f32 %v6599_v20, 0.0 }
 0x70a   : > { %v7077_v17 = vmax.f32 %v6939_v19, 0.0 }
 0x70b   : > { %v7158_v46 = vpack.c.bf16 %v7075_v18, %v7074_v23 }
 0x70c   : > { %v6431_v28 = vpop.f32.mrf.mxu3 }
 0x70d   : > { %7222 = vst [vmem:[%s10477_s24 + $0x760] sm:$0xff] %v7158_v46  ;;  %v6432_v26 = vadd.f32 %v6431_v28, %v13844_v22  ;;  %v6600_v60 = vpop.f32.mrf.mxu2  ;;  %v6772_v9 = vpop.f32.mrf.mxu0 }
 0x70e   : > { %v6941_v7 = vpop.f32.mrf.mxu1  ;;  %v6773_v58 = vadd.f32 %v6772_v9, %v13845_v35 }
 0x70f   : > { %v6601_v59 = vadd.f32 %v6600_v60, %v6432_v26 }
 0x710   : > { %6811 = vmatmul.bf16.gmra.mxu0 %v9609_v8  ;;  %v6942_v4 = vadd.f32 %v6941_v7, %v6773_v58 }
 0x711   : > { %v7076_v5 = vmax.f32 %v6601_v59, 0.0  ;;  %6473 = vmatmul.bf16.gmra.mxu3 %v9609_v8  ;;  %9749 = vmatmul.msk.bf16.gmra.mxu1 %vm931_vm0, %v9613_v61 }
 0x712   : > { %9717 = vmatmul.msk.bf16.gmra.mxu2 %vm931_vm0, %v9613_v61  ;;  %v7079_v25 = vmax.f32 %v6942_v4, 0.0 }
 0x713   : > { %v7159_v41 = vpack.c.bf16 %v7077_v17, %v7076_v5  ;;  %v13848_v17 = vld [vmem:[#allocation88_spill] sm:$0xff] }
 0x714   : > { %v6434_v63 = vpop.f32.mrf.mxu3 }
 0x715   : > { %7223 = vst [vmem:[%s10477_s24 + $0x768] sm:$0xff] %v7159_v41  ;;  %v6435_v44 = vadd.f32 %v6434_v63, %v13845_v35  ;;  %v6603_v56 = vpop.f32.mrf.mxu2  ;;  %v6774_v34 = vpop.f32.mrf.mxu0 }
 0x716   : > { %v6943_v14 = vpop.f32.mrf.mxu1  ;;  %v6775_v15 = vadd.f32 %v6774_v34, %v12100_v54 }
 0x717   : > { %v6604_v38 = vadd.f32 %v6603_v56, %v6435_v44 }
 0x718   : > { %v6944_v1 = vadd.f32 %v6943_v14, %v6775_v15  ;;  %v13849_v14 = vld [vmem:[#allocation87_spill] sm:$0xff] }
 0x719   : > { %v7078_v3 = vmax.f32 %v6604_v38, 0.0 }
 0x71a   : > { %v7081_v51 = vmax.f32 %v6944_v1, 0.0 }
 0x71b   : > { %v7160_v33 = vpack.c.bf16 %v7079_v25, %v7078_v3 }
 0x71c   : > { %v6436_v21 = vpop.f32.mrf.mxu3 }
 0x71d   : > { %7224 = vst [vmem:[%s10477_s24 + $0x770] sm:$0xff] %v7160_v33  ;;  %v6437_v42 = vadd.f32 %v6436_v21, %v12100_v54  ;;  %v6605_v40 = vpop.f32.mrf.mxu2  ;;  %v6777_v27 = vpop.f32.mrf.mxu0 }
 0x71e   : > { %v6946_v43 = vpop.f32.mrf.mxu1  ;;  %v6778_v31 = vadd.f32 %v6777_v27, %v13846_v16 }
 0x71f   : > { %v6606_v0 = vadd.f32 %v6605_v40, %v6437_v42 }
 0x720   : > { %v6947_v29 = vadd.f32 %v6946_v43, %v6778_v31 }
 0x721   : > { %v7080_v11 = vmax.f32 %v6606_v0, 0.0 }
 0x722   : > { %v7083_v54 = vmax.f32 %v6947_v29, 0.0 }
 0x723   : > { %v7161_v6 = vpack.c.bf16 %v7081_v51, %v7080_v11 }
 0x724   : > { %v6439_v53 = vpop.f32.mrf.mxu3 }
 0x725   : > { %7225 = vst [vmem:[%s10477_s24 + $0x778] sm:$0xff] %v7161_v6  ;;  %v6440_v30 = vadd.f32 %v6439_v53, %v13846_v16  ;;  %v6608_v55 = vpop.f32.mrf.mxu2  ;;  %v6779_v32 = vpop.f32.mrf.mxu0 }
 0x726   : > { %v6948_v39 = vpop.f32.mrf.mxu1  ;;  %v6780_v47 = vadd.f32 %v6779_v32, %v13847_v13 }
 0x727   : > { %v6609_v62 = vadd.f32 %v6608_v55, %v6440_v30 }
 0x728   : > { %v6949_v2 = vadd.f32 %v6948_v39, %v6780_v47  ;;  %v13850_v39 = vld [vmem:[#allocation90_spill] sm:$0xff] }
 0x729   : > { %v7082_v49 = vmax.f32 %v6609_v62, 0.0 }
 0x72a   : > { %v7085_v45 = vmax.f32 %v6949_v2, 0.0 }
 0x72b   : > { %v7162_v37 = vpack.c.bf16 %v7083_v54, %v7082_v49 }
 0x72c   : > { %v6441_v20 = vpop.f32.mrf.mxu3 }
 0x72d   : > { %7226 = vst [vmem:[%s10477_s24 + $0x780] sm:$0xff] %v7162_v37  ;;  %v6442_v18 = vadd.f32 %v6441_v20, %v13847_v13  ;;  %v6610_v23 = vpop.f32.mrf.mxu2  ;;  %v6782_v22 = vpop.f32.mrf.mxu0 }
 0x72e   : > { %v6951_v12 = vpop.f32.mrf.mxu1  ;;  %v6783_v48 = vadd.f32 %v6782_v22, %v12114_v52 }
 0x72f   : > { %v6611_v50 = vadd.f32 %v6610_v23, %v6442_v18 }
 0x730   : > { %v6952_v8 = vadd.f32 %v6951_v12, %v6783_v48 }
 0x731   : > { %v7084_v46 = vmax.f32 %v6611_v50, 0.0  ;;  %v13851_v50 = vld [vmem:[#allocation89_spill] sm:$0xff] }
 0x732   : > { %v7087_v59 = vmax.f32 %v6952_v8, 0.0 }
 0x733   : > { %v7163_v24 = vpack.c.bf16 %v7085_v45, %v7084_v46 }
 0x734   : > { %v6444_v28 = vpop.f32.mrf.mxu3 }
 0x735   : > { %7227 = vst [vmem:[%s10477_s24 + $0x788] sm:$0xff] %v7163_v24  ;;  %v6445_v19 = vadd.f32 %v6444_v28, %v12114_v52  ;;  %v6613_v26 = vpop.f32.mrf.mxu2  ;;  %v6784_v60 = vpop.f32.mrf.mxu0 }
 0x736   : > { %v6953_v61 = vpop.f32.mrf.mxu1  ;;  %v6785_v5 = vadd.f32 %v6784_v60, %v13848_v17 }
 0x737   : > { %v6614_v9 = vadd.f32 %v6613_v26, %v6445_v19 }
 0x738   : > { %v6954_v41 = vadd.f32 %v6953_v61, %v6785_v5  ;;  %v13852_v61 = vld [vmem:[#allocation93_spill] sm:$0xff] }
 0x739   : > { %v7086_v7 = vmax.f32 %v6614_v9, 0.0 }
 0x73a   : > { %v7089_v52 = vmax.f32 %v6954_v41, 0.0 }
 0x73b   : > { %v7164_v35 = vpack.c.bf16 %v7087_v59, %v7086_v7 }
 0x73c   : > { %v6446_v58 = vpop.f32.mrf.mxu3 }
 0x73d   : > { %7228 = vst [vmem:[%s10477_s24 + $0x790] sm:$0xff] %v7164_v35  ;;  %v6447_v63 = vadd.f32 %v6446_v58, %v13848_v17  ;;  %v6615_v4 = vpop.f32.mrf.mxu2  ;;  %v6787_v44 = vpop.f32.mrf.mxu0 }
 0x73e   : > { %v6956_v34 = vpop.f32.mrf.mxu1  ;;  %v6788_v25 = vadd.f32 %v6787_v44, %v13849_v14 }
 0x73f   : > { %v6616_v56 = vadd.f32 %v6615_v4, %v6447_v63 }
 0x740   : > { %v6957_v33 = vadd.f32 %v6956_v34, %v6788_v25  ;;  %v13853_v34 = vld [vmem:[#allocation92_spill] sm:$0xff] }
 0x741   : > { %v7088_v38 = vmax.f32 %v6616_v56, 0.0 }
 0x742   : > { %v7091_v0 = vmax.f32 %v6957_v33, 0.0 }
 0x743   : > { %v7165_v3 = vpack.c.bf16 %v7089_v52, %v7088_v38 }
 0x744   : > { %v6449_v15 = vpop.f32.mrf.mxu3 }
 0x745   : > { %7229 = vst [vmem:[%s10477_s24 + $0x798] sm:$0xff] %v7165_v3  ;;  %v6450_v21 = vadd.f32 %v6449_v15, %v13849_v14  ;;  %v6618_v1 = vpop.f32.mrf.mxu2  ;;  %v6789_v42 = vpop.f32.mrf.mxu0 }
 0x746   : > { %v6958_v27 = vpop.f32.mrf.mxu1  ;;  %v6790_v51 = vadd.f32 %v6789_v42, %v12138_v57 }
 0x747   : > { %v6619_v40 = vadd.f32 %v6618_v1, %v6450_v21 }
 0x748   : > { %v6959_v31 = vadd.f32 %v6958_v27, %v6790_v51  ;;  %v13854_v27 = vld [vmem:[#allocation91_spill] sm:$0xff] }
 0x749   : > { %v7090_v43 = vmax.f32 %v6619_v40, 0.0 }
 0x74a   : > { %v7093_v32 = vmax.f32 %v6959_v31, 0.0 }
 0x74b   : > { %v7166_v11 = vpack.c.bf16 %v7091_v0, %v7090_v43 }
 0x74c   : > { %v6451_v16 = vpop.f32.mrf.mxu3 }
 0x74d   : > { %7230 = vst [vmem:[%s10477_s24 + $0x7a0] sm:$0xff] %v7166_v11  ;;  %v6452_v6 = vadd.f32 %v6451_v16, %v12138_v57  ;;  %v6620_v53 = vpop.f32.mrf.mxu2  ;;  %v6792_v29 = vpop.f32.mrf.mxu0 }
 0x74e   : > { %v6961_v55 = vpop.f32.mrf.mxu1  ;;  %v6793_v54 = vadd.f32 %v6792_v29, %v13850_v39 }
 0x74f   : > { %v6621_v30 = vadd.f32 %v6620_v53, %v6452_v6 }
 0x750   : > { %v6962_v47 = vadd.f32 %v6961_v55, %v6793_v54 }
 0x751   : > { %v7092_v62 = vmax.f32 %v6621_v30, 0.0 }
 0x752   : > { %v7095_v57 = vmax.f32 %v6962_v47, 0.0 }
 0x753   : > { %v7167_v49 = vpack.c.bf16 %v7093_v32, %v7092_v62 }
 0x754   : > { %v6454_v13 = vpop.f32.mrf.mxu3 }
 0x755   : > { %7231 = vst [vmem:[%s10477_s24 + $0x7a8] sm:$0xff] %v7167_v49  ;;  %v6455_v37 = vadd.f32 %v6454_v13, %v13850_v39  ;;  %v6623_v20 = vpop.f32.mrf.mxu2  ;;  %v6794_v2 = vpop.f32.mrf.mxu0 }
 0x756   : > { %v6963_v23 = vpop.f32.mrf.mxu1  ;;  %v6795_v12 = vadd.f32 %v6794_v2, %v13851_v50 }
 0x757   : > { %v6624_v18 = vadd.f32 %v6623_v20, %v6455_v37 }
 0x758   : > { %v6964_v48 = vadd.f32 %v6963_v23, %v6795_v12  ;;  %v13855_v23 = vld [vmem:[#allocation95_spill] sm:$0xff] }
 0x759   : > { %v7094_v22 = vmax.f32 %v6624_v18, 0.0 }
 0x75a   : > { %v7097_v60 = vmax.f32 %v6964_v48, 0.0 }
 0x75b   : > { %v7168_v45 = vpack.c.bf16 %v7095_v57, %v7094_v22 }
 0x75c   : > { %v6456_v46 = vpop.f32.mrf.mxu3 }
 0x75d   : > { %7232 = vst [vmem:[%s10477_s24 + $0x7b0] sm:$0xff] %v7168_v45  ;;  %v6457_v24 = vadd.f32 %v6456_v46, %v13851_v50  ;;  %v6625_v28 = vpop.f32.mrf.mxu2  ;;  %v6797_v8 = vpop.f32.mrf.mxu0 }
 0x75e   : > { %v6966_v26 = vpop.f32.mrf.mxu1  ;;  %v6798_v59 = vadd.f32 %v6797_v8, %v13852_v61 }
 0x75f   : > { %v6626_v19 = vadd.f32 %v6625_v28, %v6457_v24 }
 0x760   : > { %v6967_v5 = vadd.f32 %v6966_v26, %v6798_v59 }
 0x761   : > { %v7096_v9 = vmax.f32 %v6626_v19, 0.0  ;;  %v13856_v19 = vld [vmem:[#allocation94_spill] sm:$0xff] }
 0x762   : > { %v7099_v44 = vmax.f32 %v6967_v5, 0.0 }
 0x763   : > { %v7169_v7 = vpack.c.bf16 %v7097_v60, %v7096_v9 }
 0x764   : > { %v6459_v17 = vpop.f32.mrf.mxu3 }
 0x765   : > { %7233 = vst [vmem:[%s10477_s24 + $0x7b8] sm:$0xff] %v7169_v7  ;;  %v6460_v35 = vadd.f32 %v6459_v17, %v13852_v61  ;;  %v6628_v58 = vpop.f32.mrf.mxu2  ;;  %v6799_v41 = vpop.f32.mrf.mxu0 }
 0x766   : > { %v6968_v4 = vpop.f32.mrf.mxu1  ;;  %v6800_v52 = vadd.f32 %v6799_v41, %v13853_v34 }
 0x767   : > { %v6629_v63 = vadd.f32 %v6628_v58, %v6460_v35 }
 0x768   : > { %v6969_v25 = vadd.f32 %v6968_v4, %v6800_v52 }
 0x769   : > { %v7098_v56 = vmax.f32 %v6629_v63, 0.0 }
 0x76a   : > { %v7101_v42 = vmax.f32 %v6969_v25, 0.0 }
 0x76b   : > { %v7170_v38 = vpack.c.bf16 %v7099_v44, %v7098_v56 }
 0x76c   : > { %v6461_v14 = vpop.f32.mrf.mxu3 }
 0x76d   : > { %7234 = vst [vmem:[%s10477_s24 + $0x7c0] sm:$0xff] %v7170_v38  ;;  %v6462_v3 = vadd.f32 %v6461_v14, %v13853_v34  ;;  %v6630_v15 = vpop.f32.mrf.mxu2  ;;  %v6802_v33 = vpop.f32.mrf.mxu0 }
 0x76e   : > { %v6971_v1 = vpop.f32.mrf.mxu1  ;;  %v6803_v0 = vadd.f32 %v6802_v33, %v13854_v27 }
 0x76f   : > { %v6631_v21 = vadd.f32 %v6630_v15, %v6462_v3  ;;  %v13857_v15 = vld [vmem:[#allocation96_spill] sm:$0xff] }
 0x770   : > { %v6972_v11 = vadd.f32 %v6971_v1, %v6803_v0 }
 0x771   : > { %v7100_v40 = vmax.f32 %v6631_v21, 0.0 }
 0x772   : > { %v7103_v30 = vmax.f32 %v6972_v11, 0.0 }
 0x773   : > { %v7171_v43 = vpack.c.bf16 %v7101_v42, %v7100_v40 }
 0x774   : > { %v6464_v51 = vpop.f32.mrf.mxu3 }
 0x775   : > { %7235 = vst [vmem:[%s10477_s24 + $0x7c8] sm:$0xff] %v7171_v43  ;;  %v6465_v16 = vadd.f32 %v6464_v51, %v13854_v27  ;;  %v6633_v31 = vpop.f32.mrf.mxu2  ;;  %v6804_v6 = vpop.f32.mrf.mxu0 }
 0x776   : > { %v6973_v29 = vpop.f32.mrf.mxu1  ;;  %v6805_v32 = vadd.f32 %v6804_v6, %v12180_v10 }
 0x777   : > { %v6634_v53 = vadd.f32 %v6633_v31, %v6465_v16 }
 0x778   : > { %v6974_v54 = vadd.f32 %v6973_v29, %v6805_v32 }
 0x779   : > { %v7102_v55 = vmax.f32 %v6634_v53, 0.0 }
 0x77a   : > { %v7105_v2 = vmax.f32 %v6974_v54, 0.0 }
 0x77b   : > { %v7172_v62 = vpack.c.bf16 %v7103_v30, %v7102_v55 }
 0x77c   : > { %v6466_v39 = vpop.f32.mrf.mxu3 }
 0x77d   : > { %7236 = vst [vmem:[%s10477_s24 + $0x7d0] sm:$0xff] %v7172_v62  ;;  %v6467_v49 = vadd.f32 %v6466_v39, %v12180_v10  ;;  %v6635_v13 = vpop.f32.mrf.mxu2  ;;  %v6807_v47 = vpop.f32.mrf.mxu0 }
 0x77e   : > { %v6976_v20 = vpop.f32.mrf.mxu1  ;;  %v6808_v57 = vadd.f32 %v6807_v47, %v13855_v23 }
 0x77f   : > { %v6636_v37 = vadd.f32 %v6635_v13, %v6467_v49 }
 0x780   : > { %v6977_v12 = vadd.f32 %v6976_v20, %v6808_v57 }
 0x781   : > { %v7104_v18 = vmax.f32 %v6636_v37, 0.0 }
 0x782   : > { %v7107_v10 = vmax.f32 %v6977_v12, 0.0 }
 0x783   : > { %v7173_v22 = vpack.c.bf16 %v7105_v2, %v7104_v18 }
 0x784   : > { %v6469_v50 = vpop.f32.mrf.mxu3 }
 0x785   : > { %7237 = vst [vmem:[%s10477_s24 + $0x7d8] sm:$0xff] %v7173_v22  ;;  %v6470_v45 = vadd.f32 %v6469_v50, %v13855_v23  ;;  %v6638_v46 = vpop.f32.mrf.mxu2  ;;  %v6809_v48 = vpop.f32.mrf.mxu0 }
 0x786   : > { %v6978_v28 = vpop.f32.mrf.mxu1  ;;  %v6810_v26 = vadd.f32 %v6809_v48, %v13856_v19 }
 0x787   : > { %v6639_v24 = vadd.f32 %v6638_v46, %v6470_v45 }
 0x788   : > { %v6979_v61 = vadd.f32 %v6978_v28, %v6810_v26 }
 0x789   : > { %v7106_v8 = vmax.f32 %v6639_v24, 0.0 }
 0x78a   : > { %v7109_v35 = vmax.f32 %v6979_v61, 0.0 }
 0x78b   : > { %v7174_v60 = vpack.c.bf16 %v7107_v10, %v7106_v8 }
 0x78c   : > { %v6471_v9 = vpop.f32.mrf.mxu3 }
 0x78d   : > { %7238 = vst [vmem:[%s10477_s24 + $0x7e0] sm:$0xff] %v7174_v60  ;;  %v6472_v59 = vadd.f32 %v6471_v9, %v13856_v19  ;;  %v6640_v7 = vpop.f32.mrf.mxu2  ;;  %v6812_v17 = vpop.f32.mrf.mxu0 }
 0x78e   : > { %v6813_v41 = vadd.f32 %v6812_v17, %v12196_v36  ;;  %v6981_v63 = vpop.f32.mrf.mxu1 }
 0x78f   : > { %v6641_v5 = vadd.f32 %v6640_v7, %v6472_v59 }
 0x790   : > { %v6982_v56 = vadd.f32 %v6981_v63, %v6813_v41 }
 0x791   : > { %v7108_v58 = vmax.f32 %v6641_v5, 0.0 }
 0x792   : > { %v7111_v25 = vmax.f32 %v6982_v56, 0.0 }
 0x793   : > { %v7175_v4 = vpack.c.bf16 %v7109_v35, %v7108_v58 }
 0x794   : > { %v6474_v44 = vpop.f32.mrf.mxu3 }
 0x795   : > { %7239 = vst [vmem:[%s10477_s24 + $0x7e8] sm:$0xff] %v7175_v4  ;;  %v6475_v34 = vadd.f32 %v6474_v44, %v12196_v36  ;;  %v6643_v52 = vpop.f32.mrf.mxu2  ;;  %v6814_v38 = vpop.f32.mrf.mxu0 }
 0x796   : > { %v6815_v33 = vadd.f32 %v6814_v38, %v13857_v15  ;;  %v6983_v1 = vpop.f32.mrf.mxu1 }
 0x797   : > { %v6644_v14 = vadd.f32 %v6643_v52, %v6475_v34 }
 0x798   : > { %v6984_v36 = vadd.f32 %v6983_v1, %v6815_v33 }
 0x799   : > { %v7110_v3 = vmax.f32 %v6644_v14, 0.0 }
 0x79a   : > { %v7113_v43 = vmax.f32 %v6984_v36, 0.0 }
 0x79b   : > { %v7176_v21 = vpack.c.bf16 %v7111_v25, %v7110_v3 }
 0x79c   : > { %v6476_v42 = vpop.f32.mrf.mxu3 }
 0x79d   : > { %7240 = vst [vmem:[%s10477_s24 + $0x7f0] sm:$0xff] %v7176_v21  ;;  %v6477_v40 = vadd.f32 %v6476_v42, %v13857_v15  ;;  %v6645_v27 = vpop.f32.mrf.mxu2 }
 0x79f   : > { %v6646_v0 = vadd.f32 %v6645_v27, %v6477_v40 }
 0x7a1   : > { %v7112_v51 = vmax.f32 %v6646_v0, 0.0 }
 0x7a3   : > { %v7177_v11 = vpack.c.bf16 %v7113_v43, %v7112_v51 }
 0x7a5   : > { %7241 = vst [vmem:[%s10477_s24 + $0x7f8] sm:$0xff] %v7177_v11 }
 0x7a6   : > { %10129 = shalt.err (!%p10126_p5)
}
 0x7a7   : > { %s10184_s11 = smov 128   ;;  %s10185_s24 = smov 8  }
 0x7a8   : > { %10040 = dma.vmem_to_hbm [thread:$0]  (%p10256_p4), %s8090_s21, 40960, %s8092_s13, %s8075_s14, %s10184_s11, %s10184_s11, %s10185_s24  }
 0x7a9 PF: > { %p10046_p6 = scmp.ge.s32.totalorder %s10180_s23, 2  ;;  %s8106_s8 = sand.u32 1, %s10160_s18  }
 0x7aa   : > { %s8107_s9 = scalar_lea.sflag [#allocation3], %s8106_s8 }
 0x7ab   : > { %p10043_p7 = pnand %p10046_p6, %p10263_p8 }
 0x7ad   : > { %p10044_p9 = pneg %p10043_p7 }
 0x7af   : > { %10155 = dma.done.wait (%p10044_p9), %s8107_s9, 40960  }
 0x7b0   : > { %10157 = vsyncadd (%p10044_p9), %s8107_s9, 4294926336  ;;  %s18_s23 = sadd.s32 1, %s10180_s23   ;;  %s13858_s18 = smov %s10164_s19 }
 0x7b1   : > { %p15_p10 = scmp.ge.s32.totalorder %s18_s23, 4   ;;  %s13859_s19 = smov %s10168_s20 }
 0x7b2   : > { %s13860_s20 = smov %s10269_s6  ;;  %s13861_s21 = smov %s10176_s22 }
 0x7b3   : > { %s13862_s22 = smov %s13864_s26  ;;  %17 = sbr.rel (!%p15_p10) target bundleno = 4 (0x4), region = 85 }
 0x7b8   :  { %8113 = vsyncpa [#allocation3], 1 }
 0x7b9   :  { %8115 = vsyncpa [#allocation3 + $0x1], 1 }

</bundles_post_ra>
